<compile_context>
chip_gen: v7x
topology: tpu7x:2x2x1
jax: 0.10.0
libtpu: 0.0.40
codegen_flags: <defaults>
</compile_context>

<pallas_src>
from typing import NamedTuple

import jax
import jax.numpy as jnp
from jax.experimental import pallas as pl
from jax.experimental.pallas import tpu as pltpu

# ----------------------------------------------------------------------------
# Model constants (from the PyTorch module)
# ----------------------------------------------------------------------------
NUM_ATOM_TYPES = 13
NUM_RBF = 16
NS, NV = 100, 16        # _DEFAULT_V_DIM
ES, EV = 32, 1          # _DEFAULT_E_DIM
OUT_DIM = 128           # out_dim (torch default 512; kept at 128 for the demo)

# lane-dense padded scalar widths; pad region is exact zeros.
NS_P = 128              # 100 -> 128
FF_REAL = 4 * NS        # 400
FF_P = 512              # 400 -> 512
H1 = 2 * NV + EV        # 33, vector hidden of the first message GVP
SLAB_W = NS_P + 3 * NV  # 176: node/message slab = [s(128) | vx(16) | vy(16) | vz(16)]

ROW_TILE = 1024         # max row tile (multiple of 8)
SMALL_ROWS = 256        # below this, run a single padded block
WEIGHT_DTYPE = jnp.bfloat16   # matmul weights (set to jnp.float32 for parity tests)
ACT_DTYPE = jnp.bfloat16      # inter-kernel activations (set to jnp.float32 for parity)

_CPARAMS = pltpu.CompilerParams(dimension_semantics=("parallel",),
                                vmem_limit_bytes=32 * 1024 * 1024)


class GVPCfg(NamedTuple):
    si: int             # padded scalar in-width
    vi: int
    so: int             # padded scalar out-width
    vo: int
    relu: bool          # scalar activation (vector activation is always None here)
    si_r: int = 0       # real widths (0 -> same as padded)
    so_r: int = 0

    @property
    def h(self):
        return max(self.vi, self.vo) if self.vi else 0

    @property
    def sir(self):
        return self.si_r or self.si

    @property
    def sor(self):
        return self.so_r or self.so


# GVP configs appearing in CDDModel (all vector_gate=True, vector_act=None)
CFG_WV = GVPCfg(NUM_ATOM_TYPES, 0, SLAB_W, 0, False, so_r=NS)      # Linear(13->100); v lanes = 0
CFG_WE = GVPCfg(NUM_RBF, EV, ES, EV, False)                        # (16,1)->(32,1)
CONV_REST_CFGS = [GVPCfg(NS_P, NV, NS_P, NV, True, si_r=NS, so_r=NS),
                  GVPCfg(NS_P, NV, NS_P, NV, False, si_r=NS, so_r=NS)]
FF_CFGS = [GVPCfg(NS_P, NV, FF_P, 2 * NV, True, si_r=NS, so_r=FF_REAL),
           GVPCfg(FF_P, 2 * NV, NS_P, NV, False, si_r=FF_REAL, so_r=NS)]
CFG_WOUT = GVPCfg(NS_P, NV, OUT_DIM, 0, True, si_r=NS)             # (100,16)->(out_dim,0), ReLU

# first conv GVP: (2*ns+es, 2*nv+ev) -> (ns, nv), weights pre-split by input block
# so the kernel consumes s_j / s_E / s_i and v_j / v_E / v_i without an XLA concat.
CONV0_DEFS = [
    ('wh_j', (NV, H1), (NV, H1)),
    ('wh_e', (EV, H1), (EV, H1)),
    ('wh_i', (NV, H1), (NV, H1)),
    ('ws_j', (NS, NS), (NS_P, NS_P)),
    ('ws_e', (ES, NS), (ES, NS_P)),
    ('ws_i', (NS, NS), (NS_P, NS_P)),
    ('ws_v', (H1, NS), (H1, NS_P)),
    ('ws_b', (1, NS), (1, NS_P)),
    ('wv', (H1, NV), (H1, NV)),
    ('wsv', (NS, NV), (NS_P, NV)),
    ('wsv_b', (1, NV), (1, NV)),
]


def gvp_param_defs(cfg):
    """(name, real_shape, padded_shape).  ws is pre-split into the scalar part
    (ws_s) and the vector-norm part (ws_v): s@ws_s + vn@ws_v == concat([s,vn])@ws."""
    if cfg.vi:
        h = cfg.h
        defs = [('wh', (cfg.vi, h), (cfg.vi, h)),
                ('ws_s', (cfg.sir, cfg.sor), (cfg.si, cfg.so)),
                ('ws_v', (h, cfg.sor), (h, cfg.so)),
                ('ws_b', (1, cfg.sor), (1, cfg.so))]
        if cfg.vo:
            defs += [('wv', (h, cfg.vo), (h, cfg.vo)),
                     ('wsv', (cfg.sor, cfg.vo), (cfg.so, cfg.vo)),
                     ('wsv_b', (1, cfg.vo), (1, cfg.vo))]
    else:
        defs = [('ws', (cfg.sir, cfg.sor), (cfg.si, cfg.so)),
                ('ws_b', (1, cfg.sor), (1, cfg.so))]
    return defs


# ----------------------------------------------------------------------------
# In-kernel math (pure jnp on loaded VMEM values)
# ----------------------------------------------------------------------------
def _dot(a, w):
    # operands in the (pre-cast) weight dtype, f32 accumulation on the MXU
    return jnp.dot(a.astype(w.dtype), w, preferred_element_type=jnp.float32)


def _mm(a, w):
    """a @ w; K==1 contractions run on the VPU as an f32 broadcast outer product."""
    if a.shape[-1] == 1:
        return a.astype(jnp.float32) * w.astype(jnp.float32)
    return _dot(a, w)


def _cat3(v):                      # list of 3 [m, c] -> [3m, c]  (sublane concat)
    return jnp.concatenate(v, axis=0)


def _split3(x, m):                 # [3m, c] -> list of 3 [m, c]  (static row slices)
    return [x[0:m], x[m:2 * m], x[2 * m:3 * m]]


def _unpack_v(x, nv, base=0):
    # xyz-lane-packed [m, base + 3*nv] -> list of 3 [m, nv] planes
    return [x[:, base + c * nv: base + (c + 1) * nv] for c in range(3)]


def _pack_v(v):                    # list of 3 [m, nv] -> [m, 3*nv]
    return jnp.concatenate(v, axis=-1)


def _ln_scalar(s, g, b, n_real, eps=1e-5):
    """Two-pass LayerNorm over the first n_real lanes (padded lanes are zero)."""
    width = s.shape[-1]
    inv_n = 1.0 / float(n_real)
    mu = jnp.sum(s, axis=-1, keepdims=True) * inv_n
    d = s - mu
    if width != n_real:
        mask = (jax.lax.broadcasted_iota(jnp.int32, (1, width), 1)
                < n_real).astype(s.dtype)
        d = d * mask
    var = jnp.sum(d * d, axis=-1, keepdims=True) * inv_n
    return d * jax.lax.rsqrt(var + eps) * g + b


def _ln_vec(v, eps=1e-8):
    # v: list of 3 [m, nv] xyz planes (vector channels are not padded)
    sq = jnp.maximum(v[0] * v[0] + v[1] * v[1] + v[2] * v[2], eps)   # [m, nv]
    inv = jax.lax.rsqrt(jnp.mean(sq, axis=-1, keepdims=True))        # [m, 1]
    return [p * inv for p in v]


def _gvp_apply(s, v, W, cfg):
    # GVP with vector gating, vector_act = None (as in CDDModel).
    tm = s.shape[0]
    if cfg.vi:
        vh_f = _mm(_cat3(v), W['wh'])                                # [3tm, h]
        vh = _split3(vh_f, tm)
        vn = jnp.sqrt(jnp.maximum(vh[0] * vh[0] + vh[1] * vh[1] + vh[2] * vh[2],
                                  1e-8))                             # [tm, h]
        s = _dot(s, W['ws_s']) + _mm(vn, W['ws_v']) + W['ws_b']
        if cfg.vo:
            gate = jax.nn.sigmoid(_dot(s, W['wsv']) + W['wsv_b'])    # pre-ReLU s
            wv_f = _mm(vh_f, W['wv'])                                # [3tm, vo]
            v = [p * gate for p in _split3(wv_f, tm)]
        else:
            v = None
    else:
        s = _dot(s, W['ws']) + W['ws_b']
        v = None
    if cfg.relu:
        s = jax.nn.relu(s)
    return s, v


# ----------------------------------------------------------------------------
# BlockSpec helpers
# ----------------------------------------------------------------------------
def _row_spec(tile, width):
    return pl.BlockSpec((tile, width), lambda i: (i, 0))


def _const_spec(shape):
    nd = len(shape)
    return pl.BlockSpec(shape, lambda i: (0,) * nd)


def _round_up(x, m):
    return -(-x // m) * m


def pad_rows(m, target=ROW_TILE):
    """Row padding + tile size.  Tiny inputs run as one padded block; larger
    inputs get >=2 tiles (keeps both v7x TensorCores busy), capped at `target`."""
    if m <= SMALL_ROWS:
        mp = _round_up(m, 8)
        return mp, mp
    tile = min(target, _round_up(-(-m // 2), 8))
    mp = _round_up(m, tile)
    return mp, tile


# ----------------------------------------------------------------------------
# Pallas kernels
# ----------------------------------------------------------------------------
def make_chain_kernel(cfgs, ln_mode, ln_nreal, out_dtype):
    """[optional LayerNorm] -> GVP -> ... on one row tile (used for W_v / W_e)."""
    has_v_in = cfgs[0].vi > 0
    vo_last = cfgs[-1].vo
    defs_per = [gvp_param_defs(c) for c in cfgs]

    def kernel(*refs):
        it = iter(refs)
        s = next(it)[...].astype(jnp.float32)
        v = None
        if has_v_in:
            v = [p.astype(jnp.float32)
                 for p in _unpack_v(next(it)[...], cfgs[0].vi)]
        if ln_mode is not None:
            g = next(it)[...]
            b = next(it)[...]
            s = _ln_scalar(s, g, b, ln_nreal)
            if ln_mode == 'tuple':
                v = _ln_vec(v)
        for cfg, defs in zip(cfgs, defs_per):
            W = {name: next(it)[...] for name, _, _ in defs}
            s, v = _gvp_apply(s, v, W, cfg)
        next(it)[...] = s.astype(out_dtype)
        if vo_last:
            next(it)[...] = _pack_v(v).astype(out_dtype)

    return kernel


def make_conv_kernel(e_real):
    """GVPConv message function (3 GVPs) on one edge tile.  Inputs are the
    gathered node slabs + edge features (no XLA concat); the output is one
    lane-dense [tile, SLAB_W] message slab, padded edge rows zeroed."""
    rest_defs = [gvp_param_defs(c) for c in CONV_REST_CFGS]

    def kernel(xj_ref, se_ref, ve_ref, xi_ref, *rest):
        it = iter(rest)
        W0 = {name: next(it)[...] for name, _, _ in CONV0_DEFS}
        rest_W = [{name: next(it)[...] for name, _, _ in defs} for defs in rest_defs]
        msg_ref = next(it)

        xj = xj_ref[...]
        xi = xi_ref[...]
        se = se_ref[...]
        tm = xj.shape[0]
        sj = xj[:, :NS_P]
        si = xi[:, :NS_P]
        vj_f = _cat3(_unpack_v(xj, NV, NS_P))                        # [3tm, NV]
        vi_f = _cat3(_unpack_v(xi, NV, NS_P))
        ve_f = _cat3(_unpack_v(ve_ref[...], EV)).astype(jnp.float32)  # [3tm, 1]

        # first GVP with block-split weights (== concat + single matmul);
        # the K==1 edge-vector path runs on the VPU.
        vh_f = (_dot(vj_f, W0['wh_j']) + _dot(vi_f, W0['wh_i'])
                + ve_f * W0['wh_e'].astype(jnp.float32))
        vh = _split3(vh_f, tm)
        vn = jnp.sqrt(jnp.maximum(vh[0] * vh[0] + vh[1] * vh[1] + vh[2] * vh[2], 1e-8))
        s = (_dot(sj, W0['ws_j']) + _dot(se, W0['ws_e']) + _dot(si, W0['ws_i'])
             + _dot(vn, W0['ws_v']) + W0['ws_b'])
        gate = jax.nn.sigmoid(_dot(s, W0['wsv']) + W0['wsv_b'])
        wv_f = _dot(vh_f, W0['wv'])
        v = [p * gate for p in _split3(wv_f, tm)]
        s = jax.nn.relu(s)

        # remaining message GVPs
        for cfg, W in zip(CONV_REST_CFGS, rest_W):
            s, v = _gvp_apply(s, v, W, cfg)

        # zero messages from padded edge rows (so the scatter stays exact)
        row = (pl.program_id(0) * tm
               + jax.lax.broadcasted_iota(jnp.int32, (tm, 1), 0))
        valid = (row < e_real).astype(jnp.float32)                   # [tm, 1]
        msg_ref[...] = jnp.concatenate([s] + v, axis=-1) * valid

    return kernel


def make_node_kernel(with_wout):
    """Fused per-layer node update:  x = norm0(x + dh);  x = norm1(x + ff(x));
    for the last layer the W_out chain (LN + GVP -> out_dim, ReLU) is fused in."""
    ff_defs = [gvp_param_defs(c) for c in FF_CFGS]
    wout_defs = gvp_param_defs(CFG_WOUT)

    def kernel(x_ref, dh_ref, g0_ref, b0_ref, *rest):
        it = iter(rest)
        ff_W = [{name: next(it)[...] for name, _, _ in defs} for defs in ff_defs]
        g1 = next(it)[...]
        b1 = next(it)[...]
        if with_wout:
            gw = next(it)[...]
            bw = next(it)[...]
            wout_W = {name: next(it)[...] for name, _, _ in wout_defs}
        out_ref = next(it)

        x = x_ref[...]
        dh = dh_ref[...]
        # x = norm0(x + dh)   (dropout = identity in eval mode)
        s = _ln_scalar(x[:, :NS_P].astype(jnp.float32) + dh[:, :NS_P],
                       g0_ref[...], b0_ref[...], NS)
        v = _ln_vec([x[:, NS_P + c * NV: NS_P + (c + 1) * NV].astype(jnp.float32)
                     + dh[:, NS_P + c * NV: NS_P + (c + 1) * NV] for c in range(3)])

        # feed-forward
        fs, fv = s, v
        for cfg, W in zip(FF_CFGS, ff_W):
            fs, fv = _gvp_apply(fs, fv, W, cfg)

        # x = norm1(x + ff(x))
        s = _ln_scalar(s + fs, g1, b1, NS)
        v = _ln_vec([v[c] + fv[c] for c in range(3)])

        if with_wout:
            # fused W_out: tuple LayerNorm + GVP (100,16)->(OUT_DIM,0) + ReLU
            s = _ln_scalar(s, gw, bw, NS)
            v = _ln_vec(v)
            s, _ = _gvp_apply(s, v, wout_W, CFG_WOUT)
            out_ref[...] = s                                          # f32
        else:
            out_ref[...] = jnp.concatenate([s] + v, axis=-1).astype(ACT_DTYPE)

    return kernel


# ----------------------------------------------------------------------------
# pallas_call wrappers (inputs are pre-padded on rows by the caller)
# ----------------------------------------------------------------------------
def chain_call(s, v_packed, ln_params, gvp_params_list, cfgs, ln_mode,
               ln_nreal, tile_m, out_dtype):
    Mp = s.shape[0]
    has_v_in = cfgs[0].vi > 0
    inputs = [s]
    in_specs = [_row_spec(tile_m, s.shape[1])]
    if has_v_in:
        inputs.append(v_packed)
        in_specs.append(_row_spec(tile_m, v_packed.shape[1]))
    if ln_mode is not None:
        for p in ln_params:
            inputs.append(p)
            in_specs.append(_const_spec(p.shape))
    for cfg, gp in zip(cfgs, gvp_params_list):
        for name, _, pshape in gvp_param_defs(cfg):
            inputs.append(gp[name])
            in_specs.append(_const_spec(pshape))

    so, vo = cfgs[-1].so, cfgs[-1].vo
    out_shape = [jax.ShapeDtypeStruct((Mp, so), out_dtype)]
    out_specs = [_row_spec(tile_m, so)]
    if vo:
        out_shape.append(jax.ShapeDtypeStruct((Mp, 3 * vo), out_dtype))
        out_specs.append(_row_spec(tile_m, 3 * vo))

    outs = pl.pallas_call(
        make_chain_kernel(cfgs, ln_mode, ln_nreal, out_dtype),
        grid=(Mp // tile_m,),
        in_specs=in_specs,
        out_specs=out_specs,
        out_shape=out_shape,
        compiler_params=_CPARAMS,
    )(*inputs)
    return (outs[0], outs[1]) if vo else (outs[0], None)


def conv_call(xj, s_E, v_E, xi, conv0, conv_rest, e_real, tile_m):
    Ep = xj.shape[0]
    inputs = [xj, s_E, v_E, xi]
    in_specs = [_row_spec(tile_m, SLAB_W), _row_spec(tile_m, ES),
                _row_spec(tile_m, 3 * EV), _row_spec(tile_m, SLAB_W)]
    for name, _, pshape in CONV0_DEFS:
        inputs.append(conv0[name])
        in_specs.append(_const_spec(pshape))
    for cfg, gp in zip(CONV_REST_CFGS, conv_rest):
        for name, _, pshape in gvp_param_defs(cfg):
            inputs.append(gp[name])
            in_specs.append(_const_spec(pshape))
    return pl.pallas_call(
        make_conv_kernel(e_real),
        grid=(Ep // tile_m,),
        in_specs=in_specs,
        out_specs=_row_spec(tile_m, SLAB_W),
        out_shape=jax.ShapeDtypeStruct((Ep, SLAB_W), jnp.float32),
        compiler_params=_CPARAMS,
    )(*inputs)


def node_update_call(x_slab, dh_slab, lp, wout, tile_m):
    Np_ = x_slab.shape[0]
    inputs = [x_slab, dh_slab, lp['norm0'][0], lp['norm0'][1]]
    in_specs = [_row_spec(tile_m, SLAB_W), _row_spec(tile_m, SLAB_W),
                _const_spec((1, NS_P)), _const_spec((1, NS_P))]
    for cfg, gp in zip(FF_CFGS, lp['ff']):
        for name, _, pshape in gvp_param_defs(cfg):
            inputs.append(gp[name])
            in_specs.append(_const_spec(pshape))
    inputs += [lp['norm1'][0], lp['norm1'][1]]
    in_specs += [_const_spec((1, NS_P)), _const_spec((1, NS_P))]
    if wout is not None:
        inputs += [wout['ln'][0], wout['ln'][1]]
        in_specs += [_const_spec((1, NS_P)), _const_spec((1, NS_P))]
        for name, _, pshape in gvp_param_defs(CFG_WOUT):
            inputs.append(wout['gvp'][name])
            in_specs.append(_const_spec(pshape))
        out_shape = jax.ShapeDtypeStruct((Np_, OUT_DIM), jnp.float32)
        out_specs = _row_spec(tile_m, OUT_DIM)
    else:
        out_shape = jax.ShapeDtypeStruct((Np_, SLAB_W), ACT_DTYPE)
        out_specs = _row_spec(tile_m, SLAB_W)
    return pl.pallas_call(
        make_node_kernel(wout is not None),
        grid=(Np_ // tile_m,),
        in_specs=in_specs,
        out_specs=out_specs,
        out_shape=out_shape,
        compiler_params=_CPARAMS,
    )(*inputs)


# ----------------------------------------------------------------------------
# Parameter init (deterministic, synthetic; zero-padded to lane-dense widths;
# matmul weights pre-cast to WEIGHT_DTYPE, biases / LN params kept in f32)
# ----------------------------------------------------------------------------
def init_params(base_key):
    counter = [0]

    def nk():
        counter[0] += 1
        return jax.random.fold_in(base_key, counter[0])

    def make_w(rshape, pshape, is_bias):
        scale = 0.01 if is_bias else 1.0 / (rshape[0] ** 0.5)
        w = jax.random.normal(nk(), rshape, jnp.float32) * scale
        w = jnp.pad(w, [(0, p - r) for r, p in zip(rshape, pshape)])
        return w if is_bias else w.astype(WEIGHT_DTYPE)

    def init_defs(defs):
        return {name: make_w(r, p, name.endswith('_b')) for name, r, p in defs}

    def init_gvp(cfg):
        return init_defs(gvp_param_defs(cfg))

    def ln(real, padded=None):
        d = padded or real
        g = jnp.pad(jnp.ones((1, real), jnp.float32), ((0, 0), (0, d - real)))
        b = jnp.zeros((1, d), jnp.float32)
        return (g, b)

    params = {
        'embed': jax.random.normal(nk(), (NUM_ATOM_TYPES, NUM_ATOM_TYPES), jnp.float32),
        'Wv': {'ln': ln(NUM_ATOM_TYPES), 'gvp': init_gvp(CFG_WV)},
        'We': {'ln': ln(NUM_RBF), 'gvp': init_gvp(CFG_WE)},
        'layers': [],
        'Wout': {'ln': ln(NS, NS_P), 'gvp': init_gvp(CFG_WOUT)},
    }
    for _ in range(5):
        params['layers'].append({
            'conv0': init_defs(CONV0_DEFS),
            'conv_rest': [init_gvp(c) for c in CONV_REST_CFGS],
            'norm0': ln(NS, NS_P),
            'ff': [init_gvp(c) for c in FF_CFGS],
            'norm1': ln(NS, NS_P),
        })
    return params


# ----------------------------------------------------------------------------
# Full forward pass (CDDModel.forward: scatter_mean=True, attn=False,
# chain_ind=False, no_pool=False, eval mode)
# ----------------------------------------------------------------------------
def cdd_forward(params, atoms, edge_s, edge_v, edge_index, batch_id, num_graphs):
    N = atoms.shape[0]
    E = edge_s.shape[0]
    Np, node_tile = pad_rows(N)     # pad rows ONCE per forward
    Ep, edge_tile = pad_rows(E)

    # embedding lookup (glue: data-dependent gather)
    h_s = jnp.pad(params['embed'][atoms], ((0, Np - N), (0, 0)))   # [Np, 13]

    # W_v: scalar LayerNorm + GVP((13,0)->(100,16)); emits the packed node slab
    # directly (s in lanes 0..127, vector lanes 128..175 are zero).
    X, _ = chain_call(h_s, None, params['Wv']['ln'], [params['Wv']['gvp']],
                      [CFG_WV], 'scalar', NUM_ATOM_TYPES, node_tile, ACT_DTYPE)

    # W_e: tuple LayerNorm + GVP((16,1)->(32,1)); edge vectors xyz-lane-packed.
    es = jnp.pad(edge_s.astype(jnp.float32), ((0, Ep - E), (0, 0)))
    ev = jnp.pad(jnp.transpose(edge_v.astype(jnp.float32), (0, 2, 1)).reshape(E, 3 * EV),
                 ((0, Ep - E), (0, 0)))                            # [Ep, 3]
    s_E, v_E = chain_call(es, ev, params['We']['ln'], [params['We']['gvp']],
                          [CFG_WE], 'tuple', NUM_RBF, edge_tile, ACT_DTYPE)

    src_p = jnp.pad(edge_index[0], (0, Ep - E))   # j (source)
    dst_p = jnp.pad(edge_index[1], (0, Ep - E))   # i (target)
    deg = jnp.maximum(jax.ops.segment_sum(jnp.ones((E,), jnp.float32), edge_index[1],
                                          num_segments=Np), 1.0)

    # TODO(synk): gather node slabs inside the conv kernel (PrefetchScalarGridSpec +
    # manual DMA gather) instead of materializing X[src_p]/X[dst_p] in HBM each layer.
    n_layers = len(params['layers'])
    out_s = None
    for li, lp in enumerate(params['layers']):
        # --- GVPConv message passing (aggr="mean") ----------------------------
        Xj = X[src_p]                              # [Ep, SLAB_W] bf16 gather (glue)
        Xi = X[dst_p]
        msg = conv_call(Xj, s_E, v_E, Xi, lp['conv0'], lp['conv_rest'], E, edge_tile)
        # scatter-mean over target nodes (glue reduction); padded edges are zeroed
        dh = jax.ops.segment_sum(msg, dst_p, num_segments=Np) / deg[:, None]
        # --- fused node update (last layer also fuses W_out) ------------------
        if li == n_layers - 1:
            out_s = node_update_call(X, dh, lp, params['Wout'], node_tile)
        else:
            X = node_update_call(X, dh, lp, None, node_tile)

    out_s = out_s[:N]                                              # [N, OUT_DIM]

    # scatter_mean pooling over graphs (glue reduction)
    gsum = jax.ops.segment_sum(out_s, batch_id, num_segments=num_graphs)
    gcnt = jnp.maximum(jax.ops.segment_sum(jnp.ones((N,), jnp.float32), batch_id,
                                           num_segments=num_graphs), 1.0)
    return gsum / gcnt[:, None]


# ----------------------------------------------------------------------------
if __name__ == "__main__":
    key = jax.random.PRNGKey(0)
    N, E, B = 16, 48, 2
    ks = jax.random.split(key, 5)
    atoms = jax.random.randint(ks[0], (N,), 0, NUM_ATOM_TYPES)
    edge_s = jax.random.normal(ks[1], (E, NUM_RBF), jnp.float32)
    edge_v = jax.random.normal(ks[2], (E, 1, 3), jnp.float32)
    edge_index = jax.random.randint(ks[3], (2, E), 0, N)
    batch_id = jnp.concatenate([jnp.zeros((N // 2,), jnp.int32),
                                jnp.ones((N - N // 2,), jnp.int32)])

    params = init_params(jax.random.PRNGKey(42))

    fwd = jax.jit(cdd_forward, static_argnums=(6,))
    out = jax.block_until_ready(fwd(params, atoms, edge_s, edge_v, edge_index,
                                    batch_id, B))

    assert out.shape == (B, OUT_DIM), out.shape
    assert bool(jnp.all(jnp.isfinite(out)))
    print("KERNEL_OK")
</pallas_src>

<mosaic_0001>
module attributes {stable_mosaic.version = 11 : i64} {
  func.func private @main(%arg0: i32) attributes {dimension_semantics = [#tpu.dimension_semantics<core_parallel>], iteration_bounds = array<i64: 2>, tpu.core_type = #tpu.core_type<sc_scalar_subcore>, window_params = []} {
    return
  }
}

module attributes {stable_mosaic.version = 11 : i64} {
  func.func private @main(%arg0: i32) attributes {dimension_semantics = [#tpu.dimension_semantics<core_parallel>], iteration_bounds = array<i64: 2>, tpu.core_type = #tpu.core_type<sc_scalar_subcore>, window_params = []} {
    return
  }
}

module attributes {stable_mosaic.version = 11 : i64} {
  func.func @kernel(%arg0: i32, %arg1: memref<16x13xf32, #tpu.memory_space<vmem>>, %arg2: memref<1x13xf32, #tpu.memory_space<vmem>>, %arg3: memref<1x13xf32, #tpu.memory_space<vmem>>, %arg4: memref<13x176xbf16, #tpu.memory_space<vmem>>, %arg5: memref<1x176xf32, #tpu.memory_space<vmem>>, %arg6: memref<16x176xbf16, #tpu.memory_space<vmem>>) attributes {dimension_semantics = [#tpu.dimension_semantics<parallel>], iteration_bounds = array<i64: 1>, scalar_prefetch = 0 : i64, scratch_operands = 0 : i64, tpu.core_type = #tpu.core_type<tc>, window_params = [{transform_indices = @transform_0, window_bounds = array<i64: 16, 13>}, {pipeline_mode = #tpu.pipeline_mode<synchronous>, transform_indices = @transform_1, window_bounds = array<i64: 1, 13>}, {pipeline_mode = #tpu.pipeline_mode<synchronous>, transform_indices = @transform_2, window_bounds = array<i64: 1, 13>}, {pipeline_mode = #tpu.pipeline_mode<synchronous>, transform_indices = @transform_3, window_bounds = array<i64: 13, 176>}, {pipeline_mode = #tpu.pipeline_mode<synchronous>, transform_indices = @transform_4, window_bounds = array<i64: 1, 176>}, {transform_indices = @transform_5, window_bounds = array<i64: 16, 176>}]} {
    %c0 = arith.constant 0 : index
    %c0_0 = arith.constant 0 : index
    %0 = vector.load %arg1[%c0, %c0_0] : memref<16x13xf32, #tpu.memory_space<vmem>>, vector<16x13xf32>
    %c0_1 = arith.constant 0 : index
    %c0_2 = arith.constant 0 : index
    %1 = vector.load %arg2[%c0_1, %c0_2] : memref<1x13xf32, #tpu.memory_space<vmem>>, vector<1x13xf32>
    %c0_3 = arith.constant 0 : index
    %c0_4 = arith.constant 0 : index
    %2 = vector.load %arg3[%c0_3, %c0_4] : memref<1x13xf32, #tpu.memory_space<vmem>>, vector<1x13xf32>
    %cst = arith.constant dense<0.000000e+00> : vector<16xf32>
    %3 = vector.multi_reduction <add>, %0, %cst [1] : vector<16x13xf32> to vector<16xf32>
    %4 = vector.shape_cast %3 : vector<16xf32> to vector<16x1xf32>
    %cst_5 = arith.constant 0.0769230798 : f32
    %5 = vector.broadcast %cst_5 : f32 to vector<16x1xf32>
    %6 = arith.mulf %4, %5 : vector<16x1xf32>
    %7 = vector.broadcast %6 : vector<16x1xf32> to vector<16x13xf32>
    %8 = arith.subf %0, %7 : vector<16x13xf32>
    %9 = arith.mulf %8, %8 : vector<16x13xf32>
    %cst_6 = arith.constant dense<0.000000e+00> : vector<16xf32>
    %10 = vector.multi_reduction <add>, %9, %cst_6 [1] : vector<16x13xf32> to vector<16xf32>
    %11 = vector.shape_cast %10 : vector<16xf32> to vector<16x1xf32>
    %cst_7 = arith.constant 0.0769230798 : f32
    %12 = vector.broadcast %cst_7 : f32 to vector<16x1xf32>
    %13 = arith.mulf %11, %12 : vector<16x1xf32>
    %cst_8 = arith.constant 9.99999974E-6 : f32
    %14 = vector.broadcast %cst_8 : f32 to vector<16x1xf32>
    %15 = arith.addf %13, %14 : vector<16x1xf32>
    %16 = math.rsqrt %15 : vector<16x1xf32>
    %17 = vector.broadcast %16 : vector<16x1xf32> to vector<16x13xf32>
    %18 = arith.mulf %8, %17 : vector<16x13xf32>
    %19 = vector.broadcast %1 : vector<1x13xf32> to vector<16x13xf32>
    %20 = arith.mulf %18, %19 : vector<16x13xf32>
    %21 = vector.broadcast %2 : vector<1x13xf32> to vector<16x13xf32>
    %22 = arith.addf %20, %21 : vector<16x13xf32>
    %c0_9 = arith.constant 0 : index
    %c0_10 = arith.constant 0 : index
    %23 = vector.load %arg4[%c0_9, %c0_10] : memref<13x176xbf16, #tpu.memory_space<vmem>>, vector<13x176xbf16>
    %c0_11 = arith.constant 0 : index
    %c0_12 = arith.constant 0 : index
    %24 = vector.load %arg5[%c0_11, %c0_12] : memref<1x176xf32, #tpu.memory_space<vmem>>, vector<1x176xf32>
    %25 = arith.truncf %22 : vector<16x13xf32> to vector<16x13xbf16>
    %cst_13 = arith.constant dense<0.000000e+00> : vector<16x176xf32>
    %26 = tpu.matmul %25, %23, %cst_13 {dimension_numbers = #tpu.dot_dimension_numbers<[1], [0], [0], [1], [0, 0, 1, 1], [], []>} : vector<16x13xbf16>, vector<13x176xbf16>, vector<16x176xf32> -> vector<16x176xf32>
    %27 = vector.broadcast %24 : vector<1x176xf32> to vector<16x176xf32>
    %28 = arith.addf %26, %27 : vector<16x176xf32>
    %29 = arith.truncf %28 : vector<16x176xf32> to vector<16x176xbf16>
    %c0_14 = arith.constant 0 : index
    %c0_15 = arith.constant 0 : index
    %30 = vector.load %arg6[%c0_14, %c0_15] : memref<16x176xbf16, #tpu.memory_space<vmem>>, vector<16x176xbf16>
    tpu.vector_store %arg6[%c0_14, %c0_15], %29 {strides = array<i32>} : memref<16x176xbf16, #tpu.memory_space<vmem>>, vector<16x176xbf16>,
    return
  }
  func.func @transform_0(%arg0: i32) -> (i32, i32) {
    %c0_i32 = arith.constant 0 : i32
    %c0_i32_0 = arith.constant 0 : i32
    return %arg0, %c0_i32 : i32, i32
  }
  func.func @transform_1(%arg0: i32) -> (i32, i32) {
    %c0_i32 = arith.constant 0 : i32
    %c0_i32_0 = arith.constant 0 : i32
    %c0_i32_1 = arith.constant 0 : i32
    return %c0_i32, %c0_i32_0 : i32, i32
  }
  func.func @transform_2(%arg0: i32) -> (i32, i32) {
    %c0_i32 = arith.constant 0 : i32
    %c0_i32_0 = arith.constant 0 : i32
    %c0_i32_1 = arith.constant 0 : i32
    return %c0_i32, %c0_i32_0 : i32, i32
  }
  func.func @transform_3(%arg0: i32) -> (i32, i32) {
    %c0_i32 = arith.constant 0 : i32
    %c0_i32_0 = arith.constant 0 : i32
    %c0_i32_1 = arith.constant 0 : i32
    return %c0_i32, %c0_i32_0 : i32, i32
  }
  func.func @transform_4(%arg0: i32) -> (i32, i32) {
    %c0_i32 = arith.constant 0 : i32
    %c0_i32_0 = arith.constant 0 : i32
    %c0_i32_1 = arith.constant 0 : i32
    return %c0_i32, %c0_i32_0 : i32, i32
  }
  func.func @transform_5(%arg0: i32) -> (i32, i32) {
    %c0_i32 = arith.constant 0 : i32
    %c0_i32_0 = arith.constant 0 : i32
    return %arg0, %c0_i32 : i32, i32
  }
}

module attributes {stable_mosaic.version = 11 : i64} {
  func.func @kernel(%arg0: i32, %arg1: memref<48x16xf32, #tpu.memory_space<vmem>>, %arg2: memref<48x3xf32, #tpu.memory_space<vmem>>, %arg3: memref<1x16xf32, #tpu.memory_space<vmem>>, %arg4: memref<1x16xf32, #tpu.memory_space<vmem>>, %arg5: memref<1x1xbf16, #tpu.memory_space<vmem>>, %arg6: memref<16x32xbf16, #tpu.memory_space<vmem>>, %arg7: memref<1x32xbf16, #tpu.memory_space<vmem>>, %arg8: memref<1x32xf32, #tpu.memory_space<vmem>>, %arg9: memref<1x1xbf16, #tpu.memory_space<vmem>>, %arg10: memref<32x1xbf16, #tpu.memory_space<vmem>>, %arg11: memref<1x1xf32, #tpu.memory_space<vmem>>, %arg12: memref<48x32xbf16, #tpu.memory_space<vmem>>, %arg13: memref<48x3xbf16, #tpu.memory_space<vmem>>) attributes {dimension_semantics = [#tpu.dimension_semantics<parallel>], iteration_bounds = array<i64: 1>, scalar_prefetch = 0 : i64, scratch_operands = 0 : i64, tpu.core_type = #tpu.core_type<tc>, window_params = [{transform_indices = @transform_0, window_bounds = array<i64: 48, 16>}, {transform_indices = @transform_1, window_bounds = array<i64: 48, 3>}, {pipeline_mode = #tpu.pipeline_mode<synchronous>, transform_indices = @transform_2, window_bounds = array<i64: 1, 16>}, {pipeline_mode = #tpu.pipeline_mode<synchronous>, transform_indices = @transform_3, window_bounds = array<i64: 1, 16>}, {pipeline_mode = #tpu.pipeline_mode<synchronous>, transform_indices = @transform_4, window_bounds = array<i64: 1, 1>}, {pipeline_mode = #tpu.pipeline_mode<synchronous>, transform_indices = @transform_5, window_bounds = array<i64: 16, 32>}, {pipeline_mode = #tpu.pipeline_mode<synchronous>, transform_indices = @transform_6, window_bounds = array<i64: 1, 32>}, {pipeline_mode = #tpu.pipeline_mode<synchronous>, transform_indices = @transform_7, window_bounds = array<i64: 1, 32>}, {pipeline_mode = #tpu.pipeline_mode<synchronous>, transform_indices = @transform_8, window_bounds = array<i64: 1, 1>}, {pipeline_mode = #tpu.pipeline_mode<synchronous>, transform_indices = @transform_9, window_bounds = array<i64: 32, 1>}, {pipeline_mode = #tpu.pipeline_mode<synchronous>, transform_indices = @transform_10, window_bounds = array<i64: 1, 1>}, {transform_indices = @transform_11, window_bounds = array<i64: 48, 32>}, {transform_indices = @transform_12, window_bounds = array<i64: 48, 3>}]} {
    %c0 = arith.constant 0 : index
    %c0_0 = arith.constant 0 : index
    %0 = vector.load %arg1[%c0, %c0_0] : memref<48x16xf32, #tpu.memory_space<vmem>>, vector<48x16xf32>
    %c0_1 = arith.constant 0 : index
    %c0_2 = arith.constant 0 : index
    %1 = vector.load %arg2[%c0_1, %c0_2] : memref<48x3xf32, #tpu.memory_space<vmem>>, vector<48x3xf32>
    %2 = vector.extract_strided_slice %1 {offsets = [0, 0], sizes = [48, 1], strides = [1, 1]} : vector<48x3xf32> to vector<48x1xf32>
    %3 = vector.extract_strided_slice %1 {offsets = [0, 1], sizes = [48, 1], strides = [1, 1]} : vector<48x3xf32> to vector<48x1xf32>
    %4 = vector.extract_strided_slice %1 {offsets = [0, 2], sizes = [48, 1], strides = [1, 1]} : vector<48x3xf32> to vector<48x1xf32>
    %c0_3 = arith.constant 0 : index
    %c0_4 = arith.constant 0 : index
    %5 = vector.load %arg3[%c0_3, %c0_4] : memref<1x16xf32, #tpu.memory_space<vmem>>, vector<1x16xf32>
    %c0_5 = arith.constant 0 : index
    %c0_6 = arith.constant 0 : index
    %6 = vector.load %arg4[%c0_5, %c0_6] : memref<1x16xf32, #tpu.memory_space<vmem>>, vector<1x16xf32>
    %cst = arith.constant dense<0.000000e+00> : vector<48xf32>
    %7 = vector.multi_reduction <add>, %0, %cst [1] : vector<48x16xf32> to vector<48xf32>
    %8 = vector.shape_cast %7 : vector<48xf32> to vector<48x1xf32>
    %cst_7 = arith.constant 6.250000e-02 : f32
    %9 = vector.broadcast %cst_7 : f32 to vector<48x1xf32>
    %10 = arith.mulf %8, %9 : vector<48x1xf32>
    %11 = vector.broadcast %10 : vector<48x1xf32> to vector<48x16xf32>
    %12 = arith.subf %0, %11 : vector<48x16xf32>
    %13 = arith.mulf %12, %12 : vector<48x16xf32>
    %cst_8 = arith.constant dense<0.000000e+00> : vector<48xf32>
    %14 = vector.multi_reduction <add>, %13, %cst_8 [1] : vector<48x16xf32> to vector<48xf32>
    %15 = vector.shape_cast %14 : vector<48xf32> to vector<48x1xf32>
    %cst_9 = arith.constant 6.250000e-02 : f32
    %16 = vector.broadcast %cst_9 : f32 to vector<48x1xf32>
    %17 = arith.mulf %15, %16 : vector<48x1xf32>
    %cst_10 = arith.constant 9.99999974E-6 : f32
    %18 = vector.broadcast %cst_10 : f32 to vector<48x1xf32>
    %19 = arith.addf %17, %18 : vector<48x1xf32>
    %20 = math.rsqrt %19 : vector<48x1xf32>
    %21 = vector.broadcast %20 : vector<48x1xf32> to vector<48x16xf32>
    %22 = arith.mulf %12, %21 : vector<48x16xf32>
    %23 = vector.broadcast %5 : vector<1x16xf32> to vector<48x16xf32>
    %24 = arith.mulf %22, %23 : vector<48x16xf32>
    %25 = vector.broadcast %6 : vector<1x16xf32> to vector<48x16xf32>
    %26 = arith.addf %24, %25 : vector<48x16xf32>
    %27 = arith.mulf %2, %2 : vector<48x1xf32>
    %28 = arith.mulf %3, %3 : vector<48x1xf32>
    %29 = arith.addf %27, %28 : vector<48x1xf32>
    %30 = arith.mulf %4, %4 : vector<48x1xf32>
    %31 = arith.addf %29, %30 : vector<48x1xf32>
    %cst_11 = arith.constant 9.99999993E-9 : f32
    %32 = vector.broadcast %cst_11 : f32 to vector<48x1xf32>
    %33 = arith.maximumf %31, %32 : vector<48x1xf32>
    %cst_12 = arith.constant dense<0.000000e+00> : vector<48xf32>
    %34 = vector.multi_reduction <add>, %33, %cst_12 [1] : vector<48x1xf32> to vector<48xf32>
    %35 = vector.shape_cast %34 : vector<48xf32> to vector<48x1xf32>
    %cst_13 = arith.constant 1.000000e+00 : f32
    %36 = vector.broadcast %cst_13 : f32 to vector<48x1xf32>
    %37 = arith.divf %35, %36 : vector<48x1xf32>
    %38 = math.rsqrt %37 : vector<48x1xf32>
    %39 = arith.mulf %2, %38 : vector<48x1xf32>
    %40 = arith.mulf %3, %38 : vector<48x1xf32>
    %41 = arith.mulf %4, %38 : vector<48x1xf32>
    %c0_14 = arith.constant 0 : index
    %c0_15 = arith.constant 0 : index
    %42 = vector.load %arg5[%c0_14, %c0_15] : memref<1x1xbf16, #tpu.memory_space<vmem>>, vector<1x1xbf16>
    %c0_16 = arith.constant 0 : index
    %c0_17 = arith.constant 0 : index
    %43 = vector.load %arg6[%c0_16, %c0_17] : memref<16x32xbf16, #tpu.memory_space<vmem>>, vector<16x32xbf16>
    %c0_18 = arith.constant 0 : index
    %c0_19 = arith.constant 0 : index
    %44 = vector.load %arg7[%c0_18, %c0_19] : memref<1x32xbf16, #tpu.memory_space<vmem>>, vector<1x32xbf16>
    %c0_20 = arith.constant 0 : index
    %c0_21 = arith.constant 0 : index
    %45 = vector.load %arg8[%c0_20, %c0_21] : memref<1x32xf32, #tpu.memory_space<vmem>>, vector<1x32xf32>
    %c0_22 = arith.constant 0 : index
    %c0_23 = arith.constant 0 : index
    %46 = vector.load %arg9[%c0_22, %c0_23] : memref<1x1xbf16, #tpu.memory_space<vmem>>, vector<1x1xbf16>
    %c0_24 = arith.constant 0 : index
    %c0_25 = arith.constant 0 : index
    %47 = vector.load %arg10[%c0_24, %c0_25] : memref<32x1xbf16, #tpu.memory_space<vmem>>, vector<32x1xbf16>
    %c0_26 = arith.constant 0 : index
    %c0_27 = arith.constant 0 : index
    %48 = vector.load %arg11[%c0_26, %c0_27] : memref<1x1xf32, #tpu.memory_space<vmem>>, vector<1x1xf32>
    %49 = tpu.concatenate %39, %40, %41 in 0 : vector<48x1xf32>, vector<48x1xf32>, vector<48x1xf32> -> vector<144x1xf32>
    %50 = arith.extf %42 : vector<1x1xbf16> to vector<1x1xf32>
    %51 = vector.broadcast %50 : vector<1x1xf32> to vector<144x1xf32>
    %52 = arith.mulf %49, %51 : vector<144x1xf32>
    %53 = vector.extract_strided_slice %52 {offsets = [0, 0], sizes = [48, 1], strides = [1, 1]} : vector<144x1xf32> to vector<48x1xf32>
    %54 = vector.extract_strided_slice %52 {offsets = [48, 0], sizes = [48, 1], strides = [1, 1]} : vector<144x1xf32> to vector<48x1xf32>
    %55 = vector.extract_strided_slice %52 {offsets = [96, 0], sizes = [48, 1], strides = [1, 1]} : vector<144x1xf32> to vector<48x1xf32>
    %56 = arith.mulf %53, %53 : vector<48x1xf32>
    %57 = arith.mulf %54, %54 : vector<48x1xf32>
    %58 = arith.addf %56, %57 : vector<48x1xf32>
    %59 = arith.mulf %55, %55 : vector<48x1xf32>
    %60 = arith.addf %58, %59 : vector<48x1xf32>
    %cst_28 = arith.constant 9.99999993E-9 : f32
    %61 = vector.broadcast %cst_28 : f32 to vector<48x1xf32>
    %62 = arith.maximumf %60, %61 : vector<48x1xf32>
    %63 = math.sqrt %62 : vector<48x1xf32>
    %64 = arith.truncf %26 : vector<48x16xf32> to vector<48x16xbf16>
    %cst_29 = arith.constant dense<0.000000e+00> : vector<48x32xf32>
    %65 = tpu.matmul %64, %43, %cst_29 {dimension_numbers = #tpu.dot_dimension_numbers<[1], [0], [0], [1], [0, 0, 1, 1], [], []>} : vector<48x16xbf16>, vector<16x32xbf16>, vector<48x32xf32> -> vector<48x32xf32>
    %66 = arith.extf %44 : vector<1x32xbf16> to vector<1x32xf32>
    %67 = vector.broadcast %63 : vector<48x1xf32> to vector<48x32xf32>
    %68 = vector.broadcast %66 : vector<1x32xf32> to vector<48x32xf32>
    %69 = arith.mulf %67, %68 : vector<48x32xf32>
    %70 = arith.addf %65, %69 : vector<48x32xf32>
    %71 = vector.broadcast %45 : vector<1x32xf32> to vector<48x32xf32>
    %72 = arith.addf %70, %71 : vector<48x32xf32>
    %73 = arith.truncf %72 : vector<48x32xf32> to vector<48x32xbf16>
    %cst_30 = arith.constant dense<0.000000e+00> : vector<48x1xf32>
    %74 = tpu.matmul %73, %47, %cst_30 {dimension_numbers = #tpu.dot_dimension_numbers<[1], [0], [0], [1], [0, 0, 1, 1], [], []>} : vector<48x32xbf16>, vector<32x1xbf16>, vector<48x1xf32> -> vector<48x1xf32>
    %75 = vector.broadcast %48 : vector<1x1xf32> to vector<48x1xf32>
    %76 = arith.addf %74, %75 : vector<48x1xf32>
    %77 = arith.negf %76 : vector<48x1xf32>
    %78 = math.exp %77 : vector<48x1xf32>
    %cst_31 = arith.constant 1.000000e+00 : f32
    %79 = vector.broadcast %cst_31 : f32 to vector<48x1xf32>
    %80 = arith.addf %79, %78 : vector<48x1xf32>
    %81 = arith.divf %79, %80 : vector<48x1xf32>
    %82 = arith.extf %46 : vector<1x1xbf16> to vector<1x1xf32>
    %83 = vector.broadcast %82 : vector<1x1xf32> to vector<144x1xf32>
    %84 = arith.mulf %52, %83 : vector<144x1xf32>
    %85 = vector.extract_strided_slice %84 {offsets = [0, 0], sizes = [48, 1], strides = [1, 1]} : vector<144x1xf32> to vector<48x1xf32>
    %86 = vector.extract_strided_slice %84 {offsets = [48, 0], sizes = [48, 1], strides = [1, 1]} : vector<144x1xf32> to vector<48x1xf32>
    %87 = vector.extract_strided_slice %84 {offsets = [96, 0], sizes = [48, 1], strides = [1, 1]} : vector<144x1xf32> to vector<48x1xf32>
    %88 = arith.mulf %85, %81 : vector<48x1xf32>
    %89 = arith.mulf %86, %81 : vector<48x1xf32>
    %90 = arith.mulf %87, %81 : vector<48x1xf32>
    %91 = arith.truncf %72 : vector<48x32xf32> to vector<48x32xbf16>
    %c0_32 = arith.constant 0 : index
    %c0_33 = arith.constant 0 : index
    %92 = vector.load %arg12[%c0_32, %c0_33] : memref<48x32xbf16, #tpu.memory_space<vmem>>, vector<48x32xbf16>
    tpu.vector_store %arg12[%c0_32, %c0_33], %91 {strides = array<i32>} : memref<48x32xbf16, #tpu.memory_space<vmem>>, vector<48x32xbf16>,
    %93 = tpu.concatenate %88, %89, %90 in 1 : vector<48x1xf32>, vector<48x1xf32>, vector<48x1xf32> -> vector<48x3xf32>
    %94 = arith.truncf %93 : vector<48x3xf32> to vector<48x3xbf16>
    %c0_34 = arith.constant 0 : index
    %c0_35 = arith.constant 0 : index
    %95 = vector.load %arg13[%c0_34, %c0_35] : memref<48x3xbf16, #tpu.memory_space<vmem>>, vector<48x3xbf16>
    tpu.vector_store %arg13[%c0_34, %c0_35], %94 {strides = array<i32>} : memref<48x3xbf16, #tpu.memory_space<vmem>>, vector<48x3xbf16>,
    return
  }
  func.func @transform_0(%arg0: i32) -> (i32, i32) {
    %c0_i32 = arith.constant 0 : i32
    %c0_i32_0 = arith.constant 0 : i32
    return %arg0, %c0_i32 : i32, i32
  }
  func.func @transform_1(%arg0: i32) -> (i32, i32) {
    %c0_i32 = arith.constant 0 : i32
    %c0_i32_0 = arith.constant 0 : i32
    return %arg0, %c0_i32 : i32, i32
  }
  func.func @transform_2(%arg0: i32) -> (i32, i32) {
    %c0_i32 = arith.constant 0 : i32
    %c0_i32_0 = arith.constant 0 : i32
    %c0_i32_1 = arith.constant 0 : i32
    return %c0_i32, %c0_i32_0 : i32, i32
  }
  func.func @transform_3(%arg0: i32) -> (i32, i32) {
    %c0_i32 = arith.constant 0 : i32
    %c0_i32_0 = arith.constant 0 : i32
    %c0_i32_1 = arith.constant 0 : i32
    return %c0_i32, %c0_i32_0 : i32, i32
  }
  func.func @transform_4(%arg0: i32) -> (i32, i32) {
    %c0_i32 = arith.constant 0 : i32
    %c0_i32_0 = arith.constant 0 : i32
    %c0_i32_1 = arith.constant 0 : i32
    return %c0_i32, %c0_i32_0 : i32, i32
  }
  func.func @transform_5(%arg0: i32) -> (i32, i32) {
    %c0_i32 = arith.constant 0 : i32
    %c0_i32_0 = arith.constant 0 : i32
    %c0_i32_1 = arith.constant 0 : i32
    return %c0_i32, %c0_i32_0 : i32, i32
  }
  func.func @transform_6(%arg0: i32) -> (i32, i32) {
    %c0_i32 = arith.constant 0 : i32
    %c0_i32_0 = arith.constant 0 : i32
    %c0_i32_1 = arith.constant 0 : i32
    return %c0_i32, %c0_i32_0 : i32, i32
  }
  func.func @transform_7(%arg0: i32) -> (i32, i32) {
    %c0_i32 = arith.constant 0 : i32
    %c0_i32_0 = arith.constant 0 : i32
    %c0_i32_1 = arith.constant 0 : i32
    return %c0_i32, %c0_i32_0 : i32, i32
  }
  func.func @transform_8(%arg0: i32) -> (i32, i32) {
    %c0_i32 = arith.constant 0 : i32
    %c0_i32_0 = arith.constant 0 : i32
    %c0_i32_1 = arith.constant 0 : i32
    return %c0_i32, %c0_i32_0 : i32, i32
  }
  func.func @transform_9(%arg0: i32) -> (i32, i32) {
    %c0_i32 = arith.constant 0 : i32
    %c0_i32_0 = arith.constant 0 : i32
    %c0_i32_1 = arith.constant 0 : i32
    return %c0_i32, %c0_i32_0 : i32, i32
  }
  func.func @transform_10(%arg0: i32) -> (i32, i32) {
    %c0_i32 = arith.constant 0 : i32
    %c0_i32_0 = arith.constant 0 : i32
    %c0_i32_1 = arith.constant 0 : i32
    return %c0_i32, %c0_i32_0 : i32, i32
  }
  func.func @transform_11(%arg0: i32) -> (i32, i32) {
    %c0_i32 = arith.constant 0 : i32
    %c0_i32_0 = arith.constant 0 : i32
    return %arg0, %c0_i32 : i32, i32
  }
  func.func @transform_12(%arg0: i32) -> (i32, i32) {
    %c0_i32 = arith.constant 0 : i32
    %c0_i32_0 = arith.constant 0 : i32
    return %arg0, %c0_i32 : i32, i32
  }
}

module attributes {stable_mosaic.version = 11 : i64} {
  func.func @kernel(%arg0: i32, %arg1: memref<48x176xbf16, #tpu.memory_space<vmem>>, %arg2: memref<48x32xbf16, #tpu.memory_space<vmem>>, %arg3: memref<48x3xbf16, #tpu.memory_space<vmem>>, %arg4: memref<48x176xbf16, #tpu.memory_space<vmem>>, %arg5: memref<16x33xbf16, #tpu.memory_space<vmem>>, %arg6: memref<1x33xbf16, #tpu.memory_space<vmem>>, %arg7: memref<16x33xbf16, #tpu.memory_space<vmem>>, %arg8: memref<128x128xbf16, #tpu.memory_space<vmem>>, %arg9: memref<32x128xbf16, #tpu.memory_space<vmem>>, %arg10: memref<128x128xbf16, #tpu.memory_space<vmem>>, %arg11: memref<33x128xbf16, #tpu.memory_space<vmem>>, %arg12: memref<1x128xf32, #tpu.memory_space<vmem>>, %arg13: memref<33x16xbf16, #tpu.memory_space<vmem>>, %arg14: memref<128x16xbf16, #tpu.memory_space<vmem>>, %arg15: memref<1x16xf32, #tpu.memory_space<vmem>>, %arg16: memref<16x16xbf16, #tpu.memory_space<vmem>>, %arg17: memref<128x128xbf16, #tpu.memory_space<vmem>>, %arg18: memref<16x128xbf16, #tpu.memory_space<vmem>>, %arg19: memref<1x128xf32, #tpu.memory_space<vmem>>, %arg20: memref<16x16xbf16, #tpu.memory_space<vmem>>, %arg21: memref<128x16xbf16, #tpu.memory_space<vmem>>, %arg22: memref<1x16xf32, #tpu.memory_space<vmem>>, %arg23: memref<16x16xbf16, #tpu.memory_space<vmem>>, %arg24: memref<128x128xbf16, #tpu.memory_space<vmem>>, %arg25: memref<16x128xbf16, #tpu.memory_space<vmem>>, %arg26: memref<1x128xf32, #tpu.memory_space<vmem>>, %arg27: memref<16x16xbf16, #tpu.memory_space<vmem>>, %arg28: memref<128x16xbf16, #tpu.memory_space<vmem>>, %arg29: memref<1x16xf32, #tpu.memory_space<vmem>>, %arg30: memref<48x176xf32, #tpu.memory_space<vmem>>) attributes {dimension_semantics = [#tpu.dimension_semantics<parallel>], iteration_bounds = array<i64: 1>, scalar_prefetch = 0 : i64, scratch_operands = 0 : i64, tpu.core_type = #tpu.core_type<tc>, window_params = [{transform_indices = @transform_0, window_bounds = array<i64: 48, 176>}, {transform_indices = @transform_1, window_bounds = array<i64: 48, 32>}, {transform_indices = @transform_2, window_bounds = array<i64: 48, 3>}, {transform_indices = @transform_3, window_bounds = array<i64: 48, 176>}, {pipeline_mode = #tpu.pipeline_mode<synchronous>, transform_indices = @transform_4, window_bounds = array<i64: 16, 33>}, {pipeline_mode = #tpu.pipeline_mode<synchronous>, transform_indices = @transform_5, window_bounds = array<i64: 1, 33>}, {pipeline_mode = #tpu.pipeline_mode<synchronous>, transform_indices = @transform_6, window_bounds = array<i64: 16, 33>}, {pipeline_mode = #tpu.pipeline_mode<synchronous>, transform_indices = @transform_7, window_bounds = array<i64: 128, 128>}, {pipeline_mode = #tpu.pipeline_mode<synchronous>, transform_indices = @transform_8, window_bounds = array<i64: 32, 128>}, {pipeline_mode = #tpu.pipeline_mode<synchronous>, transform_indices = @transform_9, window_bounds = array<i64: 128, 128>}, {pipeline_mode = #tpu.pipeline_mode<synchronous>, transform_indices = @transform_10, window_bounds = array<i64: 33, 128>}, {pipeline_mode = #tpu.pipeline_mode<synchronous>, transform_indices = @transform_11, window_bounds = array<i64: 1, 128>}, {pipeline_mode = #tpu.pipeline_mode<synchronous>, transform_indices = @transform_12, window_bounds = array<i64: 33, 16>}, {pipeline_mode = #tpu.pipeline_mode<synchronous>, transform_indices = @transform_13, window_bounds = array<i64: 128, 16>}, {pipeline_mode = #tpu.pipeline_mode<synchronous>, transform_indices = @transform_14, window_bounds = array<i64: 1, 16>}, {pipeline_mode = #tpu.pipeline_mode<synchronous>, transform_indices = @transform_15, window_bounds = array<i64: 16, 16>}, {pipeline_mode = #tpu.pipeline_mode<synchronous>, transform_indices = @transform_16, window_bounds = array<i64: 128, 128>}, {pipeline_mode = #tpu.pipeline_mode<synchronous>, transform_indices = @transform_17, window_bounds = array<i64: 16, 128>}, {pipeline_mode = #tpu.pipeline_mode<synchronous>, transform_indices = @transform_18, window_bounds = array<i64: 1, 128>}, {pipeline_mode = #tpu.pipeline_mode<synchronous>, transform_indices = @transform_19, window_bounds = array<i64: 16, 16>}, {pipeline_mode = #tpu.pipeline_mode<synchronous>, transform_indices = @transform_20, window_bounds = array<i64: 128, 16>}, {pipeline_mode = #tpu.pipeline_mode<synchronous>, transform_indices = @transform_21, window_bounds = array<i64: 1, 16>}, {pipeline_mode = #tpu.pipeline_mode<synchronous>, transform_indices = @transform_22, window_bounds = array<i64: 16, 16>}, {pipeline_mode = #tpu.pipeline_mode<synchronous>, transform_indices = @transform_23, window_bounds = array<i64: 128, 128>}, {pipeline_mode = #tpu.pipeline_mode<synchronous>, transform_indices = @transform_24, window_bounds = array<i64: 16, 128>}, {pipeline_mode = #tpu.pipeline_mode<synchronous>, transform_indices = @transform_25, window_bounds = array<i64: 1, 128>}, {pipeline_mode = #tpu.pipeline_mode<synchronous>, transform_indices = @transform_26, window_bounds = array<i64: 16, 16>}, {pipeline_mode = #tpu.pipeline_mode<synchronous>, transform_indices = @transform_27, window_bounds = array<i64: 128, 16>}, {pipeline_mode = #tpu.pipeline_mode<synchronous>, transform_indices = @transform_28, window_bounds = array<i64: 1, 16>}, {transform_indices = @transform_29, window_bounds = array<i64: 48, 176>}]} {
    %c0 = arith.constant 0 : index
    %c0_0 = arith.constant 0 : index
    %0 = vector.load %arg5[%c0, %c0_0] : memref<16x33xbf16, #tpu.memory_space<vmem>>, vector<16x33xbf16>
    %c0_1 = arith.constant 0 : index
    %c0_2 = arith.constant 0 : index
    %1 = vector.load %arg6[%c0_1, %c0_2] : memref<1x33xbf16, #tpu.memory_space<vmem>>, vector<1x33xbf16>
    %c0_3 = arith.constant 0 : index
    %c0_4 = arith.constant 0 : index
    %2 = vector.load %arg7[%c0_3, %c0_4] : memref<16x33xbf16, #tpu.memory_space<vmem>>, vector<16x33xbf16>
    %c0_5 = arith.constant 0 : index
    %c0_6 = arith.constant 0 : index
    %3 = vector.load %arg8[%c0_5, %c0_6] : memref<128x128xbf16, #tpu.memory_space<vmem>>, vector<128x128xbf16>
    %c0_7 = arith.constant 0 : index
    %c0_8 = arith.constant 0 : index
    %4 = vector.load %arg9[%c0_7, %c0_8] : memref<32x128xbf16, #tpu.memory_space<vmem>>, vector<32x128xbf16>
    %c0_9 = arith.constant 0 : index
    %c0_10 = arith.constant 0 : index
    %5 = vector.load %arg10[%c0_9, %c0_10] : memref<128x128xbf16, #tpu.memory_space<vmem>>, vector<128x128xbf16>
    %c0_11 = arith.constant 0 : index
    %c0_12 = arith.constant 0 : index
    %6 = vector.load %arg11[%c0_11, %c0_12] : memref<33x128xbf16, #tpu.memory_space<vmem>>, vector<33x128xbf16>
    %c0_13 = arith.constant 0 : index
    %c0_14 = arith.constant 0 : index
    %7 = vector.load %arg12[%c0_13, %c0_14] : memref<1x128xf32, #tpu.memory_space<vmem>>, vector<1x128xf32>
    %c0_15 = arith.constant 0 : index
    %c0_16 = arith.constant 0 : index
    %8 = vector.load %arg13[%c0_15, %c0_16] : memref<33x16xbf16, #tpu.memory_space<vmem>>, vector<33x16xbf16>
    %c0_17 = arith.constant 0 : index
    %c0_18 = arith.constant 0 : index
    %9 = vector.load %arg14[%c0_17, %c0_18] : memref<128x16xbf16, #tpu.memory_space<vmem>>, vector<128x16xbf16>
    %c0_19 = arith.constant 0 : index
    %c0_20 = arith.constant 0 : index
    %10 = vector.load %arg15[%c0_19, %c0_20] : memref<1x16xf32, #tpu.memory_space<vmem>>, vector<1x16xf32>
    %c0_21 = arith.constant 0 : index
    %c0_22 = arith.constant 0 : index
    %11 = vector.load %arg16[%c0_21, %c0_22] : memref<16x16xbf16, #tpu.memory_space<vmem>>, vector<16x16xbf16>
    %c0_23 = arith.constant 0 : index
    %c0_24 = arith.constant 0 : index
    %12 = vector.load %arg17[%c0_23, %c0_24] : memref<128x128xbf16, #tpu.memory_space<vmem>>, vector<128x128xbf16>
    %c0_25 = arith.constant 0 : index
    %c0_26 = arith.constant 0 : index
    %13 = vector.load %arg18[%c0_25, %c0_26] : memref<16x128xbf16, #tpu.memory_space<vmem>>, vector<16x128xbf16>
    %c0_27 = arith.constant 0 : index
    %c0_28 = arith.constant 0 : index
    %14 = vector.load %arg19[%c0_27, %c0_28] : memref<1x128xf32, #tpu.memory_space<vmem>>, vector<1x128xf32>
    %c0_29 = arith.constant 0 : index
    %c0_30 = arith.constant 0 : index
    %15 = vector.load %arg20[%c0_29, %c0_30] : memref<16x16xbf16, #tpu.memory_space<vmem>>, vector<16x16xbf16>
    %c0_31 = arith.constant 0 : index
    %c0_32 = arith.constant 0 : index
    %16 = vector.load %arg21[%c0_31, %c0_32] : memref<128x16xbf16, #tpu.memory_space<vmem>>, vector<128x16xbf16>
    %c0_33 = arith.constant 0 : index
    %c0_34 = arith.constant 0 : index
    %17 = vector.load %arg22[%c0_33, %c0_34] : memref<1x16xf32, #tpu.memory_space<vmem>>, vector<1x16xf32>
    %c0_35 = arith.constant 0 : index
    %c0_36 = arith.constant 0 : index
    %18 = vector.load %arg23[%c0_35, %c0_36] : memref<16x16xbf16, #tpu.memory_space<vmem>>, vector<16x16xbf16>
    %c0_37 = arith.constant 0 : index
    %c0_38 = arith.constant 0 : index
    %19 = vector.load %arg24[%c0_37, %c0_38] : memref<128x128xbf16, #tpu.memory_space<vmem>>, vector<128x128xbf16>
    %c0_39 = arith.constant 0 : index
    %c0_40 = arith.constant 0 : index
    %20 = vector.load %arg25[%c0_39, %c0_40] : memref<16x128xbf16, #tpu.memory_space<vmem>>, vector<16x128xbf16>
    %c0_41 = arith.constant 0 : index
    %c0_42 = arith.constant 0 : index
    %21 = vector.load %arg26[%c0_41, %c0_42] : memref<1x128xf32, #tpu.memory_space<vmem>>, vector<1x128xf32>
    %c0_43 = arith.constant 0 : index
    %c0_44 = arith.constant 0 : index
    %22 = vector.load %arg27[%c0_43, %c0_44] : memref<16x16xbf16, #tpu.memory_space<vmem>>, vector<16x16xbf16>
    %c0_45 = arith.constant 0 : index
    %c0_46 = arith.constant 0 : index
    %23 = vector.load %arg28[%c0_45, %c0_46] : memref<128x16xbf16, #tpu.memory_space<vmem>>, vector<128x16xbf16>
    %c0_47 = arith.constant 0 : index
    %c0_48 = arith.constant 0 : index
    %24 = vector.load %arg29[%c0_47, %c0_48] : memref<1x16xf32, #tpu.memory_space<vmem>>, vector<1x16xf32>
    %c0_49 = arith.constant 0 : index
    %c0_50 = arith.constant 0 : index
    %25 = vector.load %arg1[%c0_49, %c0_50] : memref<48x176xbf16, #tpu.memory_space<vmem>>, vector<48x176xbf16>
    %c0_51 = arith.constant 0 : index
    %c0_52 = arith.constant 0 : index
    %26 = vector.load %arg4[%c0_51, %c0_52] : memref<48x176xbf16, #tpu.memory_space<vmem>>, vector<48x176xbf16>
    %c0_53 = arith.constant 0 : index
    %c0_54 = arith.constant 0 : index
    %27 = vector.load %arg2[%c0_53, %c0_54] : memref<48x32xbf16, #tpu.memory_space<vmem>>, vector<48x32xbf16>
    %28 = vector.extract_strided_slice %25 {offsets = [0, 0], sizes = [48, 128], strides = [1, 1]} : vector<48x176xbf16> to vector<48x128xbf16>
    %29 = vector.extract_strided_slice %26 {offsets = [0, 0], sizes = [48, 128], strides = [1, 1]} : vector<48x176xbf16> to vector<48x128xbf16>
    %30 = vector.extract_strided_slice %25 {offsets = [0, 128], sizes = [48, 16], strides = [1, 1]} : vector<48x176xbf16> to vector<48x16xbf16>
    %31 = vector.extract_strided_slice %25 {offsets = [0, 144], sizes = [48, 16], strides = [1, 1]} : vector<48x176xbf16> to vector<48x16xbf16>
    %32 = vector.extract_strided_slice %25 {offsets = [0, 160], sizes = [48, 16], strides = [1, 1]} : vector<48x176xbf16> to vector<48x16xbf16>
    %33 = tpu.concatenate %30, %31, %32 in 0 : vector<48x16xbf16>, vector<48x16xbf16>, vector<48x16xbf16> -> vector<144x16xbf16>
    %34 = vector.extract_strided_slice %26 {offsets = [0, 128], sizes = [48, 16], strides = [1, 1]} : vector<48x176xbf16> to vector<48x16xbf16>
    %35 = vector.extract_strided_slice %26 {offsets = [0, 144], sizes = [48, 16], strides = [1, 1]} : vector<48x176xbf16> to vector<48x16xbf16>
    %36 = vector.extract_strided_slice %26 {offsets = [0, 160], sizes = [48, 16], strides = [1, 1]} : vector<48x176xbf16> to vector<48x16xbf16>
    %37 = tpu.concatenate %34, %35, %36 in 0 : vector<48x16xbf16>, vector<48x16xbf16>, vector<48x16xbf16> -> vector<144x16xbf16>
    %c0_55 = arith.constant 0 : index
    %c0_56 = arith.constant 0 : index
    %38 = vector.load %arg3[%c0_55, %c0_56] : memref<48x3xbf16, #tpu.memory_space<vmem>>, vector<48x3xbf16>
    %39 = vector.extract_strided_slice %38 {offsets = [0, 0], sizes = [48, 1], strides = [1, 1]} : vector<48x3xbf16> to vector<48x1xbf16>
    %40 = vector.extract_strided_slice %38 {offsets = [0, 1], sizes = [48, 1], strides = [1, 1]} : vector<48x3xbf16> to vector<48x1xbf16>
    %41 = vector.extract_strided_slice %38 {offsets = [0, 2], sizes = [48, 1], strides = [1, 1]} : vector<48x3xbf16> to vector<48x1xbf16>
    %42 = tpu.concatenate %39, %40, %41 in 0 : vector<48x1xbf16>, vector<48x1xbf16>, vector<48x1xbf16> -> vector<144x1xbf16>
    %43 = arith.extf %42 : vector<144x1xbf16> to vector<144x1xf32>
    %cst = arith.constant dense<0.000000e+00> : vector<144x33xf32>
    %44 = tpu.matmul %33, %0, %cst {dimension_numbers = #tpu.dot_dimension_numbers<[1], [0], [0], [1], [0, 0, 1, 1], [], []>} : vector<144x16xbf16>, vector<16x33xbf16>, vector<144x33xf32> -> vector<144x33xf32>
    %cst_57 = arith.constant dense<0.000000e+00> : vector<144x33xf32>
    %45 = tpu.matmul %37, %2, %cst_57 {dimension_numbers = #tpu.dot_dimension_numbers<[1], [0], [0], [1], [0, 0, 1, 1], [], []>} : vector<144x16xbf16>, vector<16x33xbf16>, vector<144x33xf32> -> vector<144x33xf32>
    %46 = arith.addf %44, %45 : vector<144x33xf32>
    %47 = arith.extf %1 : vector<1x33xbf16> to vector<1x33xf32>
    %48 = vector.broadcast %43 : vector<144x1xf32> to vector<144x33xf32>
    %49 = vector.broadcast %47 : vector<1x33xf32> to vector<144x33xf32>
    %50 = arith.mulf %48, %49 : vector<144x33xf32>
    %51 = arith.addf %46, %50 : vector<144x33xf32>
    %52 = vector.extract_strided_slice %51 {offsets = [0, 0], sizes = [48, 33], strides = [1, 1]} : vector<144x33xf32> to vector<48x33xf32>
    %53 = vector.extract_strided_slice %51 {offsets = [48, 0], sizes = [48, 33], strides = [1, 1]} : vector<144x33xf32> to vector<48x33xf32>
    %54 = vector.extract_strided_slice %51 {offsets = [96, 0], sizes = [48, 33], strides = [1, 1]} : vector<144x33xf32> to vector<48x33xf32>
    %55 = arith.mulf %52, %52 : vector<48x33xf32>
    %56 = arith.mulf %53, %53 : vector<48x33xf32>
    %57 = arith.addf %55, %56 : vector<48x33xf32>
    %58 = arith.mulf %54, %54 : vector<48x33xf32>
    %59 = arith.addf %57, %58 : vector<48x33xf32>
    %cst_58 = arith.constant 9.99999993E-9 : f32
    %60 = vector.broadcast %cst_58 : f32 to vector<48x33xf32>
    %61 = arith.maximumf %59, %60 : vector<48x33xf32>
    %62 = math.sqrt %61 : vector<48x33xf32>
    %cst_59 = arith.constant dense<0.000000e+00> : vector<48x128xf32>
    %63 = tpu.matmul %28, %3, %cst_59 {dimension_numbers = #tpu.dot_dimension_numbers<[1], [0], [0], [1], [0, 0, 1, 1], [], []>} : vector<48x128xbf16>, vector<128x128xbf16>, vector<48x128xf32> -> vector<48x128xf32>
    %cst_60 = arith.constant dense<0.000000e+00> : vector<48x128xf32>
    %64 = tpu.matmul %27, %4, %cst_60 {dimension_numbers = #tpu.dot_dimension_numbers<[1], [0], [0], [1], [0, 0, 1, 1], [], []>} : vector<48x32xbf16>, vector<32x128xbf16>, vector<48x128xf32> -> vector<48x128xf32>
    %65 = arith.addf %63, %64 : vector<48x128xf32>
    %cst_61 = arith.constant dense<0.000000e+00> : vector<48x128xf32>
    %66 = tpu.matmul %29, %5, %cst_61 {dimension_numbers = #tpu.dot_dimension_numbers<[1], [0], [0], [1], [0, 0, 1, 1], [], []>} : vector<48x128xbf16>, vector<128x128xbf16>, vector<48x128xf32> -> vector<48x128xf32>
    %67 = arith.addf %65, %66 : vector<48x128xf32>
    %68 = arith.truncf %62 : vector<48x33xf32> to vector<48x33xbf16>
    %cst_62 = arith.constant dense<0.000000e+00> : vector<48x128xf32>
    %69 = tpu.matmul %68, %6, %cst_62 {dimension_numbers = #tpu.dot_dimension_numbers<[1], [0], [0], [1], [0, 0, 1, 1], [], []>} : vector<48x33xbf16>, vector<33x128xbf16>, vector<48x128xf32> -> vector<48x128xf32>
    %70 = arith.addf %67, %69 : vector<48x128xf32>
    %71 = vector.broadcast %7 : vector<1x128xf32> to vector<48x128xf32>
    %72 = arith.addf %70, %71 : vector<48x128xf32>
    %73 = arith.truncf %72 : vector<48x128xf32> to vector<48x128xbf16>
    %cst_63 = arith.constant dense<0.000000e+00> : vector<48x16xf32>
    %74 = tpu.matmul %73, %9, %cst_63 {dimension_numbers = #tpu.dot_dimension_numbers<[1], [0], [0], [1], [0, 0, 1, 1], [], []>} : vector<48x128xbf16>, vector<128x16xbf16>, vector<48x16xf32> -> vector<48x16xf32>
    %75 = vector.broadcast %10 : vector<1x16xf32> to vector<48x16xf32>
    %76 = arith.addf %74, %75 : vector<48x16xf32>
    %77 = arith.negf %76 : vector<48x16xf32>
    %78 = math.exp %77 : vector<48x16xf32>
    %cst_64 = arith.constant 1.000000e+00 : f32
    %79 = vector.broadcast %cst_64 : f32 to vector<48x16xf32>
    %80 = arith.addf %79, %78 : vector<48x16xf32>
    %81 = arith.divf %79, %80 : vector<48x16xf32>
    %82 = arith.truncf %51 : vector<144x33xf32> to vector<144x33xbf16>
    %cst_65 = arith.constant dense<0.000000e+00> : vector<144x16xf32>
    %83 = tpu.matmul %82, %8, %cst_65 {dimension_numbers = #tpu.dot_dimension_numbers<[1], [0], [0], [1], [0, 0, 1, 1], [], []>} : vector<144x33xbf16>, vector<33x16xbf16>, vector<144x16xf32> -> vector<144x16xf32>
    %84 = vector.extract_strided_slice %83 {offsets = [0, 0], sizes = [48, 16], strides = [1, 1]} : vector<144x16xf32> to vector<48x16xf32>
    %85 = vector.extract_strided_slice %83 {offsets = [48, 0], sizes = [48, 16], strides = [1, 1]} : vector<144x16xf32> to vector<48x16xf32>
    %86 = vector.extract_strided_slice %83 {offsets = [96, 0], sizes = [48, 16], strides = [1, 1]} : vector<144x16xf32> to vector<48x16xf32>
    %87 = arith.mulf %84, %81 : vector<48x16xf32>
    %88 = arith.mulf %85, %81 : vector<48x16xf32>
    %89 = arith.mulf %86, %81 : vector<48x16xf32>
    %cst_66 = arith.constant 0.000000e+00 : f32
    %90 = vector.broadcast %cst_66 : f32 to vector<48x128xf32>
    %91 = arith.maximumf %72, %90 : vector<48x128xf32>
    %92 = tpu.concatenate %87, %88, %89 in 0 : vector<48x16xf32>, vector<48x16xf32>, vector<48x16xf32> -> vector<144x16xf32>
    %93 = arith.truncf %92 : vector<144x16xf32> to vector<144x16xbf16>
    %cst_67 = arith.constant dense<0.000000e+00> : vector<144x16xf32>
    %94 = tpu.matmul %93, %11, %cst_67 {dimension_numbers = #tpu.dot_dimension_numbers<[1], [0], [0], [1], [0, 0, 1, 1], [], []>} : vector<144x16xbf16>, vector<16x16xbf16>, vector<144x16xf32> -> vector<144x16xf32>
    %95 = vector.extract_strided_slice %94 {offsets = [0, 0], sizes = [48, 16], strides = [1, 1]} : vector<144x16xf32> to vector<48x16xf32>
    %96 = vector.extract_strided_slice %94 {offsets = [48, 0], sizes = [48, 16], strides = [1, 1]} : vector<144x16xf32> to vector<48x16xf32>
    %97 = vector.extract_strided_slice %94 {offsets = [96, 0], sizes = [48, 16], strides = [1, 1]} : vector<144x16xf32> to vector<48x16xf32>
    %98 = arith.mulf %95, %95 : vector<48x16xf32>
    %99 = arith.mulf %96, %96 : vector<48x16xf32>
    %100 = arith.addf %98, %99 : vector<48x16xf32>
    %101 = arith.mulf %97, %97 : vector<48x16xf32>
    %102 = arith.addf %100, %101 : vector<48x16xf32>
    %cst_68 = arith.constant 9.99999993E-9 : f32
    %103 = vector.broadcast %cst_68 : f32 to vector<48x16xf32>
    %104 = arith.maximumf %102, %103 : vector<48x16xf32>
    %105 = math.sqrt %104 : vector<48x16xf32>
    %106 = arith.truncf %91 : vector<48x128xf32> to vector<48x128xbf16>
    %cst_69 = arith.constant dense<0.000000e+00> : vector<48x128xf32>
    %107 = tpu.matmul %106, %12, %cst_69 {dimension_numbers = #tpu.dot_dimension_numbers<[1], [0], [0], [1], [0, 0, 1, 1], [], []>} : vector<48x128xbf16>, vector<128x128xbf16>, vector<48x128xf32> -> vector<48x128xf32>
    %108 = arith.truncf %105 : vector<48x16xf32> to vector<48x16xbf16>
    %cst_70 = arith.constant dense<0.000000e+00> : vector<48x128xf32>
    %109 = tpu.matmul %108, %13, %cst_70 {dimension_numbers = #tpu.dot_dimension_numbers<[1], [0], [0], [1], [0, 0, 1, 1], [], []>} : vector<48x16xbf16>, vector<16x128xbf16>, vector<48x128xf32> -> vector<48x128xf32>
    %110 = arith.addf %107, %109 : vector<48x128xf32>
    %111 = vector.broadcast %14 : vector<1x128xf32> to vector<48x128xf32>
    %112 = arith.addf %110, %111 : vector<48x128xf32>
    %113 = arith.truncf %112 : vector<48x128xf32> to vector<48x128xbf16>
    %cst_71 = arith.constant dense<0.000000e+00> : vector<48x16xf32>
    %114 = tpu.matmul %113, %16, %cst_71 {dimension_numbers = #tpu.dot_dimension_numbers<[1], [0], [0], [1], [0, 0, 1, 1], [], []>} : vector<48x128xbf16>, vector<128x16xbf16>, vector<48x16xf32> -> vector<48x16xf32>
    %115 = vector.broadcast %17 : vector<1x16xf32> to vector<48x16xf32>
    %116 = arith.addf %114, %115 : vector<48x16xf32>
    %117 = arith.negf %116 : vector<48x16xf32>
    %118 = math.exp %117 : vector<48x16xf32>
    %cst_72 = arith.constant 1.000000e+00 : f32
    %119 = vector.broadcast %cst_72 : f32 to vector<48x16xf32>
    %120 = arith.addf %119, %118 : vector<48x16xf32>
    %121 = arith.divf %119, %120 : vector<48x16xf32>
    %122 = arith.truncf %94 : vector<144x16xf32> to vector<144x16xbf16>
    %cst_73 = arith.constant dense<0.000000e+00> : vector<144x16xf32>
    %123 = tpu.matmul %122, %15, %cst_73 {dimension_numbers = #tpu.dot_dimension_numbers<[1], [0], [0], [1], [0, 0, 1, 1], [], []>} : vector<144x16xbf16>, vector<16x16xbf16>, vector<144x16xf32> -> vector<144x16xf32>
    %124 = vector.extract_strided_slice %123 {offsets = [0, 0], sizes = [48, 16], strides = [1, 1]} : vector<144x16xf32> to vector<48x16xf32>
    %125 = vector.extract_strided_slice %123 {offsets = [48, 0], sizes = [48, 16], strides = [1, 1]} : vector<144x16xf32> to vector<48x16xf32>
    %126 = vector.extract_strided_slice %123 {offsets = [96, 0], sizes = [48, 16], strides = [1, 1]} : vector<144x16xf32> to vector<48x16xf32>
    %127 = arith.mulf %124, %121 : vector<48x16xf32>
    %128 = arith.mulf %125, %121 : vector<48x16xf32>
    %129 = arith.mulf %126, %121 : vector<48x16xf32>
    %cst_74 = arith.constant 0.000000e+00 : f32
    %130 = vector.broadcast %cst_74 : f32 to vector<48x128xf32>
    %131 = arith.maximumf %112, %130 : vector<48x128xf32>
    %132 = tpu.concatenate %127, %128, %129 in 0 : vector<48x16xf32>, vector<48x16xf32>, vector<48x16xf32> -> vector<144x16xf32>
    %133 = arith.truncf %132 : vector<144x16xf32> to vector<144x16xbf16>
    %cst_75 = arith.constant dense<0.000000e+00> : vector<144x16xf32>
    %134 = tpu.matmul %133, %18, %cst_75 {dimension_numbers = #tpu.dot_dimension_numbers<[1], [0], [0], [1], [0, 0, 1, 1], [], []>} : vector<144x16xbf16>, vector<16x16xbf16>, vector<144x16xf32> -> vector<144x16xf32>
    %135 = vector.extract_strided_slice %134 {offsets = [0, 0], sizes = [48, 16], strides = [1, 1]} : vector<144x16xf32> to vector<48x16xf32>
    %136 = vector.extract_strided_slice %134 {offsets = [48, 0], sizes = [48, 16], strides = [1, 1]} : vector<144x16xf32> to vector<48x16xf32>
    %137 = vector.extract_strided_slice %134 {offsets = [96, 0], sizes = [48, 16], strides = [1, 1]} : vector<144x16xf32> to vector<48x16xf32>
    %138 = arith.mulf %135, %135 : vector<48x16xf32>
    %139 = arith.mulf %136, %136 : vector<48x16xf32>
    %140 = arith.addf %138, %139 : vector<48x16xf32>
    %141 = arith.mulf %137, %137 : vector<48x16xf32>
    %142 = arith.addf %140, %141 : vector<48x16xf32>
    %cst_76 = arith.constant 9.99999993E-9 : f32
    %143 = vector.broadcast %cst_76 : f32 to vector<48x16xf32>
    %144 = arith.maximumf %142, %143 : vector<48x16xf32>
    %145 = math.sqrt %144 : vector<48x16xf32>
    %146 = arith.truncf %131 : vector<48x128xf32> to vector<48x128xbf16>
    %cst_77 = arith.constant dense<0.000000e+00> : vector<48x128xf32>
    %147 = tpu.matmul %146, %19, %cst_77 {dimension_numbers = #tpu.dot_dimension_numbers<[1], [0], [0], [1], [0, 0, 1, 1], [], []>} : vector<48x128xbf16>, vector<128x128xbf16>, vector<48x128xf32> -> vector<48x128xf32>
    %148 = arith.truncf %145 : vector<48x16xf32> to vector<48x16xbf16>
    %cst_78 = arith.constant dense<0.000000e+00> : vector<48x128xf32>
    %149 = tpu.matmul %148, %20, %cst_78 {dimension_numbers = #tpu.dot_dimension_numbers<[1], [0], [0], [1], [0, 0, 1, 1], [], []>} : vector<48x16xbf16>, vector<16x128xbf16>, vector<48x128xf32> -> vector<48x128xf32>
    %150 = arith.addf %147, %149 : vector<48x128xf32>
    %151 = vector.broadcast %21 : vector<1x128xf32> to vector<48x128xf32>
    %152 = arith.addf %150, %151 : vector<48x128xf32>
    %153 = arith.truncf %152 : vector<48x128xf32> to vector<48x128xbf16>
    %cst_79 = arith.constant dense<0.000000e+00> : vector<48x16xf32>
    %154 = tpu.matmul %153, %23, %cst_79 {dimension_numbers = #tpu.dot_dimension_numbers<[1], [0], [0], [1], [0, 0, 1, 1], [], []>} : vector<48x128xbf16>, vector<128x16xbf16>, vector<48x16xf32> -> vector<48x16xf32>
    %155 = vector.broadcast %24 : vector<1x16xf32> to vector<48x16xf32>
    %156 = arith.addf %154, %155 : vector<48x16xf32>
    %157 = arith.negf %156 : vector<48x16xf32>
    %158 = math.exp %157 : vector<48x16xf32>
    %cst_80 = arith.constant 1.000000e+00 : f32
    %159 = vector.broadcast %cst_80 : f32 to vector<48x16xf32>
    %160 = arith.addf %159, %158 : vector<48x16xf32>
    %161 = arith.divf %159, %160 : vector<48x16xf32>
    %162 = arith.truncf %134 : vector<144x16xf32> to vector<144x16xbf16>
    %cst_81 = arith.constant dense<0.000000e+00> : vector<144x16xf32>
    %163 = tpu.matmul %162, %22, %cst_81 {dimension_numbers = #tpu.dot_dimension_numbers<[1], [0], [0], [1], [0, 0, 1, 1], [], []>} : vector<144x16xbf16>, vector<16x16xbf16>, vector<144x16xf32> -> vector<144x16xf32>
    %164 = vector.extract_strided_slice %163 {offsets = [0, 0], sizes = [48, 16], strides = [1, 1]} : vector<144x16xf32> to vector<48x16xf32>
    %165 = vector.extract_strided_slice %163 {offsets = [48, 0], sizes = [48, 16], strides = [1, 1]} : vector<144x16xf32> to vector<48x16xf32>
    %166 = vector.extract_strided_slice %163 {offsets = [96, 0], sizes = [48, 16], strides = [1, 1]} : vector<144x16xf32> to vector<48x16xf32>
    %167 = arith.mulf %164, %161 : vector<48x16xf32>
    %168 = arith.mulf %165, %161 : vector<48x16xf32>
    %169 = arith.mulf %166, %161 : vector<48x16xf32>
    %c48_i32 = arith.constant 48 : i32
    %170 = arith.muli %arg0, %c48_i32 : i32
    %171 = tpu.iota {dimensions = array<i32: 0>} : vector<48x1xi32>
    %172 = vector.broadcast %170 : i32 to vector<48x1xi32>
    %173 = arith.addi %172, %171 : vector<48x1xi32>
    %c48_i32_82 = arith.constant 48 : i32
    %174 = vector.broadcast %c48_i32_82 : i32 to vector<48x1xi32>
    %175 = arith.cmpi slt, %173, %174 : vector<48x1xi32>
    %176 = arith.extui %175 : vector<48x1xi1> to vector<48x1xi32>
    %177 = arith.sitofp %176 : vector<48x1xi32> to vector<48x1xf32>
    %178 = tpu.concatenate %152, %167, %168, %169 in 1 : vector<48x128xf32>, vector<48x16xf32>, vector<48x16xf32>, vector<48x16xf32> -> vector<48x176xf32>
    %179 = vector.broadcast %177 : vector<48x1xf32> to vector<48x176xf32>
    %180 = arith.mulf %178, %179 : vector<48x176xf32>
    %c0_83 = arith.constant 0 : index
    %c0_84 = arith.constant 0 : index
    %181 = vector.load %arg30[%c0_83, %c0_84] : memref<48x176xf32, #tpu.memory_space<vmem>>, vector<48x176xf32>
    tpu.vector_store %arg30[%c0_83, %c0_84], %180 {strides = array<i32>} : memref<48x176xf32, #tpu.memory_space<vmem>>, vector<48x176xf32>,
    return
  }
  func.func @transform_0(%arg0: i32) -> (i32, i32) {
    %c0_i32 = arith.constant 0 : i32
    %c0_i32_0 = arith.constant 0 : i32
    return %arg0, %c0_i32 : i32, i32
  }
  func.func @transform_1(%arg0: i32) -> (i32, i32) {
    %c0_i32 = arith.constant 0 : i32
    %c0_i32_0 = arith.constant 0 : i32
    return %arg0, %c0_i32 : i32, i32
  }
  func.func @transform_2(%arg0: i32) -> (i32, i32) {
    %c0_i32 = arith.constant 0 : i32
    %c0_i32_0 = arith.constant 0 : i32
    return %arg0, %c0_i32 : i32, i32
  }
  func.func @transform_3(%arg0: i32) -> (i32, i32) {
    %c0_i32 = arith.constant 0 : i32
    %c0_i32_0 = arith.constant 0 : i32
    return %arg0, %c0_i32 : i32, i32
  }
  func.func @transform_4(%arg0: i32) -> (i32, i32) {
    %c0_i32 = arith.constant 0 : i32
    %c0_i32_0 = arith.constant 0 : i32
    %c0_i32_1 = arith.constant 0 : i32
    return %c0_i32, %c0_i32_0 : i32, i32
  }
  func.func @transform_5(%arg0: i32) -> (i32, i32) {
    %c0_i32 = arith.constant 0 : i32
    %c0_i32_0 = arith.constant 0 : i32
    %c0_i32_1 = arith.constant 0 : i32
    return %c0_i32, %c0_i32_0 : i32, i32
  }
  func.func @transform_6(%arg0: i32) -> (i32, i32) {
    %c0_i32 = arith.constant 0 : i32
    %c0_i32_0 = arith.constant 0 : i32
    %c0_i32_1 = arith.constant 0 : i32
    return %c0_i32, %c0_i32_0 : i32, i32
  }
  func.func @transform_7(%arg0: i32) -> (i32, i32) {
    %c0_i32 = arith.constant 0 : i32
    %c0_i32_0 = arith.constant 0 : i32
    %c0_i32_1 = arith.constant 0 : i32
    return %c0_i32, %c0_i32_0 : i32, i32
  }
  func.func @transform_8(%arg0: i32) -> (i32, i32) {
    %c0_i32 = arith.constant 0 : i32
    %c0_i32_0 = arith.constant 0 : i32
    %c0_i32_1 = arith.constant 0 : i32
    return %c0_i32, %c0_i32_0 : i32, i32
  }
  func.func @transform_9(%arg0: i32) -> (i32, i32) {
    %c0_i32 = arith.constant 0 : i32
    %c0_i32_0 = arith.constant 0 : i32
    %c0_i32_1 = arith.constant 0 : i32
    return %c0_i32, %c0_i32_0 : i32, i32
  }
  func.func @transform_10(%arg0: i32) -> (i32, i32) {
    %c0_i32 = arith.constant 0 : i32
    %c0_i32_0 = arith.constant 0 : i32
    %c0_i32_1 = arith.constant 0 : i32
    return %c0_i32, %c0_i32_0 : i32, i32
  }
  func.func @transform_11(%arg0: i32) -> (i32, i32) {
    %c0_i32 = arith.constant 0 : i32
    %c0_i32_0 = arith.constant 0 : i32
    %c0_i32_1 = arith.constant 0 : i32
    return %c0_i32, %c0_i32_0 : i32, i32
  }
  func.func @transform_12(%arg0: i32) -> (i32, i32) {
    %c0_i32 = arith.constant 0 : i32
    %c0_i32_0 = arith.constant 0 : i32
    %c0_i32_1 = arith.constant 0 : i32
    return %c0_i32, %c0_i32_0 : i32, i32
  }
  func.func @transform_13(%arg0: i32) -> (i32, i32) {
    %c0_i32 = arith.constant 0 : i32
    %c0_i32_0 = arith.constant 0 : i32
    %c0_i32_1 = arith.constant 0 : i32
    return %c0_i32, %c0_i32_0 : i32, i32
  }
  func.func @transform_14(%arg0: i32) -> (i32, i32) {
    %c0_i32 = arith.constant 0 : i32
    %c0_i32_0 = arith.constant 0 : i32
    %c0_i32_1 = arith.constant 0 : i32
    return %c0_i32, %c0_i32_0 : i32, i32
  }
  func.func @transform_15(%arg0: i32) -> (i32, i32) {
    %c0_i32 = arith.constant 0 : i32
    %c0_i32_0 = arith.constant 0 : i32
    %c0_i32_1 = arith.constant 0 : i32
    return %c0_i32, %c0_i32_0 : i32, i32
  }
  func.func @transform_16(%arg0: i32) -> (i32, i32) {
    %c0_i32 = arith.constant 0 : i32
    %c0_i32_0 = arith.constant 0 : i32
    %c0_i32_1 = arith.constant 0 : i32
    return %c0_i32, %c0_i32_0 : i32, i32
  }
  func.func @transform_17(%arg0: i32) -> (i32, i32) {
    %c0_i32 = arith.constant 0 : i32
    %c0_i32_0 = arith.constant 0 : i32
    %c0_i32_1 = arith.constant 0 : i32
    return %c0_i32, %c0_i32_0 : i32, i32
  }
  func.func @transform_18(%arg0: i32) -> (i32, i32) {
    %c0_i32 = arith.constant 0 : i32
    %c0_i32_0 = arith.constant 0 : i32
    %c0_i32_1 = arith.constant 0 : i32
    return %c0_i32, %c0_i32_0 : i32, i32
  }
  func.func @transform_19(%arg0: i32) -> (i32, i32) {
    %c0_i32 = arith.constant 0 : i32
    %c0_i32_0 = arith.constant 0 : i32
    %c0_i32_1 = arith.constant 0 : i32
    return %c0_i32, %c0_i32_0 : i32, i32
  }
  func.func @transform_20(%arg0: i32) -> (i32, i32) {
    %c0_i32 = arith.constant 0 : i32
    %c0_i32_0 = arith.constant 0 : i32
    %c0_i32_1 = arith.constant 0 : i32
    return %c0_i32, %c0_i32_0 : i32, i32
  }
  func.func @transform_21(%arg0: i32) -> (i32, i32) {
    %c0_i32 = arith.constant 0 : i32
    %c0_i32_0 = arith.constant 0 : i32
    %c0_i32_1 = arith.constant 0 : i32
    return %c0_i32, %c0_i32_0 : i32, i32
  }
  func.func @transform_22(%arg0: i32) -> (i32, i32) {
    %c0_i32 = arith.constant 0 : i32
    %c0_i32_0 = arith.constant 0 : i32
    %c0_i32_1 = arith.constant 0 : i32
    return %c0_i32, %c0_i32_0 : i32, i32
  }
  func.func @transform_23(%arg0: i32) -> (i32, i32) {
    %c0_i32 = arith.constant 0 : i32
    %c0_i32_0 = arith.constant 0 : i32
    %c0_i32_1 = arith.constant 0 : i32
    return %c0_i32, %c0_i32_0 : i32, i32
  }
  func.func @transform_24(%arg0: i32) -> (i32, i32) {
    %c0_i32 = arith.constant 0 : i32
    %c0_i32_0 = arith.constant 0 : i32
    %c0_i32_1 = arith.constant 0 : i32
    return %c0_i32, %c0_i32_0 : i32, i32
  }
  func.func @transform_25(%arg0: i32) -> (i32, i32) {
    %c0_i32 = arith.constant 0 : i32
    %c0_i32_0 = arith.constant 0 : i32
    %c0_i32_1 = arith.constant 0 : i32
    return %c0_i32, %c0_i32_0 : i32, i32
  }
  func.func @transform_26(%arg0: i32) -> (i32, i32) {
    %c0_i32 = arith.constant 0 : i32
    %c0_i32_0 = arith.constant 0 : i32
    %c0_i32_1 = arith.constant 0 : i32
    return %c0_i32, %c0_i32_0 : i32, i32
  }
  func.func @transform_27(%arg0: i32) -> (i32, i32) {
    %c0_i32 = arith.constant 0 : i32
    %c0_i32_0 = arith.constant 0 : i32
    %c0_i32_1 = arith.constant 0 : i32
    return %c0_i32, %c0_i32_0 : i32, i32
  }
  func.func @transform_28(%arg0: i32) -> (i32, i32) {
    %c0_i32 = arith.constant 0 : i32
    %c0_i32_0 = arith.constant 0 : i32
    %c0_i32_1 = arith.constant 0 : i32
    return %c0_i32, %c0_i32_0 : i32, i32
  }
  func.func @transform_29(%arg0: i32) -> (i32, i32) {
    %c0_i32 = arith.constant 0 : i32
    %c0_i32_0 = arith.constant 0 : i32
    return %arg0, %c0_i32 : i32, i32
  }
}

module attributes {stable_mosaic.version = 11 : i64} {
  func.func @kernel(%arg0: i32, %arg1: memref<16x176xbf16, #tpu.memory_space<vmem>>, %arg2: memref<16x176xf32, #tpu.memory_space<vmem>>, %arg3: memref<1x128xf32, #tpu.memory_space<vmem>>, %arg4: memref<1x128xf32, #tpu.memory_space<vmem>>, %arg5: memref<16x32xbf16, #tpu.memory_space<vmem>>, %arg6: memref<128x512xbf16, #tpu.memory_space<vmem>>, %arg7: memref<32x512xbf16, #tpu.memory_space<vmem>>, %arg8: memref<1x512xf32, #tpu.memory_space<vmem>>, %arg9: memref<32x32xbf16, #tpu.memory_space<vmem>>, %arg10: memref<512x32xbf16, #tpu.memory_space<vmem>>, %arg11: memref<1x32xf32, #tpu.memory_space<vmem>>, %arg12: memref<32x32xbf16, #tpu.memory_space<vmem>>, %arg13: memref<512x128xbf16, #tpu.memory_space<vmem>>, %arg14: memref<32x128xbf16, #tpu.memory_space<vmem>>, %arg15: memref<1x128xf32, #tpu.memory_space<vmem>>, %arg16: memref<32x16xbf16, #tpu.memory_space<vmem>>, %arg17: memref<128x16xbf16, #tpu.memory_space<vmem>>, %arg18: memref<1x16xf32, #tpu.memory_space<vmem>>, %arg19: memref<1x128xf32, #tpu.memory_space<vmem>>, %arg20: memref<1x128xf32, #tpu.memory_space<vmem>>, %arg21: memref<1x128xf32, #tpu.memory_space<vmem>>, %arg22: memref<1x128xf32, #tpu.memory_space<vmem>>, %arg23: memref<16x16xbf16, #tpu.memory_space<vmem>>, %arg24: memref<128x128xbf16, #tpu.memory_space<vmem>>, %arg25: memref<16x128xbf16, #tpu.memory_space<vmem>>, %arg26: memref<1x128xf32, #tpu.memory_space<vmem>>, %arg27: memref<16x128xf32, #tpu.memory_space<vmem>>) attributes {dimension_semantics = [#tpu.dimension_semantics<parallel>], iteration_bounds = array<i64: 1>, scalar_prefetch = 0 : i64, scratch_operands = 0 : i64, tpu.core_type = #tpu.core_type<tc>, window_params = [{transform_indices = @transform_0, window_bounds = array<i64: 16, 176>}, {transform_indices = @transform_1, window_bounds = array<i64: 16, 176>}, {pipeline_mode = #tpu.pipeline_mode<synchronous>, transform_indices = @transform_2, window_bounds = array<i64: 1, 128>}, {pipeline_mode = #tpu.pipeline_mode<synchronous>, transform_indices = @transform_3, window_bounds = array<i64: 1, 128>}, {pipeline_mode = #tpu.pipeline_mode<synchronous>, transform_indices = @transform_4, window_bounds = array<i64: 16, 32>}, {pipeline_mode = #tpu.pipeline_mode<synchronous>, transform_indices = @transform_5, window_bounds = array<i64: 128, 512>}, {pipeline_mode = #tpu.pipeline_mode<synchronous>, transform_indices = @transform_6, window_bounds = array<i64: 32, 512>}, {pipeline_mode = #tpu.pipeline_mode<synchronous>, transform_indices = @transform_7, window_bounds = array<i64: 1, 512>}, {pipeline_mode = #tpu.pipeline_mode<synchronous>, transform_indices = @transform_8, window_bounds = array<i64: 32, 32>}, {pipeline_mode = #tpu.pipeline_mode<synchronous>, transform_indices = @transform_9, window_bounds = array<i64: 512, 32>}, {pipeline_mode = #tpu.pipeline_mode<synchronous>, transform_indices = @transform_10, window_bounds = array<i64: 1, 32>}, {pipeline_mode = #tpu.pipeline_mode<synchronous>, transform_indices = @transform_11, window_bounds = array<i64: 32, 32>}, {pipeline_mode = #tpu.pipeline_mode<synchronous>, transform_indices = @transform_12, window_bounds = array<i64: 512, 128>}, {pipeline_mode = #tpu.pipeline_mode<synchronous>, transform_indices = @transform_13, window_bounds = array<i64: 32, 128>}, {pipeline_mode = #tpu.pipeline_mode<synchronous>, transform_indices = @transform_14, window_bounds = array<i64: 1, 128>}, {pipeline_mode = #tpu.pipeline_mode<synchronous>, transform_indices = @transform_15, window_bounds = array<i64: 32, 16>}, {pipeline_mode = #tpu.pipeline_mode<synchronous>, transform_indices = @transform_16, window_bounds = array<i64: 128, 16>}, {pipeline_mode = #tpu.pipeline_mode<synchronous>, transform_indices = @transform_17, window_bounds = array<i64: 1, 16>}, {pipeline_mode = #tpu.pipeline_mode<synchronous>, transform_indices = @transform_18, window_bounds = array<i64: 1, 128>}, {pipeline_mode = #tpu.pipeline_mode<synchronous>, transform_indices = @transform_19, window_bounds = array<i64: 1, 128>}, {pipeline_mode = #tpu.pipeline_mode<synchronous>, transform_indices = @transform_20, window_bounds = array<i64: 1, 128>}, {pipeline_mode = #tpu.pipeline_mode<synchronous>, transform_indices = @transform_21, window_bounds = array<i64: 1, 128>}, {pipeline_mode = #tpu.pipeline_mode<synchronous>, transform_indices = @transform_22, window_bounds = array<i64: 16, 16>}, {pipeline_mode = #tpu.pipeline_mode<synchronous>, transform_indices = @transform_23, window_bounds = array<i64: 128, 128>}, {pipeline_mode = #tpu.pipeline_mode<synchronous>, transform_indices = @transform_24, window_bounds = array<i64: 16, 128>}, {pipeline_mode = #tpu.pipeline_mode<synchronous>, transform_indices = @transform_25, window_bounds = array<i64: 1, 128>}, {transform_indices = @transform_26, window_bounds = array<i64: 16, 128>}]} {
    %c0 = arith.constant 0 : index
    %c0_0 = arith.constant 0 : index
    %0 = vector.load %arg5[%c0, %c0_0] : memref<16x32xbf16, #tpu.memory_space<vmem>>, vector<16x32xbf16>
    %c0_1 = arith.constant 0 : index
    %c0_2 = arith.constant 0 : index
    %1 = vector.load %arg6[%c0_1, %c0_2] : memref<128x512xbf16, #tpu.memory_space<vmem>>, vector<128x512xbf16>
    %c0_3 = arith.constant 0 : index
    %c0_4 = arith.constant 0 : index
    %2 = vector.load %arg7[%c0_3, %c0_4] : memref<32x512xbf16, #tpu.memory_space<vmem>>, vector<32x512xbf16>
    %c0_5 = arith.constant 0 : index
    %c0_6 = arith.constant 0 : index
    %3 = vector.load %arg8[%c0_5, %c0_6] : memref<1x512xf32, #tpu.memory_space<vmem>>, vector<1x512xf32>
    %c0_7 = arith.constant 0 : index
    %c0_8 = arith.constant 0 : index
    %4 = vector.load %arg9[%c0_7, %c0_8] : memref<32x32xbf16, #tpu.memory_space<vmem>>, vector<32x32xbf16>
    %c0_9 = arith.constant 0 : index
    %c0_10 = arith.constant 0 : index
    %5 = vector.load %arg10[%c0_9, %c0_10] : memref<512x32xbf16, #tpu.memory_space<vmem>>, vector<512x32xbf16>
    %c0_11 = arith.constant 0 : index
    %c0_12 = arith.constant 0 : index
    %6 = vector.load %arg11[%c0_11, %c0_12] : memref<1x32xf32, #tpu.memory_space<vmem>>, vector<1x32xf32>
    %c0_13 = arith.constant 0 : index
    %c0_14 = arith.constant 0 : index
    %7 = vector.load %arg12[%c0_13, %c0_14] : memref<32x32xbf16, #tpu.memory_space<vmem>>, vector<32x32xbf16>
    %c0_15 = arith.constant 0 : index
    %c0_16 = arith.constant 0 : index
    %8 = vector.load %arg13[%c0_15, %c0_16] : memref<512x128xbf16, #tpu.memory_space<vmem>>, vector<512x128xbf16>
    %c0_17 = arith.constant 0 : index
    %c0_18 = arith.constant 0 : index
    %9 = vector.load %arg14[%c0_17, %c0_18] : memref<32x128xbf16, #tpu.memory_space<vmem>>, vector<32x128xbf16>
    %c0_19 = arith.constant 0 : index
    %c0_20 = arith.constant 0 : index
    %10 = vector.load %arg15[%c0_19, %c0_20] : memref<1x128xf32, #tpu.memory_space<vmem>>, vector<1x128xf32>
    %c0_21 = arith.constant 0 : index
    %c0_22 = arith.constant 0 : index
    %11 = vector.load %arg16[%c0_21, %c0_22] : memref<32x16xbf16, #tpu.memory_space<vmem>>, vector<32x16xbf16>
    %c0_23 = arith.constant 0 : index
    %c0_24 = arith.constant 0 : index
    %12 = vector.load %arg17[%c0_23, %c0_24] : memref<128x16xbf16, #tpu.memory_space<vmem>>, vector<128x16xbf16>
    %c0_25 = arith.constant 0 : index
    %c0_26 = arith.constant 0 : index
    %13 = vector.load %arg18[%c0_25, %c0_26] : memref<1x16xf32, #tpu.memory_space<vmem>>, vector<1x16xf32>
    %c0_27 = arith.constant 0 : index
    %c0_28 = arith.constant 0 : index
    %14 = vector.load %arg19[%c0_27, %c0_28] : memref<1x128xf32, #tpu.memory_space<vmem>>, vector<1x128xf32>
    %c0_29 = arith.constant 0 : index
    %c0_30 = arith.constant 0 : index
    %15 = vector.load %arg20[%c0_29, %c0_30] : memref<1x128xf32, #tpu.memory_space<vmem>>, vector<1x128xf32>
    %c0_31 = arith.constant 0 : index
    %c0_32 = arith.constant 0 : index
    %16 = vector.load %arg21[%c0_31, %c0_32] : memref<1x128xf32, #tpu.memory_space<vmem>>, vector<1x128xf32>
    %c0_33 = arith.constant 0 : index
    %c0_34 = arith.constant 0 : index
    %17 = vector.load %arg22[%c0_33, %c0_34] : memref<1x128xf32, #tpu.memory_space<vmem>>, vector<1x128xf32>
    %c0_35 = arith.constant 0 : index
    %c0_36 = arith.constant 0 : index
    %18 = vector.load %arg23[%c0_35, %c0_36] : memref<16x16xbf16, #tpu.memory_space<vmem>>, vector<16x16xbf16>
    %c0_37 = arith.constant 0 : index
    %c0_38 = arith.constant 0 : index
    %19 = vector.load %arg24[%c0_37, %c0_38] : memref<128x128xbf16, #tpu.memory_space<vmem>>, vector<128x128xbf16>
    %c0_39 = arith.constant 0 : index
    %c0_40 = arith.constant 0 : index
    %20 = vector.load %arg25[%c0_39, %c0_40] : memref<16x128xbf16, #tpu.memory_space<vmem>>, vector<16x128xbf16>
    %c0_41 = arith.constant 0 : index
    %c0_42 = arith.constant 0 : index
    %21 = vector.load %arg26[%c0_41, %c0_42] : memref<1x128xf32, #tpu.memory_space<vmem>>, vector<1x128xf32>
    %c0_43 = arith.constant 0 : index
    %c0_44 = arith.constant 0 : index
    %22 = vector.load %arg1[%c0_43, %c0_44] : memref<16x176xbf16, #tpu.memory_space<vmem>>, vector<16x176xbf16>
    %c0_45 = arith.constant 0 : index
    %c0_46 = arith.constant 0 : index
    %23 = vector.load %arg2[%c0_45, %c0_46] : memref<16x176xf32, #tpu.memory_space<vmem>>, vector<16x176xf32>
    %24 = vector.extract_strided_slice %22 {offsets = [0, 0], sizes = [16, 128], strides = [1, 1]} : vector<16x176xbf16> to vector<16x128xbf16>
    %25 = arith.extf %24 : vector<16x128xbf16> to vector<16x128xf32>
    %26 = vector.extract_strided_slice %23 {offsets = [0, 0], sizes = [16, 128], strides = [1, 1]} : vector<16x176xf32> to vector<16x128xf32>
    %27 = arith.addf %25, %26 : vector<16x128xf32>
    %c0_47 = arith.constant 0 : index
    %c0_48 = arith.constant 0 : index
    %28 = vector.load %arg3[%c0_47, %c0_48] : memref<1x128xf32, #tpu.memory_space<vmem>>, vector<1x128xf32>
    %c0_49 = arith.constant 0 : index
    %c0_50 = arith.constant 0 : index
    %29 = vector.load %arg4[%c0_49, %c0_50] : memref<1x128xf32, #tpu.memory_space<vmem>>, vector<1x128xf32>
    %cst = arith.constant dense<0.000000e+00> : vector<16xf32>
    %30 = vector.multi_reduction <add>, %27, %cst [1] : vector<16x128xf32> to vector<16xf32>
    %31 = vector.shape_cast %30 : vector<16xf32> to vector<16x1xf32>
    %cst_51 = arith.constant 0.00999999977 : f32
    %32 = vector.broadcast %cst_51 : f32 to vector<16x1xf32>
    %33 = arith.mulf %31, %32 : vector<16x1xf32>
    %34 = vector.broadcast %33 : vector<16x1xf32> to vector<16x128xf32>
    %35 = arith.subf %27, %34 : vector<16x128xf32>
    %36 = tpu.iota {dimensions = array<i32: 1>} : vector<1x128xi32>
    %c100_i32 = arith.constant 100 : i32
    %37 = vector.broadcast %c100_i32 : i32 to vector<1x128xi32>
    %38 = arith.cmpi slt, %36, %37 : vector<1x128xi32>
    %39 = arith.extui %38 : vector<1x128xi1> to vector<1x128xi32>
    %40 = arith.sitofp %39 : vector<1x128xi32> to vector<1x128xf32>
    %41 = vector.broadcast %40 : vector<1x128xf32> to vector<16x128xf32>
    %42 = arith.mulf %35, %41 : vector<16x128xf32>
    %43 = arith.mulf %42, %42 : vector<16x128xf32>
    %cst_52 = arith.constant dense<0.000000e+00> : vector<16xf32>
    %44 = vector.multi_reduction <add>, %43, %cst_52 [1] : vector<16x128xf32> to vector<16xf32>
    %45 = vector.shape_cast %44 : vector<16xf32> to vector<16x1xf32>
    %cst_53 = arith.constant 0.00999999977 : f32
    %46 = vector.broadcast %cst_53 : f32 to vector<16x1xf32>
    %47 = arith.mulf %45, %46 : vector<16x1xf32>
    %cst_54 = arith.constant 9.99999974E-6 : f32
    %48 = vector.broadcast %cst_54 : f32 to vector<16x1xf32>
    %49 = arith.addf %47, %48 : vector<16x1xf32>
    %50 = math.rsqrt %49 : vector<16x1xf32>
    %51 = vector.broadcast %50 : vector<16x1xf32> to vector<16x128xf32>
    %52 = arith.mulf %42, %51 : vector<16x128xf32>
    %53 = vector.broadcast %28 : vector<1x128xf32> to vector<16x128xf32>
    %54 = arith.mulf %52, %53 : vector<16x128xf32>
    %55 = vector.broadcast %29 : vector<1x128xf32> to vector<16x128xf32>
    %56 = arith.addf %54, %55 : vector<16x128xf32>
    %57 = vector.extract_strided_slice %22 {offsets = [0, 128], sizes = [16, 16], strides = [1, 1]} : vector<16x176xbf16> to vector<16x16xbf16>
    %58 = arith.extf %57 : vector<16x16xbf16> to vector<16x16xf32>
    %59 = vector.extract_strided_slice %23 {offsets = [0, 128], sizes = [16, 16], strides = [1, 1]} : vector<16x176xf32> to vector<16x16xf32>
    %60 = arith.addf %58, %59 : vector<16x16xf32>
    %61 = vector.extract_strided_slice %22 {offsets = [0, 144], sizes = [16, 16], strides = [1, 1]} : vector<16x176xbf16> to vector<16x16xbf16>
    %62 = arith.extf %61 : vector<16x16xbf16> to vector<16x16xf32>
    %63 = vector.extract_strided_slice %23 {offsets = [0, 144], sizes = [16, 16], strides = [1, 1]} : vector<16x176xf32> to vector<16x16xf32>
    %64 = arith.addf %62, %63 : vector<16x16xf32>
    %65 = vector.extract_strided_slice %22 {offsets = [0, 160], sizes = [16, 16], strides = [1, 1]} : vector<16x176xbf16> to vector<16x16xbf16>
    %66 = arith.extf %65 : vector<16x16xbf16> to vector<16x16xf32>
    %67 = vector.extract_strided_slice %23 {offsets = [0, 160], sizes = [16, 16], strides = [1, 1]} : vector<16x176xf32> to vector<16x16xf32>
    %68 = arith.addf %66, %67 : vector<16x16xf32>
    %69 = arith.mulf %60, %60 : vector<16x16xf32>
    %70 = arith.mulf %64, %64 : vector<16x16xf32>
    %71 = arith.addf %69, %70 : vector<16x16xf32>
    %72 = arith.mulf %68, %68 : vector<16x16xf32>
    %73 = arith.addf %71, %72 : vector<16x16xf32>
    %cst_55 = arith.constant 9.99999993E-9 : f32
    %74 = vector.broadcast %cst_55 : f32 to vector<16x16xf32>
    %75 = arith.maximumf %73, %74 : vector<16x16xf32>
    %cst_56 = arith.constant dense<0.000000e+00> : vector<16xf32>
    %76 = vector.multi_reduction <add>, %75, %cst_56 [1] : vector<16x16xf32> to vector<16xf32>
    %77 = vector.shape_cast %76 : vector<16xf32> to vector<16x1xf32>
    %cst_57 = arith.constant 1.600000e+01 : f32
    %78 = vector.broadcast %cst_57 : f32 to vector<16x1xf32>
    %79 = arith.divf %77, %78 : vector<16x1xf32>
    %80 = math.rsqrt %79 : vector<16x1xf32>
    %81 = vector.broadcast %80 : vector<16x1xf32> to vector<16x16xf32>
    %82 = arith.mulf %60, %81 : vector<16x16xf32>
    %83 = vector.broadcast %80 : vector<16x1xf32> to vector<16x16xf32>
    %84 = arith.mulf %64, %83 : vector<16x16xf32>
    %85 = vector.broadcast %80 : vector<16x1xf32> to vector<16x16xf32>
    %86 = arith.mulf %68, %85 : vector<16x16xf32>
    %87 = tpu.concatenate %82, %84, %86 in 0 : vector<16x16xf32>, vector<16x16xf32>, vector<16x16xf32> -> vector<48x16xf32>
    %88 = arith.truncf %87 : vector<48x16xf32> to vector<48x16xbf16>
    %cst_58 = arith.constant dense<0.000000e+00> : vector<48x32xf32>
    %89 = tpu.matmul %88, %0, %cst_58 {dimension_numbers = #tpu.dot_dimension_numbers<[1], [0], [0], [1], [0, 0, 1, 1], [], []>} : vector<48x16xbf16>, vector<16x32xbf16>, vector<48x32xf32> -> vector<48x32xf32>
    %90 = vector.extract_strided_slice %89 {offsets = [0, 0], sizes = [16, 32], strides = [1, 1]} : vector<48x32xf32> to vector<16x32xf32>
    %91 = vector.extract_strided_slice %89 {offsets = [16, 0], sizes = [16, 32], strides = [1, 1]} : vector<48x32xf32> to vector<16x32xf32>
    %92 = vector.extract_strided_slice %89 {offsets = [32, 0], sizes = [16, 32], strides = [1, 1]} : vector<48x32xf32> to vector<16x32xf32>
    %93 = arith.mulf %90, %90 : vector<16x32xf32>
    %94 = arith.mulf %91, %91 : vector<16x32xf32>
    %95 = arith.addf %93, %94 : vector<16x32xf32>
    %96 = arith.mulf %92, %92 : vector<16x32xf32>
    %97 = arith.addf %95, %96 : vector<16x32xf32>
    %cst_59 = arith.constant 9.99999993E-9 : f32
    %98 = vector.broadcast %cst_59 : f32 to vector<16x32xf32>
    %99 = arith.maximumf %97, %98 : vector<16x32xf32>
    %100 = math.sqrt %99 : vector<16x32xf32>
    %101 = arith.truncf %56 : vector<16x128xf32> to vector<16x128xbf16>
    %cst_60 = arith.constant dense<0.000000e+00> : vector<16x512xf32>
    %102 = tpu.matmul %101, %1, %cst_60 {dimension_numbers = #tpu.dot_dimension_numbers<[1], [0], [0], [1], [0, 0, 1, 1], [], []>} : vector<16x128xbf16>, vector<128x512xbf16>, vector<16x512xf32> -> vector<16x512xf32>
    %103 = arith.truncf %100 : vector<16x32xf32> to vector<16x32xbf16>
    %cst_61 = arith.constant dense<0.000000e+00> : vector<16x512xf32>
    %104 = tpu.matmul %103, %2, %cst_61 {dimension_numbers = #tpu.dot_dimension_numbers<[1], [0], [0], [1], [0, 0, 1, 1], [], []>} : vector<16x32xbf16>, vector<32x512xbf16>, vector<16x512xf32> -> vector<16x512xf32>
    %105 = arith.addf %102, %104 : vector<16x512xf32>
    %106 = vector.broadcast %3 : vector<1x512xf32> to vector<16x512xf32>
    %107 = arith.addf %105, %106 : vector<16x512xf32>
    %108 = arith.truncf %107 : vector<16x512xf32> to vector<16x512xbf16>
    %cst_62 = arith.constant dense<0.000000e+00> : vector<16x32xf32>
    %109 = tpu.matmul %108, %5, %cst_62 {dimension_numbers = #tpu.dot_dimension_numbers<[1], [0], [0], [1], [0, 0, 1, 1], [], []>} : vector<16x512xbf16>, vector<512x32xbf16>, vector<16x32xf32> -> vector<16x32xf32>
    %110 = vector.broadcast %6 : vector<1x32xf32> to vector<16x32xf32>
    %111 = arith.addf %109, %110 : vector<16x32xf32>
    %112 = arith.negf %111 : vector<16x32xf32>
    %113 = math.exp %112 : vector<16x32xf32>
    %cst_63 = arith.constant 1.000000e+00 : f32
    %114 = vector.broadcast %cst_63 : f32 to vector<16x32xf32>
    %115 = arith.addf %114, %113 : vector<16x32xf32>
    %116 = arith.divf %114, %115 : vector<16x32xf32>
    %117 = arith.truncf %89 : vector<48x32xf32> to vector<48x32xbf16>
    %cst_64 = arith.constant dense<0.000000e+00> : vector<48x32xf32>
    %118 = tpu.matmul %117, %4, %cst_64 {dimension_numbers = #tpu.dot_dimension_numbers<[1], [0], [0], [1], [0, 0, 1, 1], [], []>} : vector<48x32xbf16>, vector<32x32xbf16>, vector<48x32xf32> -> vector<48x32xf32>
    %119 = vector.extract_strided_slice %118 {offsets = [0, 0], sizes = [16, 32], strides = [1, 1]} : vector<48x32xf32> to vector<16x32xf32>
    %120 = vector.extract_strided_slice %118 {offsets = [16, 0], sizes = [16, 32], strides = [1, 1]} : vector<48x32xf32> to vector<16x32xf32>
    %121 = vector.extract_strided_slice %118 {offsets = [32, 0], sizes = [16, 32], strides = [1, 1]} : vector<48x32xf32> to vector<16x32xf32>
    %122 = arith.mulf %119, %116 : vector<16x32xf32>
    %123 = arith.mulf %120, %116 : vector<16x32xf32>
    %124 = arith.mulf %121, %116 : vector<16x32xf32>
    %cst_65 = arith.constant 0.000000e+00 : f32
    %125 = vector.broadcast %cst_65 : f32 to vector<16x512xf32>
    %126 = arith.maximumf %107, %125 : vector<16x512xf32>
    %127 = tpu.concatenate %122, %123, %124 in 0 : vector<16x32xf32>, vector<16x32xf32>, vector<16x32xf32> -> vector<48x32xf32>
    %128 = arith.truncf %127 : vector<48x32xf32> to vector<48x32xbf16>
    %cst_66 = arith.constant dense<0.000000e+00> : vector<48x32xf32>
    %129 = tpu.matmul %128, %7, %cst_66 {dimension_numbers = #tpu.dot_dimension_numbers<[1], [0], [0], [1], [0, 0, 1, 1], [], []>} : vector<48x32xbf16>, vector<32x32xbf16>, vector<48x32xf32> -> vector<48x32xf32>
    %130 = vector.extract_strided_slice %129 {offsets = [0, 0], sizes = [16, 32], strides = [1, 1]} : vector<48x32xf32> to vector<16x32xf32>
    %131 = vector.extract_strided_slice %129 {offsets = [16, 0], sizes = [16, 32], strides = [1, 1]} : vector<48x32xf32> to vector<16x32xf32>
    %132 = vector.extract_strided_slice %129 {offsets = [32, 0], sizes = [16, 32], strides = [1, 1]} : vector<48x32xf32> to vector<16x32xf32>
    %133 = arith.mulf %130, %130 : vector<16x32xf32>
    %134 = arith.mulf %131, %131 : vector<16x32xf32>
    %135 = arith.addf %133, %134 : vector<16x32xf32>
    %136 = arith.mulf %132, %132 : vector<16x32xf32>
    %137 = arith.addf %135, %136 : vector<16x32xf32>
    %cst_67 = arith.constant 9.99999993E-9 : f32
    %138 = vector.broadcast %cst_67 : f32 to vector<16x32xf32>
    %139 = arith.maximumf %137, %138 : vector<16x32xf32>
    %140 = math.sqrt %139 : vector<16x32xf32>
    %141 = arith.truncf %126 : vector<16x512xf32> to vector<16x512xbf16>
    %cst_68 = arith.constant dense<0.000000e+00> : vector<16x128xf32>
    %142 = tpu.matmul %141, %8, %cst_68 {dimension_numbers = #tpu.dot_dimension_numbers<[1], [0], [0], [1], [0, 0, 1, 1], [], []>} : vector<16x512xbf16>, vector<512x128xbf16>, vector<16x128xf32> -> vector<16x128xf32>
    %143 = arith.truncf %140 : vector<16x32xf32> to vector<16x32xbf16>
    %cst_69 = arith.constant dense<0.000000e+00> : vector<16x128xf32>
    %144 = tpu.matmul %143, %9, %cst_69 {dimension_numbers = #tpu.dot_dimension_numbers<[1], [0], [0], [1], [0, 0, 1, 1], [], []>} : vector<16x32xbf16>, vector<32x128xbf16>, vector<16x128xf32> -> vector<16x128xf32>
    %145 = arith.addf %142, %144 : vector<16x128xf32>
    %146 = vector.broadcast %10 : vector<1x128xf32> to vector<16x128xf32>
    %147 = arith.addf %145, %146 : vector<16x128xf32>
    %148 = arith.truncf %147 : vector<16x128xf32> to vector<16x128xbf16>
    %cst_70 = arith.constant dense<0.000000e+00> : vector<16x16xf32>
    %149 = tpu.matmul %148, %12, %cst_70 {dimension_numbers = #tpu.dot_dimension_numbers<[1], [0], [0], [1], [0, 0, 1, 1], [], []>} : vector<16x128xbf16>, vector<128x16xbf16>, vector<16x16xf32> -> vector<16x16xf32>
    %150 = vector.broadcast %13 : vector<1x16xf32> to vector<16x16xf32>
    %151 = arith.addf %149, %150 : vector<16x16xf32>
    %152 = arith.negf %151 : vector<16x16xf32>
    %153 = math.exp %152 : vector<16x16xf32>
    %cst_71 = arith.constant 1.000000e+00 : f32
    %154 = vector.broadcast %cst_71 : f32 to vector<16x16xf32>
    %155 = arith.addf %154, %153 : vector<16x16xf32>
    %156 = arith.divf %154, %155 : vector<16x16xf32>
    %157 = arith.truncf %129 : vector<48x32xf32> to vector<48x32xbf16>
    %cst_72 = arith.constant dense<0.000000e+00> : vector<48x16xf32>
    %158 = tpu.matmul %157, %11, %cst_72 {dimension_numbers = #tpu.dot_dimension_numbers<[1], [0], [0], [1], [0, 0, 1, 1], [], []>} : vector<48x32xbf16>, vector<32x16xbf16>, vector<48x16xf32> -> vector<48x16xf32>
    %159 = vector.extract_strided_slice %158 {offsets = [0, 0], sizes = [16, 16], strides = [1, 1]} : vector<48x16xf32> to vector<16x16xf32>
    %160 = vector.extract_strided_slice %158 {offsets = [16, 0], sizes = [16, 16], strides = [1, 1]} : vector<48x16xf32> to vector<16x16xf32>
    %161 = vector.extract_strided_slice %158 {offsets = [32, 0], sizes = [16, 16], strides = [1, 1]} : vector<48x16xf32> to vector<16x16xf32>
    %162 = arith.mulf %159, %156 : vector<16x16xf32>
    %163 = arith.mulf %160, %156 : vector<16x16xf32>
    %164 = arith.mulf %161, %156 : vector<16x16xf32>
    %165 = arith.addf %56, %147 : vector<16x128xf32>
    %cst_73 = arith.constant dense<0.000000e+00> : vector<16xf32>
    %166 = vector.multi_reduction <add>, %165, %cst_73 [1] : vector<16x128xf32> to vector<16xf32>
    %167 = vector.shape_cast %166 : vector<16xf32> to vector<16x1xf32>
    %cst_74 = arith.constant 0.00999999977 : f32
    %168 = vector.broadcast %cst_74 : f32 to vector<16x1xf32>
    %169 = arith.mulf %167, %168 : vector<16x1xf32>
    %170 = vector.broadcast %169 : vector<16x1xf32> to vector<16x128xf32>
    %171 = arith.subf %165, %170 : vector<16x128xf32>
    %172 = tpu.iota {dimensions = array<i32: 1>} : vector<1x128xi32>
    %c100_i32_75 = arith.constant 100 : i32
    %173 = vector.broadcast %c100_i32_75 : i32 to vector<1x128xi32>
    %174 = arith.cmpi slt, %172, %173 : vector<1x128xi32>
    %175 = arith.extui %174 : vector<1x128xi1> to vector<1x128xi32>
    %176 = arith.sitofp %175 : vector<1x128xi32> to vector<1x128xf32>
    %177 = vector.broadcast %176 : vector<1x128xf32> to vector<16x128xf32>
    %178 = arith.mulf %171, %177 : vector<16x128xf32>
    %179 = arith.mulf %178, %178 : vector<16x128xf32>
    %cst_76 = arith.constant dense<0.000000e+00> : vector<16xf32>
    %180 = vector.multi_reduction <add>, %179, %cst_76 [1] : vector<16x128xf32> to vector<16xf32>
    %181 = vector.shape_cast %180 : vector<16xf32> to vector<16x1xf32>
    %cst_77 = arith.constant 0.00999999977 : f32
    %182 = vector.broadcast %cst_77 : f32 to vector<16x1xf32>
    %183 = arith.mulf %181, %182 : vector<16x1xf32>
    %cst_78 = arith.constant 9.99999974E-6 : f32
    %184 = vector.broadcast %cst_78 : f32 to vector<16x1xf32>
    %185 = arith.addf %183, %184 : vector<16x1xf32>
    %186 = math.rsqrt %185 : vector<16x1xf32>
    %187 = vector.broadcast %186 : vector<16x1xf32> to vector<16x128xf32>
    %188 = arith.mulf %178, %187 : vector<16x128xf32>
    %189 = vector.broadcast %14 : vector<1x128xf32> to vector<16x128xf32>
    %190 = arith.mulf %188, %189 : vector<16x128xf32>
    %191 = vector.broadcast %15 : vector<1x128xf32> to vector<16x128xf32>
    %192 = arith.addf %190, %191 : vector<16x128xf32>
    %193 = arith.addf %82, %162 : vector<16x16xf32>
    %194 = arith.addf %84, %163 : vector<16x16xf32>
    %195 = arith.addf %86, %164 : vector<16x16xf32>
    %196 = arith.mulf %193, %193 : vector<16x16xf32>
    %197 = arith.mulf %194, %194 : vector<16x16xf32>
    %198 = arith.addf %196, %197 : vector<16x16xf32>
    %199 = arith.mulf %195, %195 : vector<16x16xf32>
    %200 = arith.addf %198, %199 : vector<16x16xf32>
    %cst_79 = arith.constant 9.99999993E-9 : f32
    %201 = vector.broadcast %cst_79 : f32 to vector<16x16xf32>
    %202 = arith.maximumf %200, %201 : vector<16x16xf32>
    %cst_80 = arith.constant dense<0.000000e+00> : vector<16xf32>
    %203 = vector.multi_reduction <add>, %202, %cst_80 [1] : vector<16x16xf32> to vector<16xf32>
    %204 = vector.shape_cast %203 : vector<16xf32> to vector<16x1xf32>
    %cst_81 = arith.constant 1.600000e+01 : f32
    %205 = vector.broadcast %cst_81 : f32 to vector<16x1xf32>
    %206 = arith.divf %204, %205 : vector<16x1xf32>
    %207 = math.rsqrt %206 : vector<16x1xf32>
    %208 = vector.broadcast %207 : vector<16x1xf32> to vector<16x16xf32>
    %209 = arith.mulf %193, %208 : vector<16x16xf32>
    %210 = vector.broadcast %207 : vector<16x1xf32> to vector<16x16xf32>
    %211 = arith.mulf %194, %210 : vector<16x16xf32>
    %212 = vector.broadcast %207 : vector<16x1xf32> to vector<16x16xf32>
    %213 = arith.mulf %195, %212 : vector<16x16xf32>
    %cst_82 = arith.constant dense<0.000000e+00> : vector<16xf32>
    %214 = vector.multi_reduction <add>, %192, %cst_82 [1] : vector<16x128xf32> to vector<16xf32>
    %215 = vector.shape_cast %214 : vector<16xf32> to vector<16x1xf32>
    %cst_83 = arith.constant 0.00999999977 : f32
    %216 = vector.broadcast %cst_83 : f32 to vector<16x1xf32>
    %217 = arith.mulf %215, %216 : vector<16x1xf32>
    %218 = vector.broadcast %217 : vector<16x1xf32> to vector<16x128xf32>
    %219 = arith.subf %192, %218 : vector<16x128xf32>
    %220 = tpu.iota {dimensions = array<i32: 1>} : vector<1x128xi32>
    %c100_i32_84 = arith.constant 100 : i32
    %221 = vector.broadcast %c100_i32_84 : i32 to vector<1x128xi32>
    %222 = arith.cmpi slt, %220, %221 : vector<1x128xi32>
    %223 = arith.extui %222 : vector<1x128xi1> to vector<1x128xi32>
    %224 = arith.sitofp %223 : vector<1x128xi32> to vector<1x128xf32>
    %225 = vector.broadcast %224 : vector<1x128xf32> to vector<16x128xf32>
    %226 = arith.mulf %219, %225 : vector<16x128xf32>
    %227 = arith.mulf %226, %226 : vector<16x128xf32>
    %cst_85 = arith.constant dense<0.000000e+00> : vector<16xf32>
    %228 = vector.multi_reduction <add>, %227, %cst_85 [1] : vector<16x128xf32> to vector<16xf32>
    %229 = vector.shape_cast %228 : vector<16xf32> to vector<16x1xf32>
    %cst_86 = arith.constant 0.00999999977 : f32
    %230 = vector.broadcast %cst_86 : f32 to vector<16x1xf32>
    %231 = arith.mulf %229, %230 : vector<16x1xf32>
    %cst_87 = arith.constant 9.99999974E-6 : f32
    %232 = vector.broadcast %cst_87 : f32 to vector<16x1xf32>
    %233 = arith.addf %231, %232 : vector<16x1xf32>
    %234 = math.rsqrt %233 : vector<16x1xf32>
    %235 = vector.broadcast %234 : vector<16x1xf32> to vector<16x128xf32>
    %236 = arith.mulf %226, %235 : vector<16x128xf32>
    %237 = vector.broadcast %16 : vector<1x128xf32> to vector<16x128xf32>
    %238 = arith.mulf %236, %237 : vector<16x128xf32>
    %239 = vector.broadcast %17 : vector<1x128xf32> to vector<16x128xf32>
    %240 = arith.addf %238, %239 : vector<16x128xf32>
    %241 = arith.mulf %209, %209 : vector<16x16xf32>
    %242 = arith.mulf %211, %211 : vector<16x16xf32>
    %243 = arith.addf %241, %242 : vector<16x16xf32>
    %244 = arith.mulf %213, %213 : vector<16x16xf32>
    %245 = arith.addf %243, %244 : vector<16x16xf32>
    %cst_88 = arith.constant 9.99999993E-9 : f32
    %246 = vector.broadcast %cst_88 : f32 to vector<16x16xf32>
    %247 = arith.maximumf %245, %246 : vector<16x16xf32>
    %cst_89 = arith.constant dense<0.000000e+00> : vector<16xf32>
    %248 = vector.multi_reduction <add>, %247, %cst_89 [1] : vector<16x16xf32> to vector<16xf32>
    %249 = vector.shape_cast %248 : vector<16xf32> to vector<16x1xf32>
    %cst_90 = arith.constant 1.600000e+01 : f32
    %250 = vector.broadcast %cst_90 : f32 to vector<16x1xf32>
    %251 = arith.divf %249, %250 : vector<16x1xf32>
    %252 = math.rsqrt %251 : vector<16x1xf32>
    %253 = vector.broadcast %252 : vector<16x1xf32> to vector<16x16xf32>
    %254 = arith.mulf %209, %253 : vector<16x16xf32>
    %255 = vector.broadcast %252 : vector<16x1xf32> to vector<16x16xf32>
    %256 = arith.mulf %211, %255 : vector<16x16xf32>
    %257 = vector.broadcast %252 : vector<16x1xf32> to vector<16x16xf32>
    %258 = arith.mulf %213, %257 : vector<16x16xf32>
    %259 = tpu.concatenate %254, %256, %258 in 0 : vector<16x16xf32>, vector<16x16xf32>, vector<16x16xf32> -> vector<48x16xf32>
    %260 = arith.truncf %259 : vector<48x16xf32> to vector<48x16xbf16>
    %cst_91 = arith.constant dense<0.000000e+00> : vector<48x16xf32>
    %261 = tpu.matmul %260, %18, %cst_91 {dimension_numbers = #tpu.dot_dimension_numbers<[1], [0], [0], [1], [0, 0, 1, 1], [], []>} : vector<48x16xbf16>, vector<16x16xbf16>, vector<48x16xf32> -> vector<48x16xf32>
    %262 = vector.extract_strided_slice %261 {offsets = [0, 0], sizes = [16, 16], strides = [1, 1]} : vector<48x16xf32> to vector<16x16xf32>
    %263 = vector.extract_strided_slice %261 {offsets = [16, 0], sizes = [16, 16], strides = [1, 1]} : vector<48x16xf32> to vector<16x16xf32>
    %264 = vector.extract_strided_slice %261 {offsets = [32, 0], sizes = [16, 16], strides = [1, 1]} : vector<48x16xf32> to vector<16x16xf32>
    %265 = arith.mulf %262, %262 : vector<16x16xf32>
    %266 = arith.mulf %263, %263 : vector<16x16xf32>
    %267 = arith.addf %265, %266 : vector<16x16xf32>
    %268 = arith.mulf %264, %264 : vector<16x16xf32>
    %269 = arith.addf %267, %268 : vector<16x16xf32>
    %cst_92 = arith.constant 9.99999993E-9 : f32
    %270 = vector.broadcast %cst_92 : f32 to vector<16x16xf32>
    %271 = arith.maximumf %269, %270 : vector<16x16xf32>
    %272 = math.sqrt %271 : vector<16x16xf32>
    %273 = arith.truncf %240 : vector<16x128xf32> to vector<16x128xbf16>
    %cst_93 = arith.constant dense<0.000000e+00> : vector<16x128xf32>
    %274 = tpu.matmul %273, %19, %cst_93 {dimension_numbers = #tpu.dot_dimension_numbers<[1], [0], [0], [1], [0, 0, 1, 1], [], []>} : vector<16x128xbf16>, vector<128x128xbf16>, vector<16x128xf32> -> vector<16x128xf32>
    %275 = arith.truncf %272 : vector<16x16xf32> to vector<16x16xbf16>
    %cst_94 = arith.constant dense<0.000000e+00> : vector<16x128xf32>
    %276 = tpu.matmul %275, %20, %cst_94 {dimension_numbers = #tpu.dot_dimension_numbers<[1], [0], [0], [1], [0, 0, 1, 1], [], []>} : vector<16x16xbf16>, vector<16x128xbf16>, vector<16x128xf32> -> vector<16x128xf32>
    %277 = arith.addf %274, %276 : vector<16x128xf32>
    %278 = vector.broadcast %21 : vector<1x128xf32> to vector<16x128xf32>
    %279 = arith.addf %277, %278 : vector<16x128xf32>
    %cst_95 = arith.constant 0.000000e+00 : f32
    %280 = vector.broadcast %cst_95 : f32 to vector<16x128xf32>
    %281 = arith.maximumf %279, %280 : vector<16x128xf32>
    %c0_96 = arith.constant 0 : index
    %c0_97 = arith.constant 0 : index
    %282 = vector.load %arg27[%c0_96, %c0_97] : memref<16x128xf32, #tpu.memory_space<vmem>>, vector<16x128xf32>
    tpu.vector_store %arg27[%c0_96, %c0_97], %281 {strides = array<i32>} : memref<16x128xf32, #tpu.memory_space<vmem>>, vector<16x128xf32>,
    return
  }
  func.func @transform_0(%arg0: i32) -> (i32, i32) {
    %c0_i32 = arith.constant 0 : i32
    %c0_i32_0 = arith.constant 0 : i32
    return %arg0, %c0_i32 : i32, i32
  }
  func.func @transform_1(%arg0: i32) -> (i32, i32) {
    %c0_i32 = arith.constant 0 : i32
    %c0_i32_0 = arith.constant 0 : i32
    return %arg0, %c0_i32 : i32, i32
  }
  func.func @transform_2(%arg0: i32) -> (i32, i32) {
    %c0_i32 = arith.constant 0 : i32
    %c0_i32_0 = arith.constant 0 : i32
    %c0_i32_1 = arith.constant 0 : i32
    return %c0_i32, %c0_i32_0 : i32, i32
  }
  func.func @transform_3(%arg0: i32) -> (i32, i32) {
    %c0_i32 = arith.constant 0 : i32
    %c0_i32_0 = arith.constant 0 : i32
    %c0_i32_1 = arith.constant 0 : i32
    return %c0_i32, %c0_i32_0 : i32, i32
  }
  func.func @transform_4(%arg0: i32) -> (i32, i32) {
    %c0_i32 = arith.constant 0 : i32
    %c0_i32_0 = arith.constant 0 : i32
    %c0_i32_1 = arith.constant 0 : i32
    return %c0_i32, %c0_i32_0 : i32, i32
  }
  func.func @transform_5(%arg0: i32) -> (i32, i32) {
    %c0_i32 = arith.constant 0 : i32
    %c0_i32_0 = arith.constant 0 : i32
    %c0_i32_1 = arith.constant 0 : i32
    return %c0_i32, %c0_i32_0 : i32, i32
  }
  func.func @transform_6(%arg0: i32) -> (i32, i32) {
    %c0_i32 = arith.constant 0 : i32
    %c0_i32_0 = arith.constant 0 : i32
    %c0_i32_1 = arith.constant 0 : i32
    return %c0_i32, %c0_i32_0 : i32, i32
  }
  func.func @transform_7(%arg0: i32) -> (i32, i32) {
    %c0_i32 = arith.constant 0 : i32
    %c0_i32_0 = arith.constant 0 : i32
    %c0_i32_1 = arith.constant 0 : i32
    return %c0_i32, %c0_i32_0 : i32, i32
  }
  func.func @transform_8(%arg0: i32) -> (i32, i32) {
    %c0_i32 = arith.constant 0 : i32
    %c0_i32_0 = arith.constant 0 : i32
    %c0_i32_1 = arith.constant 0 : i32
    return %c0_i32, %c0_i32_0 : i32, i32
  }
  func.func @transform_9(%arg0: i32) -> (i32, i32) {
    %c0_i32 = arith.constant 0 : i32
    %c0_i32_0 = arith.constant 0 : i32
    %c0_i32_1 = arith.constant 0 : i32
    return %c0_i32, %c0_i32_0 : i32, i32
  }
  func.func @transform_10(%arg0: i32) -> (i32, i32) {
    %c0_i32 = arith.constant 0 : i32
    %c0_i32_0 = arith.constant 0 : i32
    %c0_i32_1 = arith.constant 0 : i32
    return %c0_i32, %c0_i32_0 : i32, i32
  }
  func.func @transform_11(%arg0: i32) -> (i32, i32) {
    %c0_i32 = arith.constant 0 : i32
    %c0_i32_0 = arith.constant 0 : i32
    %c0_i32_1 = arith.constant 0 : i32
    return %c0_i32, %c0_i32_0 : i32, i32
  }
  func.func @transform_12(%arg0: i32) -> (i32, i32) {
    %c0_i32 = arith.constant 0 : i32
    %c0_i32_0 = arith.constant 0 : i32
    %c0_i32_1 = arith.constant 0 : i32
    return %c0_i32, %c0_i32_0 : i32, i32
  }
  func.func @transform_13(%arg0: i32) -> (i32, i32) {
    %c0_i32 = arith.constant 0 : i32
    %c0_i32_0 = arith.constant 0 : i32
    %c0_i32_1 = arith.constant 0 : i32
    return %c0_i32, %c0_i32_0 : i32, i32
  }
  func.func @transform_14(%arg0: i32) -> (i32, i32) {
    %c0_i32 = arith.constant 0 : i32
    %c0_i32_0 = arith.constant 0 : i32
    %c0_i32_1 = arith.constant 0 : i32
    return %c0_i32, %c0_i32_0 : i32, i32
  }
  func.func @transform_15(%arg0: i32) -> (i32, i32) {
    %c0_i32 = arith.constant 0 : i32
    %c0_i32_0 = arith.constant 0 : i32
    %c0_i32_1 = arith.constant 0 : i32
    return %c0_i32, %c0_i32_0 : i32, i32
  }
  func.func @transform_16(%arg0: i32) -> (i32, i32) {
    %c0_i32 = arith.constant 0 : i32
    %c0_i32_0 = arith.constant 0 : i32
    %c0_i32_1 = arith.constant 0 : i32
    return %c0_i32, %c0_i32_0 : i32, i32
  }
  func.func @transform_17(%arg0: i32) -> (i32, i32) {
    %c0_i32 = arith.constant 0 : i32
    %c0_i32_0 = arith.constant 0 : i32
    %c0_i32_1 = arith.constant 0 : i32
    return %c0_i32, %c0_i32_0 : i32, i32
  }
  func.func @transform_18(%arg0: i32) -> (i32, i32) {
    %c0_i32 = arith.constant 0 : i32
    %c0_i32_0 = arith.constant 0 : i32
    %c0_i32_1 = arith.constant 0 : i32
    return %c0_i32, %c0_i32_0 : i32, i32
  }
  func.func @transform_19(%arg0: i32) -> (i32, i32) {
    %c0_i32 = arith.constant 0 : i32
    %c0_i32_0 = arith.constant 0 : i32
    %c0_i32_1 = arith.constant 0 : i32
    return %c0_i32, %c0_i32_0 : i32, i32
  }
  func.func @transform_20(%arg0: i32) -> (i32, i32) {
    %c0_i32 = arith.constant 0 : i32
    %c0_i32_0 = arith.constant 0 : i32
    %c0_i32_1 = arith.constant 0 : i32
    return %c0_i32, %c0_i32_0 : i32, i32
  }
  func.func @transform_21(%arg0: i32) -> (i32, i32) {
    %c0_i32 = arith.constant 0 : i32
    %c0_i32_0 = arith.constant 0 : i32
    %c0_i32_1 = arith.constant 0 : i32
    return %c0_i32, %c0_i32_0 : i32, i32
  }
  func.func @transform_22(%arg0: i32) -> (i32, i32) {
    %c0_i32 = arith.constant 0 : i32
    %c0_i32_0 = arith.constant 0 : i32
    %c0_i32_1 = arith.constant 0 : i32
    return %c0_i32, %c0_i32_0 : i32, i32
  }
  func.func @transform_23(%arg0: i32) -> (i32, i32) {
    %c0_i32 = arith.constant 0 : i32
    %c0_i32_0 = arith.constant 0 : i32
    %c0_i32_1 = arith.constant 0 : i32
    return %c0_i32, %c0_i32_0 : i32, i32
  }
  func.func @transform_24(%arg0: i32) -> (i32, i32) {
    %c0_i32 = arith.constant 0 : i32
    %c0_i32_0 = arith.constant 0 : i32
    %c0_i32_1 = arith.constant 0 : i32
    return %c0_i32, %c0_i32_0 : i32, i32
  }
  func.func @transform_25(%arg0: i32) -> (i32, i32) {
    %c0_i32 = arith.constant 0 : i32
    %c0_i32_0 = arith.constant 0 : i32
    %c0_i32_1 = arith.constant 0 : i32
    return %c0_i32, %c0_i32_0 : i32, i32
  }
  func.func @transform_26(%arg0: i32) -> (i32, i32) {
    %c0_i32 = arith.constant 0 : i32
    %c0_i32_0 = arith.constant 0 : i32
    return %arg0, %c0_i32 : i32, i32
  }
}

module attributes {stable_mosaic.version = 11 : i64} {
  func.func @kernel(%arg0: i32, %arg1: memref<16x176xbf16, #tpu.memory_space<vmem>>, %arg2: memref<16x176xf32, #tpu.memory_space<vmem>>, %arg3: memref<1x128xf32, #tpu.memory_space<vmem>>, %arg4: memref<1x128xf32, #tpu.memory_space<vmem>>, %arg5: memref<16x32xbf16, #tpu.memory_space<vmem>>, %arg6: memref<128x512xbf16, #tpu.memory_space<vmem>>, %arg7: memref<32x512xbf16, #tpu.memory_space<vmem>>, %arg8: memref<1x512xf32, #tpu.memory_space<vmem>>, %arg9: memref<32x32xbf16, #tpu.memory_space<vmem>>, %arg10: memref<512x32xbf16, #tpu.memory_space<vmem>>, %arg11: memref<1x32xf32, #tpu.memory_space<vmem>>, %arg12: memref<32x32xbf16, #tpu.memory_space<vmem>>, %arg13: memref<512x128xbf16, #tpu.memory_space<vmem>>, %arg14: memref<32x128xbf16, #tpu.memory_space<vmem>>, %arg15: memref<1x128xf32, #tpu.memory_space<vmem>>, %arg16: memref<32x16xbf16, #tpu.memory_space<vmem>>, %arg17: memref<128x16xbf16, #tpu.memory_space<vmem>>, %arg18: memref<1x16xf32, #tpu.memory_space<vmem>>, %arg19: memref<1x128xf32, #tpu.memory_space<vmem>>, %arg20: memref<1x128xf32, #tpu.memory_space<vmem>>, %arg21: memref<16x176xbf16, #tpu.memory_space<vmem>>) attributes {dimension_semantics = [#tpu.dimension_semantics<parallel>], iteration_bounds = array<i64: 1>, scalar_prefetch = 0 : i64, scratch_operands = 0 : i64, tpu.core_type = #tpu.core_type<tc>, window_params = [{transform_indices = @transform_0, window_bounds = array<i64: 16, 176>}, {transform_indices = @transform_1, window_bounds = array<i64: 16, 176>}, {pipeline_mode = #tpu.pipeline_mode<synchronous>, transform_indices = @transform_2, window_bounds = array<i64: 1, 128>}, {pipeline_mode = #tpu.pipeline_mode<synchronous>, transform_indices = @transform_3, window_bounds = array<i64: 1, 128>}, {pipeline_mode = #tpu.pipeline_mode<synchronous>, transform_indices = @transform_4, window_bounds = array<i64: 16, 32>}, {pipeline_mode = #tpu.pipeline_mode<synchronous>, transform_indices = @transform_5, window_bounds = array<i64: 128, 512>}, {pipeline_mode = #tpu.pipeline_mode<synchronous>, transform_indices = @transform_6, window_bounds = array<i64: 32, 512>}, {pipeline_mode = #tpu.pipeline_mode<synchronous>, transform_indices = @transform_7, window_bounds = array<i64: 1, 512>}, {pipeline_mode = #tpu.pipeline_mode<synchronous>, transform_indices = @transform_8, window_bounds = array<i64: 32, 32>}, {pipeline_mode = #tpu.pipeline_mode<synchronous>, transform_indices = @transform_9, window_bounds = array<i64: 512, 32>}, {pipeline_mode = #tpu.pipeline_mode<synchronous>, transform_indices = @transform_10, window_bounds = array<i64: 1, 32>}, {pipeline_mode = #tpu.pipeline_mode<synchronous>, transform_indices = @transform_11, window_bounds = array<i64: 32, 32>}, {pipeline_mode = #tpu.pipeline_mode<synchronous>, transform_indices = @transform_12, window_bounds = array<i64: 512, 128>}, {pipeline_mode = #tpu.pipeline_mode<synchronous>, transform_indices = @transform_13, window_bounds = array<i64: 32, 128>}, {pipeline_mode = #tpu.pipeline_mode<synchronous>, transform_indices = @transform_14, window_bounds = array<i64: 1, 128>}, {pipeline_mode = #tpu.pipeline_mode<synchronous>, transform_indices = @transform_15, window_bounds = array<i64: 32, 16>}, {pipeline_mode = #tpu.pipeline_mode<synchronous>, transform_indices = @transform_16, window_bounds = array<i64: 128, 16>}, {pipeline_mode = #tpu.pipeline_mode<synchronous>, transform_indices = @transform_17, window_bounds = array<i64: 1, 16>}, {pipeline_mode = #tpu.pipeline_mode<synchronous>, transform_indices = @transform_18, window_bounds = array<i64: 1, 128>}, {pipeline_mode = #tpu.pipeline_mode<synchronous>, transform_indices = @transform_19, window_bounds = array<i64: 1, 128>}, {transform_indices = @transform_20, window_bounds = array<i64: 16, 176>}]} {
    %c0 = arith.constant 0 : index
    %c0_0 = arith.constant 0 : index
    %0 = vector.load %arg5[%c0, %c0_0] : memref<16x32xbf16, #tpu.memory_space<vmem>>, vector<16x32xbf16>
    %c0_1 = arith.constant 0 : index
    %c0_2 = arith.constant 0 : index
    %1 = vector.load %arg6[%c0_1, %c0_2] : memref<128x512xbf16, #tpu.memory_space<vmem>>, vector<128x512xbf16>
    %c0_3 = arith.constant 0 : index
    %c0_4 = arith.constant 0 : index
    %2 = vector.load %arg7[%c0_3, %c0_4] : memref<32x512xbf16, #tpu.memory_space<vmem>>, vector<32x512xbf16>
    %c0_5 = arith.constant 0 : index
    %c0_6 = arith.constant 0 : index
    %3 = vector.load %arg8[%c0_5, %c0_6] : memref<1x512xf32, #tpu.memory_space<vmem>>, vector<1x512xf32>
    %c0_7 = arith.constant 0 : index
    %c0_8 = arith.constant 0 : index
    %4 = vector.load %arg9[%c0_7, %c0_8] : memref<32x32xbf16, #tpu.memory_space<vmem>>, vector<32x32xbf16>
    %c0_9 = arith.constant 0 : index
    %c0_10 = arith.constant 0 : index
    %5 = vector.load %arg10[%c0_9, %c0_10] : memref<512x32xbf16, #tpu.memory_space<vmem>>, vector<512x32xbf16>
    %c0_11 = arith.constant 0 : index
    %c0_12 = arith.constant 0 : index
    %6 = vector.load %arg11[%c0_11, %c0_12] : memref<1x32xf32, #tpu.memory_space<vmem>>, vector<1x32xf32>
    %c0_13 = arith.constant 0 : index
    %c0_14 = arith.constant 0 : index
    %7 = vector.load %arg12[%c0_13, %c0_14] : memref<32x32xbf16, #tpu.memory_space<vmem>>, vector<32x32xbf16>
    %c0_15 = arith.constant 0 : index
    %c0_16 = arith.constant 0 : index
    %8 = vector.load %arg13[%c0_15, %c0_16] : memref<512x128xbf16, #tpu.memory_space<vmem>>, vector<512x128xbf16>
    %c0_17 = arith.constant 0 : index
    %c0_18 = arith.constant 0 : index
    %9 = vector.load %arg14[%c0_17, %c0_18] : memref<32x128xbf16, #tpu.memory_space<vmem>>, vector<32x128xbf16>
    %c0_19 = arith.constant 0 : index
    %c0_20 = arith.constant 0 : index
    %10 = vector.load %arg15[%c0_19, %c0_20] : memref<1x128xf32, #tpu.memory_space<vmem>>, vector<1x128xf32>
    %c0_21 = arith.constant 0 : index
    %c0_22 = arith.constant 0 : index
    %11 = vector.load %arg16[%c0_21, %c0_22] : memref<32x16xbf16, #tpu.memory_space<vmem>>, vector<32x16xbf16>
    %c0_23 = arith.constant 0 : index
    %c0_24 = arith.constant 0 : index
    %12 = vector.load %arg17[%c0_23, %c0_24] : memref<128x16xbf16, #tpu.memory_space<vmem>>, vector<128x16xbf16>
    %c0_25 = arith.constant 0 : index
    %c0_26 = arith.constant 0 : index
    %13 = vector.load %arg18[%c0_25, %c0_26] : memref<1x16xf32, #tpu.memory_space<vmem>>, vector<1x16xf32>
    %c0_27 = arith.constant 0 : index
    %c0_28 = arith.constant 0 : index
    %14 = vector.load %arg19[%c0_27, %c0_28] : memref<1x128xf32, #tpu.memory_space<vmem>>, vector<1x128xf32>
    %c0_29 = arith.constant 0 : index
    %c0_30 = arith.constant 0 : index
    %15 = vector.load %arg20[%c0_29, %c0_30] : memref<1x128xf32, #tpu.memory_space<vmem>>, vector<1x128xf32>
    %c0_31 = arith.constant 0 : index
    %c0_32 = arith.constant 0 : index
    %16 = vector.load %arg1[%c0_31, %c0_32] : memref<16x176xbf16, #tpu.memory_space<vmem>>, vector<16x176xbf16>
    %c0_33 = arith.constant 0 : index
    %c0_34 = arith.constant 0 : index
    %17 = vector.load %arg2[%c0_33, %c0_34] : memref<16x176xf32, #tpu.memory_space<vmem>>, vector<16x176xf32>
    %18 = vector.extract_strided_slice %16 {offsets = [0, 0], sizes = [16, 128], strides = [1, 1]} : vector<16x176xbf16> to vector<16x128xbf16>
    %19 = arith.extf %18 : vector<16x128xbf16> to vector<16x128xf32>
    %20 = vector.extract_strided_slice %17 {offsets = [0, 0], sizes = [16, 128], strides = [1, 1]} : vector<16x176xf32> to vector<16x128xf32>
    %21 = arith.addf %19, %20 : vector<16x128xf32>
    %c0_35 = arith.constant 0 : index
    %c0_36 = arith.constant 0 : index
    %22 = vector.load %arg3[%c0_35, %c0_36] : memref<1x128xf32, #tpu.memory_space<vmem>>, vector<1x128xf32>
    %c0_37 = arith.constant 0 : index
    %c0_38 = arith.constant 0 : index
    %23 = vector.load %arg4[%c0_37, %c0_38] : memref<1x128xf32, #tpu.memory_space<vmem>>, vector<1x128xf32>
    %cst = arith.constant dense<0.000000e+00> : vector<16xf32>
    %24 = vector.multi_reduction <add>, %21, %cst [1] : vector<16x128xf32> to vector<16xf32>
    %25 = vector.shape_cast %24 : vector<16xf32> to vector<16x1xf32>
    %cst_39 = arith.constant 0.00999999977 : f32
    %26 = vector.broadcast %cst_39 : f32 to vector<16x1xf32>
    %27 = arith.mulf %25, %26 : vector<16x1xf32>
    %28 = vector.broadcast %27 : vector<16x1xf32> to vector<16x128xf32>
    %29 = arith.subf %21, %28 : vector<16x128xf32>
    %30 = tpu.iota {dimensions = array<i32: 1>} : vector<1x128xi32>
    %c100_i32 = arith.constant 100 : i32
    %31 = vector.broadcast %c100_i32 : i32 to vector<1x128xi32>
    %32 = arith.cmpi slt, %30, %31 : vector<1x128xi32>
    %33 = arith.extui %32 : vector<1x128xi1> to vector<1x128xi32>
    %34 = arith.sitofp %33 : vector<1x128xi32> to vector<1x128xf32>
    %35 = vector.broadcast %34 : vector<1x128xf32> to vector<16x128xf32>
    %36 = arith.mulf %29, %35 : vector<16x128xf32>
    %37 = arith.mulf %36, %36 : vector<16x128xf32>
    %cst_40 = arith.constant dense<0.000000e+00> : vector<16xf32>
    %38 = vector.multi_reduction <add>, %37, %cst_40 [1] : vector<16x128xf32> to vector<16xf32>
    %39 = vector.shape_cast %38 : vector<16xf32> to vector<16x1xf32>
    %cst_41 = arith.constant 0.00999999977 : f32
    %40 = vector.broadcast %cst_41 : f32 to vector<16x1xf32>
    %41 = arith.mulf %39, %40 : vector<16x1xf32>
    %cst_42 = arith.constant 9.99999974E-6 : f32
    %42 = vector.broadcast %cst_42 : f32 to vector<16x1xf32>
    %43 = arith.addf %41, %42 : vector<16x1xf32>
    %44 = math.rsqrt %43 : vector<16x1xf32>
    %45 = vector.broadcast %44 : vector<16x1xf32> to vector<16x128xf32>
    %46 = arith.mulf %36, %45 : vector<16x128xf32>
    %47 = vector.broadcast %22 : vector<1x128xf32> to vector<16x128xf32>
    %48 = arith.mulf %46, %47 : vector<16x128xf32>
    %49 = vector.broadcast %23 : vector<1x128xf32> to vector<16x128xf32>
    %50 = arith.addf %48, %49 : vector<16x128xf32>
    %51 = vector.extract_strided_slice %16 {offsets = [0, 128], sizes = [16, 16], strides = [1, 1]} : vector<16x176xbf16> to vector<16x16xbf16>
    %52 = arith.extf %51 : vector<16x16xbf16> to vector<16x16xf32>
    %53 = vector.extract_strided_slice %17 {offsets = [0, 128], sizes = [16, 16], strides = [1, 1]} : vector<16x176xf32> to vector<16x16xf32>
    %54 = arith.addf %52, %53 : vector<16x16xf32>
    %55 = vector.extract_strided_slice %16 {offsets = [0, 144], sizes = [16, 16], strides = [1, 1]} : vector<16x176xbf16> to vector<16x16xbf16>
    %56 = arith.extf %55 : vector<16x16xbf16> to vector<16x16xf32>
    %57 = vector.extract_strided_slice %17 {offsets = [0, 144], sizes = [16, 16], strides = [1, 1]} : vector<16x176xf32> to vector<16x16xf32>
    %58 = arith.addf %56, %57 : vector<16x16xf32>
    %59 = vector.extract_strided_slice %16 {offsets = [0, 160], sizes = [16, 16], strides = [1, 1]} : vector<16x176xbf16> to vector<16x16xbf16>
    %60 = arith.extf %59 : vector<16x16xbf16> to vector<16x16xf32>
    %61 = vector.extract_strided_slice %17 {offsets = [0, 160], sizes = [16, 16], strides = [1, 1]} : vector<16x176xf32> to vector<16x16xf32>
    %62 = arith.addf %60, %61 : vector<16x16xf32>
    %63 = arith.mulf %54, %54 : vector<16x16xf32>
    %64 = arith.mulf %58, %58 : vector<16x16xf32>
    %65 = arith.addf %63, %64 : vector<16x16xf32>
    %66 = arith.mulf %62, %62 : vector<16x16xf32>
    %67 = arith.addf %65, %66 : vector<16x16xf32>
    %cst_43 = arith.constant 9.99999993E-9 : f32
    %68 = vector.broadcast %cst_43 : f32 to vector<16x16xf32>
    %69 = arith.maximumf %67, %68 : vector<16x16xf32>
    %cst_44 = arith.constant dense<0.000000e+00> : vector<16xf32>
    %70 = vector.multi_reduction <add>, %69, %cst_44 [1] : vector<16x16xf32> to vector<16xf32>
    %71 = vector.shape_cast %70 : vector<16xf32> to vector<16x1xf32>
    %cst_45 = arith.constant 1.600000e+01 : f32
    %72 = vector.broadcast %cst_45 : f32 to vector<16x1xf32>
    %73 = arith.divf %71, %72 : vector<16x1xf32>
    %74 = math.rsqrt %73 : vector<16x1xf32>
    %75 = vector.broadcast %74 : vector<16x1xf32> to vector<16x16xf32>
    %76 = arith.mulf %54, %75 : vector<16x16xf32>
    %77 = vector.broadcast %74 : vector<16x1xf32> to vector<16x16xf32>
    %78 = arith.mulf %58, %77 : vector<16x16xf32>
    %79 = vector.broadcast %74 : vector<16x1xf32> to vector<16x16xf32>
    %80 = arith.mulf %62, %79 : vector<16x16xf32>
    %81 = tpu.concatenate %76, %78, %80 in 0 : vector<16x16xf32>, vector<16x16xf32>, vector<16x16xf32> -> vector<48x16xf32>
    %82 = arith.truncf %81 : vector<48x16xf32> to vector<48x16xbf16>
    %cst_46 = arith.constant dense<0.000000e+00> : vector<48x32xf32>
    %83 = tpu.matmul %82, %0, %cst_46 {dimension_numbers = #tpu.dot_dimension_numbers<[1], [0], [0], [1], [0, 0, 1, 1], [], []>} : vector<48x16xbf16>, vector<16x32xbf16>, vector<48x32xf32> -> vector<48x32xf32>
    %84 = vector.extract_strided_slice %83 {offsets = [0, 0], sizes = [16, 32], strides = [1, 1]} : vector<48x32xf32> to vector<16x32xf32>
    %85 = vector.extract_strided_slice %83 {offsets = [16, 0], sizes = [16, 32], strides = [1, 1]} : vector<48x32xf32> to vector<16x32xf32>
    %86 = vector.extract_strided_slice %83 {offsets = [32, 0], sizes = [16, 32], strides = [1, 1]} : vector<48x32xf32> to vector<16x32xf32>
    %87 = arith.mulf %84, %84 : vector<16x32xf32>
    %88 = arith.mulf %85, %85 : vector<16x32xf32>
    %89 = arith.addf %87, %88 : vector<16x32xf32>
    %90 = arith.mulf %86, %86 : vector<16x32xf32>
    %91 = arith.addf %89, %90 : vector<16x32xf32>
    %cst_47 = arith.constant 9.99999993E-9 : f32
    %92 = vector.broadcast %cst_47 : f32 to vector<16x32xf32>
    %93 = arith.maximumf %91, %92 : vector<16x32xf32>
    %94 = math.sqrt %93 : vector<16x32xf32>
    %95 = arith.truncf %50 : vector<16x128xf32> to vector<16x128xbf16>
    %cst_48 = arith.constant dense<0.000000e+00> : vector<16x512xf32>
    %96 = tpu.matmul %95, %1, %cst_48 {dimension_numbers = #tpu.dot_dimension_numbers<[1], [0], [0], [1], [0, 0, 1, 1], [], []>} : vector<16x128xbf16>, vector<128x512xbf16>, vector<16x512xf32> -> vector<16x512xf32>
    %97 = arith.truncf %94 : vector<16x32xf32> to vector<16x32xbf16>
    %cst_49 = arith.constant dense<0.000000e+00> : vector<16x512xf32>
    %98 = tpu.matmul %97, %2, %cst_49 {dimension_numbers = #tpu.dot_dimension_numbers<[1], [0], [0], [1], [0, 0, 1, 1], [], []>} : vector<16x32xbf16>, vector<32x512xbf16>, vector<16x512xf32> -> vector<16x512xf32>
    %99 = arith.addf %96, %98 : vector<16x512xf32>
    %100 = vector.broadcast %3 : vector<1x512xf32> to vector<16x512xf32>
    %101 = arith.addf %99, %100 : vector<16x512xf32>
    %102 = arith.truncf %101 : vector<16x512xf32> to vector<16x512xbf16>
    %cst_50 = arith.constant dense<0.000000e+00> : vector<16x32xf32>
    %103 = tpu.matmul %102, %5, %cst_50 {dimension_numbers = #tpu.dot_dimension_numbers<[1], [0], [0], [1], [0, 0, 1, 1], [], []>} : vector<16x512xbf16>, vector<512x32xbf16>, vector<16x32xf32> -> vector<16x32xf32>
    %104 = vector.broadcast %6 : vector<1x32xf32> to vector<16x32xf32>
    %105 = arith.addf %103, %104 : vector<16x32xf32>
    %106 = arith.negf %105 : vector<16x32xf32>
    %107 = math.exp %106 : vector<16x32xf32>
    %cst_51 = arith.constant 1.000000e+00 : f32
    %108 = vector.broadcast %cst_51 : f32 to vector<16x32xf32>
    %109 = arith.addf %108, %107 : vector<16x32xf32>
    %110 = arith.divf %108, %109 : vector<16x32xf32>
    %111 = arith.truncf %83 : vector<48x32xf32> to vector<48x32xbf16>
    %cst_52 = arith.constant dense<0.000000e+00> : vector<48x32xf32>
    %112 = tpu.matmul %111, %4, %cst_52 {dimension_numbers = #tpu.dot_dimension_numbers<[1], [0], [0], [1], [0, 0, 1, 1], [], []>} : vector<48x32xbf16>, vector<32x32xbf16>, vector<48x32xf32> -> vector<48x32xf32>
    %113 = vector.extract_strided_slice %112 {offsets = [0, 0], sizes = [16, 32], strides = [1, 1]} : vector<48x32xf32> to vector<16x32xf32>
    %114 = vector.extract_strided_slice %112 {offsets = [16, 0], sizes = [16, 32], strides = [1, 1]} : vector<48x32xf32> to vector<16x32xf32>
    %115 = vector.extract_strided_slice %112 {offsets = [32, 0], sizes = [16, 32], strides = [1, 1]} : vector<48x32xf32> to vector<16x32xf32>
    %116 = arith.mulf %113, %110 : vector<16x32xf32>
    %117 = arith.mulf %114, %110 : vector<16x32xf32>
    %118 = arith.mulf %115, %110 : vector<16x32xf32>
    %cst_53 = arith.constant 0.000000e+00 : f32
    %119 = vector.broadcast %cst_53 : f32 to vector<16x512xf32>
    %120 = arith.maximumf %101, %119 : vector<16x512xf32>
    %121 = tpu.concatenate %116, %117, %118 in 0 : vector<16x32xf32>, vector<16x32xf32>, vector<16x32xf32> -> vector<48x32xf32>
    %122 = arith.truncf %121 : vector<48x32xf32> to vector<48x32xbf16>
    %cst_54 = arith.constant dense<0.000000e+00> : vector<48x32xf32>
    %123 = tpu.matmul %122, %7, %cst_54 {dimension_numbers = #tpu.dot_dimension_numbers<[1], [0], [0], [1], [0, 0, 1, 1], [], []>} : vector<48x32xbf16>, vector<32x32xbf16>, vector<48x32xf32> -> vector<48x32xf32>
    %124 = vector.extract_strided_slice %123 {offsets = [0, 0], sizes = [16, 32], strides = [1, 1]} : vector<48x32xf32> to vector<16x32xf32>
    %125 = vector.extract_strided_slice %123 {offsets = [16, 0], sizes = [16, 32], strides = [1, 1]} : vector<48x32xf32> to vector<16x32xf32>
    %126 = vector.extract_strided_slice %123 {offsets = [32, 0], sizes = [16, 32], strides = [1, 1]} : vector<48x32xf32> to vector<16x32xf32>
    %127 = arith.mulf %124, %124 : vector<16x32xf32>
    %128 = arith.mulf %125, %125 : vector<16x32xf32>
    %129 = arith.addf %127, %128 : vector<16x32xf32>
    %130 = arith.mulf %126, %126 : vector<16x32xf32>
    %131 = arith.addf %129, %130 : vector<16x32xf32>
    %cst_55 = arith.constant 9.99999993E-9 : f32
    %132 = vector.broadcast %cst_55 : f32 to vector<16x32xf32>
    %133 = arith.maximumf %131, %132 : vector<16x32xf32>
    %134 = math.sqrt %133 : vector<16x32xf32>
    %135 = arith.truncf %120 : vector<16x512xf32> to vector<16x512xbf16>
    %cst_56 = arith.constant dense<0.000000e+00> : vector<16x128xf32>
    %136 = tpu.matmul %135, %8, %cst_56 {dimension_numbers = #tpu.dot_dimension_numbers<[1], [0], [0], [1], [0, 0, 1, 1], [], []>} : vector<16x512xbf16>, vector<512x128xbf16>, vector<16x128xf32> -> vector<16x128xf32>
    %137 = arith.truncf %134 : vector<16x32xf32> to vector<16x32xbf16>
    %cst_57 = arith.constant dense<0.000000e+00> : vector<16x128xf32>
    %138 = tpu.matmul %137, %9, %cst_57 {dimension_numbers = #tpu.dot_dimension_numbers<[1], [0], [0], [1], [0, 0, 1, 1], [], []>} : vector<16x32xbf16>, vector<32x128xbf16>, vector<16x128xf32> -> vector<16x128xf32>
    %139 = arith.addf %136, %138 : vector<16x128xf32>
    %140 = vector.broadcast %10 : vector<1x128xf32> to vector<16x128xf32>
    %141 = arith.addf %139, %140 : vector<16x128xf32>
    %142 = arith.truncf %141 : vector<16x128xf32> to vector<16x128xbf16>
    %cst_58 = arith.constant dense<0.000000e+00> : vector<16x16xf32>
    %143 = tpu.matmul %142, %12, %cst_58 {dimension_numbers = #tpu.dot_dimension_numbers<[1], [0], [0], [1], [0, 0, 1, 1], [], []>} : vector<16x128xbf16>, vector<128x16xbf16>, vector<16x16xf32> -> vector<16x16xf32>
    %144 = vector.broadcast %13 : vector<1x16xf32> to vector<16x16xf32>
    %145 = arith.addf %143, %144 : vector<16x16xf32>
    %146 = arith.negf %145 : vector<16x16xf32>
    %147 = math.exp %146 : vector<16x16xf32>
    %cst_59 = arith.constant 1.000000e+00 : f32
    %148 = vector.broadcast %cst_59 : f32 to vector<16x16xf32>
    %149 = arith.addf %148, %147 : vector<16x16xf32>
    %150 = arith.divf %148, %149 : vector<16x16xf32>
    %151 = arith.truncf %123 : vector<48x32xf32> to vector<48x32xbf16>
    %cst_60 = arith.constant dense<0.000000e+00> : vector<48x16xf32>
    %152 = tpu.matmul %151, %11, %cst_60 {dimension_numbers = #tpu.dot_dimension_numbers<[1], [0], [0], [1], [0, 0, 1, 1], [], []>} : vector<48x32xbf16>, vector<32x16xbf16>, vector<48x16xf32> -> vector<48x16xf32>
    %153 = vector.extract_strided_slice %152 {offsets = [0, 0], sizes = [16, 16], strides = [1, 1]} : vector<48x16xf32> to vector<16x16xf32>
    %154 = vector.extract_strided_slice %152 {offsets = [16, 0], sizes = [16, 16], strides = [1, 1]} : vector<48x16xf32> to vector<16x16xf32>
    %155 = vector.extract_strided_slice %152 {offsets = [32, 0], sizes = [16, 16], strides = [1, 1]} : vector<48x16xf32> to vector<16x16xf32>
    %156 = arith.mulf %153, %150 : vector<16x16xf32>
    %157 = arith.mulf %154, %150 : vector<16x16xf32>
    %158 = arith.mulf %155, %150 : vector<16x16xf32>
    %159 = arith.addf %50, %141 : vector<16x128xf32>
    %cst_61 = arith.constant dense<0.000000e+00> : vector<16xf32>
    %160 = vector.multi_reduction <add>, %159, %cst_61 [1] : vector<16x128xf32> to vector<16xf32>
    %161 = vector.shape_cast %160 : vector<16xf32> to vector<16x1xf32>
    %cst_62 = arith.constant 0.00999999977 : f32
    %162 = vector.broadcast %cst_62 : f32 to vector<16x1xf32>
    %163 = arith.mulf %161, %162 : vector<16x1xf32>
    %164 = vector.broadcast %163 : vector<16x1xf32> to vector<16x128xf32>
    %165 = arith.subf %159, %164 : vector<16x128xf32>
    %166 = tpu.iota {dimensions = array<i32: 1>} : vector<1x128xi32>
    %c100_i32_63 = arith.constant 100 : i32
    %167 = vector.broadcast %c100_i32_63 : i32 to vector<1x128xi32>
    %168 = arith.cmpi slt, %166, %167 : vector<1x128xi32>
    %169 = arith.extui %168 : vector<1x128xi1> to vector<1x128xi32>
    %170 = arith.sitofp %169 : vector<1x128xi32> to vector<1x128xf32>
    %171 = vector.broadcast %170 : vector<1x128xf32> to vector<16x128xf32>
    %172 = arith.mulf %165, %171 : vector<16x128xf32>
    %173 = arith.mulf %172, %172 : vector<16x128xf32>
    %cst_64 = arith.constant dense<0.000000e+00> : vector<16xf32>
    %174 = vector.multi_reduction <add>, %173, %cst_64 [1] : vector<16x128xf32> to vector<16xf32>
    %175 = vector.shape_cast %174 : vector<16xf32> to vector<16x1xf32>
    %cst_65 = arith.constant 0.00999999977 : f32
    %176 = vector.broadcast %cst_65 : f32 to vector<16x1xf32>
    %177 = arith.mulf %175, %176 : vector<16x1xf32>
    %cst_66 = arith.constant 9.99999974E-6 : f32
    %178 = vector.broadcast %cst_66 : f32 to vector<16x1xf32>
    %179 = arith.addf %177, %178 : vector<16x1xf32>
    %180 = math.rsqrt %179 : vector<16x1xf32>
    %181 = vector.broadcast %180 : vector<16x1xf32> to vector<16x128xf32>
    %182 = arith.mulf %172, %181 : vector<16x128xf32>
    %183 = vector.broadcast %14 : vector<1x128xf32> to vector<16x128xf32>
    %184 = arith.mulf %182, %183 : vector<16x128xf32>
    %185 = vector.broadcast %15 : vector<1x128xf32> to vector<16x128xf32>
    %186 = arith.addf %184, %185 : vector<16x128xf32>
    %187 = arith.addf %76, %156 : vector<16x16xf32>
    %188 = arith.addf %78, %157 : vector<16x16xf32>
    %189 = arith.addf %80, %158 : vector<16x16xf32>
    %190 = arith.mulf %187, %187 : vector<16x16xf32>
    %191 = arith.mulf %188, %188 : vector<16x16xf32>
    %192 = arith.addf %190, %191 : vector<16x16xf32>
    %193 = arith.mulf %189, %189 : vector<16x16xf32>
    %194 = arith.addf %192, %193 : vector<16x16xf32>
    %cst_67 = arith.constant 9.99999993E-9 : f32
    %195 = vector.broadcast %cst_67 : f32 to vector<16x16xf32>
    %196 = arith.maximumf %194, %195 : vector<16x16xf32>
    %cst_68 = arith.constant dense<0.000000e+00> : vector<16xf32>
    %197 = vector.multi_reduction <add>, %196, %cst_68 [1] : vector<16x16xf32> to vector<16xf32>
    %198 = vector.shape_cast %197 : vector<16xf32> to vector<16x1xf32>
    %cst_69 = arith.constant 1.600000e+01 : f32
    %199 = vector.broadcast %cst_69 : f32 to vector<16x1xf32>
    %200 = arith.divf %198, %199 : vector<16x1xf32>
    %201 = math.rsqrt %200 : vector<16x1xf32>
    %202 = vector.broadcast %201 : vector<16x1xf32> to vector<16x16xf32>
    %203 = arith.mulf %187, %202 : vector<16x16xf32>
    %204 = vector.broadcast %201 : vector<16x1xf32> to vector<16x16xf32>
    %205 = arith.mulf %188, %204 : vector<16x16xf32>
    %206 = vector.broadcast %201 : vector<16x1xf32> to vector<16x16xf32>
    %207 = arith.mulf %189, %206 : vector<16x16xf32>
    %208 = tpu.concatenate %186, %203, %205, %207 in 1 : vector<16x128xf32>, vector<16x16xf32>, vector<16x16xf32>, vector<16x16xf32> -> vector<16x176xf32>
    %209 = arith.truncf %208 : vector<16x176xf32> to vector<16x176xbf16>
    %c0_70 = arith.constant 0 : index
    %c0_71 = arith.constant 0 : index
    %210 = vector.load %arg21[%c0_70, %c0_71] : memref<16x176xbf16, #tpu.memory_space<vmem>>, vector<16x176xbf16>
    tpu.vector_store %arg21[%c0_70, %c0_71], %209 {strides = array<i32>} : memref<16x176xbf16, #tpu.memory_space<vmem>>, vector<16x176xbf16>,
    return
  }
  func.func @transform_0(%arg0: i32) -> (i32, i32) {
    %c0_i32 = arith.constant 0 : i32
    %c0_i32_0 = arith.constant 0 : i32
    return %arg0, %c0_i32 : i32, i32
  }
  func.func @transform_1(%arg0: i32) -> (i32, i32) {
    %c0_i32 = arith.constant 0 : i32
    %c0_i32_0 = arith.constant 0 : i32
    return %arg0, %c0_i32 : i32, i32
  }
  func.func @transform_2(%arg0: i32) -> (i32, i32) {
    %c0_i32 = arith.constant 0 : i32
    %c0_i32_0 = arith.constant 0 : i32
    %c0_i32_1 = arith.constant 0 : i32
    return %c0_i32, %c0_i32_0 : i32, i32
  }
  func.func @transform_3(%arg0: i32) -> (i32, i32) {
    %c0_i32 = arith.constant 0 : i32
    %c0_i32_0 = arith.constant 0 : i32
    %c0_i32_1 = arith.constant 0 : i32
    return %c0_i32, %c0_i32_0 : i32, i32
  }
  func.func @transform_4(%arg0: i32) -> (i32, i32) {
    %c0_i32 = arith.constant 0 : i32
    %c0_i32_0 = arith.constant 0 : i32
    %c0_i32_1 = arith.constant 0 : i32
    return %c0_i32, %c0_i32_0 : i32, i32
  }
  func.func @transform_5(%arg0: i32) -> (i32, i32) {
    %c0_i32 = arith.constant 0 : i32
    %c0_i32_0 = arith.constant 0 : i32
    %c0_i32_1 = arith.constant 0 : i32
    return %c0_i32, %c0_i32_0 : i32, i32
  }
  func.func @transform_6(%arg0: i32) -> (i32, i32) {
    %c0_i32 = arith.constant 0 : i32
    %c0_i32_0 = arith.constant 0 : i32
    %c0_i32_1 = arith.constant 0 : i32
    return %c0_i32, %c0_i32_0 : i32, i32
  }
  func.func @transform_7(%arg0: i32) -> (i32, i32) {
    %c0_i32 = arith.constant 0 : i32
    %c0_i32_0 = arith.constant 0 : i32
    %c0_i32_1 = arith.constant 0 : i32
    return %c0_i32, %c0_i32_0 : i32, i32
  }
  func.func @transform_8(%arg0: i32) -> (i32, i32) {
    %c0_i32 = arith.constant 0 : i32
    %c0_i32_0 = arith.constant 0 : i32
    %c0_i32_1 = arith.constant 0 : i32
    return %c0_i32, %c0_i32_0 : i32, i32
  }
  func.func @transform_9(%arg0: i32) -> (i32, i32) {
    %c0_i32 = arith.constant 0 : i32
    %c0_i32_0 = arith.constant 0 : i32
    %c0_i32_1 = arith.constant 0 : i32
    return %c0_i32, %c0_i32_0 : i32, i32
  }
  func.func @transform_10(%arg0: i32) -> (i32, i32) {
    %c0_i32 = arith.constant 0 : i32
    %c0_i32_0 = arith.constant 0 : i32
    %c0_i32_1 = arith.constant 0 : i32
    return %c0_i32, %c0_i32_0 : i32, i32
  }
  func.func @transform_11(%arg0: i32) -> (i32, i32) {
    %c0_i32 = arith.constant 0 : i32
    %c0_i32_0 = arith.constant 0 : i32
    %c0_i32_1 = arith.constant 0 : i32
    return %c0_i32, %c0_i32_0 : i32, i32
  }
  func.func @transform_12(%arg0: i32) -> (i32, i32) {
    %c0_i32 = arith.constant 0 : i32
    %c0_i32_0 = arith.constant 0 : i32
    %c0_i32_1 = arith.constant 0 : i32
    return %c0_i32, %c0_i32_0 : i32, i32
  }
  func.func @transform_13(%arg0: i32) -> (i32, i32) {
    %c0_i32 = arith.constant 0 : i32
    %c0_i32_0 = arith.constant 0 : i32
    %c0_i32_1 = arith.constant 0 : i32
    return %c0_i32, %c0_i32_0 : i32, i32
  }
  func.func @transform_14(%arg0: i32) -> (i32, i32) {
    %c0_i32 = arith.constant 0 : i32
    %c0_i32_0 = arith.constant 0 : i32
    %c0_i32_1 = arith.constant 0 : i32
    return %c0_i32, %c0_i32_0 : i32, i32
  }
  func.func @transform_15(%arg0: i32) -> (i32, i32) {
    %c0_i32 = arith.constant 0 : i32
    %c0_i32_0 = arith.constant 0 : i32
    %c0_i32_1 = arith.constant 0 : i32
    return %c0_i32, %c0_i32_0 : i32, i32
  }
  func.func @transform_16(%arg0: i32) -> (i32, i32) {
    %c0_i32 = arith.constant 0 : i32
    %c0_i32_0 = arith.constant 0 : i32
    %c0_i32_1 = arith.constant 0 : i32
    return %c0_i32, %c0_i32_0 : i32, i32
  }
  func.func @transform_17(%arg0: i32) -> (i32, i32) {
    %c0_i32 = arith.constant 0 : i32
    %c0_i32_0 = arith.constant 0 : i32
    %c0_i32_1 = arith.constant 0 : i32
    return %c0_i32, %c0_i32_0 : i32, i32
  }
  func.func @transform_18(%arg0: i32) -> (i32, i32) {
    %c0_i32 = arith.constant 0 : i32
    %c0_i32_0 = arith.constant 0 : i32
    %c0_i32_1 = arith.constant 0 : i32
    return %c0_i32, %c0_i32_0 : i32, i32
  }
  func.func @transform_19(%arg0: i32) -> (i32, i32) {
    %c0_i32 = arith.constant 0 : i32
    %c0_i32_0 = arith.constant 0 : i32
    %c0_i32_1 = arith.constant 0 : i32
    return %c0_i32, %c0_i32_0 : i32, i32
  }
  func.func @transform_20(%arg0: i32) -> (i32, i32) {
    %c0_i32 = arith.constant 0 : i32
    %c0_i32_0 = arith.constant 0 : i32
    return %arg0, %c0_i32 : i32, i32
  }
}

</mosaic_0001>

<bundles_post_ra>
// kernel: cdd_forward.12
= control target key start
LH: loop header
LB: loop body
LE: loop exit
PB: predicated region body
PF: predicated region fallthrough
CT: control target
= control target key end

     0   :  { %vm25_vm0 = vcmask 105472   ;;  %vm94_vm1 = vcmask 1045504   ;;  %vm95_vm2 = vcmask 1046528   ;;  %v186_v15 = vmov 65535   ;;  %s250_s0 = inlined_call_operand.vmem [shape: f32[16,13], index: 0, kind: input, shape index: {}]   ;;  %s251_s3 = inlined_call_operand.vmem [shape: bf16[13,176], index: 3, kind: input, shape index: {}]   ;;  %s252_s1 = inlined_call_operand.vmem [shape: f32[1,13], index: 1, kind: input, shape index: {}]   ;;  %s253_s2 = inlined_call_operand.vmem [shape: f32[1,13], index: 2, kind: input, shape index: {}]   ;;  %s254_s4 = inlined_call_operand.vmem [shape: f32[1,176], index: 4, kind: input, shape index: {}]   ;;  %s255_s5 = inlined_call_operand.vmem [shape: bf16[16,176], index: 5, kind: output, shape index: {}]  }
   0x1   :  { %v21_v0 = vld [vmem:[%s250_s0] sm:$0xff]  ;;  %v22_v1 = vld [vmem:[%s250_s0 + $0x8] sm:$0xff]  ;;  %v96_v16 = vsel %vm94_vm1, 4294967295, %v186_v15  ;;  %v187_v19 = vmov 0   ;;  %v73_v39 = vlaneseq  ;;  %vm159_vm3 = vcmask 1043456  }
   0x2   :  { %v26_v2 = vsel %vm25_vm0, %v21_v0, 0.0  ;;  %v29_v3 = vsel %vm25_vm0, %v22_v1, 0.0  ;;  %v179_v14 = vld [vmem:[%s251_s3 + $0x4] ss:$8 sps:$4 sm:$0x7f]   ;;  %v97_v18 = vsel %vm95_vm2, %v96_v16, 0  ;;  %136 = vmatprep.mubr.bf16.mxu0 %v187_v19 }
   0x3   :  { %27 = vadd.xlane.f32.xlu0 %v26_v2  ;;  %v181_v17 = vld [vmem:[%s251_s3] ss:$8 sps:$4 sm:$0x7f]   ;;  %v102_v20 = vand.u32 %v179_v14, %v97_v18  ;;  %v74_v40 = vshrl.u32 %v73_v39, 7  ;;  %vm160_vm4 = vcmask 392196  }
   0x4   :  { %v99_v21 = vand.u32 %v181_v17, %v97_v18  ;;  %v168_v30 = vld [vmem:[%s252_s1] ss:$0 sm:$0xff]  ;;  %vm161_vm5 = vmor %vm160_vm4, %vm159_vm3 }
   0x5   :  { %104 = vmatprep.subr.bf16.mxu0 %v102_v20  ;;  %v169_v34 = vld [vmem:[%s253_s2] ss:$0 sm:$0xff]  ;;  %v75_v41 = vsub.s32 0, %v74_v40  ;;  %v79_v43 = vsub.s32 1, %v74_v40 }
   0x6   :  { %105 = vmatpush1.bf16.msra.mxu0 %v99_v21  ;;  %v70_v42 = vld [vmem:[%s254_s4] sm:$0x3] }
   0x7   :  { %30 = vadd.xlane.f32.xlu0 %v29_v3  ;;  %v76_v44 = vrot.slane %v70_v42, %v75_v41  ;;  %v80_v45 = vrot.slane %v70_v42, %v79_v43 }
  0x90   :  { %v28_v4 = vpop.xlane.xlu0 %27 }
  0x91   :  { %v32_v5 = vmul.f32 0.07692308, %v28_v4 }
  0x93   :  { %v34_v6 = vsub.f32 %v21_v0, %v32_v5 }
  0x94   :  { %v31_v7 = vpop.xlane.xlu0 %30 }
  0x95   :  { %v33_v8 = vmul.f32 0.07692308, %v31_v7  ;;  %v36_v9 = vmul.f32 %v34_v6, %v34_v6 }
  0x97   :  { %v35_v10 = vsub.f32 %v22_v1, %v33_v8  ;;  %v38_v11 = vsel %vm25_vm0, %v36_v9, 0.0 }
  0x98   :  { %39 = vadd.xlane.f32.xlu1 %v38_v11 }
  0x99   :  { %v37_v12 = vmul.f32 %v35_v10, %v35_v10 }
  0x9b   :  { %v41_v13 = vsel %vm25_vm0, %v37_v12, 0.0 }
  0x9c   :  { %42 = vadd.xlane.f32.xlu1 %v41_v13 }
 0x125   :  { %v40_v22 = vpop.xlane.xlu1 %39 }
 0x126   :  { %v44_v23 = vmul.f32 0.07692308, %v40_v22 }
 0x128   :  { %v46_v24 = vadd.f32 1e-05, %v44_v23 }
 0x129   :  { %v43_v25 = vpop.xlane.xlu1 %42 }
 0x12a   :  { %182 = vrsqrt.f32 %v46_v24  ;;  %v45_v26 = vmul.f32 0.07692308, %v43_v25 }
 0x12c   :  { %v47_v27 = vadd.f32 1e-05, %v45_v26 }
 0x12e   :  { %184 = vrsqrt.f32 %v47_v27 }
 0x134   :  { %v183_v28 = vpop.eup %182 }
 0x135   :  { %v50_v29 = vmul.f32 %v183_v28, %v34_v6 }
 0x137   :  { %v58_v33 = vmul.f32 %v168_v30, %v50_v29 }
 0x138   :  { %v185_v31 = vpop.eup %184 }
 0x139   :  { %v51_v32 = vmul.f32 %v185_v31, %v35_v10  ;;  %v66_v36 = vadd.f32 %v169_v34, %v58_v33 }
 0x13b   :  { %v59_v35 = vmul.f32 %v168_v30, %v51_v32 }
 0x13d   :  { %v67_v37 = vadd.f32 %v169_v34, %v59_v35 }
 0x13f   :  { %v71_v38 = vpack.c.bf16 %v67_v37, %v66_v36 }
 0x141   :  { %172 = vmatmul.mubr.msk.bf16.vlgmr.msra.gmra.mrb[0].mxu0 %vm25_vm0, %v71_v38 }
 0x214   :  { %v138_v46 = vpop.f32.mrb[0].mxu0 }
 0x215   :  { %v139_v47 = vadd.f32 %v138_v46, %v76_v44  ;;  %v140_v48 = vpop.f32.mrb[1].mxu0 }
 0x216   :  { %v141_v49 = vadd.f32 %v140_v48, %v80_v45  ;;  %v142_v50 = vpop.f32.mrb[2].mxu0 }
 0x217   :  { %v143_v51 = vadd.f32 %v142_v50, %v76_v44  ;;  %v144_v52 = vpop.f32.mrb[3].mxu0 }
 0x218   :  { %v175_v53 = vpack.c.bf16 %v141_v49, %v139_v47  ;;  %v145_v54 = vadd.f32 %v144_v52, %v80_v45 }
 0x21a   :  { %162 = vst.msk [vmem:[%s255_s5] sm:$0xff] %vm161_vm5, %v175_v53  ;;  %v176_v55 = vpack.c.bf16 %v145_v54, %v143_v51 }
 0x21c   :  { %163 = vst.msk [vmem:[%s255_s5 + $0x8] sm:$0xff] %vm161_vm5, %v176_v55 }

// kernel: cdd_forward.13
= control target key start
LH: loop header
LB: loop body
LE: loop exit
PB: predicated region body
PF: predicated region fallthrough
CT: control target
= control target key end

     0   :  { %vm61_vm0 = vcmask 130048   ;;  %s1068_s18 = smov 127   ;;  %s1069_s21 = smov 126   ;;  %v1072_v60 = vmov 0.0   ;;  %vm1073_vm1 = vmmov 0   ;;  %vm776_vm12 = vcmask 257024   ;;  %s1662_s0 = inlined_call_operand.vmem [shape: f32[48,16], index: 0, kind: input, shape index: {}]   ;;  %s1663_s1 = inlined_call_operand.vmem [shape: f32[48,3], index: 1, kind: input, shape index: {}]   ;;  %s1664_s4 = inlined_call_operand.<no memory space> [shape: bf16[1,1], index: 4, kind: input, shape index: {}]   ;;  %s1665_s8 = inlined_call_operand.<no memory space> [shape: bf16[1,1], index: 8, kind: input, shape index: {}]   ;;  %s1666_s5 = inlined_call_operand.vmem [shape: bf16[16,32], index: 5, kind: input, shape index: {}]   ;;  %s1667_s2 = inlined_call_operand.vmem [shape: f32[1,16], index: 2, kind: input, shape index: {}]   ;;  %s1668_s3 = inlined_call_operand.vmem [shape: f32[1,16], index: 3, kind: input, shape index: {}]   ;;  %s1669_s9 = inlined_call_operand.vmem [shape: bf16[32,1], index: 9, kind: input, shape index: {}]   ;;  %s1670_s6 = inlined_call_operand.vmem [shape: bf16[1,32], index: 6, kind: input, shape index: {}]   ;;  %s1671_s7 = inlined_call_operand.vmem [shape: f32[1,32], index: 7, kind: input, shape index: {}]   ;;  %s1672_s11 = inlined_call_operand.vmem [shape: bf16[48,32], index: 11, kind: output, shape index: {0}]   ;;  %s1673_s10 = inlined_call_operand.<no memory space> [shape: f32[1,1], index: 10, kind: input, shape index: {}]   ;;  %s1674_s12 = inlined_call_operand.vmem [shape: bf16[48,3], index: 12, kind: output, shape index: {1}]  }
   0x1   :  { %v47_v0 = vld [vmem:[%s1662_s0] sm:$0xff]  ;;  %v1146_v1 = vld [vmem:[%s1662_s0 + $0x10] sm:$0xff]  ;;  %v48_v2 = vld [vmem:[%s1662_s0 + $0x8] sm:$0xff]  ;;  %v18_v22 = vstv %s1664_s4  ;;  %s1071_s14 = smov 2   ;;  %936 = vmatprep.subr.bf16.mxu0 %v1072_v60  ;;  %950 = vmatprep.subr.bf16.mxu1 %v1072_v60  ;;  %vm611_vm15 = vcmask 261120  }
   0x2   :  { %v62_v3 = vsel %vm61_vm0, %v47_v0, 0.0  ;;  %v68_v4 = vsel %vm61_vm0, %v1146_v1, 0.0  ;;  %v50_v5 = vld [vmem:[%s1662_s0 + $0x18] sm:$0xff]  ;;  %v65_v6 = vsel %vm61_vm0, %v48_v2, 0.0  ;;  %v52_v8 = vld [vmem:[%s1662_s0 + $0x28] sm:$0xff]  ;;  %v1165_v9 = vld [vmem:[%s1662_s0 + $0x20] sm:$0xff]  ;;  %v20_v23 = vstv %s1665_s8  ;;  %938 = vmatprep.mubr.msk.bf16.mxu0 %vm1073_vm1, %v1072_v60  ;;  %954 = vmatprep.mubr.msk.bf16.mxu1 %vm1073_vm1, %v1072_v60 }
   0x3   :  { %63 = vadd.xlane.f32.xlu0 %v62_v3  ;;  %69 = vadd.xlane.f32.xlu1 %v68_v4  ;;  %v71_v7 = vsel %vm61_vm0, %v50_v5, 0.0  ;;  %v77_v10 = vsel %vm61_vm0, %v52_v8, 0.0  ;;  %v74_v11 = vsel %vm61_vm0, %v1165_v9, 0.0  ;;  %v1173_v12 = vld [vmem:[%s1663_s1 + $0x8] sm:$0xff]  ;;  %v1180_v14 = vld [vmem:[%s1663_s1] sm:$0xff]  ;;  %v1190_v16 = vld [vmem:[%s1663_s1 + $0x10] sm:$0xff] }
   0x4   :  { %v165_v13 = vmul.f32 %v1173_v12, %v1173_v12  ;;  %v1185_v15 = vmul.f32 %v1180_v14, %v1180_v14  ;;  %v1197_v17 = vld [vmem:[%s1663_s1 + $0x18] sm:$0xff]  ;;  %v1203_v18 = vmul.f32 %v1190_v16, %v1190_v16  ;;  %v1216_v20 = vld [vmem:[%s1663_s1 + $0x28] sm:$0xff]  ;;  %19 = vst [vmem:[#allocation2] sm:$0x1] %v18_v22  ;;  %21 = vst [vmem:[#allocation3] sm:$0x1] %v20_v23 }
   0x5   :  { %v167_v19 = vmul.f32 %v1197_v17, %v1197_v17  ;;  %v1221_v21 = vmul.f32 %v1216_v20, %v1216_v20  ;;  %v1254_v50 = vld [vmem:[%s1663_s1 + $0x20] sm:$0xff]  ;;  %s1070_s1 = smov 1  }
   0x6   :  { %v1258_v54 = vmul.f32 %v1254_v50, %v1254_v50  ;;  %v1005_v59 = vld [vmem:[%s1666_s5] sm:$0xff]  }
   0x7   :  { %66 = vadd.xlane.f32.xlu0 %v65_v6  ;;  %72 = vadd.xlane.f32.xlu1 %v71_v7 }
   0x8   :  { %937 = vmatpush3.bf16.msra.mxu0 %v1005_v59 }
   0xb   :  { %78 = vadd.xlane.f32.xlu1 %v77_v10  ;;  %75 = vadd.xlane.f32.xlu0 %v74_v11 }
  0x1c   :  { %178 = vrot.lane.b32.xlu1 %v165_v13, %s1068_s18 }
  0x20   :  { %200 = vrot.lane.b32.xlu1 %v1185_v15, %s1069_s21 }
  0x21   :  { %176 = vrot.lane.b32.xlu0 %v1185_v15, %s1068_s18 }
  0x24   :  { %202 = vrot.lane.b32.xlu1 %v165_v13, %s1069_s21 }
  0x25   :  { %180 = vrot.lane.b32.xlu0 %v1203_v18, %s1068_s18 }
  0x28   :  { %182 = vrot.lane.b32.xlu1 %v167_v19, %s1068_s18 }
  0x29   :  { %204 = vrot.lane.b32.xlu0 %v1203_v18, %s1069_s21 }
  0x2c   :  { %206 = vrot.lane.b32.xlu1 %v167_v19, %s1069_s21 }
  0x30   :  { %186 = vrot.lane.b32.xlu1 %v1221_v21, %s1068_s18 }
  0x90   :  { %v64_v24 = vpop.xlane.xlu0 %63  ;;  %v70_v25 = vpop.xlane.xlu1 %69 }
  0x91   :  { %v80_v26 = vmul.f32 0.0625, %v64_v24  ;;  %v82_v63 = vmul.f32 0.0625, %v70_v25 }
  0x93   :  { %v1231_v27 = vsub.f32 %v47_v0, %v80_v26 }
  0x94   :  { %v67_v28 = vpop.xlane.xlu0 %66  ;;  %v73_v29 = vpop.xlane.xlu1 %72 }
  0x95   :  { %v81_v30 = vmul.f32 0.0625, %v67_v28  ;;  %v83_v31 = vmul.f32 0.0625, %v73_v29  ;;  %v92_v32 = vmul.f32 %v1231_v27, %v1231_v27 }
  0x97   :  { %v1235_v33 = vsub.f32 %v48_v2, %v81_v30  ;;  %v1237_v34 = vsub.f32 %v50_v5, %v83_v31  ;;  %v98_v35 = vsel %vm61_vm0, %v92_v32, 0.0  ;;  %v1284_v2 = vsub.f32 %v1146_v1, %v82_v63 }
  0x98   :  { %99 = vadd.xlane.f32.xlu0 %v98_v35  ;;  %v79_v36 = vpop.xlane.xlu1 %78  ;;  %v76_v62 = vpop.xlane.xlu0 %75  ;;  %v1074_v63 = vmov 0  }
  0x99   :  { %v85_v37 = vmul.f32 0.0625, %v79_v36  ;;  %v93_v38 = vmul.f32 %v1235_v33, %v1235_v33  ;;  %v95_v39 = vmul.f32 %v1237_v34, %v1237_v34  ;;  %v84_v0 = vmul.f32 0.0625, %v76_v62  ;;  %974 = vset.pattern.permute.xlu1 %v1074_v63  ;;  %973 = vset.pattern.permute.xlu0 %v1074_v63 }
  0x9a   :  { %v94_v4 = vmul.f32 %v1284_v2, %v1284_v2 }
  0x9b   :  { %v1244_v40 = vsub.f32 %v52_v8, %v85_v37  ;;  %v101_v41 = vsel %vm61_vm0, %v93_v38, 0.0  ;;  %v107_v43 = vsel %vm61_vm0, %v95_v39, 0.0  ;;  %v1289_v3 = vsub.f32 %v1165_v9, %v84_v0 }
  0x9c   :  { %102 = vadd.xlane.f32.xlu1 %v101_v41  ;;  %v179_v42 = vpop.permute.xlu1 %178  ;;  %v104_v6 = vsel %vm61_vm0, %v94_v4, 0.0  ;;  %v177_v8 = vpop.permute.xlu0 %176 }
  0x9d   :  { %v97_v44 = vmul.f32 %v1244_v40, %v1244_v40  ;;  %v195_v47 = vadd.f32 %v179_v42, %v165_v13  ;;  %v96_v5 = vmul.f32 %v1289_v3, %v1289_v3  ;;  %v194_v1 = vadd.f32 %v177_v8, %v1185_v15  ;;  %v1318_v42 = vld [vmem:[%s1667_s2] ss:$0 sm:$0xff] }
  0x9f   :  { %v113_v46 = vsel %vm61_vm0, %v97_v44, 0.0  ;;  %v110_v7 = vsel %vm61_vm0, %v96_v5, 0.0 }
  0xa0   :  { %108 = vadd.xlane.f32.xlu1 %v107_v43  ;;  %v201_v45 = vpop.permute.xlu1 %200  ;;  %v181_v10 = vpop.permute.xlu0 %180 }
  0xa1   :  { %v218_v11 = vadd.f32 %v201_v45, %v194_v1  ;;  %v196_v9 = vadd.f32 %v181_v10, %v1203_v18 }
  0xa3   :  { %v224_v13 = vmax.f32 %v218_v11, 1e-08 }
  0xa4   :  { %114 = vadd.xlane.f32.xlu1 %v113_v46  ;;  %v203_v48 = vpop.permute.xlu1 %202 }
  0xa5   :  { %v219_v49 = vadd.f32 %v203_v48, %v195_v47 }
  0xa7   :  { %v225_v51 = vmax.f32 %v219_v49, 1e-08 }
  0xa8   :  { %v183_v52 = vpop.permute.xlu1 %182 }
  0xa9   :  { %v197_v53 = vadd.f32 %v183_v52, %v167_v19  ;;  %1008 = vrsqrt.f32 %v225_v51  ;;  %v205_v19 = vpop.permute.xlu0 %204 }
  0xaa   :  { %v220_v22 = vadd.f32 %v205_v19, %v196_v9 }
  0xac   :  { %v207_v55 = vpop.permute.xlu1 %206  ;;  %v226_v23 = vmax.f32 %v220_v22, 1e-08 }
  0xad   :  { %v221_v56 = vadd.f32 %v207_v55, %v197_v53 }
  0xae   :  { %184 = vrot.lane.b32.xlu0 %v1258_v54, %s1068_s18 }
  0xaf   :  { %v227_v57 = vmax.f32 %v221_v56, 1e-08 }
  0xb0   :  { %v187_v18 = vpop.permute.xlu1 %186 }
  0xb1   :  { %1010 = vrsqrt.f32 %v227_v57  ;;  %v199_v37 = vadd.f32 %v187_v18, %v1221_v21 }
  0xb2   :  { %1012 = vrsqrt.f32 %v224_v13 }
  0xb3   :  { %v1264_v58 = vpop.eup %1008  ;;  %1014 = vrsqrt.f32 %v226_v23 }
  0xb4   :  { %v243_v63 = vmul.f32 %v1264_v58, %v1173_v12 }
  0xb5   :  { %210 = vrot.lane.b32.xlu1 %v1221_v21, %s1069_s21  ;;  %v1325_v21 = vld [vmem:[%s1668_s3] ss:$0 sm:$0xff] }
  0xb9   :  { %256 = vrot.lane.b32.xlu1 %v1264_v58, %s1070_s1 }
  0xbb   :  { %v1274_v61 = vpop.eup %1010 }
  0xbc   :  { %v1301_v24 = vpop.eup %1012 }
  0xbd   :  { %280 = vrot.lane.b32.xlu1 %v1264_v58, %s1071_s14  ;;  %v1307_v15 = vpop.eup %1014 }
  0xc1   :  { %260 = vrot.lane.b32.xlu1 %v1274_v61, %s1070_s1 }
  0xc5   :  { %284 = vrot.lane.b32.xlu1 %v1274_v61, %s1071_s14 }
  0xcd   :  { %105 = vadd.xlane.f32.xlu0 %v104_v6 }
  0xd1   :  { %111 = vadd.xlane.f32.xlu0 %v110_v7 }
  0xe7   :  { %208 = vrot.lane.b32.xlu0 %v1258_v54, %s1069_s21 }
  0xeb   :  { %254 = vrot.lane.b32.xlu0 %v1301_v24, %s1070_s1 }
  0xef   :  { %278 = vrot.lane.b32.xlu0 %v1301_v24, %s1071_s14 }
  0xf3   :  { %258 = vrot.lane.b32.xlu0 %v1307_v15, %s1070_s1 }
  0xf7   :  { %282 = vrot.lane.b32.xlu0 %v1307_v15, %s1071_s14 }
 0x125   :  { %v100_v25 = vpop.xlane.xlu0 %99 }
 0x126   :  { %v116_v26 = vmul.f32 0.0625, %v100_v25 }
 0x128   :  { %v122_v28 = vadd.f32 1e-05, %v116_v26 }
 0x129   :  { %v103_v29 = vpop.xlane.xlu1 %102  ;;  %v185_v5 = vpop.permute.xlu0 %184 }
 0x12a   :  { %1016 = vrsqrt.f32 %v122_v28  ;;  %v117_v30 = vmul.f32 0.0625, %v103_v29  ;;  %v198_v9 = vadd.f32 %v185_v5, %v1258_v54 }
 0x12c   :  { %v123_v31 = vadd.f32 1e-05, %v117_v30 }
 0x12d   :  { %v109_v32 = vpop.xlane.xlu1 %108 }
 0x12e   :  { %1018 = vrsqrt.f32 %v123_v31  ;;  %v119_v57 = vmul.f32 0.0625, %v109_v32 }
 0x130   :  { %v125_v0 = vadd.f32 1e-05, %v119_v57 }
 0x131   :  { %v115_v35 = vpop.xlane.xlu1 %114 }
 0x132   :  { %v121_v6 = vmul.f32 0.0625, %v115_v35 }
 0x134   :  { %v1017_v36 = vpop.eup %1016  ;;  %v127_v1 = vadd.f32 1e-05, %v121_v6 }
 0x135   :  { %v134_v38 = vmul.f32 %v1017_v36, %v1231_v27  ;;  %v211_v39 = vpop.permute.xlu1 %210 }
 0x136   :  { %v223_v41 = vadd.f32 %v211_v39, %v199_v37 }
 0x137   :  { %v146_v46 = vmul.f32 %v1318_v42, %v134_v38 }
 0x138   :  { %v1019_v43 = vpop.eup %1018  ;;  %v229_v44 = vmax.f32 %v223_v41, 1e-08 }
 0x139   :  { %v135_v45 = vmul.f32 %v1019_v43, %v1235_v33  ;;  %v158_v47 = vadd.f32 %v1325_v21, %v146_v46  ;;  %v257_v51 = vpop.permute.xlu1 %256 }
 0x13a   :  { %1020 = vrsqrt.f32 %v229_v44  ;;  %v273_v53 = vmul.f32 %v257_v51, %v1173_v12 }
 0x13b   :  { %v147_v27 = vmul.f32 %v1318_v42, %v135_v45  ;;  %1022 = vrsqrt.f32 %v125_v0 }
 0x13d   :  { %v159_v48 = vadd.f32 %v1325_v21, %v147_v27  ;;  %v281_v52 = vpop.permute.xlu1 %280 }
 0x13e   :  { %v297_v56 = vmul.f32 %v281_v52, %v1173_v12 }
 0x13f   :  { %v462_v49 = vpack.c.bf16 %v159_v48, %v158_v47 }
 0x141   :  { %939 = vmatmul.mubr.msk.bf16.vlgmr.msra.gmra.mrb[0].mxu0 %vm61_vm0, %v462_v49  ;;  %v261_v55 = vpop.permute.xlu1 %260 }
 0x142   :  { %942 = vmatprep.mubr.msk.bf16.mxu0 %vm1073_vm1, %v1072_v60  ;;  %v275_v59 = vmul.f32 %v261_v55, %v1197_v17 }
 0x144   :  { %v1333_v33 = vpop.eup %1020 }
 0x145   :  { %264 = vrot.lane.b32.xlu1 %v1333_v33, %s1070_s1  ;;  %v285_v62 = vpop.permute.xlu1 %284  ;;  %v1023_v23 = vpop.eup %1022 }
 0x146   :  { %v299_v4 = vmul.f32 %v285_v62, %v1197_v17  ;;  %v137_v26 = vmul.f32 %v1023_v23, %v1237_v34 }
 0x148   :  { %v149_v30 = vmul.f32 %v1318_v42, %v137_v26  ;;  %v245_v26 = vmul.f32 %v1274_v61, %v1197_v17  ;;  %v242_v61 = vmul.f32 %v1301_v24, %v1180_v14 }
 0x149   :  { %288 = vrot.lane.b32.xlu1 %v1333_v33, %s1071_s14 }
 0x14a   :  { %v161_v38 = vadd.f32 %v1325_v21, %v149_v30 }
 0x14d   :  { %321 = vrot.lane.b32.xlu1 %v273_v53, %s1068_s18  ;;  %v302_v53 = vld [vmem:[#allocation2] sm:$0x1] }
 0x151   :  { %345 = vrot.lane.b32.xlu1 %v297_v56, %s1069_s21  ;;  %v361_v56 = vunpack.c.l.bf16 %v302_v53 }
 0x155   :  { %325 = vrot.lane.b32.xlu1 %v275_v59, %s1068_s18 }
 0x159   :  { %349 = vrot.lane.b32.xlu1 %v299_v4, %s1069_s21 }
 0x15a   :  { %v106_v7 = vpop.xlane.xlu0 %105 }
 0x15b   :  { %v118_v8 = vmul.f32 0.0625, %v106_v7 }
 0x15d   :  { %v124_v10 = vadd.f32 1e-05, %v118_v8 }
 0x15e   :  { %v112_v11 = vpop.xlane.xlu0 %111 }
 0x15f   :  { %1024 = vrsqrt.f32 %v124_v10  ;;  %v120_v13 = vmul.f32 0.0625, %v112_v11 }
 0x160   :  { %1026 = vrsqrt.f32 %v127_v1 }
 0x161   :  { %v126_v19 = vadd.f32 1e-05, %v120_v13 }
 0x162   :  { %v209_v22 = vpop.permute.xlu0 %208 }
 0x163   :  { %1028 = vrsqrt.f32 %v126_v19  ;;  %v222_v18 = vadd.f32 %v209_v22, %v198_v9 }
 0x165   :  { %v228_v25 = vmax.f32 %v222_v18, 1e-08 }
 0x166   :  { %v255_v39 = vpop.permute.xlu0 %254 }
 0x167   :  { %1030 = vrsqrt.f32 %v228_v25  ;;  %v272_v45 = vmul.f32 %v255_v39, %v1180_v14 }
 0x169   :  { %v1025_v28 = vpop.eup %1024 }
 0x16a   :  { %v136_v29 = vmul.f32 %v1025_v28, %v1284_v2  ;;  %v1027_v31 = vpop.eup %1026 }
 0x16b   :  { %v139_v54 = vmul.f32 %v1027_v31, %v1244_v40 }
 0x16c   :  { %v148_v32 = vmul.f32 %v1318_v42, %v136_v29 }
 0x16d   :  { %v1029_v35 = vpop.eup %1028  ;;  %v151_v2 = vmul.f32 %v1318_v42, %v139_v54 }
 0x16e   :  { %v138_v36 = vmul.f32 %v1029_v35, %v1289_v3  ;;  %v160_v37 = vadd.f32 %v1325_v21, %v148_v32  ;;  %v279_v3 = vpop.permute.xlu0 %278 }
 0x16f   :  { %v163_v44 = vadd.f32 %v1325_v21, %v151_v2 }
 0x170   :  { %v463_v34 = vpack.c.bf16 %v161_v38, %v160_v37  ;;  %v150_v41 = vmul.f32 %v1318_v42, %v138_v36  ;;  %v296_v42 = vmul.f32 %v279_v3, %v1180_v14 }
 0x171   :  { %v1357_v43 = vpop.eup %1030 }
 0x172   :  { %943 = vmatmul.mubr.msk.bf16.gmra.mrb[4].mxu0 %vm61_vm0, %v463_v34  ;;  %262 = vrot.lane.b32.xlu0 %v1357_v43, %s1070_s1  ;;  %v162_v40 = vadd.f32 %v1325_v21, %v150_v41  ;;  %v259_v27 = vpop.permute.xlu0 %258  ;;  %v362_v21 = vlaneseq }
 0x173   :  { %946 = vmatprep.mubr.msk.bf16.mxu0 %vm1073_vm1, %v1072_v60  ;;  %v274_v47 = vmul.f32 %v259_v27, %v1190_v16 }
 0x174   :  { %v464_v46 = vpack.c.bf16 %v163_v44, %v162_v40  ;;  %v363_v51 = vshrl.u32 %v362_v21, 7 }
 0x176   :  { %286 = vrot.lane.b32.xlu0 %v1357_v43, %s1071_s14  ;;  %v283_v48 = vpop.permute.xlu0 %282  ;;  %v1380_v57 = vsub.s32 0, %v363_v51 }
 0x177   :  { %v298_v49 = vmul.f32 %v283_v48, %v1190_v16 }
 0x178   :  { %v1387_v0 = vrot.slane %v361_v56, %v1380_v57 }
 0x17a   :  { %947 = vmatmul.mubr.msk.bf16.gmra.mrb[8].mxu0 %vm61_vm0, %v464_v46  ;;  %319 = vrot.lane.b32.xlu0 %v272_v45, %s1068_s18  ;;  %v1390_v5 = vmul.f32 %v1387_v0, %v243_v63  ;;  %v1411_v32 = vmul.f32 %v1387_v0, %v245_v26  ;;  %v1428_v41 = vmul.f32 %v1387_v0, %v242_v61  ;;  %vm831_vm0 = vcmask 7168  }
 0x17b   :  { %v244_v45 = vmul.f32 %v1307_v15, %v1190_v16 }
 0x17c   :  { %v385_v1 = vmul.f32 %v1390_v5, %v1390_v5  ;;  %v387_v37 = vmul.f32 %v1411_v32, %v1411_v32  ;;  %v384_v3 = vmul.f32 %v1428_v41, %v1428_v41 }
 0x17e   :  { %343 = vrot.lane.b32.xlu0 %v296_v42, %s1069_s21 }
 0x182   :  { %323 = vrot.lane.b32.xlu0 %v274_v47, %s1068_s18 }
 0x186   :  { %347 = vrot.lane.b32.xlu0 %v298_v49, %s1069_s21  ;;  %v1445_v49 = vmul.f32 %v1387_v0, %v244_v45 }
 0x188   :  { %v386_v16 = vmul.f32 %v1445_v49, %v1445_v49 }
 0x1b7   :  { %v265_v52 = vpop.permute.xlu1 %264 }
 0x1b8   :  { %v277_v55 = vmul.f32 %v265_v52, %v1216_v20 }
 0x1ba   :  { %329 = vrot.lane.b32.xlu1 %v277_v55, %s1068_s18 }
 0x1bb   :  { %v289_v59 = vpop.permute.xlu1 %288 }
 0x1bc   :  { %v301_v62 = vmul.f32 %v289_v59, %v1216_v20 }
 0x1be   :  { %353 = vrot.lane.b32.xlu1 %v301_v62, %s1069_s21 }
 0x1bf   :  { %v322_v4 = vpop.permute.xlu1 %321 }
 0x1c0   :  { %v1393_v6 = vmul.f32 %v1387_v0, %v322_v4 }
 0x1c2   :  { %v391_v7 = vmul.f32 %v1393_v6, %v1393_v6 }
 0x1c3   :  { %v346_v8 = vpop.permute.xlu1 %345 }
 0x1c4   :  { %v1400_v12 = vmul.f32 %v1387_v0, %v346_v8  ;;  %v397_v58 = vadd.f32 %v391_v7, %v385_v1 }
 0x1c6   :  { %v403_v10 = vmul.f32 %v1400_v12, %v1400_v12 }
 0x1c7   :  { %v326_v25 = vpop.permute.xlu1 %325 }
 0x1c8   :  { %v409_v11 = vadd.f32 %v403_v10, %v397_v58  ;;  %v1407_v30 = vmul.f32 %v1387_v0, %v326_v25 }
 0x1ca   :  { %v415_v13 = vmax.f32 %v409_v11, 1e-08  ;;  %v393_v36 = vmul.f32 %v1407_v30, %v1407_v30 }
 0x1cb   :  { %v350_v28 = vpop.permute.xlu1 %349 }
 0x1cc   :  { %1032 = vrsqrt.f32 %v415_v13  ;;  %vm429_vm2 = vcmp.eq.f32.partialorder %v415_v13, inf  ;;  %v432_v22 = vand.u32 2147483648, %v415_v13  ;;  %vm431_vm3 = vcmp.eq.f32.partialorder %v415_v13, 0.0 }
 0x1cd   :  { %v1414_v35 = vmul.f32 %v1387_v0, %v350_v28  ;;  %v399_v34 = vadd.f32 %v393_v36, %v387_v37 }
 0x1cf   :  { %v405_v38 = vmul.f32 %v1414_v35, %v1414_v35 }
 0x1d1   :  { %v411_v40 = vadd.f32 %v405_v38, %v399_v34 }
 0x1d3   :  { %v417_v46 = vmax.f32 %v411_v40, 1e-08 }
 0x1d5   :  { %1034 = vrsqrt.f32 %v417_v46  ;;  %vm443_vm6 = vcmp.eq.f32.partialorder %v417_v46, inf  ;;  %vm445_vm7 = vcmp.eq.f32.partialorder %v417_v46, 0.0 }
 0x1d6   :  { %v1033_v9 = vpop.eup %1032 }
 0x1d7   :  { %v428_v19 = vmul.f32 %v1033_v9, %v415_v13  ;;  %v446_v9 = vand.u32 2147483648, %v417_v46 }
 0x1d9   :  { %v430_v23 = vsel %vm429_vm2, %v415_v13, %v428_v19  ;;  %v1006_v13 = vld [vmem:[%s1669_s9] sm:$0xff]   ;;  %vm869_vm2 = vcmask 19456  }
 0x1da   :  { %v433_v18 = vsel %vm431_vm3, %v432_v22, %v430_v23  ;;  %951 = vmatpush3.bf16.msra.mxu1 %v1006_v13 }
 0x1db   :  { %473 = vperm.xlu1 %974, %v433_v18   ;;  %952 = vmatprep.subr.bf16.mxu1 %v1072_v60  ;;  %v1007_v18 = vld [vmem:[%s1669_s9 + $0x8] sm:$0xff]  }
 0x1de   :  { %953 = vmatpush3.bf16.msra.mxu1 %v1007_v18 }
 0x1df   :  { %v1035_v63 = vpop.eup %1034 }
 0x1e0   :  { %v442_v8 = vmul.f32 %v1035_v63, %v417_v46 }
 0x1e2   :  { %v444_v11 = vsel %vm443_vm6, %v417_v46, %v442_v8 }
 0x1e3   :  { %v447_v22 = vsel %vm445_vm7, %v446_v9, %v444_v11 }
 0x1e4   :  { %v263_v29 = vpop.permute.xlu0 %262 }
 0x1e5   :  { %v276_v31 = vmul.f32 %v263_v29, %v1254_v50 }
 0x1e7   :  { %327 = vrot.lane.b32.xlu0 %v276_v31, %s1068_s18 }
 0x1e8   :  { %v287_v54 = vpop.permute.xlu0 %286 }
 0x1e9   :  { %v300_v17 = vmul.f32 %v287_v54, %v1254_v50 }
 0x1eb   :  { %351 = vrot.lane.b32.xlu0 %v300_v17, %s1069_s21  ;;  %v247_v17 = vmul.f32 %v1333_v33, %v1216_v20 }
 0x1ec   :  { %v320_v39 = vpop.permute.xlu0 %319 }
 0x1ed   :  { %v1431_v2 = vmul.f32 %v1387_v0, %v320_v39  ;;  %v1471_v37 = vmul.f32 %v1387_v0, %v247_v17 }
 0x1ef   :  { %v390_v14 = vmul.f32 %v1431_v2, %v1431_v2  ;;  %v389_v40 = vmul.f32 %v1471_v37, %v1471_v37 }
 0x1f0   :  { %v344_v24 = vpop.permute.xlu0 %343 }
 0x1f1   :  { %v1438_v44 = vmul.f32 %v1387_v0, %v344_v24  ;;  %v396_v27 = vadd.f32 %v390_v14, %v384_v3 }
 0x1f3   :  { %v402_v42 = vmul.f32 %v1438_v44, %v1438_v44 }
 0x1f4   :  { %v324_v47 = vpop.permute.xlu0 %323 }
 0x1f5   :  { %v408_v48 = vadd.f32 %v402_v42, %v396_v27  ;;  %v1448_v21 = vmul.f32 %v1387_v0, %v324_v47 }
 0x1f7   :  { %v414_v51 = vmax.f32 %v408_v48, 1e-08  ;;  %v392_v52 = vmul.f32 %v1448_v21, %v1448_v21 }
 0x1f8   :  { %v348_v53 = vpop.permute.xlu0 %347 }
 0x1f9   :  { %v1455_v15 = vmul.f32 %v1387_v0, %v348_v53  ;;  %1036 = vrsqrt.f32 %v414_v51  ;;  %v398_v55 = vadd.f32 %v392_v52, %v386_v16  ;;  %vm422_vm4 = vcmp.eq.f32.partialorder %v414_v51, inf }
 0x1fa   :  { %v425_v1 = vand.u32 2147483648, %v414_v51  ;;  %vm424_vm5 = vcmp.eq.f32.partialorder %v414_v51, 0.0 }
 0x1fb   :  { %v404_v56 = vmul.f32 %v1455_v15, %v1455_v15 }
 0x1fd   :  { %v410_v59 = vadd.f32 %v404_v56, %v398_v55 }
 0x1ff   :  { %v416_v62 = vmax.f32 %v410_v59, 1e-08 }
 0x201   :  { %1038 = vrsqrt.f32 %v416_v62  ;;  %vm436_vm8 = vcmp.eq.f32.partialorder %v416_v62, inf  ;;  %v439_v25 = vand.u32 2147483648, %v416_v62  ;;  %vm438_vm9 = vcmp.eq.f32.partialorder %v416_v62, 0.0 }
 0x203   :  { %v1037_v4 = vpop.eup %1036 }
 0x204   :  { %v421_v7 = vmul.f32 %v1037_v4, %v414_v51  ;;  %v246_v4 = vmul.f32 %v1357_v43, %v1254_v50  ;;  %v890_v50 = vld [vmem:[%s1671_s7] ss:$0 sm:$0xff] }
 0x206   :  { %v423_v58 = vsel %vm422_vm4, %v414_v51, %v421_v7 }
 0x207   :  { %v426_v10 = vsel %vm424_vm5, %v425_v1, %v423_v58  ;;  %v1500_v1 = vmul.f32 %v1387_v0, %v246_v4 }
 0x208   :  { %468 = vperm.xlu0 %973, %v426_v10  }
 0x20b   :  { %v1039_v19 = vpop.eup %1038 }
 0x20c   :  { %483 = vperm.xlu0 %973, %v447_v22   ;;  %v435_v23 = vmul.f32 %v1039_v19, %v416_v62  ;;  %v388_v19 = vmul.f32 %v1500_v1, %v1500_v1 }
 0x20e   :  { %v437_v26 = vsel %vm436_vm8, %v416_v62, %v435_v23  ;;  %v305_v62 = vld [vmem:[%s1670_s6] sm:$0x1] }
 0x20f   :  { %v440_v28 = vsel %vm438_vm9, %v439_v25, %v437_v26  ;;  %v465_v63 = vunpack.c.l.bf16 %v305_v62 }
 0x210   :  { %478 = vperm.xlu1 %974, %v440_v28  }
 0x211   :  { %v1497_v7 = vrot.slane %v465_v63, %v1380_v57 }
 0x214   :  { %v1466_v29 = vpop.f32.mrb[0].mxu0 }
 0x215   :  { %v940_v31 = vpop.f32.mrb[1].mxu0 }
 0x216   :  { %v558_v54 = vpop.f32.mrb[2].mxu0 }
 0x217   :  { %v941_v36 = vpop.f32.mrb[3].mxu0 }
 0x22c   :  { %v330_v61 = vpop.permute.xlu1 %329 }
 0x22d   :  { %v1474_v38 = vmul.f32 %v1387_v0, %v330_v61 }
 0x22f   :  { %v395_v39 = vmul.f32 %v1474_v38, %v1474_v38 }
 0x230   :  { %v354_v34 = vpop.permute.xlu1 %353 }
 0x231   :  { %v1481_v14 = vmul.f32 %v1387_v0, %v354_v34  ;;  %v401_v24 = vadd.f32 %v395_v39, %v389_v40  ;;  %v22_v39 = vstv %s1673_s10 }
 0x232   :  { %23 = vst [vmem:[#allocation4] sm:$0x1] %v22_v39 }
 0x233   :  { %v407_v20 = vmul.f32 %v1481_v14, %v1481_v14 }
 0x235   :  { %v413_v33 = vadd.f32 %v407_v20, %v401_v24 }
 0x237   :  { %v419_v3 = vmax.f32 %v413_v33, 1e-08 }
 0x239   :  { %1040 = vrsqrt.f32 %v419_v3  ;;  %vm457_vm10 = vcmp.eq.f32.partialorder %v419_v3, inf  ;;  %v460_v42 = vand.u32 2147483648, %v419_v3  ;;  %vm459_vm11 = vcmp.eq.f32.partialorder %v419_v3, 0.0 }
 0x243   :  { %v1041_v45 = vpop.eup %1040 }
 0x244   :  { %v456_v46 = vmul.f32 %v1041_v45, %v419_v3 }
 0x245   :  { %v1485_v27 = vpop.f32.mrb[4].mxu0 }
 0x246   :  { %v944_v47 = vpop.f32.mrb[5].mxu0  ;;  %v458_v48 = vsel %vm457_vm10, %v419_v3, %v456_v46 }
 0x247   :  { %v566_v51 = vpop.f32.mrb[6].mxu0  ;;  %v461_v52 = vsel %vm459_vm11, %v460_v42, %v458_v48 }
 0x248   :  { %v945_v53 = vpop.f32.mrb[7].mxu0  ;;  %493 = vperm.xlu0 %973, %v461_v52  }
 0x24d   :  { %v1487_v16 = vpop.f32.mrb[8].mxu0 }
 0x24e   :  { %v948_v55 = vpop.f32.mrb[9].mxu0 }
 0x24f   :  { %v1489_v56 = vpop.f32.mrb[10].mxu0 }
 0x250   :  { %v949_v59 = vpop.f32.mrb[11].mxu0 }
 0x259   :  { %v328_v8 = vpop.permute.xlu0 %327 }
 0x25a   :  { %v1503_v58 = vmul.f32 %v1387_v0, %v328_v8  ;;  %v474_v10 = vpop.permute.xlu1 %473 }
 0x25b   :  { %v501_v11 = vmul.f32 %v1497_v7, %v474_v10 }
 0x25c   :  { %v394_v13 = vmul.f32 %v1503_v58, %v1503_v58 }
 0x25d   :  { %v559_v43 = vadd.f32 %v558_v54, %v501_v11  ;;  %v352_v9 = vpop.permute.xlu0 %351 }
 0x25e   :  { %v1514_v22 = vmul.f32 %v1387_v0, %v352_v9  ;;  %v400_v18 = vadd.f32 %v394_v13, %v388_v19 }
 0x25f   :  { %v585_v23 = vadd.f32 %v890_v50, %v559_v43 }
 0x260   :  { %v406_v25 = vmul.f32 %v1514_v22, %v1514_v22 }
 0x261   :  { %v916_v26 = vpack.c.bf16 %v585_v23, %v585_v23 }
 0x262   :  { %v412_v28 = vadd.f32 %v406_v25, %v400_v18 }
 0x263   :  { %778 = vst.msk [vmem:[%s1672_s11 + $0x4] sm:$0xf] %vm776_vm12, %v916_v26 }
 0x264   :  { %v418_v31 = vmax.f32 %v412_v28, 1e-08 }
 0x266   :  { %1042 = vrsqrt.f32 %v418_v31  ;;  %vm450_vm13 = vcmp.eq.f32.partialorder %v418_v31, inf  ;;  %v453_v0 = vand.u32 2147483648, %v418_v31  ;;  %vm452_vm14 = vcmp.eq.f32.partialorder %v418_v31, 0.0 }
 0x270   :  { %v1043_v54 = vpop.eup %1042 }
 0x271   :  { %v449_v36 = vmul.f32 %v1043_v54, %v418_v31 }
 0x273   :  { %v451_v17 = vsel %vm450_vm13, %v418_v31, %v449_v36 }
 0x274   :  { %v454_v61 = vsel %vm452_vm14, %v453_v0, %v451_v17 }
 0x275   :  { %488 = vperm.xlu1 %974, %v454_v61  }
 0x287   :  { %v469_v34 = vpop.permute.xlu0 %468 }
 0x288   :  { %v500_v40 = vmul.f32 %v1497_v7, %v469_v34 }
 0x28a   :  { %v556_v24 = vadd.f32 %v1466_v29, %v500_v40  ;;  %v307_v40 = vld [vmem:[#allocation3] sm:$0x1] }
 0x28b   :  { %v484_v20 = vpop.permute.xlu0 %483 }
 0x28c   :  { %v584_v33 = vadd.f32 %v890_v50, %v556_v24  ;;  %v503_v3 = vmul.f32 %v1497_v7, %v484_v20 }
 0x28e   :  { %v590_v45 = vpack.c.bf16 %v585_v23, %v584_v33  ;;  %v915_v46 = vpack.c.bf16 %v584_v33, %v584_v33  ;;  %v567_v42 = vadd.f32 %v566_v51, %v503_v3  ;;  %v714_v3 = vunpack.c.l.bf16 %v307_v40 }
 0x28f   :  { %v479_v47 = vpop.permute.xlu1 %478 }
 0x290   :  { %777 = vst.msk [vmem:[%s1672_s11] sm:$0xf] %vm776_vm12, %v915_v46  ;;  %v587_v48 = vadd.f32 %v890_v50, %v567_v42  ;;  %v502_v52 = vmul.f32 %v1497_v7, %v479_v47  ;;  %955 = vmatmul.mubr.msk.bf16.vlgmr.msra.gmra.mrb[0].mxu1 %vm611_vm15, %v590_v45  ;;  %v1568_v46 = vrot.slane %v714_v3, %v1380_v57 }
 0x291   :  { %958 = vmatprep.mubr.msk.bf16.mxu1 %vm1073_vm1, %v1072_v60 }
 0x292   :  { %v918_v29 = vpack.c.bf16 %v587_v48, %v587_v48  ;;  %v564_v53 = vadd.f32 %v1485_v27, %v502_v52  ;;  %v719_v52 = vmul.f32 %v1568_v46, %v1428_v41  ;;  %v726_v57 = vmul.f32 %v1568_v46, %v1393_v6 }
 0x293   :  { %v727_v6 = vmul.f32 %v1568_v46, %v1448_v21  ;;  %v724_v40 = vmul.f32 %v1568_v46, %v1471_v37 }
 0x294   :  { %780 = vst.msk [vmem:[%s1672_s11 + $0xc] sm:$0xf] %vm776_vm12, %v918_v29  ;;  %v586_v51 = vadd.f32 %v890_v50, %v564_v53  ;;  %v725_v29 = vmul.f32 %v1568_v46, %v1431_v2  ;;  %v731_v53 = vmul.f32 %v1568_v46, %v1438_v44 }
 0x296   :  { %v591_v55 = vpack.c.bf16 %v587_v48, %v586_v51  ;;  %v917_v59 = vpack.c.bf16 %v586_v51, %v586_v51 }
 0x298   :  { %779 = vst.msk [vmem:[%s1672_s11 + $0x8] sm:$0xf] %vm776_vm12, %v917_v59  ;;  %959 = vmatmul.mubr.msk.bf16.gmra.mrb[4].mxu1 %vm611_vm15, %v591_v55  ;;  %v720_v55 = vmul.f32 %v1568_v46, %v1390_v5  ;;  %v732_v59 = vmul.f32 %v1568_v46, %v1400_v12  ;;  %v721_v5 = vmul.f32 %v1568_v46, %v1445_v49 }
 0x299   :  { %962 = vmatprep.mubr.msk.bf16.mxu1 %vm1073_vm1, %v1072_v60  ;;  %v733_v12 = vmul.f32 %v1568_v46, %v1455_v15  ;;  %v734_v49 = vmul.f32 %v1568_v46, %v1414_v35  ;;  %vm838_vm1 = vcmask 15360  }
 0x2c7   :  { %v494_v62 = vpop.permute.xlu0 %493 }
 0x2c8   :  { %v505_v27 = vmul.f32 %v1497_v7, %v494_v62 }
 0x2ca   :  { %v575_v63 = vadd.f32 %v1489_v56, %v505_v27  ;;  %v1561_v56 = vld [vmem:[#allocation4] ss:$0 sm:$0xff] }
 0x2cc   :  { %v589_v4 = vadd.f32 %v890_v50, %v575_v63 }
 0x2ce   :  { %v920_v8 = vpack.c.bf16 %v589_v4, %v589_v4 }
 0x2d0   :  { %782 = vst.msk [vmem:[%s1672_s11 + $0x14] sm:$0xf] %vm776_vm12, %v920_v8 }
 0x2f4   :  { %v489_v10 = vpop.permute.xlu1 %488 }
 0x2f5   :  { %v504_v11 = vmul.f32 %v1497_v7, %v489_v10 }
 0x2f7   :  { %v572_v13 = vadd.f32 %v1487_v16, %v504_v11 }
 0x2f9   :  { %v588_v43 = vadd.f32 %v890_v50, %v572_v13  ;;  %v722_v13 = vmul.f32 %v1568_v46, %v1411_v32 }
 0x2fb   :  { %v592_v9 = vpack.c.bf16 %v589_v4, %v588_v43  ;;  %v919_v60 = vpack.c.bf16 %v588_v43, %v588_v43  ;;  %v728_v43 = vmul.f32 %v1568_v46, %v1407_v30 }
 0x2fd   :  { %781 = vst.msk [vmem:[%s1672_s11 + $0x10] sm:$0xf] %vm776_vm12, %v919_v60  ;;  %963 = vmatmul.mubr.msk.bf16.gmra.mrb[8].mxu1 %vm611_vm15, %v592_v9 }
 0x363   :  { %v655_v19 = vpop.f32.mrb[0].mxu1 }
 0x364   :  { %v656_v23 = vadd.f32 %v1561_v56, %v655_v19  ;;  %v956_v18 = vpop.f32.mrb[1].mxu1 }
 0x365   :  { %v658_v25 = vpop.f32.mrb[2].mxu1 }
 0x366   :  { %v897_v7 = vmul.f32 -1.442695, %v656_v23  ;;  %v659_v16 = vadd.f32 %v1561_v56, %v658_v25  ;;  %v957_v50 = vpop.f32.mrb[3].mxu1 }
 0x368   :  { %1044 = vpow2.f32 %v897_v7  ;;  %v898_v26 = vmul.f32 -1.442695, %v659_v16 }
 0x36a   :  { %1046 = vpow2.f32 %v898_v26 }
 0x36b   :  { %v663_v28 = vpop.f32.mrb[4].mxu1 }
 0x36c   :  { %v664_v31 = vadd.f32 %v1561_v56, %v663_v28  ;;  %v960_v54 = vpop.f32.mrb[5].mxu1 }
 0x36d   :  { %v666_v36 = vpop.f32.mrb[6].mxu1 }
 0x36e   :  { %v899_v0 = vmul.f32 -1.442695, %v664_v31  ;;  %v667_v17 = vadd.f32 %v1561_v56, %v666_v36  ;;  %v961_v61 = vpop.f32.mrb[7].mxu1 }
 0x36f   :  { %v723_v61 = vmul.f32 %v1568_v46, %v1500_v1 }
 0x370   :  { %1048 = vpow2.f32 %v899_v0  ;;  %v900_v39 = vmul.f32 -1.442695, %v667_v17 }
 0x372   :  { %v1045_v34 = vpop.eup %1044  ;;  %1050 = vpow2.f32 %v900_v39  ;;  %v729_v39 = vmul.f32 %v1568_v46, %v1503_v58 }
 0x373   :  { %v696_v24 = vadd.f32 1.0, %v1045_v34  ;;  %v735_v34 = vmul.f32 %v1568_v46, %v1514_v22 }
 0x374   :  { %v1047_v20 = vpop.eup %1046 }
 0x375   :  { %1052 = vrcp.f32 %v696_v24  ;;  %v697_v33 = vadd.f32 1.0, %v1047_v20  ;;  %v730_v24 = vmul.f32 %v1568_v46, %v1474_v38  ;;  %v736_v20 = vmul.f32 %v1568_v46, %v1481_v14 }
 0x377   :  { %1054 = vrcp.f32 %v697_v33 }
 0x37a   :  { %v1049_v45 = vpop.eup %1048 }
 0x37b   :  { %v698_v42 = vadd.f32 1.0, %v1049_v45 }
 0x37c   :  { %v1051_v47 = vpop.eup %1050 }
 0x37d   :  { %1056 = vrcp.f32 %v698_v42  ;;  %v699_v48 = vadd.f32 1.0, %v1051_v47 }
 0x37f   :  { %v1053_v51 = vpop.eup %1052  ;;  %1058 = vrcp.f32 %v699_v48 }
 0x380   :  { %v749_v62 = vmul.f32 %v1053_v51, %v731_v53  ;;  %v743_v27 = vmul.f32 %v1053_v51, %v725_v29  ;;  %v1582_v41 = vmul.f32 %v1053_v51, %v719_v52 }
 0x381   :  { %v1055_v63 = vpop.eup %1054 }
 0x382   :  { %v750_v2 = vmul.f32 %v1055_v63, %v732_v59  ;;  %v744_v4 = vmul.f32 %v1055_v63, %v726_v57  ;;  %v1584_v8 = vmul.f32 %v1055_v63, %v720_v55 }
 0x384   :  { %v980_v44 = vpack.i.bf16 %v750_v2, %v749_v62  ;;  %v975_v10 = vpack.i.bf16 %v744_v4, %v743_v27 }
 0x386   :  { %981 = vrot.lane.b32.xlu0 %v980_v44, %s1071_s14  ;;  %976 = vrot.lane.b32.xlu1 %v975_v10, %s1070_s1 }
 0x387   :  { %v1057_v11 = vpop.eup %1056 }
 0x388   :  { %v745_v9 = vmul.f32 %v1057_v11, %v727_v6  ;;  %v751_v60 = vmul.f32 %v1057_v11, %v733_v12  ;;  %v1600_v21 = vmul.f32 %v1057_v11, %v721_v5 }
 0x389   :  { %v1059_v19 = vpop.eup %1058 }
 0x38a   :  { %v746_v15 = vmul.f32 %v1059_v19, %v728_v43  ;;  %v752_v23 = vmul.f32 %v1059_v19, %v734_v49  ;;  %v1602_v18 = vmul.f32 %v1059_v19, %v722_v13 }
 0x38c   :  { %v985_v25 = vpack.i.bf16 %v746_v15, %v745_v9  ;;  %v995_v7 = vpack.i.bf16 %v752_v23, %v751_v60 }
 0x38e   :  { %986 = vrot.lane.b32.xlu0 %v985_v25, %s1070_s1 }
 0x3d0   :  { %v671_v32 = vpop.f32.mrb[8].mxu1 }
 0x3d1   :  { %v672_v16 = vadd.f32 %v1561_v56, %v671_v32  ;;  %v964_v30 = vpop.f32.mrb[9].mxu1 }
 0x3d2   :  { %v674_v50 = vpop.f32.mrb[10].mxu1 }
 0x3d3   :  { %v901_v26 = vmul.f32 -1.442695, %v672_v16  ;;  %v675_v35 = vadd.f32 %v1561_v56, %v674_v50  ;;  %v965_v28 = vpop.f32.mrb[11].mxu1 }
 0x3d5   :  { %1060 = vpow2.f32 %v901_v26  ;;  %v902_v31 = vmul.f32 -1.442695, %v675_v35 }
 0x3d7   :  { %1062 = vpow2.f32 %v902_v31 }
 0x3df   :  { %v1061_v54 = vpop.eup %1060 }
 0x3e0   :  { %v700_v36 = vadd.f32 1.0, %v1061_v54 }
 0x3e1   :  { %v1063_v0 = vpop.eup %1062 }
 0x3e2   :  { %1064 = vrcp.f32 %v700_v36  ;;  %v701_v17 = vadd.f32 1.0, %v1063_v0 }
 0x3e4   :  { %1066 = vrcp.f32 %v701_v17 }
 0x3ec   :  { %v1065_v56 = vpop.eup %1064 }
 0x3ed   :  { %v753_v33 = vmul.f32 %v1065_v56, %v735_v34  ;;  %v747_v3 = vmul.f32 %v1065_v56, %v729_v39  ;;  %v741_v45 = vmul.f32 %v1065_v56, %v723_v61 }
 0x3ee   :  { %v1067_v1 = vpop.eup %1066 }
 0x3ef   :  { %v754_v42 = vmul.f32 %v1067_v1, %v736_v20  ;;  %v748_v47 = vmul.f32 %v1067_v1, %v730_v24  ;;  %v742_v58 = vmul.f32 %v1067_v1, %v724_v40 }
 0x3f1   :  { %v1000_v48 = vpack.i.bf16 %v754_v42, %v753_v33  ;;  %v990_v52 = vpack.i.bf16 %v748_v47, %v747_v3 }
 0x3f3   :  { %1001 = vrot.lane.b32.xlu0 %v1000_v48, %s1071_s14  ;;  %991 = vrot.lane.b32.xlu1 %v990_v52, %s1070_s1 }
 0x3f7   :  { %996 = vrot.lane.b32.xlu1 %v995_v7, %s1071_s14 }
 0x3f8   :  { %v977_v37 = vpop.permute.xlu1 %976  ;;  %v982_v38 = vpop.permute.xlu0 %981 }
 0x3f9   :  { %v979_v14 = vunpack.i.h.bf16 %v977_v37  ;;  %v978_v22 = vunpack.i.l.bf16 %v977_v37  ;;  %v984_v46 = vunpack.i.h.bf16 %v982_v38  ;;  %v983_v29 = vunpack.i.l.bf16 %v982_v38 }
 0x3fb   :  { %v832_v53 = vsel %vm831_vm0, %v1582_v41, %v978_v22  ;;  %v833_v51 = vsel %vm831_vm0, %v1584_v8, %v979_v14 }
 0x3fc   :  { %v840_v55 = vsel %vm838_vm1, %v833_v51, %v984_v46  ;;  %v839_v57 = vsel %vm838_vm1, %v832_v53, %v983_v29 }
 0x3fd   :  { %v922_v59 = vpack.c.bf16 %v840_v55, %v840_v55  ;;  %v921_v62 = vpack.c.bf16 %v839_v57, %v839_v57 }
 0x3ff   :  { %871 = vst.msk [vmem:[%s1674_s12 + $0x4] sm:$0xf] %vm869_vm2, %v922_v59  ;;  %870 = vst.msk [vmem:[%s1674_s12] sm:$0xf] %vm869_vm2, %v921_v62 }
 0x400   :  { %v987_v27 = vpop.permute.xlu0 %986 }
 0x401   :  { %v989_v10 = vunpack.i.h.bf16 %v987_v27  ;;  %v988_v5 = vunpack.i.l.bf16 %v987_v27 }
 0x403   :  { %v835_v15 = vsel %vm831_vm0, %v1602_v18, %v989_v10  ;;  %v834_v23 = vsel %vm831_vm0, %v1600_v21, %v988_v5 }
 0x465   :  { %v992_v41 = vpop.permute.xlu1 %991  ;;  %v1002_v63 = vpop.permute.xlu0 %1001 }
 0x466   :  { %v994_v2 = vunpack.i.h.bf16 %v992_v41  ;;  %v993_v4 = vunpack.i.l.bf16 %v992_v41  ;;  %v1004_v8 = vunpack.i.h.bf16 %v1002_v63  ;;  %v1003_v44 = vunpack.i.l.bf16 %v1002_v63 }
 0x468   :  { %v836_v6 = vsel %vm831_vm0, %v741_v45, %v993_v4  ;;  %v837_v12 = vsel %vm831_vm0, %v742_v58, %v994_v2 }
 0x469   :  { %v844_v11 = vsel %vm838_vm1, %v837_v12, %v1004_v8  ;;  %v843_v13 = vsel %vm838_vm1, %v836_v6, %v1003_v44  ;;  %v997_v43 = vpop.permute.xlu1 %996 }
 0x46a   :  { %v926_v49 = vpack.c.bf16 %v844_v11, %v844_v11  ;;  %v925_v9 = vpack.c.bf16 %v843_v13, %v843_v13  ;;  %v999_v60 = vunpack.i.h.bf16 %v997_v43  ;;  %v998_v19 = vunpack.i.l.bf16 %v997_v43 }
 0x46c   :  { %875 = vst.msk [vmem:[%s1674_s12 + $0x14] sm:$0xf] %vm869_vm2, %v926_v49  ;;  %874 = vst.msk [vmem:[%s1674_s12 + $0x10] sm:$0xf] %vm869_vm2, %v925_v9  ;;  %v841_v25 = vsel %vm838_vm1, %v834_v23, %v998_v19  ;;  %v842_v7 = vsel %vm838_vm1, %v835_v15, %v999_v60 }
 0x46d   :  { %v923_v32 = vpack.c.bf16 %v841_v25, %v841_v25  ;;  %v924_v16 = vpack.c.bf16 %v842_v7, %v842_v7 }
 0x46f   :  { %872 = vst.msk [vmem:[%s1674_s12 + $0x8] sm:$0xf] %vm869_vm2, %v923_v32  ;;  %873 = vst.msk [vmem:[%s1674_s12 + $0xc] sm:$0xf] %vm869_vm2, %v924_v16 }

// kernel: cdd_forward.23
= control target key start
LH: loop header
LB: loop body
LE: loop exit
PB: predicated region body
PF: predicated region fallthrough
CT: control target
= control target key end

     0   :  { %s4034_s0 = inlined_call_operand.vmem [shape: bf16[16,176], index: 0, kind: input, shape index: {}]   ;;  %s4035_s1 = inlined_call_operand.vmem [shape: f32[16,176], index: 1, kind: input, shape index: {}]   ;;  %s4036_s2 = inlined_call_operand.vmem [shape: f32[1,128], index: 2, kind: input, shape index: {}]   ;;  %s4037_s3 = inlined_call_operand.vmem [shape: f32[1,128], index: 3, kind: input, shape index: {}]   ;;  %s4038_s4 = inlined_call_operand.vmem [shape: bf16[16,32], index: 4, kind: input, shape index: {}]   ;;  %s4039_s5 = inlined_call_operand.vmem [shape: bf16[128,512], index: 5, kind: input, shape index: {}]   ;;  %s4040_s6 = inlined_call_operand.vmem [shape: bf16[32,512], index: 6, kind: input, shape index: {}]   ;;  %s4041_s7 = inlined_call_operand.vmem [shape: f32[1,512], index: 7, kind: input, shape index: {}]   ;;  %s4042_s8 = inlined_call_operand.vmem [shape: bf16[32,32], index: 8, kind: input, shape index: {}]   ;;  %s4043_s9 = inlined_call_operand.vmem [shape: bf16[512,32], index: 9, kind: input, shape index: {}]   ;;  %s4044_s10 = inlined_call_operand.vmem [shape: f32[1,32], index: 10, kind: input, shape index: {}]   ;;  %s4045_s11 = inlined_call_operand.vmem [shape: bf16[32,32], index: 11, kind: input, shape index: {}]   ;;  %s4046_s12 = inlined_call_operand.vmem [shape: bf16[512,128], index: 12, kind: input, shape index: {}]   ;;  %s4047_s13 = inlined_call_operand.vmem [shape: bf16[32,128], index: 13, kind: input, shape index: {}]   ;;  %s4048_s14 = inlined_call_operand.vmem [shape: f32[1,128], index: 14, kind: input, shape index: {}]   ;;  %s4049_s15 = inlined_call_operand.vmem [shape: bf16[32,16], index: 15, kind: input, shape index: {}]   ;;  %s4050_s16 = inlined_call_operand.vmem [shape: bf16[128,16], index: 16, kind: input, shape index: {}]   ;;  %s4051_s17 = inlined_call_operand.vmem [shape: f32[1,16], index: 17, kind: input, shape index: {}]   ;;  %s4052_s18 = inlined_call_operand.vmem [shape: f32[1,128], index: 18, kind: input, shape index: {}]   ;;  %s4053_s19 = inlined_call_operand.vmem [shape: f32[1,128], index: 19, kind: input, shape index: {}]   ;;  %s4054_s20 = inlined_call_operand.vmem [shape: f32[1,128], index: 20, kind: input, shape index: {}]   ;;  %s4055_s21 = inlined_call_operand.hbm [shape: f32[1,128], index: 21, kind: input, shape index: {}]   ;;  %s4056_s22 = inlined_call_operand.vmem [shape: bf16[16,16], index: 22, kind: input, shape index: {}]   ;;  %s4057_s23 = inlined_call_operand.vmem [shape: bf16[128,128], index: 23, kind: input, shape index: {}]   ;;  %s4058_s24 = inlined_call_operand.vmem [shape: bf16[16,128], index: 24, kind: input, shape index: {}]   ;;  %s4059_s25 = inlined_call_operand.hbm [shape: f32[1,128], index: 25, kind: input, shape index: {}]   ;;  %s4060_s26 = inlined_call_operand.vmem [shape: f32[16,128], index: 26, kind: output, shape index: {}]  }
   0x1   :  { %4067 = sst [smem:[#allocation8_spill]] %s4034_s0 }
   0x2   :  { %4068 = sst [smem:[#allocation9_spill]] %s4035_s1 }
   0x3   :  { %4069 = sst [smem:[#allocation10_spill]] %s4036_s2 }
   0x4   :  { %4070 = sst [smem:[#allocation11_spill]] %s4037_s3 }
   0x5   :  { %4071 = sst [smem:[#allocation12_spill]] %s4038_s4 }
   0x6   :  { %4072 = sst [smem:[#allocation13_spill]] %s4039_s5 }
   0x7   :  { %4073 = sst [smem:[#allocation14_spill]] %s4040_s6 }
   0x8   :  { %4074 = sst [smem:[#allocation15_spill]] %s4041_s7 }
   0x9   :  { %4075 = sst [smem:[#allocation16_spill]] %s4042_s8 }
   0xa   :  { %4076 = sst [smem:[#allocation17_spill]] %s4043_s9 }
   0xb   :  { %4077 = sst [smem:[#allocation18_spill]] %s4044_s10 }
   0xc   :  { %31 = vsyncpa [#allocation3], 0 }
   0xd   :  { %32 = vsyncpa [#allocation5], 0  ;;  %s3117_s27 = smov [#allocation2]   ;;  %s3118_s7 = smov [#allocation4]  }
   0xe   :  { %s81_s3 = sshll.u32 %s3117_s27, 4  ;;  %s97_s28 = sshll.u32 %s3118_s7, 4  ;;  %s82_s3 = int_to_ptr.vmem [resolvable:$true] %s81_s3  ;;  %s98_s28 = int_to_ptr.vmem [resolvable:$true] %s97_s28 }
   0xf   :  { %s3069_s29 = scalar_lea.hbm %s4055_s21, 16 }
  0x10   :  { %p3070_p0 = scmp.ne.s32.totalorder %s4055_s21, %s3069_s29  ;;  %p3073_p1 = scmp.lt.u32.totalorder %s3069_s29, %s4055_s21 }
  0x12   :  { %p3075_p2 = pnand %p3073_p1, %p3070_p0 }
  0x14   :  { %3078 = shalt.err (!%p3075_p2)
}
  0x15   :  { %s3079_s5 = scalar_lea.vmem %s82_s3, 16  ;;  %s3083_s10 = scalar_lea.vmem %s82_s3, 32 }
  0x16   :  { %p3080_p3 = scmp.ne.s32.totalorder %s82_s3, %s3079_s5  ;;  %p3084_p4 = scmp.lt.s32.totalorder %s82_s3, %s82_s3 }
  0x17   :  { %p3085_p5 = scmp.lt.s32.totalorder %s3083_s10, %s3079_s5 }
  0x19   :  { %p3086_p6 = por %p3085_p5, %p3084_p4 }
  0x1b   :  { %p3087_p7 = pnand %p3086_p6, %p3080_p3 }
  0x1d   :  { %3090 = shalt.err (!%p3087_p7)
}
  0x1e   :  { %84 = dma.hbm_to_vmem [thread:$0]  %s4055_s21, 16, %s82_s3, [#allocation3]  }
  0x1f   :  { %s3091_s8 = scalar_lea.hbm %s4059_s25, 16 }
  0x20   :  { %p3092_p8 = scmp.ne.s32.totalorder %s4059_s25, %s3091_s8  ;;  %p3095_p9 = scmp.lt.u32.totalorder %s3091_s8, %s4059_s25 }
  0x22   :  { %p3097_p10 = pnand %p3095_p9, %p3092_p8 }
  0x24   :  { %3100 = shalt.err (!%p3097_p10)
}
  0x25   :  { %s3101_s30 = scalar_lea.vmem %s98_s28, 16  ;;  %s3105_s2 = scalar_lea.vmem %s98_s28, 32 }
  0x26   :  { %p3102_p11 = scmp.ne.s32.totalorder %s98_s28, %s3101_s30  ;;  %p3106_p12 = scmp.lt.s32.totalorder %s98_s28, %s98_s28 }
  0x27   :  { %p3107_p13 = scmp.lt.s32.totalorder %s3105_s2, %s3101_s30 }
  0x29   :  { %p3108_p0 = por %p3107_p13, %p3106_p12 }
  0x2b   :  { %p3109_p1 = pnand %p3108_p0, %p3102_p11 }
  0x2d   :  { %3112 = shalt.err (!%p3109_p1)
}
  0x2e   :  { %100 = dma.hbm_to_vmem [thread:$0]  %s4059_s25, 16, %s98_s28, [#allocation5]  }
  0x2f   :  { %3113 = dma.done.wait [#allocation3], 16  }
  0x30   :  { %3114 = vsyncadd [#allocation3], 4294967280 }
  0x31   :  { %3115 = dma.done.wait [#allocation5], 16  }
  0x32   :  { %3116 = vsyncadd [#allocation5], 4294967280  ;;  %s4078_s6 = sld [smem:[#allocation8_spill]]  ;;  %s3119_s7 = smov 96   ;;  %vm456_vm0 = vcmask 130048   ;;  %v3121_v50 = vmov 0.0   ;;  %v359_v52 = vlaneseq }
  0x33   :  { %s3120_s8 = smov 112   ;;  %s4079_s4 = sld [smem:[#allocation9_spill]]  ;;  %2721 = vmatprep.subr.bf16.mxu0 %v3121_v50  ;;  %vm3122_vm1 = vmmov 0   ;;  %vm617_vm7 = vcmask 261120  }
  0x34   :  { %s4080_s10 = sld [smem:[#allocation12_spill]]  ;;  %2723 = vmatprep.mubr.msk.bf16.mxu0 %vm3122_vm1, %v3121_v50  ;;  %v360_v53 = vand.u32 127, %v359_v52  ;;  %s4081_s27 = sld [smem:[#allocation14_spill]] }
  0x35   :  { %s4083_s5 = sld [smem:[#allocation10_spill]]  ;;  %s4084_s28 = sld [smem:[#allocation11_spill]] }
  0x36   :  { %vm361_vm2 = vcmp.lt.s32.totalorder %v360_v53, 100  ;;  %s4085_s0 = sld [smem:[#allocation17_spill]]  ;;  %s4086_s2 = sld [smem:[#allocation15_spill]] }
  0x37   :  { %v3337_v60 = vsel %vm361_vm2, 1.0, %v3121_v50  ;;  %s4087_s21 = sld [smem:[#allocation16_spill]] }
  0x38   :  { %v339_v0 = vld [vmem:[%s4078_s6] sm:$0xff]  ;;  %v3289_v1 = vld [vmem:[%s4078_s6 + $0x8] sm:$0xff] }
  0x39   :  { %426 = vrot.lane.b32.xlu1 %v339_v0, %s3119_s7  ;;  %406 = vrot.lane.b32.xlu0 %v339_v0, %s3120_s8  ;;  %v399_v2 = vrot.slane %v3289_v1, 4  ;;  %v398_v3 = vrot.slane %v339_v0, 4  ;;  %v344_v4 = vld [vmem:[%s4079_s4 + $0x18] sm:$0xff]  ;;  %v342_v5 = vld [vmem:[%s4079_s4 + $0x8] sm:$0xff]  ;;  %v345_v40 = vunpack.c.l.bf16 %v339_v0  ;;  %v346_v47 = vunpack.c.l.bf16 %v3289_v1 }
  0x3a   :  { %v341_v43 = vld [vmem:[%s4079_s4] sm:$0xff]  ;;  %v343_v48 = vld [vmem:[%s4079_s4 + $0x10] sm:$0xff] }
  0x3b   :  { %v403_v6 = vunpack.c.l.bf16 %v399_v2  ;;  %v402_v7 = vunpack.c.l.bf16 %v398_v3  ;;  %v347_v46 = vadd.f32 %v345_v40, %v341_v43  ;;  %v348_v49 = vadd.f32 %v346_v47, %v343_v48  ;;  %v2866_v51 = vld [vmem:[%s4080_s10] sm:$0xff]  }
  0x3c   :  { %2722 = vmatpush3.bf16.msra.mxu0 %v2866_v51 }
  0x3d   :  { %428 = vrot.lane.b32.xlu1 %v3289_v1, %s3119_s7  ;;  %408 = vrot.lane.b32.xlu0 %v3289_v1, %s3120_s8  ;;  %v3300_v8 = vadd.f32 %v403_v6, %v344_v4  ;;  %v3302_v9 = vadd.f32 %v402_v7, %v342_v5 }
  0x3f   :  { %v445_v24 = vmul.f32 %v3300_v8, %v3300_v8  ;;  %v444_v25 = vmul.f32 %v3302_v9, %v3302_v9 }
  0x41   :  { %420 = vrot.lane.b32.xlu1 %v344_v4, %s3120_s8  ;;  %418 = vrot.lane.b32.xlu0 %v342_v5, %s3120_s8 }
  0x45   :  { %438 = vrot.lane.b32.xlu1 %v344_v4, %s3119_s7  ;;  %436 = vrot.lane.b32.xlu0 %v342_v5, %s3119_s7  ;;  %s4082_s7 = sld [smem:[#allocation13_spill]] }
  0xab   :  { %v427_v10 = vpop.permute.xlu1 %426  ;;  %v407_v11 = vpop.permute.xlu0 %406 }
  0xac   :  { %v410_v12 = vrot.slane %v407_v11, 4  ;;  %v430_v16 = vrot.slane %v427_v10, 4 }
  0xae   :  { %v414_v17 = vunpack.c.l.bf16 %v410_v12  ;;  %v434_v26 = vunpack.c.l.bf16 %v430_v16  ;;  %v2867_v16 = vld [vmem:[%s4081_s27 + $0xc] ss:$16 sps:$4 sm:$0xff]  }
  0xaf   :  { %v429_v13 = vpop.permute.xlu1 %428  ;;  %v409_v14 = vpop.permute.xlu0 %408  ;;  %664 = vmatprep.subr.bf16.mxu1 %v2867_v16 }
  0xb0   :  { %v411_v15 = vrot.slane %v409_v14, 4  ;;  %v431_v18 = vrot.slane %v429_v13, 4 }
  0xb2   :  { %v415_v19 = vunpack.c.l.bf16 %v411_v15  ;;  %v435_v27 = vunpack.c.l.bf16 %v431_v18  ;;  %v2872_v18 = vld [vmem:[%s4081_s27 + $0x8] ss:$16 sps:$4 sm:$0xff]  }
  0xb3   :  { %v421_v20 = vpop.permute.xlu1 %420  ;;  %v419_v21 = vpop.permute.xlu0 %418  ;;  %665 = vmatpush1.bf16.msra.mxu1 %v2872_v18  ;;  %v2882_v18 = vld [vmem:[%s4082_s7 + $0x20] ss:$16 sps:$4 sm:$0xff]  }
  0xb4   :  { %v3304_v22 = vadd.f32 %v421_v20, %v415_v19  ;;  %v3306_v23 = vadd.f32 %v419_v21, %v414_v17  ;;  %v2871_v17 = vld [vmem:[%s4081_s27 + $0x4] ss:$16 sps:$4 sm:$0xff]   ;;  %v2869_v19 = vld [vmem:[%s4081_s27] ss:$16 sps:$4 sm:$0xff]   ;;  %v2873_v20 = vld [vmem:[%s4081_s27 + $0x2c] ss:$16 sps:$4 sm:$0xff]  }
  0xb5   :  { %621 = vmatprep.subr.bf16.mxu0 %v2871_v17  ;;  %v2875_v21 = vld [vmem:[%s4081_s27 + $0x20] ss:$16 sps:$4 sm:$0xff]   ;;  %666 = vmatprep.subr.bf16.mxu1 %v2873_v20 }
  0xb6   :  { %v447_v28 = vmul.f32 %v3304_v22, %v3304_v22  ;;  %v446_v29 = vmul.f32 %v3306_v23, %v3306_v23 }
  0xb7   :  { %v439_v30 = vpop.permute.xlu1 %438  ;;  %v437_v31 = vpop.permute.xlu0 %436 }
  0xb8   :  { %v3316_v32 = vadd.f32 %v439_v30, %v435_v27  ;;  %v442_v33 = vadd.f32 %v437_v31, %v434_v26  ;;  %v449_v34 = vadd.f32 %v447_v28, %v445_v24  ;;  %v448_v35 = vadd.f32 %v446_v29, %v444_v25  ;;  %v2881_v24 = vld [vmem:[%s4082_s7 + $0x4] ss:$16 sps:$4 sm:$0xff]  }
  0xb9   :  { %v3123_v25 = vmov 0  }
  0xba   :  { %v451_v36 = vmul.f32 %v3316_v32, %v3316_v32  ;;  %v450_v37 = vmul.f32 %v442_v33, %v442_v33  ;;  %696 = vmatprep.mubr.bf16.mxu1 %v3123_v25 }
  0xbc   :  { %v453_v38 = vadd.f32 %v451_v36, %v449_v34  ;;  %v452_v39 = vadd.f32 %v450_v37, %v448_v35 }
  0xbe   :  { %v455_v41 = vmax.f32 %v453_v38, 1e-08  ;;  %v454_v42 = vmax.f32 %v452_v39, 1e-08 }
  0xc0   :  { %v460_v44 = vsel %vm456_vm0, %v455_v41, 0.0  ;;  %v457_v45 = vsel %vm456_vm0, %v454_v42, 0.0 }
  0xc1   :  { %461 = vadd.xlane.f32.xlu1 %v460_v44  ;;  %458 = vadd.xlane.f32.xlu0 %v457_v45 }
  0xc5   :  { %351 = vadd.xlane.f32.xlu0 %v347_v46 }
  0xc9   :  { %353 = vadd.xlane.f32.xlu0 %v348_v49 }
 0x14e   :  { %v462_v54 = vpop.xlane.xlu1 %461  ;;  %v459_v55 = vpop.xlane.xlu0 %458 }
 0x14f   :  { %v465_v56 = vmul.f32 0.0625, %v462_v54  ;;  %v464_v57 = vmul.f32 0.0625, %v459_v55 }
 0x151   :  { %3017 = vrsqrt.f32 %v465_v56 }
 0x152   :  { %3019 = vrsqrt.f32 %v464_v57  ;;  %v352_v58 = vpop.xlane.xlu0 %351 }
 0x153   :  { %v355_v59 = vmul.f32 0.01, %v352_v58 }
 0x155   :  { %v357_v61 = vsub.f32 %v347_v46, %v355_v59 }
 0x156   :  { %v354_v62 = vpop.xlane.xlu0 %353 }
 0x157   :  { %v356_v63 = vmul.f32 0.01, %v354_v62  ;;  %v3340_v0 = vmul.f32 %v3337_v60, %v357_v61 }
 0x159   :  { %v358_v1 = vsub.f32 %v348_v49, %v356_v63  ;;  %v366_v2 = vmul.f32 %v3340_v0, %v3340_v0 }
 0x15b   :  { %v3018_v3 = vpop.eup %3017  ;;  %368 = vadd.xlane.f32.xlu1 %v366_v2  ;;  %v3345_v4 = vmul.f32 %v3337_v60, %v358_v1 }
 0x15c   :  { %v3020_v5 = vpop.eup %3019  ;;  %v3348_v6 = vmul.f32 %v3018_v3, %v3300_v8  ;;  %v3364_v8 = vmul.f32 %v3018_v3, %v3304_v22  ;;  %v3374_v14 = vmul.f32 %v3018_v3, %v3316_v32  ;;  %v2877_v22 = vld [vmem:[%s4081_s27 + $0x24] ss:$16 sps:$4 sm:$0xff]  }
 0x15d   :  { %v367_v7 = vmul.f32 %v3345_v4, %v3345_v4  ;;  %v3353_v10 = vmul.f32 %v3020_v5, %v3302_v9  ;;  %v3361_v12 = vmul.f32 %v3020_v5, %v3306_v23  ;;  %v3371_v9 = vmul.f32 %v3020_v5, %v442_v33  ;;  %v2878_v23 = vld [vmem:[%s4081_s27 + $0x28] ss:$16 sps:$4 sm:$0xff]   ;;  %v2879_v5 = vld [vmem:[%s4082_s7] ss:$16 sps:$4 sm:$0xff]  }
 0x15e   :  { %667 = vmatpush1.bf16.msra.mxu1 %v2878_v23  ;;  %v2888_v23 = vld [vmem:[%s4082_s7 + $0x60] ss:$16 sps:$4 sm:$0xff]  }
 0x15f   :  { %370 = vadd.xlane.f32.xlu0 %v367_v7  ;;  %v474_v11 = vpack.c.bf16 %v3348_v6, %v3353_v10  ;;  %v475_v13 = vpack.c.bf16 %v3364_v8, %v3361_v12  ;;  %v476_v15 = vpack.c.bf16 %v3374_v14, %v3371_v9  ;;  %867 = vmatprep.subr.bf16.mxu1 %v2881_v24  ;;  %v2893_v24 = vld [vmem:[%s4082_s7 + $0x84] ss:$16 sps:$4 sm:$0xff]  }
 0x161   :  { %2724 = vmatmul.mubr.msk.bf16.vlgmr.msra.gmra.mrb[0].mxu0 %vm456_vm0, %v474_v11 }
 0x162   :  { %2727 = vmatprep.mubr.msk.bf16.mxu0 %vm3122_vm1, %v3121_v50  ;;  %622 = vmatpush1.bf16.msra.mxu0 %v2869_v19  ;;  %v2887_v19 = vld [vmem:[%s4082_s7 + $0x44] ss:$16 sps:$4 sm:$0xff]  }
 0x163   :  { %623 = vmatprep.subr.bf16.mxu0 %v2877_v22  ;;  %v2890_v22 = vld [vmem:[%s4082_s7 + $0x64] ss:$16 sps:$4 sm:$0xff]  }
 0x166   :  { %624 = vmatpush1.bf16.msra.mxu0 %v2875_v21  ;;  %v2885_v21 = vld [vmem:[%s4082_s7 + $0x40] ss:$16 sps:$4 sm:$0xff]  }
 0x169   :  { %2728 = vmatmul.mubr.msk.bf16.gmra.mrb[4].mxu0 %vm456_vm0, %v475_v13 }
 0x16a   :  { %2731 = vmatprep.mubr.msk.bf16.mxu0 %vm3122_vm1, %v3121_v50 }
 0x171   :  { %2732 = vmatmul.mubr.msk.bf16.gmra.mrb[8].mxu0 %vm456_vm0, %v476_v15  ;;  %v2884_v15 = vld [vmem:[%s4082_s7 + $0x24] ss:$16 sps:$4 sm:$0xff]  }
 0x172   :  { %653 = vmatprep.mubr.bf16.mxu0 %v3123_v25 }
 0x1e8   :  { %v369_v1 = vpop.xlane.xlu1 %368 }
 0x1e9   :  { %v372_v16 = vmul.f32 0.01, %v369_v1  ;;  %v2918_v1 = vld [vmem:[%s4082_s7 + $0xa8] ss:$16 sps:$4 sm:$0xff]  }
 0x1eb   :  { %v374_v20 = vadd.f32 1e-05, %v372_v16  ;;  %v2930_v16 = vld [vmem:[%s4085_s0 + $0x8] sm:$0xff]  }
 0x1ec   :  { %v371_v58 = vpop.xlane.xlu0 %370 }
 0x1ed   :  { %v373_v3 = vmul.f32 0.01, %v371_v58  ;;  %v2909_v58 = vld [vmem:[%s4082_s7 + $0x48] ss:$16 sps:$4 sm:$0xff]  }
 0x1ef   :  { %v375_v17 = vadd.f32 1e-05, %v373_v3  ;;  %v2921_v3 = vld [vmem:[%s4082_s7 + $0xc8] ss:$16 sps:$4 sm:$0xff]  }
 0x234   :  { %v3408_v26 = vpop.f32.mrb[0].mxu0 }
 0x235   :  { %v2725_v27 = vpop.f32.mrb[1].mxu0  ;;  %v549_v32 = vmul.f32 %v3408_v26, %v3408_v26 }
 0x236   :  { %v3410_v28 = vpop.f32.mrb[2].mxu0  ;;  %v2891_v27 = vld [vmem:[%s4082_s7 + $0x80] ss:$16 sps:$4 sm:$0xff]  }
 0x237   :  { %v1278_v29 = vpack.c.bf16 %v3410_v28, %v3408_v26  ;;  %v2726_v30 = vpop.f32.mrb[3].mxu0  ;;  %v550_v36 = vmul.f32 %v3410_v28, %v3410_v28  ;;  %v2961_v26 = vld [vmem:[%s4045_s11] sm:$0xff]   ;;  %v2962_v28 = vld [vmem:[%s4045_s11 + $0x8] sm:$0xff]  }
 0x238   :  { %v2896_v30 = vld [vmem:[%s4082_s7 + $0xa4] ss:$16 sps:$4 sm:$0xff]  }
 0x23c   :  { %v3414_v31 = vpop.f32.mrb[4].mxu0 }
 0x23d   :  { %v551_v33 = vmul.f32 %v3414_v31, %v3414_v31  ;;  %v2729_v34 = vpop.f32.mrb[5].mxu0 }
 0x23e   :  { %v3420_v35 = vpop.f32.mrb[6].mxu0  ;;  %v2894_v34 = vld [vmem:[%s4082_s7 + $0xa0] ss:$16 sps:$4 sm:$0xff]  }
 0x23f   :  { %v553_v37 = vadd.f32 %v551_v33, %v549_v32  ;;  %v552_v38 = vmul.f32 %v3420_v35, %v3420_v35  ;;  %v1279_v39 = vpack.c.bf16 %v3420_v35, %v3414_v31  ;;  %v2730_v40 = vpop.f32.mrb[7].mxu0 }
 0x240   :  { %v2897_v40 = vld [vmem:[%s4082_s7 + $0xc0] ss:$16 sps:$4 sm:$0xff]  }
 0x241   :  { %v554_v41 = vadd.f32 %v552_v38, %v550_v36 }
 0x244   :  { %v3428_v42 = vpop.f32.mrb[8].mxu0 }
 0x245   :  { %v555_v43 = vmul.f32 %v3428_v42, %v3428_v42  ;;  %v2733_v44 = vpop.f32.mrb[9].mxu0 }
 0x246   :  { %v3432_v45 = vpop.f32.mrb[10].mxu0 }
 0x247   :  { %v557_v46 = vadd.f32 %v555_v43, %v553_v37  ;;  %v556_v47 = vmul.f32 %v3432_v45, %v3432_v45  ;;  %v1280_v48 = vpack.c.bf16 %v3432_v45, %v3428_v42  ;;  %v2734_v49 = vpop.f32.mrb[11].mxu0  ;;  %v2899_v37 = vld [vmem:[%s4082_s7 + $0xc4] ss:$16 sps:$4 sm:$0xff]  }
 0x248   :  { %v2905_v49 = vld [vmem:[%s4082_s7 + $0xc] ss:$16 sps:$4 sm:$0xff]  }
 0x249   :  { %v559_v51 = vmax.f32 %v557_v46, 1e-08  ;;  %v558_v53 = vadd.f32 %v556_v47, %v554_v41  ;;  %v2423_v41 = vld [vmem:[%s4083_s5] ss:$0 sm:$0xff] }
 0x24a   :  { %v2424_v46 = vld [vmem:[%s4084_s28] ss:$0 sm:$0xff]  ;;  %s4088_s28 = sld [smem:[#allocation18_spill]] }
 0x24b   :  { %3021 = vrsqrt.f32 %v559_v51  ;;  %v560_v54 = vmax.f32 %v558_v53, 1e-08  ;;  %vm563_vm3 = vcmp.eq.f32.partialorder %v559_v51, inf  ;;  %v566_v62 = vand.u32 2147483648, %v559_v51  ;;  %v2903_v53 = vld [vmem:[%s4082_s7 + $0x8] ss:$16 sps:$4 sm:$0xff]  }
 0x24c   :  { %vm565_vm5 = vcmp.eq.f32.partialorder %v559_v51, 0.0 }
 0x24d   :  { %3023 = vrsqrt.f32 %v560_v54  ;;  %vm570_vm4 = vcmp.eq.f32.partialorder %v560_v54, inf  ;;  %v573_v63 = vand.u32 2147483648, %v560_v54  ;;  %vm572_vm6 = vcmp.eq.f32.partialorder %v560_v54, 0.0 }
 0x24e   :  { %3025 = vrsqrt.f32 %v375_v17  ;;  %v2931_v17 = vld [vmem:[%s4085_s0 + $0x50] sm:$0xff]  }
 0x24f   :  { %3027 = vrsqrt.f32 %v374_v20  ;;  %v2934_v20 = vld [vmem:[%s4085_s0 + $0x18] sm:$0xff]  }
 0x255   :  { %v3022_v55 = vpop.eup %3021 }
 0x256   :  { %v562_v56 = vmul.f32 %v3022_v55, %v559_v51  ;;  %v2908_v55 = vld [vmem:[%s4082_s7 + $0x2c] ss:$16 sps:$4 sm:$0xff]  }
 0x257   :  { %v3024_v57 = vpop.eup %3023 }
 0x258   :  { %v569_v59 = vmul.f32 %v3024_v57, %v560_v54  ;;  %v564_v61 = vsel %vm563_vm3, %v559_v51, %v562_v56  ;;  %v3026_v32 = vpop.eup %3025  ;;  %v2906_v56 = vld [vmem:[%s4082_s7 + $0x28] ss:$16 sps:$4 sm:$0xff]   ;;  %v2911_v57 = vld [vmem:[%s4082_s7 + $0x4c] ss:$16 sps:$4 sm:$0xff]  }
 0x259   :  { %v567_v7 = vsel %vm565_vm5, %v566_v62, %v564_v61  ;;  %v3028_v33 = vpop.eup %3027  ;;  %v379_v36 = vmul.f32 %v3026_v32, %v3345_v4  ;;  %v2902_v4 = vld [vmem:[%s4082_s7 + $0xe4] ss:$16 sps:$4 sm:$0xff]   ;;  %v2917_v61 = vld [vmem:[%s4082_s7 + $0x8c] ss:$16 sps:$4 sm:$0xff]   ;;  %v2915_v62 = vld [vmem:[%s4082_s7 + $0x88] ss:$16 sps:$4 sm:$0xff]  }
 0x25a   :  { %v571_v2 = vsel %vm570_vm4, %v560_v54, %v569_v59  ;;  %v378_v38 = vmul.f32 %v3028_v33, %v3340_v0  ;;  %v2900_v0 = vld [vmem:[%s4082_s7 + $0xe0] ss:$16 sps:$4 sm:$0xff]   ;;  %v2914_v59 = vld [vmem:[%s4082_s7 + $0x6c] ss:$16 sps:$4 sm:$0xff]  }
 0x25b   :  { %v574_v11 = vsel %vm572_vm6, %v573_v63, %v571_v2  ;;  %v387_v43 = vmul.f32 %v2423_v41, %v379_v36  ;;  %v2920_v63 = vld [vmem:[%s4082_s7 + $0xac] ss:$16 sps:$4 sm:$0xff]  }
 0x25c   :  { %v576_v13 = vpack.c.bf16 %v574_v11, %v567_v7  ;;  %v386_v44 = vmul.f32 %v2423_v41, %v378_v38  ;;  %v2923_v2 = vld [vmem:[%s4082_s7 + $0xcc] ss:$16 sps:$4 sm:$0xff]   ;;  %v2924_v7 = vld [vmem:[%s4082_s7 + $0xe8] ss:$16 sps:$4 sm:$0xff]   ;;  %v2927_v11 = vld [vmem:[%s4085_s0 + $0x40] sm:$0xff]   ;;  %v955_v41 = vshrl.u32 %v359_v52, 7 }
 0x25d   :  { %v3494_v47 = vadd.f32 %v2424_v46, %v387_v43  ;;  %2591 = vmatprep.subr.bf16.mxu0 %v2927_v11  ;;  %v2941_v32 = vld [vmem:[%s4085_s0 + $0x78] sm:$0xff]   ;;  %v150_v43 = vld [vmem:[%s4086_s2] sm:$0xf] }
 0x25e   :  { %2437 = vmatmul.mubr.msk.bf16.vlgmr.msra.gmra.mrb[12].mxu0 %vm617_vm7, %v576_v13  ;;  %2438 = vmatmul.mubr.msk.bf16.vlgmr.msra.gmra.mrb[0].mxu1 %vm617_vm7, %v576_v13  ;;  %v3499_v51 = vadd.f32 %v2424_v46, %v386_v44  ;;  %v2928_v13 = vld [vmem:[%s4085_s0] sm:$0xff]   ;;  %v2942_v33 = vld [vmem:[%s4085_s0 + $0x38] sm:$0xff]   ;;  %v960_v44 = vsub.s32 1, %v955_v41 }
 0x25f   :  { %868 = vmatpush1.bf16.msra.mxu1 %v2879_v5  ;;  %899 = vmatprep.mubr.bf16.mxu1 %v3123_v25  ;;  %v2926_v5 = vld [vmem:[%s4082_s7 + $0xec] ss:$16 sps:$4 sm:$0xff]   ;;  %v2944_v11 = vld [vmem:[%s4085_s0 + $0x80] sm:$0xff]  }
 0x260   :  { %869 = vmatprep.subr.bf16.mxu1 %v2884_v15  ;;  %v575_v54 = vpack.c.bf16 %v3494_v47, %v3499_v51  ;;  %v2929_v15 = vld [vmem:[%s4085_s0 + $0x48] sm:$0xff]   ;;  %2592 = vmatpush3.bf16.msra.mxu0 %v2928_v13 }
 0x261   :  { %2593 = vmatprep.subr.bf16.mxu0 %v2929_v15  ;;  %v2945_v15 = vld [vmem:[%s4085_s0 + $0xc8] sm:$0xff]  }
 0x263   :  { %870 = vmatpush1.bf16.msra.mxu1 %v2882_v18  ;;  %v2932_v18 = vld [vmem:[%s4085_s0 + $0x10] sm:$0xff]  }
 0x264   :  { %871 = vmatprep.subr.bf16.mxu1 %v2887_v19  ;;  %2594 = vmatpush3.bf16.msra.mxu0 %v2930_v16  ;;  %v2933_v19 = vld [vmem:[%s4085_s0 + $0x58] sm:$0xff]  }
 0x265   :  { %2595 = vmatprep.subr.bf16.mxu0 %v2931_v17  ;;  %v2946_v17 = vld [vmem:[%s4085_s0 + $0x88] sm:$0xff]  }
 0x267   :  { %872 = vmatpush1.bf16.msra.mxu1 %v2885_v21  ;;  %v2935_v21 = vld [vmem:[%s4085_s0 + $0x60] sm:$0xff]  }
 0x268   :  { %873 = vmatprep.subr.bf16.mxu1 %v2890_v22  ;;  %2596 = vmatpush3.bf16.msra.mxu0 %v2932_v18  ;;  %v2936_v22 = vld [vmem:[%s4085_s0 + $0x20] sm:$0xff]   ;;  %v2947_v18 = vld [vmem:[%s4085_s0 + $0xd0] sm:$0xff]  }
 0x269   :  { %2597 = vmatprep.subr.bf16.mxu0 %v2933_v19  ;;  %v2948_v19 = vld [vmem:[%s4085_s0 + $0x90] sm:$0xff]  }
 0x26b   :  { %874 = vmatpush1.bf16.msra.mxu1 %v2888_v23  ;;  %v2937_v23 = vld [vmem:[%s4085_s0 + $0x68] sm:$0xff]  }
 0x26c   :  { %875 = vmatprep.subr.bf16.mxu1 %v2893_v24  ;;  %2598 = vmatpush3.bf16.msra.mxu0 %v2934_v20  ;;  %v2938_v24 = vld [vmem:[%s4085_s0 + $0x28] sm:$0xff]   ;;  %v2949_v20 = vld [vmem:[%s4085_s0 + $0xd8] sm:$0xff]  }
 0x26d   :  { %2599 = vmatprep.subr.bf16.mxu0 %v2935_v21  ;;  %v2950_v21 = vld [vmem:[%s4085_s0 + $0x98] sm:$0xff]  }
 0x26f   :  { %876 = vmatpush1.bf16.msra.mxu1 %v2891_v27  ;;  %v2939_v27 = vld [vmem:[%s4085_s0 + $0x70] sm:$0xff]  }
 0x270   :  { %877 = vmatprep.subr.bf16.mxu1 %v2896_v30  ;;  %2600 = vmatpush3.bf16.msra.mxu0 %v2936_v22  ;;  %v2940_v30 = vld [vmem:[%s4085_s0 + $0x30] sm:$0xff]   ;;  %v2951_v22 = vld [vmem:[%s4085_s0 + $0xe0] sm:$0xff]  }
 0x271   :  { %2601 = vmatprep.subr.bf16.mxu0 %v2937_v23  ;;  %v2952_v23 = vld [vmem:[%s4085_s0 + $0xa0] sm:$0xff]  }
 0x273   :  { %878 = vmatpush1.bf16.msra.mxu1 %v2894_v34  ;;  %v2943_v34 = vld [vmem:[%s4085_s0 + $0xc0] sm:$0xff]  }
 0x274   :  { %879 = vmatprep.subr.bf16.mxu1 %v2899_v37  ;;  %2602 = vmatpush3.bf16.msra.mxu0 %v2938_v24  ;;  %v2953_v24 = vld [vmem:[%s4085_s0 + $0xe8] sm:$0xff]  }
 0x275   :  { %2603 = vmatprep.subr.bf16.mxu0 %v2939_v27  ;;  %v964_v27 = vsub.s32 2, %v955_v41 }
 0x277   :  { %880 = vmatpush1.bf16.msra.mxu1 %v2897_v40 }
 0x278   :  { %881 = vmatprep.subr.bf16.mxu1 %v2902_v4  ;;  %2604 = vmatpush3.bf16.msra.mxu0 %v2940_v30  ;;  %v956_v4 = vsub.s32 0, %v955_v41  ;;  %v968_v30 = vsub.s32 3, %v955_v41 }
 0x279   :  { %2605 = vmatprep.subr.bf16.mxu0 %v2941_v32  ;;  %v2954_v32 = vld [vmem:[%s4085_s0 + $0xa8] sm:$0xff]  }
 0x27b   :  { %882 = vmatpush1.bf16.msra.mxu1 %v2900_v0  ;;  %v957_v0 = vrot.slane %v150_v43, %v956_v4  ;;  %v2957_v4 = vld [vmem:[%s4085_s0 + $0xf8] sm:$0xff]  }
 0x27c   :  { %910 = vmatprep.subr.bf16.mxu1 %v2905_v49  ;;  %2606 = vmatpush3.bf16.msra.mxu0 %v2942_v33  ;;  %v961_v49 = vrot.slane %v150_v43, %v960_v44  ;;  %v965_v33 = vrot.slane %v150_v43, %v964_v27 }
 0x27d   :  { %2613 = vmatprep.subr.bf16.mxu0 %v2943_v34  ;;  %v2955_v34 = vld [vmem:[%s4085_s0 + $0xf0] sm:$0xff]  }
 0x27e   :  { %900 = vmatmul.mubr.bf16.vlgmr.msra.gmra.mrb[4].mxu1 %v575_v54 }
 0x27f   :  { %911 = vmatpush1.bf16.msra.mxu1 %v2903_v53  ;;  %942 = vmatprep.mubr.bf16.mxu1 %v3123_v25  ;;  %v2912_v25 = vld [vmem:[%s4082_s7 + $0x68] ss:$16 sps:$4 sm:$0xff]  }
 0x280   :  { %912 = vmatprep.subr.bf16.mxu1 %v2908_v55 }
 0x283   :  { %913 = vmatpush1.bf16.msra.mxu1 %v2906_v56 }
 0x284   :  { %914 = vmatprep.subr.bf16.mxu1 %v2911_v57 }
 0x287   :  { %915 = vmatpush1.bf16.msra.mxu1 %v2909_v58 }
 0x288   :  { %916 = vmatprep.subr.bf16.mxu1 %v2914_v59 }
 0x28b   :  { %917 = vmatpush1.bf16.msra.mxu1 %v2912_v25 }
 0x28c   :  { %918 = vmatprep.subr.bf16.mxu1 %v2917_v61 }
 0x28f   :  { %919 = vmatpush1.bf16.msra.mxu1 %v2915_v62 }
 0x290   :  { %920 = vmatprep.subr.bf16.mxu1 %v2920_v63 }
 0x293   :  { %921 = vmatpush1.bf16.msra.mxu1 %v2918_v1 }
 0x294   :  { %922 = vmatprep.subr.bf16.mxu1 %v2923_v2 }
 0x297   :  { %923 = vmatpush1.bf16.msra.mxu1 %v2921_v3 }
 0x298   :  { %924 = vmatprep.subr.bf16.mxu1 %v2926_v5 }
 0x29b   :  { %925 = vmatpush1.bf16.msra.mxu1 %v2924_v7 }
 0x29c   :  { %2751 = vmatprep.subr.bf16.mxu1 %v3121_v50 }
 0x29e   :  { %943 = vmatmul.mubr.bf16.vlgmr.msra.gmra.mrb[0].mxu1 %v575_v54 }
 0x29f   :  { %2755 = vmatprep.mubr.msk.bf16.mxu1 %vm3122_vm1, %v3121_v50  ;;  %2752 = vmatpush3.bf16.msra.mxu1 %v2961_v26  ;;  %v2965_v26 = vld [vmem:[%s4046_s12 + $0x48] sm:$0xff]  }
 0x2a0   :  { %2753 = vmatprep.subr.bf16.mxu1 %v3121_v50 }
 0x2a3   :  { %2754 = vmatpush3.bf16.msra.mxu1 %v2962_v28  ;;  %v2966_v28 = vld [vmem:[%s4046_s12 + $0x8] sm:$0xff]  }
 0x331   :  { %v655_v36 = vpop.f32.mrb[12].mxu0 }
 0x332   :  { %v657_v37 = vpop.f32.mrb[13].mxu0 }
 0x333   :  { %v659_v38 = vpop.f32.mrb[14].mxu0 }
 0x334   :  { %v661_v40 = vpop.f32.mrb[15].mxu0 }
 0x351   :  { %v901_v46 = vpop.f32.mrb[4].mxu1 }
 0x352   :  { %v902_v53 = vadd.f32 %v901_v46, %v655_v36  ;;  %v903_v54 = vpop.f32.mrb[5].mxu1  ;;  %v969_v36 = vrot.slane %v150_v43, %v968_v30  ;;  %v2958_v43 = vld [vmem:[%s4085_s0 + $0xb8] sm:$0xff]  }
 0x353   :  { %v904_v55 = vadd.f32 %v903_v54, %v657_v37  ;;  %v905_v56 = vpop.f32.mrb[6].mxu1 }
 0x354   :  { %v974_v57 = vadd.f32 %v957_v0, %v902_v53  ;;  %v906_v58 = vadd.f32 %v905_v56, %v659_v38  ;;  %v907_v59 = vpop.f32.mrb[7].mxu1  ;;  %v2956_v38 = vld [vmem:[%s4085_s0 + $0xb0] sm:$0xff]  }
 0x355   :  { %v975_v25 = vadd.f32 %v961_v49, %v904_v55  ;;  %v908_v61 = vadd.f32 %v907_v59, %v661_v40 }
 0x356   :  { %v978_v62 = vadd.f32 %v957_v0, %v906_v58  ;;  %v1365_v63 = vmax.f32 %v974_v57, 0.0 }
 0x357   :  { %v979_v52 = vadd.f32 %v961_v49, %v908_v61  ;;  %v1366_v3 = vmax.f32 %v975_v25, 0.0  ;;  %v2959_v61 = vld [vmem:[%s4087_s21] sm:$0xff]  }
 0x358   :  { %v982_v1 = vpack.c.bf16 %v978_v62, %v974_v57  ;;  %v1369_v2 = vmax.f32 %v978_v62, 0.0 }
 0x359   :  { %v1370_v5 = vmax.f32 %v979_v52, 0.0  ;;  %v983_v7 = vpack.c.bf16 %v979_v52, %v975_v25  ;;  %v2960_v52 = vld [vmem:[%s4087_s21 + $0x8] sm:$0xff]  }
 0x35a   :  { %v3610_v13 = vpack.c.bf16 %v1369_v2, %v1365_v63  ;;  %v2471_v63 = vld [vmem:[%s4088_s28] ss:$0 sm:$0xff] }
 0x35b   :  { %1216 = vmatprep.mubr.bf16.mxu0 %v983_v7  ;;  %v3615_v16 = vpack.c.bf16 %v1370_v5, %v1366_v3 }
 0x35c   :  { %1217 = vmatmul.mubr.bf16.vlgmr.msra.gmra.mrb[16].mxu0 %v982_v1 }
 0x35d   :  { %2614 = vmatpush3.bf16.msra.mxu0 %v2944_v11 }
 0x35e   :  { %2615 = vmatprep.subr.bf16.mxu0 %v2945_v15 }
 0x361   :  { %2616 = vmatpush3.bf16.msra.mxu0 %v2946_v17 }
 0x362   :  { %2617 = vmatprep.subr.bf16.mxu0 %v2947_v18 }
 0x365   :  { %2618 = vmatpush3.bf16.msra.mxu0 %v2948_v19 }
 0x366   :  { %2619 = vmatprep.subr.bf16.mxu0 %v2949_v20 }
 0x369   :  { %2620 = vmatpush3.bf16.msra.mxu0 %v2950_v21 }
 0x36a   :  { %2621 = vmatprep.subr.bf16.mxu0 %v2951_v22 }
 0x36d   :  { %2622 = vmatpush3.bf16.msra.mxu0 %v2952_v23 }
 0x36e   :  { %2623 = vmatprep.subr.bf16.mxu0 %v2953_v24 }
 0x371   :  { %2624 = vmatpush3.bf16.msra.mxu0 %v2954_v32  ;;  %v944_v37 = vpop.f32.mrb[0].mxu1 }
 0x372   :  { %v976_v40 = vadd.f32 %v965_v33, %v944_v37  ;;  %v946_v41 = vpop.f32.mrb[1].mxu1  ;;  %2625 = vmatprep.subr.bf16.mxu0 %v2955_v34 }
 0x373   :  { %v977_v44 = vadd.f32 %v969_v36, %v946_v41  ;;  %v948_v0 = vpop.f32.mrb[2].mxu1 }
 0x374   :  { %v980_v46 = vadd.f32 %v965_v33, %v948_v0  ;;  %v950_v49 = vpop.f32.mrb[3].mxu1  ;;  %v1367_v54 = vmax.f32 %v976_v40, 0.0 }
 0x375   :  { %v981_v53 = vadd.f32 %v969_v36, %v950_v49  ;;  %2626 = vmatpush3.bf16.msra.mxu0 %v2956_v38  ;;  %v1368_v57 = vmax.f32 %v977_v44, 0.0 }
 0x376   :  { %v984_v55 = vpack.c.bf16 %v980_v46, %v976_v40  ;;  %v1371_v56 = vmax.f32 %v980_v46, 0.0  ;;  %2627 = vmatprep.subr.bf16.mxu0 %v2957_v4 }
 0x377   :  { %v985_v58 = vpack.c.bf16 %v981_v53, %v977_v44  ;;  %v1372_v59 = vmax.f32 %v981_v53, 0.0 }
 0x378   :  { %v3656_v25 = vpack.c.bf16 %v1371_v56, %v1367_v54 }
 0x379   :  { %2628 = vmatpush3.bf16.msra.mxu0 %v2958_v43  ;;  %1257 = vmatprep.mubr.bf16.mxu0 %v985_v58  ;;  %v3661_v62 = vpack.c.bf16 %v1372_v59, %v1368_v57  ;;  %v2964_v58 = vld [vmem:[%s4046_s12] sm:$0xff]  }
 0x37a   :  { %2735 = vmatprep.subr.bf16.mxu0 %v3121_v50 }
 0x37c   :  { %1258 = vmatmul.mubr.bf16.vlgmr.msra.gmra.mrb[20].mxu0 %v984_v55 }
 0x37d   :  { %2736 = vmatpush3.bf16.msra.mxu0 %v2959_v61  ;;  %2739 = vmatprep.mubr.msk.bf16.mxu0 %vm3122_vm1, %v3121_v50 }
 0x37e   :  { %2737 = vmatprep.subr.bf16.mxu0 %v3121_v50 }
 0x381   :  { %2738 = vmatpush3.bf16.msra.mxu0 %v2960_v52 }
 0x382   :  { %2767 = vmatprep.subr.bf16.mxu0 %v3121_v50 }
 0x384   :  { %2740 = vmatmul.mubr.msk.bf16.vlgmr.msra.gmra.mrb[24].mxu0 %vm617_vm7, %v1278_v29  ;;  %v2963_v29 = vld [vmem:[%s4046_s12 + $0x40] sm:$0xff]  }
 0x385   :  { %2743 = vmatprep.mubr.msk.bf16.mxu0 %vm3122_vm1, %v3121_v50  ;;  %2648 = vmatprep.subr.bf16.mxu1 %v2963_v29  ;;  %v2967_v29 = vld [vmem:[%s4046_s12 + $0x50] sm:$0xff]  }
 0x38c   :  { %2744 = vmatmul.mubr.msk.bf16.gmra.mrb[28].mxu0 %vm617_vm7, %v1279_v39 }
 0x38d   :  { %2747 = vmatprep.mubr.msk.bf16.mxu0 %vm3122_vm1, %v3121_v50 }
 0x394   :  { %2748 = vmatmul.mubr.msk.bf16.gmra.mrb[32].mxu0 %vm617_vm7, %v1280_v48 }
 0x395   :  { %2771 = vmatprep.mubr.msk.bf16.mxu0 %vm3122_vm1, %v3121_v50 }
 0x42f   :  { %v2607_v31 = vpop.f32.mrb[16].mxu0 }
 0x430   :  { %v2608_v35 = vpop.f32.mrb[17].mxu0 }
 0x431   :  { %v2609_v39 = vadd.f32 %v2608_v35, %v2607_v31  ;;  %v2610_v42 = vpop.f32.mrb[18].mxu0  ;;  %v2968_v31 = vld [vmem:[%s4046_s12 + $0x10] sm:$0xff]   ;;  %v2969_v35 = vld [vmem:[%s4046_s12 + $0x58] sm:$0xff]  }
 0x432   :  { %v2611_v45 = vpop.f32.mrb[19].mxu0 }
 0x433   :  { %v2612_v48 = vadd.f32 %v2611_v45, %v2610_v42  ;;  %v1219_v3 = vadd.f32 %v2609_v39, %v2471_v63  ;;  %v2970_v39 = vld [vmem:[%s4046_s12 + $0x18] sm:$0xff]   ;;  %v2971_v42 = vld [vmem:[%s4046_s12 + $0x60] sm:$0xff]  }
 0x434   :  { %v2972_v45 = vld [vmem:[%s4046_s12 + $0x20] sm:$0xff]  }
 0x435   :  { %v1222_v15 = vadd.f32 %v2612_v48, %v2471_v63  ;;  %v2973_v48 = vld [vmem:[%s4046_s12 + $0x68] sm:$0xff]  }
 0x436   :  { %v2974_v63 = vld [vmem:[%s4046_s12 + $0x28] sm:$0xff]  }
 0x44f   :  { %v2629_v1 = vpop.f32.mrb[20].mxu0 }
 0x450   :  { %v2630_v2 = vpop.f32.mrb[21].mxu0 }
 0x451   :  { %v2631_v5 = vadd.f32 %v2630_v2, %v2629_v1  ;;  %v2632_v7 = vpop.f32.mrb[22].mxu0  ;;  %v2975_v1 = vld [vmem:[%s4046_s12 + $0x70] sm:$0xff]  }
 0x452   :  { %v2633_v11 = vpop.f32.mrb[23].mxu0  ;;  %v2976_v2 = vld [vmem:[%s4046_s12 + $0x30] sm:$0xff]  }
 0x453   :  { %v1260_v17 = vadd.f32 %v2631_v5, %v1219_v3  ;;  %v2634_v18 = vadd.f32 %v2633_v11, %v2632_v7  ;;  %v2977_v3 = vld [vmem:[%s4046_s12 + $0x78] sm:$0xff]   ;;  %v2979_v5 = vld [vmem:[%s4047_s13] sm:$0xff]   ;;  %v2980_v7 = vld [vmem:[%s4047_s13 + $0x8] sm:$0xff]  }
 0x454   :  { %2768 = vmatpush3.bf16.msra.mxu0 %v2979_v5  ;;  %v2981_v11 = vld [vmem:[%s4046_s12 + $0xc0] sm:$0xff]   ;;  %v2987_v5 = vld [vmem:[%s4046_s12 + $0xd8] sm:$0xff]  }
 0x455   :  { %v2504_v19 = vmul.f32 -1.442695, %v1260_v17  ;;  %v1263_v20 = vadd.f32 %v2634_v18, %v1222_v15  ;;  %2769 = vmatprep.subr.bf16.mxu0 %v3121_v50 }
 0x457   :  { %3029 = vpow2.f32 %v2504_v19  ;;  %v2505_v21 = vmul.f32 -1.442695, %v1263_v20  ;;  %v1336_v22 = vpop.f32.mrb[24].mxu0 }
 0x458   :  { %v2741_v23 = vpop.f32.mrb[25].mxu0  ;;  %2770 = vmatpush3.bf16.msra.mxu0 %v2980_v7  ;;  %v2989_v7 = vld [vmem:[%s4046_s12 + $0xe0] sm:$0xff]  }
 0x459   :  { %3031 = vpow2.f32 %v2505_v21  ;;  %v1339_v24 = vpop.f32.mrb[26].mxu0  ;;  %2670 = vmatprep.subr.bf16.mxu0 %v2981_v11  ;;  %v2990_v11 = vld [vmem:[%s4046_s12 + $0xa0] sm:$0xff]  }
 0x45a   :  { %v2742_v27 = vpop.f32.mrb[27].mxu0 }
 0x45f   :  { %v1344_v30 = vpop.f32.mrb[28].mxu0 }
 0x460   :  { %v2745_v32 = vpop.f32.mrb[29].mxu0 }
 0x461   :  { %v3030_v33 = vpop.eup %3029  ;;  %v1347_v34 = vpop.f32.mrb[30].mxu0 }
 0x462   :  { %v1272_v36 = vadd.f32 1.0, %v3030_v33  ;;  %v2746_v37 = vpop.f32.mrb[31].mxu0 }
 0x463   :  { %v3032_v38 = vpop.eup %3031 }
 0x464   :  { %3033 = vrcp.f32 %v1272_v36  ;;  %v1273_v40 = vadd.f32 1.0, %v3032_v38 }
 0x466   :  { %3035 = vrcp.f32 %v1273_v40 }
 0x467   :  { %v1352_v41 = vpop.f32.mrb[32].mxu0 }
 0x468   :  { %v2749_v4 = vpop.f32.mrb[33].mxu0 }
 0x469   :  { %v1355_v44 = vpop.f32.mrb[34].mxu0 }
 0x46a   :  { %v2750_v0 = vpop.f32.mrb[35].mxu0 }
 0x46e   :  { %v3034_v46 = vpop.eup %3033 }
 0x46f   :  { %v1359_v49 = vmul.f32 %v3034_v46, %v1336_v22  ;;  %v1361_v53 = vmul.f32 %v3034_v46, %v1344_v30  ;;  %v1363_v43 = vmul.f32 %v3034_v46, %v1352_v41 }
 0x470   :  { %v3036_v54 = vpop.eup %3035 }
 0x471   :  { %v1360_v55 = vmul.f32 %v3036_v54, %v1339_v24  ;;  %v1362_v56 = vmul.f32 %v3036_v54, %v1347_v34  ;;  %v1364_v57 = vmul.f32 %v3036_v54, %v1355_v44 }
 0x473   :  { %v1373_v59 = vpack.c.bf16 %v1360_v55, %v1359_v49  ;;  %v1374_v61 = vpack.c.bf16 %v1362_v56, %v1361_v53  ;;  %v1375_v52 = vpack.c.bf16 %v1364_v57, %v1363_v43 }
 0x475   :  { %2756 = vmatmul.mubr.msk.bf16.vlgmr.msra.gmra.mrb[8].mxu1 %vm617_vm7, %v1373_v59 }
 0x476   :  { %2649 = vmatpush3.bf16.msra.mxu1 %v2964_v58  ;;  %2759 = vmatprep.mubr.msk.bf16.mxu1 %vm3122_vm1, %v3121_v50 }
 0x477   :  { %2650 = vmatprep.subr.bf16.mxu1 %v2965_v26 }
 0x47a   :  { %2651 = vmatpush3.bf16.msra.mxu1 %v2966_v28 }
 0x47b   :  { %2652 = vmatprep.subr.bf16.mxu1 %v2967_v29 }
 0x47d   :  { %2760 = vmatmul.mubr.msk.bf16.gmra.mrb[12].mxu1 %vm617_vm7, %v1374_v61 }
 0x47e   :  { %2653 = vmatpush3.bf16.msra.mxu1 %v2968_v31  ;;  %2763 = vmatprep.mubr.msk.bf16.mxu1 %vm3122_vm1, %v3121_v50 }
 0x47f   :  { %2654 = vmatprep.subr.bf16.mxu1 %v2969_v35 }
 0x482   :  { %2655 = vmatpush3.bf16.msra.mxu1 %v2970_v39 }
 0x483   :  { %2656 = vmatprep.subr.bf16.mxu1 %v2971_v42 }
 0x485   :  { %2764 = vmatmul.mubr.msk.bf16.gmra.mrb[16].mxu1 %vm617_vm7, %v1375_v52 }
 0x486   :  { %2657 = vmatpush3.bf16.msra.mxu1 %v2972_v45  ;;  %1765 = vmatprep.mubr.bf16.mxu1 %v3615_v16  ;;  %v2978_v16 = vld [vmem:[%s4046_s12 + $0x38] sm:$0xff]  }
 0x487   :  { %2658 = vmatprep.subr.bf16.mxu1 %v2973_v48  ;;  %v2982_v48 = vld [vmem:[%s4046_s12 + $0x80] sm:$0xff]  }
 0x48a   :  { %2659 = vmatpush3.bf16.msra.mxu1 %v2974_v63 }
 0x48b   :  { %2660 = vmatprep.subr.bf16.mxu1 %v2975_v1  ;;  %v2983_v1 = vld [vmem:[%s4046_s12 + $0xc8] sm:$0xff]  }
 0x48e   :  { %2661 = vmatpush3.bf16.msra.mxu1 %v2976_v2  ;;  %v2984_v2 = vld [vmem:[%s4046_s12 + $0x88] sm:$0xff]  }
 0x48f   :  { %2662 = vmatprep.subr.bf16.mxu1 %v2977_v3  ;;  %v2985_v3 = vld [vmem:[%s4046_s12 + $0xd0] sm:$0xff]  }
 0x492   :  { %2663 = vmatpush3.bf16.msra.mxu1 %v2978_v16  ;;  %v2986_v16 = vld [vmem:[%s4046_s12 + $0x90] sm:$0xff]  }
 0x493   :  { %2775 = vmatprep.subr.bf16.mxu1 %v3121_v50 }
 0x495   :  { %1766 = vmatmul.mubr.bf16.vlgmr.msra.gmra.mrb[20].mxu1 %v3610_v13 }
 0x496   :  { %2791 = vmatprep.mubr.msk.bf16.mxu1 %vm3122_vm1, %v3121_v50 }
 0x548   :  { %v3769_v13 = vpop.f32.mrb[8].mxu1 }
 0x549   :  { %v2757_v15 = vpop.f32.mrb[9].mxu1  ;;  %v1454_v21 = vmul.f32 %v3769_v13, %v3769_v13 }
 0x54a   :  { %v3771_v17 = vpop.f32.mrb[10].mxu1  ;;  %v2991_v15 = vld [vmem:[%s4046_s12 + $0xe8] sm:$0xff]  }
 0x54b   :  { %v1931_v18 = vpack.c.bf16 %v3771_v17, %v3769_v13  ;;  %v2758_v19 = vpop.f32.mrb[11].mxu1  ;;  %v1455_v27 = vmul.f32 %v3771_v17, %v3771_v17  ;;  %v3000_v13 = vld [vmem:[%s4050_s16 + $0x8] sm:$0xff]   ;;  %v3001_v17 = vld [vmem:[%s4050_s16 + $0x10] sm:$0xff]  }
 0x54c   :  { %v2992_v19 = vld [vmem:[%s4046_s12 + $0xa8] sm:$0xff]  }
 0x550   :  { %v3775_v20 = vpop.f32.mrb[12].mxu1 }
 0x551   :  { %v1456_v22 = vmul.f32 %v3775_v20, %v3775_v20  ;;  %v2761_v23 = vpop.f32.mrb[13].mxu1 }
 0x552   :  { %v3781_v24 = vpop.f32.mrb[14].mxu1  ;;  %v2995_v23 = vld [vmem:[%s4046_s12 + $0xf8] sm:$0xff]  }
 0x553   :  { %v1458_v30 = vadd.f32 %v1456_v22, %v1454_v21  ;;  %v1457_v32 = vmul.f32 %v3781_v24, %v3781_v24  ;;  %v1932_v33 = vpack.c.bf16 %v3781_v24, %v3775_v20  ;;  %v2762_v34 = vpop.f32.mrb[15].mxu1  ;;  %v2993_v21 = vld [vmem:[%s4046_s12 + $0xf0] sm:$0xff]   ;;  %v3003_v20 = vld [vmem:[%s4050_s16 + $0x20] sm:$0xff]   ;;  %v3004_v24 = vld [vmem:[%s4050_s16 + $0x28] sm:$0xff]  }
 0x554   :  { %v2994_v22 = vld [vmem:[%s4046_s12 + $0xb0] sm:$0xff]   ;;  %v3006_v34 = vld [vmem:[%s4050_s16 + $0x38] sm:$0xff]  }
 0x555   :  { %v1459_v36 = vadd.f32 %v1457_v32, %v1455_v27  ;;  %v2996_v27 = vld [vmem:[%s4046_s12 + $0xb8] sm:$0xff]   ;;  %v2998_v32 = vld [vmem:[%s4049_s15 + $0x8] sm:$0xff]  }
 0x558   :  { %v3789_v37 = vpop.f32.mrb[16].mxu1 }
 0x559   :  { %v1460_v38 = vmul.f32 %v3789_v37, %v3789_v37  ;;  %v2765_v40 = vpop.f32.mrb[17].mxu1 }
 0x55a   :  { %v3793_v41 = vpop.f32.mrb[18].mxu1 }
 0x55b   :  { %v1462_v4 = vadd.f32 %v1460_v38, %v1458_v30  ;;  %v1461_v44 = vmul.f32 %v3793_v41, %v3793_v41  ;;  %v1933_v0 = vpack.c.bf16 %v3793_v41, %v3789_v37  ;;  %v2766_v46 = vpop.f32.mrb[19].mxu1  ;;  %v2997_v30 = vld [vmem:[%s4049_s15] sm:$0xff]  }
 0x55d   :  { %v1464_v49 = vmax.f32 %v1462_v4, 1e-08  ;;  %v1463_v53 = vadd.f32 %v1461_v44, %v1459_v36 }
 0x55f   :  { %3037 = vrsqrt.f32 %v1464_v49  ;;  %v1465_v43 = vmax.f32 %v1463_v53, 1e-08  ;;  %vm1468_vm8 = vcmp.eq.f32.partialorder %v1464_v49, inf  ;;  %v1471_v31 = vand.u32 2147483648, %v1464_v49 }
 0x560   :  { %vm1470_vm10 = vcmp.eq.f32.partialorder %v1464_v49, 0.0 }
 0x561   :  { %3039 = vrsqrt.f32 %v1465_v43  ;;  %vm1475_vm9 = vcmp.eq.f32.partialorder %v1465_v43, inf  ;;  %v1478_v35 = vand.u32 2147483648, %v1465_v43  ;;  %vm1477_vm11 = vcmp.eq.f32.partialorder %v1465_v43, 0.0 }
 0x568   :  { %v2664_v54 = vpop.f32.mrb[20].mxu1 }
 0x569   :  { %v3038_v55 = vpop.eup %3037  ;;  %v2665_v56 = vpop.f32.mrb[21].mxu1 }
 0x56a   :  { %v1467_v57 = vmul.f32 %v3038_v55, %v1464_v49  ;;  %v3799_v58 = vadd.f32 %v2665_v56, %v2664_v54  ;;  %v2667_v59 = vpop.f32.mrb[22].mxu1  ;;  %v2551_v55 = vld [vmem:[%s4048_s14] ss:$0 sm:$0xff] }
 0x56b   :  { %v3040_v61 = vpop.eup %3039  ;;  %v2668_v52 = vpop.f32.mrb[23].mxu1 }
 0x56c   :  { %v1474_v26 = vmul.f32 %v3040_v61, %v1465_v43  ;;  %v3801_v28 = vadd.f32 %v2668_v52, %v2667_v59  ;;  %v1469_v29 = vsel %vm1468_vm8, %v1464_v49, %v1467_v57 }
 0x56d   :  { %v1472_v42 = vsel %vm1470_vm10, %v1471_v31, %v1469_v29 }
 0x56e   :  { %v1476_v39 = vsel %vm1475_vm9, %v1465_v43, %v1474_v26 }
 0x56f   :  { %v1479_v45 = vsel %vm1477_vm11, %v1478_v35, %v1476_v39 }
 0x570   :  { %v1484_v63 = vpack.c.bf16 %v1479_v45, %v1472_v42 }
 0x572   :  { %2772 = vmatmul.mubr.msk.bf16.vlgmr.msra.gmra.mrb[36].mxu0 %vm617_vm7, %v1484_v63 }
 0x573   :  { %2671 = vmatpush3.bf16.msra.mxu0 %v2982_v48  ;;  %1806 = vmatprep.mubr.bf16.mxu0 %v3661_v62  ;;  %v2988_v62 = vld [vmem:[%s4046_s12 + $0x98] sm:$0xff]  }
 0x574   :  { %2672 = vmatprep.subr.bf16.mxu0 %v2983_v1  ;;  %v2552_v1 = vld [vmem:[%s4051_s17] ss:$0 sm:$0xff] }
 0x577   :  { %2673 = vmatpush3.bf16.msra.mxu0 %v2984_v2 }
 0x578   :  { %2674 = vmatprep.subr.bf16.mxu0 %v2985_v3 }
 0x57b   :  { %2675 = vmatpush3.bf16.msra.mxu0 %v2986_v16 }
 0x57c   :  { %2676 = vmatprep.subr.bf16.mxu0 %v2987_v5 }
 0x57f   :  { %2677 = vmatpush3.bf16.msra.mxu0 %v2988_v62 }
 0x580   :  { %2678 = vmatprep.subr.bf16.mxu0 %v2989_v7 }
 0x583   :  { %2679 = vmatpush3.bf16.msra.mxu0 %v2990_v11 }
 0x584   :  { %2680 = vmatprep.subr.bf16.mxu0 %v2991_v15 }
 0x587   :  { %2681 = vmatpush3.bf16.msra.mxu0 %v2992_v19 }
 0x588   :  { %2682 = vmatprep.subr.bf16.mxu0 %v2993_v21 }
 0x58b   :  { %2683 = vmatpush3.bf16.msra.mxu0 %v2994_v22 }
 0x58c   :  { %2684 = vmatprep.subr.bf16.mxu0 %v2995_v23 }
 0x58f   :  { %2685 = vmatpush3.bf16.msra.mxu0 %v2996_v27 }
 0x590   :  { %2795 = vmatprep.subr.bf16.mxu0 %v3121_v50 }
 0x592   :  { %1807 = vmatmul.mubr.bf16.vlgmr.msra.gmra.mrb[40].mxu0 %v3656_v25  ;;  %v2999_v25 = vld [vmem:[%s4050_s16] sm:$0xff]  }
 0x593   :  { %2796 = vmatpush3.bf16.msra.mxu0 %v2997_v30  ;;  %2799 = vmatprep.mubr.msk.bf16.mxu0 %vm3122_vm1, %v3121_v50 }
 0x594   :  { %2797 = vmatprep.subr.bf16.mxu0 %v3121_v50  ;;  %2776 = vmatpush3.bf16.msra.mxu1 %v2999_v25 }
 0x595   :  { %2777 = vmatprep.subr.bf16.mxu1 %v3121_v50 }
 0x597   :  { %2798 = vmatpush3.bf16.msra.mxu0 %v2998_v32 }
 0x598   :  { %2825 = vmatprep.subr.bf16.mxu0 %v3121_v50  ;;  %2778 = vmatpush3.bf16.msra.mxu1 %v3000_v13 }
 0x599   :  { %2779 = vmatprep.subr.bf16.mxu1 %v3121_v50 }
 0x59a   :  { %2800 = vmatmul.mubr.msk.bf16.vlgmr.msra.gmra.mrb[44].mxu0 %vm617_vm7, %v1931_v18  ;;  %v3002_v18 = vld [vmem:[%s4050_s16 + $0x18] sm:$0xff]  }
 0x59b   :  { %2803 = vmatprep.mubr.msk.bf16.mxu0 %vm3122_vm1, %v3121_v50 }
 0x59c   :  { %2780 = vmatpush3.bf16.msra.mxu1 %v3001_v17 }
 0x59d   :  { %2781 = vmatprep.subr.bf16.mxu1 %v3121_v50 }
 0x5a0   :  { %2782 = vmatpush3.bf16.msra.mxu1 %v3002_v18 }
 0x5a1   :  { %2783 = vmatprep.subr.bf16.mxu1 %v3121_v50 }
 0x5a2   :  { %2804 = vmatmul.mubr.msk.bf16.gmra.mrb[48].mxu0 %vm617_vm7, %v1932_v33  ;;  %v3005_v33 = vld [vmem:[%s4050_s16 + $0x30] sm:$0xff]  }
 0x5a3   :  { %2807 = vmatprep.mubr.msk.bf16.mxu0 %vm3122_vm1, %v3121_v50 }
 0x5a4   :  { %2784 = vmatpush3.bf16.msra.mxu1 %v3003_v20 }
 0x5a5   :  { %2785 = vmatprep.subr.bf16.mxu1 %v3121_v50 }
 0x5a8   :  { %2786 = vmatpush3.bf16.msra.mxu1 %v3004_v24 }
 0x5a9   :  { %2787 = vmatprep.subr.bf16.mxu1 %v3121_v50 }
 0x5aa   :  { %2808 = vmatmul.mubr.msk.bf16.gmra.mrb[52].mxu0 %vm617_vm7, %v1933_v0 }
 0x5ab   :  { %2827 = vmatprep.mubr.msk.bf16.mxu0 %vm3122_vm1, %v3121_v50 }
 0x5ac   :  { %2788 = vmatpush3.bf16.msra.mxu1 %v3005_v33 }
 0x5ad   :  { %2789 = vmatprep.subr.bf16.mxu1 %v3121_v50 }
 0x5b0   :  { %2790 = vmatpush3.bf16.msra.mxu1 %v3006_v34 }
 0x5b1   :  { %2811 = vmatprep.subr.bf16.mxu1 %v3121_v50 }
 0x645   :  { %v1534_v36 = vpop.f32.mrb[36].mxu0 }
 0x646   :  { %v1768_v37 = vadd.f32 %v3799_v58, %v1534_v36  ;;  %v2773_v38 = vpop.f32.mrb[37].mxu0 }
 0x647   :  { %v1537_v40 = vpop.f32.mrb[38].mxu0 }
 0x648   :  { %v1771_v41 = vadd.f32 %v3801_v28, %v1537_v40  ;;  %v2774_v4 = vpop.f32.mrb[39].mxu0 }
 0x665   :  { %v2686_v44 = vpop.f32.mrb[40].mxu0 }
 0x666   :  { %v2687_v0 = vpop.f32.mrb[41].mxu0 }
 0x667   :  { %v2688_v46 = vadd.f32 %v2687_v0, %v2686_v44  ;;  %v2689_v49 = vpop.f32.mrb[42].mxu0 }
 0x668   :  { %v2690_v53 = vpop.f32.mrb[43].mxu0 }
 0x669   :  { %v1809_v43 = vadd.f32 %v2688_v46, %v1768_v37  ;;  %v2691_v54 = vadd.f32 %v2690_v53, %v2689_v49 }
 0x66b   :  { %v1812_v56 = vadd.f32 %v2691_v54, %v1771_v41  ;;  %v3917_v57 = vadd.f32 %v2551_v55, %v1809_v43 }
 0x66d   :  { %v3919_v58 = vadd.f32 %v2551_v55, %v1812_v56  ;;  %v1989_v59 = vpop.f32.mrb[44].mxu0 }
 0x66e   :  { %v2801_v61 = vpop.f32.mrb[45].mxu0 }
 0x66f   :  { %v1823_v52 = vpack.c.bf16 %v3919_v58, %v3917_v57  ;;  %v1992_v26 = vpop.f32.mrb[46].mxu0 }
 0x670   :  { %v2802_v28 = vpop.f32.mrb[47].mxu0 }
 0x671   :  { %2792 = vmatmul.mubr.bf16.vlgmr.msra.gmra.mrb[24].mxu1 %v1823_v52 }
 0x672   :  { %2813 = vmatprep.mubr.msk.bf16.mxu1 %vm3122_vm1, %v3121_v50 }
 0x675   :  { %v1997_v29 = vpop.f32.mrb[48].mxu0 }
 0x676   :  { %v2805_v31 = vpop.f32.mrb[49].mxu0 }
 0x677   :  { %v2000_v35 = vpop.f32.mrb[50].mxu0 }
 0x678   :  { %v2806_v39 = vpop.f32.mrb[51].mxu0 }
 0x67d   :  { %v2005_v42 = vpop.f32.mrb[52].mxu0 }
 0x67e   :  { %v2809_v45 = vpop.f32.mrb[53].mxu0 }
 0x67f   :  { %v2008_v48 = vpop.f32.mrb[54].mxu0 }
 0x680   :  { %v2810_v63 = vpop.f32.mrb[55].mxu0 }
 0x744   :  { %v1912_v2 = vpop.f32.mrb[24].mxu1 }
 0x745   :  { %v1913_v3 = vadd.f32 %v2552_v1, %v1912_v2  ;;  %v2793_v16 = vpop.f32.mrb[25].mxu1 }
 0x746   :  { %v1915_v5 = vpop.f32.mrb[26].mxu1 }
 0x747   :  { %v2561_v62 = vmul.f32 -1.442695, %v1913_v3  ;;  %v1916_v7 = vadd.f32 %v2552_v1, %v1915_v5  ;;  %v2794_v11 = vpop.f32.mrb[27].mxu1 }
 0x749   :  { %3041 = vpow2.f32 %v2561_v62  ;;  %v2562_v15 = vmul.f32 -1.442695, %v1916_v7 }
 0x74b   :  { %3043 = vpow2.f32 %v2562_v15 }
 0x753   :  { %v3042_v19 = vpop.eup %3041 }
 0x754   :  { %v1925_v21 = vadd.f32 1.0, %v3042_v19 }
 0x755   :  { %v3044_v22 = vpop.eup %3043 }
 0x756   :  { %3045 = vrcp.f32 %v1925_v21  ;;  %v1926_v23 = vadd.f32 1.0, %v3044_v22 }
 0x758   :  { %3047 = vrcp.f32 %v1926_v23 }
 0x760   :  { %v3046_v27 = vpop.eup %3045 }
 0x761   :  { %v2012_v30 = vmul.f32 %v3046_v27, %v1989_v59  ;;  %v2014_v32 = vmul.f32 %v3046_v27, %v1997_v29  ;;  %v2016_v25 = vmul.f32 %v3046_v27, %v2005_v42 }
 0x762   :  { %v3048_v13 = vpop.eup %3047 }
 0x763   :  { %v2060_v17 = vadd.f32 %v2012_v30, %v3353_v10  ;;  %v2062_v18 = vadd.f32 %v2014_v32, %v3361_v12  ;;  %v2064_v20 = vadd.f32 %v2016_v25, %v3371_v9  ;;  %v2013_v24 = vmul.f32 %v3048_v13, %v1992_v26 }
 0x764   :  { %v2015_v33 = vmul.f32 %v3048_v13, %v2000_v35  ;;  %v2017_v34 = vmul.f32 %v3048_v13, %v2008_v48  ;;  %v3007_v13 = vld [vmem:[%s4056_s22] sm:$0xff]  }
 0x765   :  { %v2066_v36 = vmul.f32 %v2060_v17, %v2060_v17  ;;  %v2068_v37 = vmul.f32 %v2062_v18, %v2062_v18  ;;  %v2061_v38 = vadd.f32 %v2013_v24, %v3348_v6  ;;  %v2072_v44 = vmul.f32 %v2064_v20, %v2064_v20  ;;  %2812 = vmatpush3.bf16.msra.mxu1 %v3007_v13 }
 0x766   :  { %v2063_v40 = vadd.f32 %v2015_v33, %v3364_v8  ;;  %v2065_v41 = vadd.f32 %v2017_v34, %v3374_v14  ;;  %v2018_v6 = vadd.f32 %v3917_v57, %v3499_v51  ;;  %v2019_v8 = vadd.f32 %v3919_v58, %v3494_v47  ;;  %2831 = vmatprep.subr.bf16.mxu1 %v3121_v50 }
 0x767   :  { %v2070_v4 = vadd.f32 %v2068_v37, %v2066_v36  ;;  %v2067_v0 = vmul.f32 %v2061_v38, %v2061_v38 }
 0x768   :  { %v2069_v46 = vmul.f32 %v2063_v40, %v2063_v40  ;;  %v2073_v12 = vmul.f32 %v2065_v41, %v2065_v41 }
 0x769   :  { %v2074_v10 = vadd.f32 %v2072_v44, %v2070_v4 }
 0x76a   :  { %v2071_v49 = vadd.f32 %v2069_v46, %v2067_v0 }
 0x76b   :  { %v2076_v53 = vmax.f32 %v2074_v10, 1e-08 }
 0x76c   :  { %v2075_v9 = vadd.f32 %v2073_v12, %v2071_v49  ;;  %v2568_v49 = vld [vmem:[%s4052_s18] ss:$0 sm:$0xff] }
 0x76d   :  { %v2078_v43 = vsel %vm456_vm0, %v2076_v53, 0.0  ;;  %v2569_v53 = vld [vmem:[%s4053_s19] ss:$0 sm:$0xff] }
 0x76e   :  { %2079 = vadd.xlane.f32.xlu1 %v2078_v43  ;;  %v2077_v54 = vmax.f32 %v2075_v9, 1e-08 }
 0x770   :  { %v2081_v55 = vsel %vm456_vm0, %v2077_v54, 0.0 }
 0x771   :  { %2082 = vadd.xlane.f32.xlu0 %v2081_v55 }
 0x772   :  { %2020 = vadd.xlane.f32.xlu1 %v2018_v6 }
 0x775   :  { %2022 = vadd.xlane.f32.xlu0 %v2019_v8 }
 0x7fb   :  { %v2080_v14 = vpop.xlane.xlu1 %2079 }
 0x7fc   :  { %v2084_v56 = vmul.f32 0.0625, %v2080_v14 }
 0x7fe   :  { %3049 = vrsqrt.f32 %v2084_v56  ;;  %v2083_v59 = vpop.xlane.xlu0 %2082 }
 0x7ff   :  { %v2085_v61 = vmul.f32 0.0625, %v2083_v59  ;;  %v2021_v52 = vpop.xlane.xlu1 %2020 }
 0x800   :  { %v2024_v51 = vmul.f32 0.01, %v2021_v52 }
 0x801   :  { %3051 = vrsqrt.f32 %v2085_v61 }
 0x802   :  { %v2023_v57 = vpop.xlane.xlu0 %2022  ;;  %v2026_v2 = vsub.f32 %v2018_v6, %v2024_v51 }
 0x803   :  { %v2025_v48 = vmul.f32 0.01, %v2023_v57 }
 0x804   :  { %v2028_v21 = vmul.f32 %v3337_v60, %v2026_v2  ;;  %v3012_v2 = vld [vmem:[%s4057_s23 + $0x18] sm:$0xff]  }
 0x805   :  { %v2027_v11 = vsub.f32 %v2019_v8, %v2025_v48 }
 0x806   :  { %v2030_v32 = vmul.f32 %v2028_v21, %v2028_v21 }
 0x807   :  { %v2029_v27 = vmul.f32 %v3337_v60, %v2027_v11 }
 0x808   :  { %v3050_v26 = vpop.eup %3049 }
 0x809   :  { %v2088_v28 = vmul.f32 %v3050_v26, %v2060_v17  ;;  %v3940_v29 = vmul.f32 %v3050_v26, %v2062_v18  ;;  %v3942_v31 = vmul.f32 %v3050_v26, %v2064_v20  ;;  %v2031_v25 = vmul.f32 %v2029_v27, %v2029_v27 }
 0x80b   :  { %v3052_v35 = vpop.eup %3051  ;;  %v2134_v39 = vmul.f32 %v2088_v28, %v2088_v28  ;;  %v2136_v47 = vmul.f32 %v3940_v29, %v3940_v29  ;;  %v2140_v1 = vmul.f32 %v3942_v31, %v3942_v31 }
 0x80c   :  { %v2089_v58 = vmul.f32 %v3052_v35, %v2061_v38  ;;  %v2091_v42 = vmul.f32 %v3052_v35, %v2063_v40  ;;  %v3946_v45 = vmul.f32 %v3052_v35, %v2065_v41 }
 0x80d   :  { %v2138_v63 = vadd.f32 %v2136_v47, %v2134_v39 }
 0x80e   :  { %v2135_v3 = vmul.f32 %v2089_v58, %v2089_v58  ;;  %v2137_v16 = vmul.f32 %v2091_v42, %v2091_v42  ;;  %v2141_v7 = vmul.f32 %v3946_v45, %v3946_v45 }
 0x80f   :  { %v2142_v5 = vadd.f32 %v2140_v1, %v2138_v63  ;;  %v3011_v1 = vld [vmem:[%s4057_s23 + $0x10] sm:$0xff]  }
 0x810   :  { %v2139_v62 = vadd.f32 %v2137_v16, %v2135_v3  ;;  %v3014_v3 = vld [vmem:[%s4057_s23 + $0x28] sm:$0xff]   ;;  %v3015_v16 = vld [vmem:[%s4057_s23 + $0x30] sm:$0xff]  }
 0x811   :  { %v2144_v15 = vmax.f32 %v2142_v5, 1e-08  ;;  %v3016_v5 = vld [vmem:[%s4057_s23 + $0x38] sm:$0xff]  }
 0x812   :  { %v2143_v19 = vadd.f32 %v2141_v7, %v2139_v62 }
 0x813   :  { %v2146_v22 = vsel %vm456_vm0, %v2144_v15, 0.0 }
 0x814   :  { %2147 = vadd.xlane.f32.xlu1 %v2146_v22  ;;  %v2145_v23 = vmax.f32 %v2143_v19, 1e-08 }
 0x816   :  { %v2149_v30 = vsel %vm456_vm0, %v2145_v23, 0.0 }
 0x817   :  { %2150 = vadd.xlane.f32.xlu0 %v2149_v30 }
 0x818   :  { %2032 = vadd.xlane.f32.xlu1 %v2030_v32 }
 0x81b   :  { %2034 = vadd.xlane.f32.xlu0 %v2031_v25 }
 0x8a1   :  { %v2148_v17 = vpop.xlane.xlu1 %2147 }
 0x8a2   :  { %v2152_v18 = vmul.f32 0.0625, %v2148_v17 }
 0x8a4   :  { %v2151_v20 = vpop.xlane.xlu0 %2150  ;;  %3053 = vrsqrt.f32 %v2152_v18 }
 0x8a5   :  { %v2153_v24 = vmul.f32 0.0625, %v2151_v20  ;;  %v2033_v33 = vpop.xlane.xlu1 %2032 }
 0x8a6   :  { %v2036_v34 = vmul.f32 0.01, %v2033_v33 }
 0x8a7   :  { %3055 = vrsqrt.f32 %v2153_v24 }
 0x8a8   :  { %v2038_v36 = vadd.f32 1e-05, %v2036_v34  ;;  %v2035_v37 = vpop.xlane.xlu0 %2034 }
 0x8a9   :  { %v2037_v38 = vmul.f32 0.01, %v2035_v37 }
 0x8aa   :  { %3057 = vrsqrt.f32 %v2038_v36 }
 0x8ab   :  { %v2039_v40 = vadd.f32 1e-05, %v2037_v38 }
 0x8ad   :  { %3059 = vrsqrt.f32 %v2039_v40 }
 0x8ae   :  { %v3054_v41 = vpop.eup %3053 }
 0x8af   :  { %v2156_v44 = vmul.f32 %v3054_v41, %v2088_v28  ;;  %v2158_v8 = vmul.f32 %v3054_v41, %v3940_v29  ;;  %v2160_v52 = vmul.f32 %v3054_v41, %v3942_v31  ;;  %v3008_v28 = vld [vmem:[%s4058_s24] sm:$0xff]   ;;  %v3010_v31 = vld [vmem:[%s4057_s23 + $0x8] sm:$0xff]  }
 0x8b0   :  { %2826 = vmatpush3.bf16.msra.mxu0 %v3008_v28  ;;  %v3009_v29 = vld [vmem:[%s4057_s23] sm:$0xff]  }
 0x8b1   :  { %v3056_v4 = vpop.eup %3055 }
 0x8b2   :  { %v2157_v0 = vmul.f32 %v3056_v4, %v2089_v58  ;;  %v2159_v54 = vmul.f32 %v3056_v4, %v2091_v42  ;;  %v2161_v61 = vmul.f32 %v3056_v4, %v3946_v45 }
 0x8b4   :  { %v3058_v46 = vpop.eup %3057  ;;  %v2162_v10 = vpack.c.bf16 %v2157_v0, %v2156_v44  ;;  %v2163_v56 = vpack.c.bf16 %v2159_v54, %v2158_v8  ;;  %v2164_v26 = vpack.c.bf16 %v2161_v61, %v2160_v52  ;;  %v2570_v61 = vld [vmem:[%s4054_s20] ss:$0 sm:$0xff] }
 0x8b5   :  { %v2042_v12 = vmul.f32 %v3058_v46, %v2028_v21 }
 0x8b6   :  { %2814 = vmatmul.mubr.msk.bf16.vlgmr.msra.gmra.mrb[28].mxu1 %vm456_vm0, %v2162_v10 }
 0x8b7   :  { %v3060_v9 = vpop.eup %3059  ;;  %v2050_v43 = vmul.f32 %v2568_v49, %v2042_v12  ;;  %2817 = vmatprep.mubr.msk.bf16.mxu1 %vm3122_vm1, %v3121_v50  ;;  %2832 = vmatpush3.bf16.msra.mxu1 %v3009_v29 }
 0x8b8   :  { %v2043_v55 = vmul.f32 %v3060_v9, %v2029_v27  ;;  %2833 = vmatprep.subr.bf16.mxu1 %v3121_v50 }
 0x8b9   :  { %v2058_v6 = vadd.f32 %v2569_v53, %v2050_v43 }
 0x8ba   :  { %v2051_v14 = vmul.f32 %v2568_v49, %v2043_v55 }
 0x8bb   :  { %2094 = vadd.xlane.f32.xlu1 %v2058_v6  ;;  %2834 = vmatpush3.bf16.msra.mxu1 %v3010_v31  ;;  %v2571_v31 = vld [vmem:[#allocation2] ss:$0 sm:$0xff] }
 0x8bc   :  { %v2059_v59 = vadd.f32 %v2569_v53, %v2051_v14  ;;  %2835 = vmatprep.subr.bf16.mxu1 %v3121_v50 }
 0x8be   :  { %2818 = vmatmul.mubr.msk.bf16.gmra.mrb[32].mxu1 %vm456_vm0, %v2163_v56  ;;  %2096 = vadd.xlane.f32.xlu0 %v2059_v59 }
 0x8bf   :  { %2821 = vmatprep.mubr.msk.bf16.mxu1 %vm3122_vm1, %v3121_v50  ;;  %2836 = vmatpush3.bf16.msra.mxu1 %v3011_v1  ;;  %v2586_v1 = vld [vmem:[#allocation4] ss:$0 sm:$0xff] }
 0x8c0   :  { %2837 = vmatprep.subr.bf16.mxu1 %v3121_v50 }
 0x8c3   :  { %2838 = vmatpush3.bf16.msra.mxu1 %v3012_v2 }
 0x8c4   :  { %2839 = vmatprep.subr.bf16.mxu1 %v3121_v50 }
 0x8c6   :  { %2822 = vmatmul.mubr.msk.bf16.gmra.mrb[36].mxu1 %vm456_vm0, %v2164_v26 }
 0x8c7   :  { %2847 = vmatprep.mubr.msk.bf16.mxu1 %vm3122_vm1, %v3121_v50 }
 0x948   :  { %v2095_v51 = vpop.xlane.xlu1 %2094 }
 0x949   :  { %v2098_v57 = vmul.f32 0.01, %v2095_v51 }
 0x94b   :  { %v2100_v35 = vsub.f32 %v2058_v6, %v2098_v57  ;;  %v2097_v39 = vpop.xlane.xlu0 %2096 }
 0x94c   :  { %v2099_v47 = vmul.f32 0.01, %v2097_v39 }
 0x94d   :  { %v3990_v58 = vmul.f32 %v3337_v60, %v2100_v35 }
 0x94e   :  { %v2101_v42 = vsub.f32 %v2059_v59, %v2099_v47 }
 0x94f   :  { %v2104_v45 = vmul.f32 %v3990_v58, %v3990_v58 }
 0x950   :  { %v3995_v48 = vmul.f32 %v3337_v60, %v2101_v42  ;;  %v3013_v60 = vld [vmem:[%s4057_s23 + $0x20] sm:$0xff]  }
 0x951   :  { %2106 = vadd.xlane.f32.xlu1 %v2104_v45  ;;  %2840 = vmatpush3.bf16.msra.mxu1 %v3013_v60 }
 0x952   :  { %v2105_v63 = vmul.f32 %v3995_v48, %v3995_v48  ;;  %2841 = vmatprep.subr.bf16.mxu1 %v3121_v50 }
 0x954   :  { %2108 = vadd.xlane.f32.xlu0 %v2105_v63 }
 0x955   :  { %2842 = vmatpush3.bf16.msra.mxu1 %v3014_v3 }
 0x956   :  { %2843 = vmatprep.subr.bf16.mxu1 %v3121_v50 }
 0x959   :  { %2844 = vmatpush3.bf16.msra.mxu1 %v3015_v16 }
 0x95a   :  { %2845 = vmatprep.subr.bf16.mxu1 %v3121_v50 }
 0x95d   :  { %2846 = vmatpush3.bf16.msra.mxu1 %v3016_v5 }
 0x989   :  { %v2214_v62 = vpop.f32.mrb[28].mxu1 }
 0x98a   :  { %v2815_v7 = vpop.f32.mrb[29].mxu1  ;;  %v2237_v21 = vmul.f32 %v2214_v62, %v2214_v62 }
 0x98b   :  { %v2217_v11 = vpop.f32.mrb[30].mxu1 }
 0x98c   :  { %v2816_v15 = vpop.f32.mrb[31].mxu1  ;;  %v2238_v30 = vmul.f32 %v2217_v11, %v2217_v11 }
 0x991   :  { %v2222_v19 = vpop.f32.mrb[32].mxu1 }
 0x992   :  { %v2239_v22 = vmul.f32 %v2222_v19, %v2222_v19  ;;  %v2819_v23 = vpop.f32.mrb[33].mxu1 }
 0x993   :  { %v2225_v27 = vpop.f32.mrb[34].mxu1 }
 0x994   :  { %v2241_v32 = vadd.f32 %v2239_v22, %v2237_v21  ;;  %v2240_v25 = vmul.f32 %v2225_v27, %v2225_v27  ;;  %v2820_v13 = vpop.f32.mrb[35].mxu1 }
 0x996   :  { %v2242_v17 = vadd.f32 %v2240_v25, %v2238_v30 }
 0x999   :  { %v2230_v18 = vpop.f32.mrb[36].mxu1 }
 0x99a   :  { %v2243_v20 = vmul.f32 %v2230_v18, %v2230_v18  ;;  %v2823_v24 = vpop.f32.mrb[37].mxu1 }
 0x99b   :  { %v2233_v33 = vpop.f32.mrb[38].mxu1 }
 0x99c   :  { %v2245_v50 = vadd.f32 %v2243_v20, %v2241_v32  ;;  %v2244_v34 = vmul.f32 %v2233_v33, %v2233_v33  ;;  %v2824_v36 = vpop.f32.mrb[39].mxu1 }
 0x99e   :  { %v2247_v37 = vmax.f32 %v2245_v50, 1e-08  ;;  %v2246_v38 = vadd.f32 %v2244_v34, %v2242_v17 }
 0x9a0   :  { %3061 = vrsqrt.f32 %v2247_v37  ;;  %v2248_v40 = vmax.f32 %v2246_v38, 1e-08  ;;  %vm2251_vm12 = vcmp.eq.f32.partialorder %v2247_v37, inf  ;;  %v2254_v10 = vand.u32 2147483648, %v2247_v37 }
 0x9a1   :  { %vm2253_vm14 = vcmp.eq.f32.partialorder %v2247_v37, 0.0 }
 0x9a2   :  { %3063 = vrsqrt.f32 %v2248_v40  ;;  %vm2258_vm13 = vcmp.eq.f32.partialorder %v2248_v40, inf  ;;  %v2261_v49 = vand.u32 2147483648, %v2248_v40  ;;  %vm2260_vm15 = vcmp.eq.f32.partialorder %v2248_v40, 0.0 }
 0x9aa   :  { %v3062_v41 = vpop.eup %3061 }
 0x9ab   :  { %v2250_v4 = vmul.f32 %v3062_v41, %v2247_v37 }
 0x9ac   :  { %v3064_v44 = vpop.eup %3063 }
 0x9ad   :  { %v2257_v0 = vmul.f32 %v3064_v44, %v2248_v40  ;;  %v2252_v46 = vsel %vm2251_vm12, %v2247_v37, %v2250_v4 }
 0x9ae   :  { %v2255_v53 = vsel %vm2253_vm14, %v2254_v10, %v2252_v46 }
 0x9af   :  { %v2259_v12 = vsel %vm2258_vm13, %v2248_v40, %v2257_v0 }
 0x9b0   :  { %v2262_v9 = vsel %vm2260_vm15, %v2261_v49, %v2259_v12 }
 0x9b1   :  { %v2264_v43 = vpack.c.bf16 %v2262_v9, %v2255_v53 }
 0x9b3   :  { %2828 = vmatmul.mubr.msk.bf16.vlgmr.msra.gmra.mrb[56].mxu0 %vm456_vm0, %v2264_v43 }
 0x9de   :  { %v2107_v54 = vpop.xlane.xlu1 %2106 }
 0x9df   :  { %v2110_v55 = vmul.f32 0.01, %v2107_v54 }
 0x9e1   :  { %v2112_v6 = vadd.f32 1e-05, %v2110_v55  ;;  %v2109_v8 = vpop.xlane.xlu0 %2108 }
 0x9e2   :  { %v2111_v14 = vmul.f32 0.01, %v2109_v8 }
 0x9e3   :  { %3065 = vrsqrt.f32 %v2112_v6 }
 0x9e4   :  { %v2113_v56 = vadd.f32 1e-05, %v2111_v14 }
 0x9e6   :  { %3067 = vrsqrt.f32 %v2113_v56 }
 0x9ed   :  { %v3066_v59 = vpop.eup %3065 }
 0x9ee   :  { %v2116_v52 = vmul.f32 %v3066_v59, %v3990_v58 }
 0x9f0   :  { %v3068_v26 = vpop.eup %3067  ;;  %v2124_v28 = vmul.f32 %v2570_v61, %v2116_v52 }
 0x9f1   :  { %v2117_v29 = vmul.f32 %v3068_v26, %v3995_v48 }
 0x9f2   :  { %v2132_v57 = vadd.f32 %v2571_v31, %v2124_v28 }
 0x9f3   :  { %v2125_v51 = vmul.f32 %v2570_v61, %v2117_v29 }
 0x9f5   :  { %v2133_v35 = vadd.f32 %v2571_v31, %v2125_v51 }
 0x9f7   :  { %v2263_v39 = vpack.c.bf16 %v2133_v35, %v2132_v57 }
 0x9f9   :  { %2848 = vmatmul.mubr.bf16.vlgmr.msra.gmra.mrb[40].mxu1 %v2263_v39 }
 0xa86   :  { %v2308_v47 = vpop.f32.mrb[56].mxu0 }
 0xa87   :  { %v2829_v42 = vpop.f32.mrb[57].mxu0 }
 0xa88   :  { %v2311_v45 = vpop.f32.mrb[58].mxu0 }
 0xa89   :  { %v2830_v63 = vpop.f32.mrb[59].mxu0 }
 0xacc   :  { %v2397_v2 = vpop.f32.mrb[40].mxu1 }
 0xacd   :  { %v2398_v60 = vadd.f32 %v2397_v2, %v2308_v47  ;;  %v2849_v3 = vpop.f32.mrb[41].mxu1 }
 0xace   :  { %v2400_v16 = vpop.f32.mrb[42].mxu1 }
 0xacf   :  { %v2410_v58 = vadd.f32 %v2586_v1, %v2398_v60  ;;  %v2401_v5 = vadd.f32 %v2400_v16, %v2311_v45  ;;  %v2850_v62 = vpop.f32.mrb[43].mxu1 }
 0xad1   :  { %v2412_v7 = vmax.f32 %v2410_v58, 0.0  ;;  %v2411_v48 = vadd.f32 %v2586_v1, %v2401_v5 }
 0xad3   :  { %2414 = vst [vmem:[%s4060_s26] sm:$0xff] %v2412_v7  ;;  %v2413_v11 = vmax.f32 %v2411_v48, 0.0 }
 0xad5   :  { %2415 = vst [vmem:[%s4060_s26 + $0x8] sm:$0xff] %v2413_v11 }
 0xad6   :  { %2420 = vsyncpa [#allocation3], 1 }
 0xad7   :  { %2421 = vsyncpa [#allocation5], 1 }

// kernel: cdd_forward.15
= control target key start
LH: loop header
LB: loop body
LE: loop exit
PB: predicated region body
PF: predicated region fallthrough
CT: control target
= control target key end

     0   :  { %s2637_s25 = smov 96   ;;  %vm391_vm0 = vcmask 130048   ;;  %v2639_v50 = vmov 0.0   ;;  %vm2640_vm1 = vmmov 0   ;;  %v294_v52 = vlaneseq  ;;  %s3420_s0 = inlined_call_operand.vmem [shape: bf16[16,176], index: 0, kind: input, shape index: {}]   ;;  %s3421_s1 = inlined_call_operand.vmem [shape: f32[16,176], index: 1, kind: input, shape index: {}]   ;;  %s3422_s4 = inlined_call_operand.vmem [shape: bf16[16,32], index: 4, kind: input, shape index: {}]   ;;  %s3423_s6 = inlined_call_operand.vmem [shape: bf16[32,512], index: 6, kind: input, shape index: {}]   ;;  %s3424_s5 = inlined_call_operand.vmem [shape: bf16[128,512], index: 5, kind: input, shape index: {}]   ;;  %s3425_s9 = inlined_call_operand.vmem [shape: bf16[512,32], index: 9, kind: input, shape index: {}]   ;;  %s3426_s2 = inlined_call_operand.vmem [shape: f32[1,128], index: 2, kind: input, shape index: {}]   ;;  %s3427_s3 = inlined_call_operand.vmem [shape: f32[1,128], index: 3, kind: input, shape index: {}]   ;;  %s3428_s8 = inlined_call_operand.vmem [shape: bf16[32,32], index: 8, kind: input, shape index: {}]   ;;  %s3429_s7 = inlined_call_operand.vmem [shape: f32[1,512], index: 7, kind: input, shape index: {}]   ;;  %s3430_s11 = inlined_call_operand.vmem [shape: bf16[32,32], index: 11, kind: input, shape index: {}]   ;;  %s3431_s12 = inlined_call_operand.vmem [shape: bf16[512,128], index: 12, kind: input, shape index: {}]   ;;  %s3432_s10 = inlined_call_operand.vmem [shape: f32[1,32], index: 10, kind: input, shape index: {}]   ;;  %s3433_s13 = inlined_call_operand.vmem [shape: bf16[32,128], index: 13, kind: input, shape index: {}]   ;;  %s3434_s15 = inlined_call_operand.vmem [shape: bf16[32,16], index: 15, kind: input, shape index: {}]   ;;  %s3435_s16 = inlined_call_operand.vmem [shape: bf16[128,16], index: 16, kind: input, shape index: {}]   ;;  %s3436_s14 = inlined_call_operand.vmem [shape: f32[1,128], index: 14, kind: input, shape index: {}]   ;;  %s3437_s17 = inlined_call_operand.vmem [shape: f32[1,16], index: 17, kind: input, shape index: {}]   ;;  %s3438_s18 = inlined_call_operand.vmem [shape: f32[1,128], index: 18, kind: input, shape index: {}]   ;;  %s3439_s19 = inlined_call_operand.vmem [shape: f32[1,128], index: 19, kind: input, shape index: {}]   ;;  %s3440_s20 = inlined_call_operand.vmem [shape: bf16[16,176], index: 20, kind: output, shape index: {}]  }
   0x1   :  { %3445 = sst [smem:[#allocation2_spill]] %s3420_s0  ;;  %2341 = vmatprep.subr.bf16.mxu0 %v2639_v50  ;;  %2343 = vmatprep.mubr.msk.bf16.mxu0 %vm2640_vm1, %v2639_v50  ;;  %vm552_vm7 = vcmask 261120   ;;  %vm2061_vm12 = vcmask 1043456   ;;  %vm2062_vm13 = vcmask 392196  }
   0x2   :  { %3446 = sst [smem:[#allocation3_spill]] %s3421_s1  ;;  %s3450_s23 = sld [smem:[#allocation2_spill]]  ;;  %v295_v53 = vand.u32 127, %v294_v52  ;;  %vm2063_vm14 = vmor %vm2062_vm13, %vm2061_vm12 }
   0x3   :  { %3447 = sst [smem:[#allocation4_spill]] %s3422_s4  ;;  %s3451_s28 = sld [smem:[#allocation3_spill]] }
   0x4   :  { %3448 = sst [smem:[#allocation5_spill]] %s3423_s6  ;;  %s2638_s6 = smov 112   ;;  %vm296_vm2 = vcmp.lt.s32.totalorder %v295_v53, 100 }
   0x5   :  { %3449 = sst [smem:[#allocation6_spill]] %s3424_s5  ;;  %s3452_s24 = sld [smem:[#allocation4_spill]]  ;;  %v2795_v60 = vsel %vm296_vm2, 1.0, %v2639_v50 }
   0x6   :  { %s3454_s4 = sld [smem:[#allocation6_spill]] }
   0x8   :  { %v274_v0 = vld [vmem:[%s3450_s23] sm:$0xff]  ;;  %v275_v1 = vld [vmem:[%s3450_s23 + $0x8] sm:$0xff] }
   0x9   :  { %361 = vrot.lane.b32.xlu1 %v274_v0, %s2637_s25  ;;  %341 = vrot.lane.b32.xlu0 %v274_v0, %s2638_s6  ;;  %v334_v2 = vrot.slane %v275_v1, 4  ;;  %v333_v3 = vrot.slane %v274_v0, 4  ;;  %v279_v6 = vld [vmem:[%s3451_s28 + $0x18] sm:$0xff]  ;;  %v277_v7 = vld [vmem:[%s3451_s28 + $0x8] sm:$0xff]  ;;  %v280_v11 = vunpack.c.l.bf16 %v274_v0  ;;  %v281_v14 = vunpack.c.l.bf16 %v275_v1 }
   0xa   :  { %v276_v10 = vld [vmem:[%s3451_s28] sm:$0xff]  ;;  %v278_v13 = vld [vmem:[%s3451_s28 + $0x10] sm:$0xff] }
   0xb   :  { %v338_v4 = vunpack.c.l.bf16 %v334_v2  ;;  %v337_v5 = vunpack.c.l.bf16 %v333_v3  ;;  %v2768_v12 = vadd.f32 %v280_v11, %v276_v10  ;;  %v2773_v15 = vadd.f32 %v281_v14, %v278_v13  ;;  %v2456_v51 = vld [vmem:[%s3452_s24] sm:$0xff]  }
   0xc   :  { %2342 = vmatpush3.bf16.msra.mxu0 %v2456_v51 }
   0xd   :  { %363 = vrot.lane.b32.xlu1 %v275_v1, %s2637_s25  ;;  %343 = vrot.lane.b32.xlu0 %v275_v1, %s2638_s6  ;;  %v2761_v8 = vadd.f32 %v338_v4, %v279_v6  ;;  %v2763_v9 = vadd.f32 %v337_v5, %v277_v7 }
   0xf   :  { %v380_v30 = vmul.f32 %v2761_v8, %v2761_v8  ;;  %v379_v31 = vmul.f32 %v2763_v9, %v2763_v9 }
  0x11   :  { %355 = vrot.lane.b32.xlu1 %v279_v6, %s2638_s6  ;;  %353 = vrot.lane.b32.xlu0 %v277_v7, %s2638_s6  ;;  %s3453_s6 = sld [smem:[#allocation5_spill]] }
  0x15   :  { %373 = vrot.lane.b32.xlu1 %v279_v6, %s2637_s25  ;;  %371 = vrot.lane.b32.xlu0 %v277_v7, %s2637_s25  ;;  %s2643_s25 = smov 16  }
  0x7b   :  { %v362_v16 = vpop.permute.xlu1 %361  ;;  %v342_v17 = vpop.permute.xlu0 %341 }
  0x7c   :  { %v345_v18 = vrot.slane %v342_v17, 4  ;;  %v365_v22 = vrot.slane %v362_v16, 4  ;;  %v2457_v16 = vld [vmem:[%s3453_s6 + $0x4] ss:$16 sps:$4 sm:$0xff]   ;;  %v2641_v17 = vmov 0  }
  0x7d   :  { %588 = vmatprep.mubr.bf16.mxu1 %v2641_v17  ;;  %556 = vmatprep.subr.bf16.mxu1 %v2457_v16  ;;  %v2463_v16 = vld [vmem:[%s3453_s6 + $0x8] ss:$16 sps:$4 sm:$0xff]  }
  0x7e   :  { %v349_v23 = vunpack.c.l.bf16 %v345_v18  ;;  %v369_v32 = vunpack.c.l.bf16 %v365_v22  ;;  %v2459_v18 = vld [vmem:[%s3453_s6] ss:$16 sps:$4 sm:$0xff]  }
  0x7f   :  { %v364_v19 = vpop.permute.xlu1 %363  ;;  %v344_v20 = vpop.permute.xlu0 %343  ;;  %557 = vmatpush1.bf16.msra.mxu1 %v2459_v18  ;;  %v2517_v22 = vld [vmem:[%s3425_s9 + $0x40] sm:$0xff]  }
  0x80   :  { %v346_v21 = vrot.slane %v344_v20, 4  ;;  %v366_v24 = vrot.slane %v364_v19, 4  ;;  %v2460_v19 = vld [vmem:[%s3453_s6 + $0x24] ss:$16 sps:$4 sm:$0xff]   ;;  %v2462_v20 = vld [vmem:[%s3453_s6 + $0x20] ss:$16 sps:$4 sm:$0xff]   ;;  %2226 = vmatprep.subr.bf16.mxu0 %v2517_v22 }
  0x81   :  { %558 = vmatprep.subr.bf16.mxu1 %v2460_v19  ;;  %v2466_v22 = vld [vmem:[%s3453_s6 + $0x28] ss:$16 sps:$4 sm:$0xff]  }
  0x82   :  { %v350_v25 = vunpack.c.l.bf16 %v346_v21  ;;  %v370_v33 = vunpack.c.l.bf16 %v366_v24  ;;  %v2465_v21 = vld [vmem:[%s3453_s6 + $0xc] ss:$16 sps:$4 sm:$0xff]  }
  0x83   :  { %v356_v26 = vpop.permute.xlu1 %355  ;;  %v354_v27 = vpop.permute.xlu0 %353  ;;  %559 = vmatpush1.bf16.msra.mxu1 %v2462_v20  ;;  %v2519_v24 = vld [vmem:[%s3425_s9 + $0x48] sm:$0xff]  }
  0x84   :  { %v2775_v28 = vadd.f32 %v356_v26, %v350_v25  ;;  %v359_v29 = vadd.f32 %v354_v27, %v349_v23  ;;  %599 = vmatprep.subr.bf16.mxu1 %v2465_v21  ;;  %v2518_v23 = vld [vmem:[%s3425_s9] sm:$0xff]   ;;  %v2520_v25 = vld [vmem:[%s3425_s9 + $0x8] sm:$0xff]   ;;  %v2521_v26 = vld [vmem:[%s3425_s9 + $0x50] sm:$0xff]  }
  0x85   :  { %v2522_v27 = vld [vmem:[%s3425_s9 + $0x10] sm:$0xff]   ;;  %v2468_v21 = vld [vmem:[%s3453_s6 + $0x2c] ss:$16 sps:$4 sm:$0xff]  }
  0x86   :  { %v382_v34 = vmul.f32 %v2775_v28, %v2775_v28  ;;  %v381_v35 = vmul.f32 %v359_v29, %v359_v29 }
  0x87   :  { %v374_v36 = vpop.permute.xlu1 %373  ;;  %v372_v37 = vpop.permute.xlu0 %371 }
  0x88   :  { %v378_v38 = vadd.f32 %v374_v36, %v370_v33  ;;  %v377_v39 = vadd.f32 %v372_v37, %v369_v32  ;;  %v384_v40 = vadd.f32 %v382_v34, %v380_v30  ;;  %v383_v41 = vadd.f32 %v381_v35, %v379_v31  ;;  %v2525_v30 = vld [vmem:[%s3425_s9 + $0x60] sm:$0xff]   ;;  %v2527_v37 = vld [vmem:[%s3425_s9 + $0x68] sm:$0xff]  }
  0x89   :  { %v2526_v34 = vld [vmem:[%s3425_s9 + $0x20] sm:$0xff]  }
  0x8a   :  { %v386_v42 = vmul.f32 %v378_v38, %v378_v38  ;;  %v385_v43 = vmul.f32 %v377_v39, %v377_v39 }
  0x8c   :  { %v388_v44 = vadd.f32 %v386_v42, %v384_v40  ;;  %v387_v45 = vadd.f32 %v385_v43, %v383_v41 }
  0x8e   :  { %v390_v46 = vmax.f32 %v388_v44, 1e-08  ;;  %v389_v47 = vmax.f32 %v387_v45, 1e-08 }
  0x90   :  { %v395_v48 = vsel %vm391_vm0, %v390_v46, 0.0  ;;  %v392_v49 = vsel %vm391_vm0, %v389_v47, 0.0 }
  0x91   :  { %396 = vadd.xlane.f32.xlu1 %v395_v48  ;;  %393 = vadd.xlane.f32.xlu0 %v392_v49 }
  0x95   :  { %286 = vadd.xlane.f32.xlu0 %v2768_v12 }
  0x99   :  { %288 = vadd.xlane.f32.xlu0 %v2773_v15 }
 0x11e   :  { %v397_v54 = vpop.xlane.xlu1 %396  ;;  %v394_v55 = vpop.xlane.xlu0 %393 }
 0x11f   :  { %v400_v56 = vmul.f32 0.0625, %v397_v54  ;;  %v399_v57 = vmul.f32 0.0625, %v394_v55 }
 0x121   :  { %2597 = vrsqrt.f32 %v400_v56 }
 0x122   :  { %2599 = vrsqrt.f32 %v399_v57  ;;  %v287_v58 = vpop.xlane.xlu0 %286 }
 0x123   :  { %v290_v59 = vmul.f32 0.01, %v287_v58 }
 0x125   :  { %v292_v61 = vsub.f32 %v2768_v12, %v290_v59 }
 0x126   :  { %v289_v62 = vpop.xlane.xlu0 %288 }
 0x127   :  { %v291_v63 = vmul.f32 0.01, %v289_v62  ;;  %v2799_v0 = vmul.f32 %v2795_v60, %v292_v61 }
 0x129   :  { %v293_v1 = vsub.f32 %v2773_v15, %v291_v63  ;;  %v301_v2 = vmul.f32 %v2799_v0, %v2799_v0 }
 0x12b   :  { %v2598_v3 = vpop.eup %2597  ;;  %303 = vadd.xlane.f32.xlu1 %v301_v2  ;;  %v2805_v4 = vmul.f32 %v2795_v60, %v293_v1 }
 0x12c   :  { %v2600_v5 = vpop.eup %2599  ;;  %v2808_v6 = vmul.f32 %v2598_v3, %v2761_v8  ;;  %v2823_v8 = vmul.f32 %v2598_v3, %v2775_v28  ;;  %v2832_v14 = vmul.f32 %v2598_v3, %v378_v38  ;;  %v2523_v28 = vld [vmem:[%s3425_s9 + $0x58] sm:$0xff]   ;;  %v2528_v38 = vld [vmem:[%s3425_s9 + $0x28] sm:$0xff]  }
 0x12d   :  { %v302_v7 = vmul.f32 %v2805_v4, %v2805_v4  ;;  %v2813_v10 = vmul.f32 %v2600_v5, %v2763_v9  ;;  %v2820_v12 = vmul.f32 %v2600_v5, %v359_v29  ;;  %v2830_v9 = vmul.f32 %v2600_v5, %v377_v39  ;;  %v2524_v29 = vld [vmem:[%s3425_s9 + $0x18] sm:$0xff]  }
 0x12f   :  { %305 = vadd.xlane.f32.xlu0 %v302_v7  ;;  %v409_v11 = vpack.c.bf16 %v2808_v6, %v2813_v10  ;;  %v410_v13 = vpack.c.bf16 %v2823_v8, %v2820_v12  ;;  %v411_v15 = vpack.c.bf16 %v2832_v14, %v2830_v9 }
 0x131   :  { %2344 = vmatmul.mubr.msk.bf16.vlgmr.msra.gmra.mrb[0].mxu0 %vm391_vm0, %v409_v11 }
 0x132   :  { %2347 = vmatprep.mubr.msk.bf16.mxu0 %vm2640_vm1, %v2639_v50  ;;  %2227 = vmatpush3.bf16.msra.mxu0 %v2518_v23 }
 0x133   :  { %2228 = vmatprep.subr.bf16.mxu0 %v2519_v24  ;;  %v2471_v24 = vld [vmem:[%s3454_s4 + $0x4] ss:$16 sps:$4 sm:$0xff]  }
 0x136   :  { %2229 = vmatpush3.bf16.msra.mxu0 %v2520_v25 }
 0x137   :  { %2230 = vmatprep.subr.bf16.mxu0 %v2521_v26 }
 0x139   :  { %2348 = vmatmul.mubr.msk.bf16.gmra.mrb[4].mxu0 %vm391_vm0, %v410_v13 }
 0x13a   :  { %2351 = vmatprep.mubr.msk.bf16.mxu0 %vm2640_vm1, %v2639_v50  ;;  %2231 = vmatpush3.bf16.msra.mxu0 %v2522_v27  ;;  %v2469_v27 = vld [vmem:[%s3454_s4] ss:$16 sps:$4 sm:$0xff]  }
 0x13b   :  { %2232 = vmatprep.subr.bf16.mxu0 %v2523_v28  ;;  %v2474_v28 = vld [vmem:[%s3454_s4 + $0x24] ss:$16 sps:$4 sm:$0xff]  }
 0x13e   :  { %2233 = vmatpush3.bf16.msra.mxu0 %v2524_v29 }
 0x13f   :  { %2234 = vmatprep.subr.bf16.mxu0 %v2525_v30 }
 0x141   :  { %2352 = vmatmul.mubr.msk.bf16.gmra.mrb[8].mxu0 %vm391_vm0, %v411_v15 }
 0x142   :  { %2235 = vmatpush3.bf16.msra.mxu0 %v2526_v34  ;;  %v2477_v34 = vld [vmem:[%s3454_s4 + $0x44] ss:$16 sps:$4 sm:$0xff]  }
 0x143   :  { %2236 = vmatprep.subr.bf16.mxu0 %v2527_v37  ;;  %v2475_v37 = vld [vmem:[%s3454_s4 + $0x40] ss:$16 sps:$4 sm:$0xff]  }
 0x146   :  { %2237 = vmatpush3.bf16.msra.mxu0 %v2528_v38  ;;  %v2480_v38 = vld [vmem:[%s3454_s4 + $0x64] ss:$16 sps:$4 sm:$0xff]  }
 0x1b8   :  { %v304_v25 = vpop.xlane.xlu1 %303 }
 0x1b9   :  { %v307_v29 = vmul.f32 0.01, %v304_v25  ;;  %v2514_v25 = vld [vmem:[%s3454_s4 + $0xe8] ss:$16 sps:$4 sm:$0xff]  }
 0x1bc   :  { %v306_v23 = vpop.xlane.xlu0 %305 }
 0x1bd   :  { %v308_v26 = vmul.f32 0.01, %v306_v23  ;;  %v2511_v23 = vld [vmem:[%s3454_s4 + $0xc8] ss:$16 sps:$4 sm:$0xff]  }
 0x1bf   :  { %v310_v30 = vadd.f32 1e-05, %v308_v26  ;;  %v2529_v26 = vld [vmem:[%s3425_s9 + $0x70] sm:$0xff]  }
 0x1c0   :  { %2238 = vmatprep.subr.bf16.mxu0 %v2529_v26 }
 0x204   :  { %v2880_v31 = vpop.f32.mrb[0].mxu0 }
 0x205   :  { %v2345_v32 = vpop.f32.mrb[1].mxu0  ;;  %v484_v40 = vmul.f32 %v2880_v31, %v2880_v31 }
 0x206   :  { %v2882_v33 = vpop.f32.mrb[2].mxu0  ;;  %v2472_v32 = vld [vmem:[%s3454_s4 + $0x20] ss:$16 sps:$4 sm:$0xff]  }
 0x207   :  { %v1213_v35 = vpack.c.bf16 %v2882_v33, %v2880_v31  ;;  %v2346_v36 = vpop.f32.mrb[3].mxu0  ;;  %v485_v44 = vmul.f32 %v2882_v33, %v2882_v33  ;;  %v2551_v31 = vld [vmem:[%s3430_s11] sm:$0xff]   ;;  %v2552_v33 = vld [vmem:[%s3430_s11 + $0x8] sm:$0xff]  }
 0x208   :  { %v309_v36 = vadd.f32 1e-05, %v307_v29  ;;  %v2532_v29 = vld [vmem:[%s3425_s9 + $0x38] sm:$0xff]  }
 0x20c   :  { %v2895_v39 = vpop.f32.mrb[4].mxu0 }
 0x20d   :  { %v486_v41 = vmul.f32 %v2895_v39, %v2895_v39  ;;  %v2349_v42 = vpop.f32.mrb[5].mxu0 }
 0x20e   :  { %v2901_v43 = vpop.f32.mrb[6].mxu0  ;;  %v2481_v42 = vld [vmem:[%s3454_s4 + $0x80] ss:$16 sps:$4 sm:$0xff]  }
 0x20f   :  { %v488_v45 = vadd.f32 %v486_v41, %v484_v40  ;;  %v487_v46 = vmul.f32 %v2901_v43, %v2901_v43  ;;  %v1214_v47 = vpack.c.bf16 %v2901_v43, %v2895_v39  ;;  %v2350_v48 = vpop.f32.mrb[7].mxu0  ;;  %v2478_v40 = vld [vmem:[%s3454_s4 + $0x60] ss:$16 sps:$4 sm:$0xff]   ;;  %v2483_v41 = vld [vmem:[%s3454_s4 + $0x84] ss:$16 sps:$4 sm:$0xff]  }
 0x210   :  { %v2484_v48 = vld [vmem:[%s3454_s4 + $0xa0] ss:$16 sps:$4 sm:$0xff]  }
 0x211   :  { %v489_v49 = vadd.f32 %v487_v46, %v485_v44  ;;  %v2486_v44 = vld [vmem:[%s3454_s4 + $0xa4] ss:$16 sps:$4 sm:$0xff]  }
 0x214   :  { %v2909_v51 = vpop.f32.mrb[8].mxu0 }
 0x215   :  { %v490_v53 = vmul.f32 %v2909_v51, %v2909_v51  ;;  %v2353_v54 = vpop.f32.mrb[9].mxu0 }
 0x216   :  { %v2913_v55 = vpop.f32.mrb[10].mxu0 }
 0x217   :  { %v492_v56 = vadd.f32 %v490_v53, %v488_v45  ;;  %v491_v57 = vmul.f32 %v2913_v55, %v2913_v55  ;;  %v1215_v58 = vpack.c.bf16 %v2913_v55, %v2909_v51  ;;  %v2354_v59 = vpop.f32.mrb[11].mxu0  ;;  %v2489_v53 = vld [vmem:[%s3454_s4 + $0xc4] ss:$16 sps:$4 sm:$0xff]  }
 0x219   :  { %v494_v61 = vmax.f32 %v492_v56, 1e-08  ;;  %v493_v62 = vadd.f32 %v491_v57, %v489_v49  ;;  %v2487_v56 = vld [vmem:[%s3454_s4 + $0xc0] ss:$16 sps:$4 sm:$0xff]  }
 0x21a   :  { %v2071_v57 = vld [vmem:[%s3426_s2] ss:$0 sm:$0xff] }
 0x21b   :  { %2601 = vrsqrt.f32 %v494_v61  ;;  %v495_v63 = vmax.f32 %v493_v62, 1e-08  ;;  %vm498_vm3 = vcmp.eq.f32.partialorder %v494_v61, inf  ;;  %v501_v11 = vand.u32 2147483648, %v494_v61  ;;  %v2072_v62 = vld [vmem:[%s3427_s3] ss:$0 sm:$0xff] }
 0x21c   :  { %vm500_vm5 = vcmp.eq.f32.partialorder %v494_v61, 0.0 }
 0x21d   :  { %2603 = vrsqrt.f32 %v495_v63  ;;  %vm505_vm4 = vcmp.eq.f32.partialorder %v495_v63, inf  ;;  %v508_v13 = vand.u32 2147483648, %v495_v63  ;;  %vm507_vm6 = vcmp.eq.f32.partialorder %v495_v63, 0.0 }
 0x21e   :  { %2605 = vrsqrt.f32 %v310_v30  ;;  %v2533_v30 = vld [vmem:[%s3425_s9 + $0xc0] sm:$0xff]  }
 0x21f   :  { %2607 = vrsqrt.f32 %v309_v36  ;;  %v108_v36 = vld [vmem:[%s3429_s7] sm:$0xf] }
 0x225   :  { %v2602_v1 = vpop.eup %2601 }
 0x226   :  { %v497_v2 = vmul.f32 %v2602_v1, %v494_v61  ;;  %v2495_v1 = vld [vmem:[%s3454_s4 + $0xc] ss:$16 sps:$4 sm:$0xff]  }
 0x227   :  { %v2604_v3 = vpop.eup %2603 }
 0x228   :  { %v499_v5 = vsel %vm498_vm3, %v494_v61, %v497_v2  ;;  %v504_v7 = vmul.f32 %v2604_v3, %v495_v63  ;;  %v2606_v45 = vpop.eup %2605  ;;  %v2493_v3 = vld [vmem:[%s3454_s4 + $0x8] ss:$16 sps:$4 sm:$0xff]  }
 0x229   :  { %v502_v18 = vsel %vm500_vm5, %v501_v11, %v499_v5  ;;  %v2608_v46 = vpop.eup %2607  ;;  %v314_v49 = vmul.f32 %v2606_v45, %v2805_v4  ;;  %v2492_v4 = vld [vmem:[%s3454_s4 + $0xe4] ss:$16 sps:$4 sm:$0xff]   ;;  %v2496_v11 = vld [vmem:[%s3454_s4 + $0x28] ss:$16 sps:$4 sm:$0xff]  }
 0x22a   :  { %v506_v15 = vsel %vm505_vm4, %v495_v63, %v504_v7  ;;  %v313_v54 = vmul.f32 %v2608_v46, %v2799_v0  ;;  %v2490_v0 = vld [vmem:[%s3454_s4 + $0xe0] ss:$16 sps:$4 sm:$0xff]   ;;  %v2498_v7 = vld [vmem:[%s3454_s4 + $0x2c] ss:$16 sps:$4 sm:$0xff]  }
 0x22b   :  { %v509_v19 = vsel %vm507_vm6, %v508_v13, %v506_v15  ;;  %v322_v59 = vmul.f32 %v2071_v57, %v314_v49  ;;  %v2501_v13 = vld [vmem:[%s3454_s4 + $0x4c] ss:$16 sps:$4 sm:$0xff]   ;;  %v2499_v15 = vld [vmem:[%s3454_s4 + $0x48] ss:$16 sps:$4 sm:$0xff]  }
 0x22c   :  { %v511_v20 = vpack.c.bf16 %v509_v19, %v502_v18  ;;  %v321_v61 = vmul.f32 %v2071_v57, %v313_v54  ;;  %v2507_v18 = vld [vmem:[%s3454_s4 + $0x8c] ss:$16 sps:$4 sm:$0xff]   ;;  %v2505_v19 = vld [vmem:[%s3454_s4 + $0x88] ss:$16 sps:$4 sm:$0xff]  }
 0x22d   :  { %v2988_v63 = vadd.f32 %v2072_v62, %v322_v59 }
 0x22e   :  { %2085 = vmatmul.mubr.msk.bf16.vlgmr.msra.gmra.mrb[0].mxu1 %vm552_vm7, %v511_v20  ;;  %v2993_v2 = vadd.f32 %v2072_v62, %v321_v61  ;;  %v2534_v61 = vld [vmem:[%s3425_s9 + $0x80] sm:$0xff]   ;;  %v2535_v62 = vld [vmem:[%s3425_s9 + $0xc8] sm:$0xff]  }
 0x22f   :  { %600 = vmatpush1.bf16.msra.mxu1 %v2463_v16  ;;  %631 = vmatprep.mubr.bf16.mxu1 %v2641_v17  ;;  %v2504_v16 = vld [vmem:[%s3454_s4 + $0x6c] ss:$16 sps:$4 sm:$0xff]  }
 0x230   :  { %601 = vmatprep.subr.bf16.mxu1 %v2468_v21  ;;  %v510_v5 = vpack.c.bf16 %v2988_v63, %v2993_v2  ;;  %v2508_v21 = vld [vmem:[%s3454_s4 + $0xa8] ss:$16 sps:$4 sm:$0xff]  }
 0x233   :  { %602 = vmatpush1.bf16.msra.mxu1 %v2466_v22  ;;  %v2513_v22 = vld [vmem:[%s3454_s4 + $0xcc] ss:$16 sps:$4 sm:$0xff]  }
 0x234   :  { %802 = vmatprep.subr.bf16.mxu1 %v2471_v24  ;;  %v2516_v24 = vld [vmem:[%s3454_s4 + $0xec] ss:$16 sps:$4 sm:$0xff]  }
 0x236   :  { %2086 = vmatmul.mubr.msk.bf16.vlgmr.msra.gmra.mrb[4].mxu1 %vm552_vm7, %v511_v20  ;;  %v2510_v20 = vld [vmem:[%s3454_s4 + $0xac] ss:$16 sps:$4 sm:$0xff]  }
 0x237   :  { %803 = vmatpush1.bf16.msra.mxu1 %v2469_v27  ;;  %834 = vmatprep.mubr.bf16.mxu1 %v2641_v17  ;;  %v2530_v27 = vld [vmem:[%s3425_s9 + $0x30] sm:$0xff]  }
 0x238   :  { %804 = vmatprep.subr.bf16.mxu1 %v2474_v28  ;;  %2239 = vmatpush3.bf16.msra.mxu0 %v2530_v27  ;;  %v2531_v28 = vld [vmem:[%s3425_s9 + $0x78] sm:$0xff]  }
 0x239   :  { %2240 = vmatprep.subr.bf16.mxu0 %v2531_v28 }
 0x23b   :  { %805 = vmatpush1.bf16.msra.mxu1 %v2472_v32  ;;  %v890_v32 = vshrl.u32 %v294_v52, 7 }
 0x23c   :  { %806 = vmatprep.subr.bf16.mxu1 %v2477_v34  ;;  %2241 = vmatpush3.bf16.msra.mxu0 %v2532_v29 }
 0x23d   :  { %2248 = vmatprep.subr.bf16.mxu0 %v2533_v30  ;;  %v891_v34 = vsub.s32 0, %v890_v32 }
 0x23f   :  { %807 = vmatpush1.bf16.msra.mxu1 %v2475_v37  ;;  %v895_v37 = vsub.s32 1, %v890_v32 }
 0x240   :  { %808 = vmatprep.subr.bf16.mxu1 %v2480_v38  ;;  %v892_v38 = vrot.slane %v108_v36, %v891_v34 }
 0x243   :  { %809 = vmatpush1.bf16.msra.mxu1 %v2478_v40  ;;  %v896_v40 = vrot.slane %v108_v36, %v895_v37 }
 0x244   :  { %810 = vmatprep.subr.bf16.mxu1 %v2483_v41 }
 0x247   :  { %811 = vmatpush1.bf16.msra.mxu1 %v2481_v42 }
 0x248   :  { %812 = vmatprep.subr.bf16.mxu1 %v2486_v44 }
 0x24b   :  { %813 = vmatpush1.bf16.msra.mxu1 %v2484_v48 }
 0x24c   :  { %814 = vmatprep.subr.bf16.mxu1 %v2489_v53 }
 0x24f   :  { %815 = vmatpush1.bf16.msra.mxu1 %v2487_v56 }
 0x250   :  { %816 = vmatprep.subr.bf16.mxu1 %v2492_v4 }
 0x253   :  { %817 = vmatpush1.bf16.msra.mxu1 %v2490_v0 }
 0x254   :  { %845 = vmatprep.subr.bf16.mxu1 %v2495_v1 }
 0x256   :  { %835 = vmatmul.mubr.bf16.vlgmr.msra.gmra.mrb[0].mxu1 %v510_v5 }
 0x257   :  { %846 = vmatpush1.bf16.msra.mxu1 %v2493_v3  ;;  %877 = vmatprep.mubr.bf16.mxu1 %v2641_v17  ;;  %v2502_v17 = vld [vmem:[%s3454_s4 + $0x68] ss:$16 sps:$4 sm:$0xff]  }
 0x258   :  { %847 = vmatprep.subr.bf16.mxu1 %v2498_v7  ;;  %v2536_v3 = vld [vmem:[%s3425_s9 + $0x88] sm:$0xff]   ;;  %v2538_v7 = vld [vmem:[%s3425_s9 + $0x90] sm:$0xff]  }
 0x25b   :  { %848 = vmatpush1.bf16.msra.mxu1 %v2496_v11  ;;  %v2539_v11 = vld [vmem:[%s3425_s9 + $0xd8] sm:$0xff]  }
 0x25c   :  { %849 = vmatprep.subr.bf16.mxu1 %v2501_v13  ;;  %v2540_v13 = vld [vmem:[%s3425_s9 + $0x98] sm:$0xff]  }
 0x25f   :  { %850 = vmatpush1.bf16.msra.mxu1 %v2499_v15  ;;  %v2541_v15 = vld [vmem:[%s3425_s9 + $0xe0] sm:$0xff]  }
 0x260   :  { %851 = vmatprep.subr.bf16.mxu1 %v2504_v16  ;;  %v2542_v16 = vld [vmem:[%s3425_s9 + $0xa0] sm:$0xff]  }
 0x263   :  { %852 = vmatpush1.bf16.msra.mxu1 %v2502_v17  ;;  %v2543_v17 = vld [vmem:[%s3425_s9 + $0xe8] sm:$0xff]  }
 0x264   :  { %853 = vmatprep.subr.bf16.mxu1 %v2507_v18  ;;  %v899_v18 = vsub.s32 2, %v890_v32 }
 0x267   :  { %854 = vmatpush1.bf16.msra.mxu1 %v2505_v19  ;;  %v2544_v19 = vld [vmem:[%s3425_s9 + $0xa8] sm:$0xff]  }
 0x268   :  { %855 = vmatprep.subr.bf16.mxu1 %v2510_v20  ;;  %v903_v20 = vsub.s32 3, %v890_v32  ;;  %v2548_v32 = vld [vmem:[%s3425_s9 + $0xb8] sm:$0xff]  }
 0x26b   :  { %856 = vmatpush1.bf16.msra.mxu1 %v2508_v21  ;;  %v2545_v21 = vld [vmem:[%s3425_s9 + $0xf0] sm:$0xff]  }
 0x26c   :  { %857 = vmatprep.subr.bf16.mxu1 %v2513_v22  ;;  %v900_v22 = vrot.slane %v108_v36, %v899_v18 }
 0x26f   :  { %858 = vmatpush1.bf16.msra.mxu1 %v2511_v23  ;;  %v904_v23 = vrot.slane %v108_v36, %v903_v20 }
 0x270   :  { %859 = vmatprep.subr.bf16.mxu1 %v2516_v24  ;;  %v2546_v24 = vld [vmem:[%s3425_s9 + $0xb0] sm:$0xff]  }
 0x273   :  { %860 = vmatpush1.bf16.msra.mxu1 %v2514_v25  ;;  %v2547_v25 = vld [vmem:[%s3425_s9 + $0xf8] sm:$0xff]  }
 0x274   :  { %2371 = vmatprep.subr.bf16.mxu1 %v2639_v50 }
 0x276   :  { %878 = vmatmul.mubr.bf16.vlgmr.msra.gmra.mrb[4].mxu1 %v510_v5  ;;  %v2537_v5 = vld [vmem:[%s3425_s9 + $0xd0] sm:$0xff]  }
 0x277   :  { %2375 = vmatprep.mubr.msk.bf16.mxu1 %vm2640_vm1, %v2639_v50  ;;  %2372 = vmatpush3.bf16.msra.mxu1 %v2551_v31  ;;  %v2555_v31 = vld [vmem:[%s3431_s12 + $0x48] sm:$0xff]  }
 0x278   :  { %2373 = vmatprep.subr.bf16.mxu1 %v2639_v50 }
 0x27b   :  { %2374 = vmatpush3.bf16.msra.mxu1 %v2552_v33  ;;  %v2556_v33 = vld [vmem:[%s3431_s12 + $0x8] sm:$0xff]  }
 0x329   :  { %v836_v41 = vpop.f32.mrb[0].mxu1 }
 0x32a   :  { %v909_v42 = vadd.f32 %v892_v38, %v836_v41  ;;  %v838_v44 = vpop.f32.mrb[1].mxu1 }
 0x32b   :  { %v910_v45 = vadd.f32 %v896_v40, %v838_v44  ;;  %v840_v46 = vpop.f32.mrb[2].mxu1 }
 0x32c   :  { %v913_v48 = vadd.f32 %v892_v38, %v840_v46  ;;  %v842_v49 = vpop.f32.mrb[3].mxu1  ;;  %v1300_v54 = vmax.f32 %v909_v42, 0.0  ;;  %v2549_v46 = vld [vmem:[%s3428_s8] sm:$0xff]  }
 0x32d   :  { %v914_v53 = vadd.f32 %v896_v40, %v842_v49  ;;  %v1301_v52 = vmax.f32 %v910_v45, 0.0 }
 0x32e   :  { %v917_v56 = vpack.c.bf16 %v913_v48, %v909_v42  ;;  %v1304_v57 = vmax.f32 %v913_v48, 0.0 }
 0x32f   :  { %v918_v4 = vpack.c.bf16 %v914_v53, %v910_v45  ;;  %v1305_v59 = vmax.f32 %v914_v53, 0.0  ;;  %v2550_v53 = vld [vmem:[%s3428_s8 + $0x8] sm:$0xff]  }
 0x330   :  { %v3068_v0 = vpack.c.bf16 %v1304_v57, %v1300_v54  ;;  %v2119_v54 = vld [vmem:[%s3432_s10] ss:$0 sm:$0xff] }
 0x331   :  { %1151 = vmatprep.mubr.bf16.mxu0 %v918_v4  ;;  %v3073_v1 = vpack.c.bf16 %v1305_v59, %v1301_v52 }
 0x332   :  { %1152 = vmatmul.mubr.bf16.vlgmr.msra.gmra.mrb[12].mxu0 %v917_v56 }
 0x333   :  { %2249 = vmatpush3.bf16.msra.mxu0 %v2534_v61 }
 0x334   :  { %2250 = vmatprep.subr.bf16.mxu0 %v2535_v62 }
 0x337   :  { %2251 = vmatpush3.bf16.msra.mxu0 %v2536_v3 }
 0x338   :  { %2252 = vmatprep.subr.bf16.mxu0 %v2537_v5 }
 0x33b   :  { %2253 = vmatpush3.bf16.msra.mxu0 %v2538_v7 }
 0x33c   :  { %2254 = vmatprep.subr.bf16.mxu0 %v2539_v11 }
 0x33f   :  { %2255 = vmatpush3.bf16.msra.mxu0 %v2540_v13 }
 0x340   :  { %2256 = vmatprep.subr.bf16.mxu0 %v2541_v15 }
 0x343   :  { %2257 = vmatpush3.bf16.msra.mxu0 %v2542_v16 }
 0x344   :  { %2258 = vmatprep.subr.bf16.mxu0 %v2543_v17 }
 0x347   :  { %2259 = vmatpush3.bf16.msra.mxu0 %v2544_v19 }
 0x348   :  { %2260 = vmatprep.subr.bf16.mxu0 %v2545_v21 }
 0x349   :  { %v879_v26 = vpop.f32.mrb[4].mxu1 }
 0x34a   :  { %v911_v27 = vadd.f32 %v900_v22, %v879_v26  ;;  %v881_v28 = vpop.f32.mrb[5].mxu1 }
 0x34b   :  { %v912_v29 = vadd.f32 %v904_v23, %v881_v28  ;;  %v883_v30 = vpop.f32.mrb[6].mxu1  ;;  %2261 = vmatpush3.bf16.msra.mxu0 %v2546_v24 }
 0x34c   :  { %v915_v34 = vadd.f32 %v900_v22, %v883_v30  ;;  %v885_v36 = vpop.f32.mrb[7].mxu1  ;;  %2262 = vmatprep.subr.bf16.mxu0 %v2547_v25  ;;  %v1302_v38 = vmax.f32 %v911_v27, 0.0 }
 0x34d   :  { %v916_v37 = vadd.f32 %v904_v23, %v885_v36  ;;  %v1303_v42 = vmax.f32 %v912_v29, 0.0 }
 0x34e   :  { %v919_v40 = vpack.c.bf16 %v915_v34, %v911_v27  ;;  %v1306_v41 = vmax.f32 %v915_v34, 0.0 }
 0x34f   :  { %v920_v44 = vpack.c.bf16 %v916_v37, %v912_v29  ;;  %v1307_v45 = vmax.f32 %v916_v37, 0.0  ;;  %2263 = vmatpush3.bf16.msra.mxu0 %v2548_v32 }
 0x350   :  { %v3117_v48 = vpack.c.bf16 %v1306_v41, %v1302_v38  ;;  %2355 = vmatprep.subr.bf16.mxu0 %v2639_v50 }
 0x351   :  { %1192 = vmatprep.mubr.bf16.mxu0 %v920_v44  ;;  %v3120_v49 = vpack.c.bf16 %v1307_v45, %v1303_v42  ;;  %v2554_v44 = vld [vmem:[%s3431_s12] sm:$0xff]  }
 0x352   :  { %1193 = vmatmul.mubr.bf16.vlgmr.msra.gmra.mrb[16].mxu0 %v919_v40 }
 0x353   :  { %2356 = vmatpush3.bf16.msra.mxu0 %v2549_v46  ;;  %2359 = vmatprep.mubr.msk.bf16.mxu0 %vm2640_vm1, %v2639_v50 }
 0x354   :  { %2357 = vmatprep.subr.bf16.mxu0 %v2639_v50 }
 0x357   :  { %2358 = vmatpush3.bf16.msra.mxu0 %v2550_v53 }
 0x358   :  { %2387 = vmatprep.subr.bf16.mxu0 %v2639_v50 }
 0x35a   :  { %2360 = vmatmul.mubr.msk.bf16.vlgmr.msra.gmra.mrb[20].mxu0 %vm552_vm7, %v1213_v35  ;;  %v2553_v35 = vld [vmem:[%s3431_s12 + $0x40] sm:$0xff]  }
 0x35b   :  { %2363 = vmatprep.mubr.msk.bf16.mxu0 %vm2640_vm1, %v2639_v50  ;;  %2283 = vmatprep.subr.bf16.mxu1 %v2553_v35  ;;  %v2557_v35 = vld [vmem:[%s3431_s12 + $0x50] sm:$0xff]  }
 0x362   :  { %2364 = vmatmul.mubr.msk.bf16.gmra.mrb[24].mxu0 %vm552_vm7, %v1214_v47 }
 0x363   :  { %2367 = vmatprep.mubr.msk.bf16.mxu0 %vm2640_vm1, %v2639_v50 }
 0x36a   :  { %2368 = vmatmul.mubr.msk.bf16.gmra.mrb[28].mxu0 %vm552_vm7, %v1215_v58 }
 0x36b   :  { %2391 = vmatprep.mubr.msk.bf16.mxu0 %vm2640_vm1, %v2639_v50 }
 0x405   :  { %v2242_v39 = vpop.f32.mrb[12].mxu0 }
 0x406   :  { %v2243_v43 = vpop.f32.mrb[13].mxu0 }
 0x407   :  { %v2244_v47 = vadd.f32 %v2243_v43, %v2242_v39  ;;  %v2245_v51 = vpop.f32.mrb[14].mxu0  ;;  %v2558_v39 = vld [vmem:[%s3431_s12 + $0x10] sm:$0xff]   ;;  %v2559_v43 = vld [vmem:[%s3431_s12 + $0x58] sm:$0xff]  }
 0x408   :  { %v2246_v55 = vpop.f32.mrb[15].mxu0 }
 0x409   :  { %v2247_v58 = vadd.f32 %v2246_v55, %v2245_v51  ;;  %v1154_v52 = vadd.f32 %v2244_v47, %v2119_v54  ;;  %v2560_v47 = vld [vmem:[%s3431_s12 + $0x18] sm:$0xff]   ;;  %v2561_v51 = vld [vmem:[%s3431_s12 + $0x60] sm:$0xff]  }
 0x40a   :  { %v2562_v55 = vld [vmem:[%s3431_s12 + $0x20] sm:$0xff]  }
 0x40b   :  { %v1157_v62 = vadd.f32 %v2247_v58, %v2119_v54  ;;  %v2563_v58 = vld [vmem:[%s3431_s12 + $0x68] sm:$0xff]  }
 0x40c   :  { %v2564_v54 = vld [vmem:[%s3431_s12 + $0x28] sm:$0xff]  }
 0x425   :  { %v2264_v56 = vpop.f32.mrb[16].mxu0 }
 0x426   :  { %v2265_v57 = vpop.f32.mrb[17].mxu0 }
 0x427   :  { %v2266_v4 = vadd.f32 %v2265_v57, %v2264_v56  ;;  %v2267_v59 = vpop.f32.mrb[18].mxu0  ;;  %v2565_v56 = vld [vmem:[%s3431_s12 + $0x70] sm:$0xff]  }
 0x428   :  { %v2268_v61 = vpop.f32.mrb[19].mxu0  ;;  %v2566_v57 = vld [vmem:[%s3431_s12 + $0x30] sm:$0xff]  }
 0x429   :  { %v1195_v3 = vadd.f32 %v2266_v4, %v1154_v52  ;;  %v2269_v5 = vadd.f32 %v2268_v61, %v2267_v59  ;;  %v2567_v52 = vld [vmem:[%s3431_s12 + $0x78] sm:$0xff]   ;;  %v2569_v4 = vld [vmem:[%s3433_s13] sm:$0xff]   ;;  %v2570_v59 = vld [vmem:[%s3433_s13 + $0x8] sm:$0xff]  }
 0x42a   :  { %2388 = vmatpush3.bf16.msra.mxu0 %v2569_v4  ;;  %v2571_v61 = vld [vmem:[%s3431_s12 + $0xc0] sm:$0xff]   ;;  %v2577_v4 = vld [vmem:[%s3431_s12 + $0xd8] sm:$0xff]  }
 0x42b   :  { %v2152_v7 = vmul.f32 -1.442695, %v1195_v3  ;;  %v1198_v11 = vadd.f32 %v2269_v5, %v1157_v62  ;;  %2389 = vmatprep.subr.bf16.mxu0 %v2639_v50 }
 0x42d   :  { %2609 = vpow2.f32 %v2152_v7  ;;  %v2153_v13 = vmul.f32 -1.442695, %v1198_v11  ;;  %v1271_v15 = vpop.f32.mrb[20].mxu0 }
 0x42e   :  { %v2361_v16 = vpop.f32.mrb[21].mxu0  ;;  %2390 = vmatpush3.bf16.msra.mxu0 %v2570_v59  ;;  %v2579_v59 = vld [vmem:[%s3431_s12 + $0xe0] sm:$0xff]  }
 0x42f   :  { %2611 = vpow2.f32 %v2153_v13  ;;  %v1274_v17 = vpop.f32.mrb[22].mxu0  ;;  %2305 = vmatprep.subr.bf16.mxu0 %v2571_v61  ;;  %v2580_v61 = vld [vmem:[%s3431_s12 + $0xa0] sm:$0xff]  }
 0x430   :  { %v2362_v18 = vpop.f32.mrb[23].mxu0 }
 0x435   :  { %v1279_v19 = vpop.f32.mrb[24].mxu0 }
 0x436   :  { %v2365_v20 = vpop.f32.mrb[25].mxu0 }
 0x437   :  { %v2610_v21 = vpop.eup %2609  ;;  %v1282_v22 = vpop.f32.mrb[26].mxu0 }
 0x438   :  { %v1207_v23 = vadd.f32 1.0, %v2610_v21  ;;  %v2366_v24 = vpop.f32.mrb[27].mxu0 }
 0x439   :  { %v2612_v25 = vpop.eup %2611 }
 0x43a   :  { %2613 = vrcp.f32 %v1207_v23  ;;  %v1208_v26 = vadd.f32 1.0, %v2612_v25 }
 0x43c   :  { %2615 = vrcp.f32 %v1208_v26 }
 0x43d   :  { %v1287_v27 = vpop.f32.mrb[28].mxu0 }
 0x43e   :  { %v2369_v28 = vpop.f32.mrb[29].mxu0 }
 0x43f   :  { %v1290_v29 = vpop.f32.mrb[30].mxu0 }
 0x440   :  { %v2370_v30 = vpop.f32.mrb[31].mxu0 }
 0x444   :  { %v2614_v32 = vpop.eup %2613 }
 0x445   :  { %v1294_v34 = vmul.f32 %v2614_v32, %v1271_v15  ;;  %v1296_v36 = vmul.f32 %v2614_v32, %v1279_v19  ;;  %v1298_v37 = vmul.f32 %v2614_v32, %v1287_v27 }
 0x446   :  { %v2616_v38 = vpop.eup %2615 }
 0x447   :  { %v1295_v40 = vmul.f32 %v2616_v38, %v1274_v17  ;;  %v1297_v41 = vmul.f32 %v2616_v38, %v1282_v22  ;;  %v1299_v42 = vmul.f32 %v2616_v38, %v1290_v29 }
 0x449   :  { %v1308_v45 = vpack.c.bf16 %v1295_v40, %v1294_v34  ;;  %v1309_v46 = vpack.c.bf16 %v1297_v41, %v1296_v36  ;;  %v1310_v53 = vpack.c.bf16 %v1299_v42, %v1298_v37 }
 0x44b   :  { %2376 = vmatmul.mubr.msk.bf16.vlgmr.msra.gmra.mrb[8].mxu1 %vm552_vm7, %v1308_v45 }
 0x44c   :  { %2284 = vmatpush3.bf16.msra.mxu1 %v2554_v44  ;;  %2379 = vmatprep.mubr.msk.bf16.mxu1 %vm2640_vm1, %v2639_v50 }
 0x44d   :  { %2285 = vmatprep.subr.bf16.mxu1 %v2555_v31 }
 0x450   :  { %2286 = vmatpush3.bf16.msra.mxu1 %v2556_v33 }
 0x451   :  { %2287 = vmatprep.subr.bf16.mxu1 %v2557_v35 }
 0x453   :  { %2380 = vmatmul.mubr.msk.bf16.gmra.mrb[12].mxu1 %vm552_vm7, %v1309_v46 }
 0x454   :  { %2288 = vmatpush3.bf16.msra.mxu1 %v2558_v39  ;;  %2383 = vmatprep.mubr.msk.bf16.mxu1 %vm2640_vm1, %v2639_v50 }
 0x455   :  { %2289 = vmatprep.subr.bf16.mxu1 %v2559_v43 }
 0x458   :  { %2290 = vmatpush3.bf16.msra.mxu1 %v2560_v47 }
 0x459   :  { %2291 = vmatprep.subr.bf16.mxu1 %v2561_v51 }
 0x45b   :  { %2384 = vmatmul.mubr.msk.bf16.gmra.mrb[16].mxu1 %vm552_vm7, %v1310_v53 }
 0x45c   :  { %2292 = vmatpush3.bf16.msra.mxu1 %v2562_v55  ;;  %1700 = vmatprep.mubr.bf16.mxu1 %v3073_v1  ;;  %v2568_v1 = vld [vmem:[%s3431_s12 + $0x38] sm:$0xff]  }
 0x45d   :  { %2293 = vmatprep.subr.bf16.mxu1 %v2563_v58  ;;  %v2572_v58 = vld [vmem:[%s3431_s12 + $0x80] sm:$0xff]  }
 0x460   :  { %2294 = vmatpush3.bf16.msra.mxu1 %v2564_v54 }
 0x461   :  { %2295 = vmatprep.subr.bf16.mxu1 %v2565_v56  ;;  %v2573_v56 = vld [vmem:[%s3431_s12 + $0xc8] sm:$0xff]  }
 0x464   :  { %2296 = vmatpush3.bf16.msra.mxu1 %v2566_v57  ;;  %v2574_v57 = vld [vmem:[%s3431_s12 + $0x88] sm:$0xff]  }
 0x465   :  { %2297 = vmatprep.subr.bf16.mxu1 %v2567_v52  ;;  %v2575_v52 = vld [vmem:[%s3431_s12 + $0xd0] sm:$0xff]  }
 0x468   :  { %2298 = vmatpush3.bf16.msra.mxu1 %v2568_v1  ;;  %v2576_v1 = vld [vmem:[%s3431_s12 + $0x90] sm:$0xff]  }
 0x469   :  { %2395 = vmatprep.subr.bf16.mxu1 %v2639_v50 }
 0x46b   :  { %1701 = vmatmul.mubr.bf16.vlgmr.msra.gmra.mrb[20].mxu1 %v3068_v0 }
 0x46c   :  { %2411 = vmatprep.mubr.msk.bf16.mxu1 %vm2640_vm1, %v2639_v50 }
 0x51e   :  { %v3227_v0 = vpop.f32.mrb[8].mxu1 }
 0x51f   :  { %v2377_v62 = vpop.f32.mrb[9].mxu1  ;;  %v1389_v13 = vmul.f32 %v3227_v0, %v3227_v0 }
 0x520   :  { %v3229_v3 = vpop.f32.mrb[10].mxu1  ;;  %v2581_v62 = vld [vmem:[%s3431_s12 + $0xe8] sm:$0xff]  }
 0x521   :  { %v1866_v5 = vpack.c.bf16 %v3229_v3, %v3227_v0  ;;  %v2378_v7 = vpop.f32.mrb[11].mxu1  ;;  %v1390_v18 = vmul.f32 %v3229_v3, %v3229_v3  ;;  %v2590_v0 = vld [vmem:[%s3435_s16 + $0x8] sm:$0xff]   ;;  %v2591_v3 = vld [vmem:[%s3435_s16 + $0x10] sm:$0xff]  }
 0x522   :  { %v2582_v7 = vld [vmem:[%s3431_s12 + $0xa8] sm:$0xff]  }
 0x526   :  { %v3233_v11 = vpop.f32.mrb[12].mxu1 }
 0x527   :  { %v1391_v15 = vmul.f32 %v3233_v11, %v3233_v11  ;;  %v2381_v16 = vpop.f32.mrb[13].mxu1 }
 0x528   :  { %v3239_v17 = vpop.f32.mrb[14].mxu1  ;;  %v2585_v16 = vld [vmem:[%s3431_s12 + $0xf8] sm:$0xff]  }
 0x529   :  { %v1393_v19 = vadd.f32 %v1391_v15, %v1389_v13  ;;  %v1392_v20 = vmul.f32 %v3239_v17, %v3239_v17  ;;  %v1867_v21 = vpack.c.bf16 %v3239_v17, %v3233_v11  ;;  %v2382_v22 = vpop.f32.mrb[15].mxu1  ;;  %v2583_v13 = vld [vmem:[%s3431_s12 + $0xf0] sm:$0xff]   ;;  %v2593_v11 = vld [vmem:[%s3435_s16 + $0x20] sm:$0xff]   ;;  %v2594_v17 = vld [vmem:[%s3435_s16 + $0x28] sm:$0xff]  }
 0x52a   :  { %v2584_v15 = vld [vmem:[%s3431_s12 + $0xb0] sm:$0xff]   ;;  %v2596_v22 = vld [vmem:[%s3435_s16 + $0x38] sm:$0xff]  }
 0x52b   :  { %v1394_v23 = vadd.f32 %v1392_v20, %v1390_v18  ;;  %v2586_v18 = vld [vmem:[%s3431_s12 + $0xb8] sm:$0xff]   ;;  %v2588_v20 = vld [vmem:[%s3434_s15 + $0x8] sm:$0xff]  }
 0x52e   :  { %v3247_v24 = vpop.f32.mrb[16].mxu1 }
 0x52f   :  { %v1395_v25 = vmul.f32 %v3247_v24, %v3247_v24  ;;  %v2385_v26 = vpop.f32.mrb[17].mxu1 }
 0x530   :  { %v3251_v27 = vpop.f32.mrb[18].mxu1 }
 0x531   :  { %v1397_v28 = vadd.f32 %v1395_v25, %v1393_v19  ;;  %v1396_v29 = vmul.f32 %v3251_v27, %v3251_v27  ;;  %v1868_v30 = vpack.c.bf16 %v3251_v27, %v3247_v24  ;;  %v2386_v32 = vpop.f32.mrb[19].mxu1  ;;  %v2587_v19 = vld [vmem:[%s3434_s15] sm:$0xff]  }
 0x533   :  { %v1399_v34 = vmax.f32 %v1397_v28, 1e-08  ;;  %v1398_v36 = vadd.f32 %v1396_v29, %v1394_v23 }
 0x535   :  { %2617 = vrsqrt.f32 %v1399_v34  ;;  %v1400_v37 = vmax.f32 %v1398_v36, 1e-08  ;;  %vm1403_vm8 = vcmp.eq.f32.partialorder %v1399_v34, inf  ;;  %v1406_v39 = vand.u32 2147483648, %v1399_v34 }
 0x536   :  { %vm1405_vm10 = vcmp.eq.f32.partialorder %v1399_v34, 0.0 }
 0x537   :  { %2619 = vrsqrt.f32 %v1400_v37  ;;  %vm1410_vm9 = vcmp.eq.f32.partialorder %v1400_v37, inf  ;;  %v1413_v43 = vand.u32 2147483648, %v1400_v37  ;;  %vm1412_vm11 = vcmp.eq.f32.partialorder %v1400_v37, 0.0 }
 0x53e   :  { %v2299_v38 = vpop.f32.mrb[20].mxu1 }
 0x53f   :  { %v2618_v40 = vpop.eup %2617  ;;  %v2300_v41 = vpop.f32.mrb[21].mxu1 }
 0x540   :  { %v1402_v42 = vmul.f32 %v2618_v40, %v1399_v34  ;;  %v3257_v44 = vadd.f32 %v2300_v41, %v2299_v38  ;;  %v2302_v45 = vpop.f32.mrb[22].mxu1 }
 0x541   :  { %v2620_v46 = vpop.eup %2619  ;;  %v2303_v53 = vpop.f32.mrb[23].mxu1 }
 0x542   :  { %v1409_v31 = vmul.f32 %v2620_v46, %v1400_v37  ;;  %v3259_v33 = vadd.f32 %v2303_v53, %v2302_v45  ;;  %v1404_v35 = vsel %vm1403_vm8, %v1399_v34, %v1402_v42 }
 0x543   :  { %v1407_v51 = vsel %vm1405_vm10, %v1406_v39, %v1404_v35 }
 0x544   :  { %v1411_v47 = vsel %vm1410_vm9, %v1400_v37, %v1409_v31 }
 0x545   :  { %v1414_v55 = vsel %vm1412_vm11, %v1413_v43, %v1411_v47 }
 0x546   :  { %v1419_v54 = vpack.c.bf16 %v1414_v55, %v1407_v51 }
 0x548   :  { %2392 = vmatmul.mubr.msk.bf16.vlgmr.msra.gmra.mrb[32].mxu0 %vm552_vm7, %v1419_v54 }
 0x549   :  { %2306 = vmatpush3.bf16.msra.mxu0 %v2572_v58  ;;  %1741 = vmatprep.mubr.bf16.mxu0 %v3120_v49  ;;  %v2578_v49 = vld [vmem:[%s3431_s12 + $0x98] sm:$0xff]  }
 0x54a   :  { %2307 = vmatprep.subr.bf16.mxu0 %v2573_v56  ;;  %v2200_v56 = vld [vmem:[%s3437_s17] ss:$0 sm:$0xff]  ;;  %s2642_s17 = smov 32  }
 0x54d   :  { %2308 = vmatpush3.bf16.msra.mxu0 %v2574_v57 }
 0x54e   :  { %2309 = vmatprep.subr.bf16.mxu0 %v2575_v52 }
 0x551   :  { %2310 = vmatpush3.bf16.msra.mxu0 %v2576_v1 }
 0x552   :  { %2311 = vmatprep.subr.bf16.mxu0 %v2577_v4 }
 0x555   :  { %2312 = vmatpush3.bf16.msra.mxu0 %v2578_v49 }
 0x556   :  { %2313 = vmatprep.subr.bf16.mxu0 %v2579_v59 }
 0x559   :  { %2314 = vmatpush3.bf16.msra.mxu0 %v2580_v61 }
 0x55a   :  { %2315 = vmatprep.subr.bf16.mxu0 %v2581_v62 }
 0x55d   :  { %2316 = vmatpush3.bf16.msra.mxu0 %v2582_v7 }
 0x55e   :  { %2317 = vmatprep.subr.bf16.mxu0 %v2583_v13 }
 0x561   :  { %2318 = vmatpush3.bf16.msra.mxu0 %v2584_v15 }
 0x562   :  { %2319 = vmatprep.subr.bf16.mxu0 %v2585_v16 }
 0x565   :  { %2320 = vmatpush3.bf16.msra.mxu0 %v2586_v18 }
 0x566   :  { %2415 = vmatprep.subr.bf16.mxu0 %v2639_v50 }
 0x568   :  { %1742 = vmatmul.mubr.bf16.vlgmr.msra.gmra.mrb[36].mxu0 %v3117_v48  ;;  %v2589_v48 = vld [vmem:[%s3435_s16] sm:$0xff]  }
 0x569   :  { %2416 = vmatpush3.bf16.msra.mxu0 %v2587_v19  ;;  %2419 = vmatprep.mubr.msk.bf16.mxu0 %vm2640_vm1, %v2639_v50 }
 0x56a   :  { %2417 = vmatprep.subr.bf16.mxu0 %v2639_v50  ;;  %2396 = vmatpush3.bf16.msra.mxu1 %v2589_v48 }
 0x56b   :  { %2397 = vmatprep.subr.bf16.mxu1 %v2639_v50 }
 0x56d   :  { %2418 = vmatpush3.bf16.msra.mxu0 %v2588_v20 }
 0x56e   :  { %2398 = vmatpush3.bf16.msra.mxu1 %v2590_v0 }
 0x56f   :  { %2399 = vmatprep.subr.bf16.mxu1 %v2639_v50 }
 0x570   :  { %2420 = vmatmul.mubr.msk.bf16.vlgmr.msra.gmra.mrb[40].mxu0 %vm552_vm7, %v1866_v5  ;;  %v2592_v5 = vld [vmem:[%s3435_s16 + $0x18] sm:$0xff]  }
 0x571   :  { %2423 = vmatprep.mubr.msk.bf16.mxu0 %vm2640_vm1, %v2639_v50 }
 0x572   :  { %2400 = vmatpush3.bf16.msra.mxu1 %v2591_v3 }
 0x573   :  { %2401 = vmatprep.subr.bf16.mxu1 %v2639_v50 }
 0x576   :  { %2402 = vmatpush3.bf16.msra.mxu1 %v2592_v5 }
 0x577   :  { %2403 = vmatprep.subr.bf16.mxu1 %v2639_v50 }
 0x578   :  { %2424 = vmatmul.mubr.msk.bf16.gmra.mrb[44].mxu0 %vm552_vm7, %v1867_v21  ;;  %v2595_v21 = vld [vmem:[%s3435_s16 + $0x30] sm:$0xff]  }
 0x579   :  { %2427 = vmatprep.mubr.msk.bf16.mxu0 %vm2640_vm1, %v2639_v50 }
 0x57a   :  { %2404 = vmatpush3.bf16.msra.mxu1 %v2593_v11 }
 0x57b   :  { %2405 = vmatprep.subr.bf16.mxu1 %v2639_v50 }
 0x57e   :  { %2406 = vmatpush3.bf16.msra.mxu1 %v2594_v17 }
 0x57f   :  { %2407 = vmatprep.subr.bf16.mxu1 %v2639_v50 }
 0x580   :  { %2428 = vmatmul.mubr.msk.bf16.gmra.mrb[48].mxu0 %vm552_vm7, %v1868_v30 }
 0x582   :  { %2408 = vmatpush3.bf16.msra.mxu1 %v2595_v21 }
 0x583   :  { %2409 = vmatprep.subr.bf16.mxu1 %v2639_v50  ;;  %v2199_v50 = vld [vmem:[%s3436_s14] ss:$0 sm:$0xff] }
 0x586   :  { %2410 = vmatpush3.bf16.msra.mxu1 %v2596_v22 }
 0x61b   :  { %v1469_v23 = vpop.f32.mrb[32].mxu0 }
 0x61c   :  { %v1703_v24 = vadd.f32 %v3257_v44, %v1469_v23  ;;  %v2393_v25 = vpop.f32.mrb[33].mxu0 }
 0x61d   :  { %v1472_v26 = vpop.f32.mrb[34].mxu0 }
 0x61e   :  { %v1706_v27 = vadd.f32 %v3259_v33, %v1472_v26  ;;  %v2394_v28 = vpop.f32.mrb[35].mxu0 }
 0x63b   :  { %v2321_v29 = vpop.f32.mrb[36].mxu0 }
 0x63c   :  { %v2322_v30 = vpop.f32.mrb[37].mxu0 }
 0x63d   :  { %v2323_v32 = vadd.f32 %v2322_v30, %v2321_v29  ;;  %v2324_v34 = vpop.f32.mrb[38].mxu0 }
 0x63e   :  { %v2325_v36 = vpop.f32.mrb[39].mxu0 }
 0x63f   :  { %v1744_v37 = vadd.f32 %v2323_v32, %v1703_v24  ;;  %v2326_v38 = vadd.f32 %v2325_v36, %v2324_v34 }
 0x641   :  { %v1747_v40 = vadd.f32 %v2326_v38, %v1706_v27  ;;  %v1756_v41 = vadd.f32 %v2199_v50, %v1744_v37 }
 0x643   :  { %v1924_v42 = vpop.f32.mrb[40].mxu0  ;;  %v3372_v44 = vadd.f32 %v1756_v41, %v2993_v2  ;;  %v1757_v45 = vadd.f32 %v2199_v50, %v1747_v40 }
 0x644   :  { %v2421_v46 = vpop.f32.mrb[41].mxu0 }
 0x645   :  { %v1927_v53 = vpop.f32.mrb[42].mxu0  ;;  %1955 = vadd.xlane.f32.xlu1 %v3372_v44  ;;  %v3376_v31 = vadd.f32 %v1757_v45, %v2988_v63  ;;  %v1758_v33 = vpack.c.bf16 %v1757_v45, %v1756_v41 }
 0x646   :  { %v2422_v35 = vpop.f32.mrb[43].mxu0 }
 0x647   :  { %1957 = vadd.xlane.f32.xlu0 %v3376_v31  ;;  %2412 = vmatmul.mubr.bf16.vlgmr.msra.gmra.mrb[24].mxu1 %v1758_v33 }
 0x64b   :  { %v1932_v39 = vpop.f32.mrb[44].mxu0 }
 0x64c   :  { %v2425_v43 = vpop.f32.mrb[45].mxu0 }
 0x64d   :  { %v1935_v47 = vpop.f32.mrb[46].mxu0 }
 0x64e   :  { %v2426_v51 = vpop.f32.mrb[47].mxu0 }
 0x653   :  { %v1940_v55 = vpop.f32.mrb[48].mxu0 }
 0x654   :  { %v2429_v2 = vpop.f32.mrb[49].mxu0 }
 0x655   :  { %v1943_v58 = vpop.f32.mrb[50].mxu0 }
 0x656   :  { %v2430_v54 = vpop.f32.mrb[51].mxu0 }
 0x6d2   :  { %v1956_v18 = vpop.xlane.xlu1 %1955 }
 0x6d3   :  { %v1959_v21 = vmul.f32 0.01, %v1956_v18 }
 0x6d4   :  { %v1958_v22 = vpop.xlane.xlu0 %1957 }
 0x6d5   :  { %v1960_v29 = vmul.f32 0.01, %v1958_v22  ;;  %v1961_v32 = vsub.f32 %v3372_v44, %v1959_v21 }
 0x6d7   :  { %v1962_v38 = vsub.f32 %v3376_v31, %v1960_v29 }
 0x71a   :  { %v1847_v57 = vpop.f32.mrb[24].mxu1 }
 0x71b   :  { %v1848_v63 = vadd.f32 %v2200_v56, %v1847_v57  ;;  %v2413_v52 = vpop.f32.mrb[25].mxu1 }
 0x71c   :  { %v1850_v1 = vpop.f32.mrb[26].mxu1 }
 0x71d   :  { %v2209_v4 = vmul.f32 -1.442695, %v1848_v63  ;;  %v1851_v49 = vadd.f32 %v2200_v56, %v1850_v1  ;;  %v2414_v59 = vpop.f32.mrb[27].mxu1 }
 0x71f   :  { %2621 = vpow2.f32 %v2209_v4  ;;  %v2210_v61 = vmul.f32 -1.442695, %v1851_v49 }
 0x721   :  { %2623 = vpow2.f32 %v2210_v61 }
 0x729   :  { %v2622_v62 = vpop.eup %2621 }
 0x72a   :  { %v1860_v7 = vadd.f32 1.0, %v2622_v62  ;;  %v2216_v62 = vld [vmem:[%s3438_s18] ss:$0 sm:$0xff] }
 0x72b   :  { %v2624_v13 = vpop.eup %2623 }
 0x72c   :  { %2625 = vrcp.f32 %v1860_v7  ;;  %v1861_v15 = vadd.f32 1.0, %v2624_v13 }
 0x72e   :  { %2627 = vrcp.f32 %v1861_v15 }
 0x736   :  { %v2626_v16 = vpop.eup %2625 }
 0x737   :  { %v1947_v19 = vmul.f32 %v2626_v16, %v1924_v42  ;;  %v1949_v20 = vmul.f32 %v2626_v16, %v1932_v39  ;;  %v1951_v48 = vmul.f32 %v2626_v16, %v1940_v55  ;;  %v1964_v42 = vmul.f32 %v2795_v60, %v1962_v38 }
 0x738   :  { %v2628_v0 = vpop.eup %2627 }
 0x739   :  { %v3383_v3 = vadd.f32 %v1947_v19, %v2813_v10  ;;  %v1997_v5 = vadd.f32 %v1949_v20, %v2820_v12  ;;  %v1999_v11 = vadd.f32 %v1951_v48, %v2830_v9  ;;  %v1948_v17 = vmul.f32 %v2628_v0, %v1927_v53  ;;  %v2217_v19 = vld [vmem:[%s3439_s19] ss:$0 sm:$0xff] }
 0x73a   :  { %v1950_v23 = vmul.f32 %v2628_v0, %v1935_v47  ;;  %v1952_v24 = vmul.f32 %v2628_v0, %v1943_v58  ;;  %v1966_v44 = vmul.f32 %v1964_v42, %v1964_v42 }
 0x73b   :  { %v2001_v25 = vmul.f32 %v3383_v3, %v3383_v3  ;;  %v2003_v26 = vmul.f32 %v1997_v5, %v1997_v5  ;;  %v3390_v27 = vadd.f32 %v1948_v17, %v2808_v6  ;;  %v2007_v30 = vmul.f32 %v1999_v11, %v1999_v11 }
 0x73c   :  { %v1998_v28 = vadd.f32 %v1950_v23, %v2823_v8  ;;  %v2000_v10 = vadd.f32 %v1952_v24, %v2832_v14  ;;  %v1963_v8 = vmul.f32 %v2795_v60, %v1961_v32 }
 0x73d   :  { %v2005_v12 = vadd.f32 %v2003_v26, %v2001_v25  ;;  %v2002_v9 = vmul.f32 %v3390_v27, %v3390_v27 }
 0x73e   :  { %v2004_v34 = vmul.f32 %v1998_v28, %v1998_v28  ;;  %v2008_v37 = vmul.f32 %v2000_v10, %v2000_v10  ;;  %v1965_v46 = vmul.f32 %v1963_v8, %v1963_v8 }
 0x73f   :  { %v2009_v36 = vadd.f32 %v2007_v30, %v2005_v12 }
 0x740   :  { %v2006_v50 = vadd.f32 %v2004_v34, %v2002_v9 }
 0x741   :  { %v2011_v6 = vmax.f32 %v2009_v36, 1e-08 }
 0x742   :  { %v2010_v40 = vadd.f32 %v2008_v37, %v2006_v50 }
 0x743   :  { %v2013_v14 = vsel %vm391_vm0, %v2011_v6, 0.0 }
 0x744   :  { %2014 = vadd.xlane.f32.xlu1 %v2013_v14  ;;  %v2012_v41 = vmax.f32 %v2010_v40, 1e-08 }
 0x746   :  { %v2016_v45 = vsel %vm391_vm0, %v2012_v41, 0.0 }
 0x747   :  { %2017 = vadd.xlane.f32.xlu0 %v2016_v45 }
 0x748   :  { %1967 = vadd.xlane.f32.xlu1 %v1965_v46 }
 0x74b   :  { %1969 = vadd.xlane.f32.xlu0 %v1966_v44 }
 0x7d1   :  { %v2015_v53 = vpop.xlane.xlu1 %2014 }
 0x7d2   :  { %v2019_v33 = vmul.f32 0.0625, %v2015_v53 }
 0x7d4   :  { %v2018_v31 = vpop.xlane.xlu0 %2017  ;;  %2629 = vrsqrt.f32 %v2019_v33 }
 0x7d5   :  { %v2020_v35 = vmul.f32 0.0625, %v2018_v31  ;;  %v1968_v54 = vpop.xlane.xlu1 %1967 }
 0x7d6   :  { %v1971_v57 = vmul.f32 0.01, %v1968_v54 }
 0x7d7   :  { %2631 = vrsqrt.f32 %v2020_v35 }
 0x7d8   :  { %v1970_v56 = vpop.xlane.xlu0 %1969  ;;  %v1973_v52 = vadd.f32 1e-05, %v1971_v57 }
 0x7d9   :  { %v1972_v63 = vmul.f32 0.01, %v1970_v56 }
 0x7da   :  { %2633 = vrsqrt.f32 %v1973_v52 }
 0x7db   :  { %v1974_v1 = vadd.f32 1e-05, %v1972_v63 }
 0x7dd   :  { %2635 = vrsqrt.f32 %v1974_v1 }
 0x7de   :  { %v2630_v39 = vpop.eup %2629 }
 0x7df   :  { %v2027_v47 = vmul.f32 %v2630_v39, %v1999_v11  ;;  %v2025_v55 = vmul.f32 %v2630_v39, %v1997_v5  ;;  %v2023_v15 = vmul.f32 %v2630_v39, %v3383_v3 }
 0x7e1   :  { %v2632_v43 = vpop.eup %2631 }
 0x7e2   :  { %v2028_v51 = vmul.f32 %v2632_v43, %v2000_v10  ;;  %v2026_v2 = vmul.f32 %v2632_v43, %v1998_v28  ;;  %v2024_v18 = vmul.f32 %v2632_v43, %v3390_v27 }
 0x7e4   :  { %v2451_v60 = vpack.i.bf16 %v2028_v51, %v2027_v47  ;;  %v2446_v58 = vpack.i.bf16 %v2026_v2, %v2025_v55  ;;  %v2634_v4 = vpop.eup %2633 }
 0x7e5   :  { %v1977_v59 = vmul.f32 %v2634_v4, %v1963_v8 }
 0x7e6   :  { %2452 = vrot.lane.b32.xlu0 %v2451_v60, %s2642_s17  ;;  %2447 = vrot.lane.b32.xlu1 %v2446_v58, %s2643_s25 }
 0x7e7   :  { %v2636_v49 = vpop.eup %2635  ;;  %v1985_v7 = vmul.f32 %v2216_v62, %v1977_v59 }
 0x7e8   :  { %v1978_v61 = vmul.f32 %v2636_v49, %v1964_v42 }
 0x7e9   :  { %v1993_v22 = vadd.f32 %v2217_v19, %v1985_v7 }
 0x7ea   :  { %v1986_v13 = vmul.f32 %v2216_v62, %v1978_v61 }
 0x7ec   :  { %v1994_v3 = vadd.f32 %v2217_v19, %v1986_v13 }
 0x858   :  { %v2448_v16 = vpop.permute.xlu1 %2447  ;;  %v2453_v20 = vpop.permute.xlu0 %2452 }
 0x859   :  { %v2450_v48 = vunpack.i.h.bf16 %v2448_v16  ;;  %v2449_v0 = vunpack.i.l.bf16 %v2448_v16  ;;  %v2455_v5 = vunpack.i.h.bf16 %v2453_v20  ;;  %v2454_v11 = vunpack.i.l.bf16 %v2453_v20 }
 0x85b   :  { %v2045_v17 = vsel %vm391_vm0, %v2023_v15, %v2449_v0  ;;  %v2046_v21 = vsel %vm391_vm0, %v2024_v18, %v2450_v48 }
 0x85c   :  { %v2048_v23 = vsel %vm552_vm7, %v2046_v21, %v2455_v5  ;;  %v2047_v24 = vsel %vm552_vm7, %v2045_v17, %v2454_v11 }
 0x85d   :  { %v2221_v25 = vpack.c.bf16 %v2048_v23, %v1994_v3  ;;  %v2220_v26 = vpack.c.bf16 %v2047_v24, %v1993_v22 }
 0x85f   :  { %2065 = vst.msk [vmem:[%s3440_s20 + $0x8] sm:$0xff] %vm2063_vm14, %v2221_v25  ;;  %2064 = vst.msk [vmem:[%s3440_s20] sm:$0xff] %vm2063_vm14, %v2220_v26 }

// kernel: cdd_forward.14
= control target key start
LH: loop header
LB: loop body
LE: loop exit
PB: predicated region body
PF: predicated region fallthrough
CT: control target
= control target key end

     0   :  { %s4468_s3 = smov 3   ;;  %v4469_v0 = vmov 0.0   ;;  %vm4470_vm0 = vmmov 0   ;;  %s4471_s10 = smov 2   ;;  %vm410_vm1 = vcmask 130048   ;;  %v4478_v13 = vmov 0   ;;  %s5531_s0 = inlined_call_operand.smem [shape: u32[30], index: -1, kind: input, shape index: {}] }
   0x1   :  { %s4513_s6 = sld [smem:[%s5531_s0 + %s4468_s3]]   ;;  %4178 = vmatprep.subr.bf16.mxu1 %v4469_v0  ;;  %3676 = vmatprep.mubr.msk.bf16.mxu1 %vm4470_vm0, %v4469_v0  ;;  %s4472_s14 = smov 6   ;;  %vm917_vm2 = vcmask 261120   ;;  %vm1252_vm3 = vcmask 1040384   ;;  %vm1242_vm4 = vcmask 269312  }
   0x2   :  { %3650 = vmatprep.subr.bf16.mxu0 %v4469_v0  ;;  %3652 = vmatprep.mubr.msk.bf16.mxu0 %vm4470_vm0, %v4469_v0  ;;  %s4524_s9 = sld [smem:[%s5531_s0]]   ;;  %s4473_s18 = smov 96  }
   0x3   :  { %s4529_s13 = sld [smem:[%s5531_s0 + %s4471_s10]]   ;;  %s4474_s19 = smov 4   ;;  %4217 = vset.pattern.permute.xlu0 %v4478_v13  ;;  %4223 = vset.pattern.permute.xlu1 %v4478_v13 }
   0x4   :  { %s3269_s17 = sld [smem:[%s5531_s0 + %s4472_s14]]   ;;  %s4475_s23 = smov 112  }
   0x5   :  { %s4541_s22 = sld [smem:[%s5531_s0 + %s4474_s19]]   ;;  %s4476_s24 = smov 127  }
   0x6   :  { %s4477_s25 = smov 126   ;;  %s4479_s26 = smov 10  }
   0x7   :  { %v4264_v1 = vld [vmem:[%s4513_s6 + $0x4] ss:$8 sps:$4 sm:$0xff]   ;;  %v4267_v2 = vld [vmem:[%s4513_s6 + $0x14] ss:$8 sps:$4 sm:$0xff]   ;;  %s4585_s29 = sld [smem:[%s5531_s0 + %s4479_s26]]   ;;  %s4480_s30 = smov 12  }
   0x8   :  { %338 = vrot.lane.b32.xlu0 %v4264_v1, %s4473_s18  ;;  %v4269_v3 = vld [vmem:[%s4513_s6 + $0x24] ss:$8 sps:$4 sm:$0xff]   ;;  %v4549_v5 = vld [vmem:[%s4524_s9 + $0x14] ss:$8 sps:$4 sm:$0xff]   ;;  %s4590_s3 = sld [smem:[%s5531_s0 + %s4480_s30]]   ;;  %s4481_s4 = smov 8  }
   0x9   :  { %342 = vrot.lane.b32.xlu1 %v4269_v3, %s4473_s18  ;;  %v4545_v4 = vld [vmem:[%s4524_s9 + $0x4] ss:$8 sps:$4 sm:$0xff]   ;;  %v4574_v10 = vld [vmem:[%s4529_s13 + $0x10] sm:$0xff]   ;;  %s3271_s8 = sld [smem:[%s5531_s0 + %s4481_s4]]   ;;  %s4482_s10 = smov 1  }
   0xa   :  { %v4279_v6 = vld [vmem:[%s3269_s17] sm:$0xff]   ;;  %v4280_v9 = vld [vmem:[%s4529_s13 + $0x8] sm:$0xff]   ;;  %s4483_s14 = smov 9   ;;  %v390_v45 = vunpack.c.l.bf16 %v4574_v10  ;;  %v391_v50 = vunpack.c.h.bf16 %v4574_v10  ;;  %s4487_s28 = smov 11  }
   0xb   :  { %v4553_v7 = vld [vmem:[%s4524_s9 + $0x24] ss:$8 sps:$4 sm:$0xff]   ;;  %4179 = vmatpush3.bf16.msra.mxu1 %v4279_v6  ;;  %3651 = vmatpush3.bf16.msra.mxu0 %v4279_v6  ;;  %v388_v14 = vunpack.c.l.bf16 %v4280_v9  ;;  %v389_v15 = vunpack.c.h.bf16 %v4280_v9  ;;  %s4604_s17 = sld [smem:[%s5531_s0 + %s4483_s14]]   ;;  %s4488_s2 = smov 15  }
   0xc   :  { %340 = vrot.lane.b32.xlu0 %v4267_v2, %s4473_s18  ;;  %3688 = vmatprep.subr.bf16.mxu1 %v4469_v0  ;;  %v4278_v8 = vld [vmem:[%s4529_s13] sm:$0xff]   ;;  %s4599_s13 = sld [smem:[%s5531_s0 + %s4482_s10]]   ;;  %v4249_v58 = vpack.i.bf16 %v391_v50, %v390_v45  ;;  %s4489_s7 = smov 16  }
   0xd   :  { %305 = vrot.lane.b32.xlu1 %v4545_v4, %s4475_s23  ;;  %3726 = vmatprep.subr.bf16.mxu0 %v4469_v0  ;;  %v386_v11 = vunpack.c.l.bf16 %v4278_v8  ;;  %v387_v12 = vunpack.c.h.bf16 %v4278_v8  ;;  %v4234_v17 = vpack.i.bf16 %v389_v15, %v388_v14  ;;  %v4281_v20 = vld [vmem:[%s4541_s22] sm:$0xff]   ;;  %v1254_v15 = vsel %vm1252_vm3, 65535, %v4478_v13  ;;  %s3274_s1 = sld [smem:[%s5531_s0 + %s4487_s28]]   ;;  %s4490_s12 = smov 14  }
   0xe   :  { %3653 = vmatmul.mubr.msk.bf16.vlgmr.msra.gmra.mrb[0].mxu0 %vm410_vm1, %v4264_v1  ;;  %v4284_v14 = vld [vmem:[%s4590_s3 + $0x10] ss:$0 sps:$4 sm:$0x11]   ;;  %s3278_s5 = sld [smem:[%s5531_s0 + %s4488_s2]]   ;;  %s4491_s16 = smov 19  }
   0xf   :  { %3656 = vmatprep.mubr.msk.bf16.mxu0 %vm4470_vm0, %v4469_v0  ;;  %v4218_v16 = vpack.i.bf16 %v387_v12, %v386_v11  ;;  %v4285_v18 = vld [vmem:[%s3271_s8] sm:$0xff]   ;;  %v4286_v19 = vld [vmem:[%s3271_s8 + $0x8] sm:$0xff]   ;;  %v4300_v11 = vld [vmem:[%s4513_s6 + $0x10] ss:$8 sps:$4 sm:$0xff]   ;;  %s5058_s11 = sld [smem:[%s5531_s0 + %s4489_s7]]   ;;  %s4492_s20 = smov 17  }
  0x10   :  { %307 = vrot.lane.b32.xlu0 %v4549_v5, %s4475_s23  ;;  %3727 = vmatpush3.bf16.msra.mxu0 %v4285_v18  ;;  %v4301_v12 = vld [vmem:[%s4590_s3] sm:$0xff]   ;;  %s3277_s15 = sld [smem:[%s5531_s0 + %s4490_s12]]   ;;  %s4493_s22 = smov 20  }
  0x11   :  { %309 = vrot.lane.b32.xlu1 %v4553_v7, %s4475_s23  ;;  %3728 = vmatprep.subr.bf16.mxu0 %v4469_v0  ;;  %v4288_v55 = vld [vmem:[%s4604_s17] sm:$0xff]   ;;  %v4289_v61 = vld [vmem:[%s4604_s17 + $0x8] sm:$0xff]   ;;  %v4296_v6 = vld [vmem:[%s4604_s17 + $0x30] sm:$0xff]   ;;  %s3282_s19 = sld [smem:[%s5531_s0 + %s4491_s16]]   ;;  %s4494_s26 = smov 18  }
  0x12   :  { %v4287_v53 = vld [vmem:[%s4599_s13] sm:$0xff]   ;;  %v4292_v63 = vld [vmem:[%s4599_s13 + $0x8] sm:$0xff]   ;;  %s4495_s30 = smov 22   ;;  %s4496_s4 = smov 23  }
  0x13   :  { %s5273_s10 = sld [smem:[%s5531_s0 + %s4496_s4]]  }
  0x14   :  { %332 = vrot.lane.b32.xlu0 %v4264_v1, %s4475_s23  ;;  %3729 = vmatpush3.bf16.msra.mxu0 %v4286_v19  ;;  %v4290_v1 = vld [vmem:[%s4604_s17 + $0x10] sm:$0xff]   ;;  %v1535_v19 = vand.u32 %v4284_v14, %v1254_v15 }
  0x15   :  { %311 = vrot.lane.b32.xlu1 %v4545_v4, %s4473_s18  ;;  %3770 = vmatprep.subr.bf16.mxu0 %v4469_v0 }
  0x16   :  { %3657 = vmatmul.mubr.msk.bf16.gmra.mrb[4].mxu0 %vm410_vm1, %v4267_v2 }
  0x17   :  { %3660 = vmatprep.mubr.msk.bf16.mxu0 %vm4470_vm0, %v4469_v0 }
  0x18   :  { %334 = vrot.lane.b32.xlu0 %v4267_v2, %s4475_s23  ;;  %v4291_v2 = vld [vmem:[%s4604_s17 + $0x18] sm:$0xff]  }
  0x19   :  { %313 = vrot.lane.b32.xlu1 %v4549_v5, %s4473_s18 }
  0x1c   :  { %336 = vrot.lane.b32.xlu0 %v4269_v3, %s4475_s23 }
  0x1d   :  { %315 = vrot.lane.b32.xlu1 %v4553_v7, %s4473_s18  ;;  %s4484_s18 = smov 7  }
  0x1e   :  { %3661 = vmatmul.mubr.msk.bf16.gmra.mrb[8].mxu0 %vm410_vm1, %v4269_v3  ;;  %v4293_v3 = vld [vmem:[%s4604_s17 + $0x20] sm:$0xff]   ;;  %s4704_s21 = sld [smem:[%s5531_s0 + %s4484_s18]]  }
  0x1f   :  { %3664 = vmatprep.mubr.msk.bf16.mxu0 %vm4470_vm0, %v4469_v0 }
  0x20   :  { %368 = vrot.lane.b32.xlu0 %v4278_v8, %s4476_s24 }
  0x21   :  { %377 = vrot.lane.b32.xlu1 %v4278_v8, %s4477_s25  ;;  %v4266_v8 = vld [vmem:[%s4513_s6] ss:$8 sps:$4 sm:$0xff]  }
  0x24   :  { %370 = vrot.lane.b32.xlu0 %v4280_v9, %s4476_s24 }
  0x25   :  { %379 = vrot.lane.b32.xlu1 %v4280_v9, %s4477_s25  ;;  %v4297_v9 = vld [vmem:[%s4704_s21] sm:$0xff]  }
  0x28   :  { %372 = vrot.lane.b32.xlu0 %v4574_v10, %s4476_s24  ;;  %s4486_s24 = smov 13  }
  0x29   :  { %381 = vrot.lane.b32.xlu1 %v4574_v10, %s4477_s25  ;;  %v4299_v10 = vld [vmem:[%s4704_s21 + $0x8] sm:$0xff]   ;;  %s4955_s27 = sld [smem:[%s5531_s0 + %s4486_s24]]  }
  0x2a   :  { %s3283_s25 = sld [smem:[%s5531_s0 + %s4493_s22]]  }
  0x2c   :  { %4219 = vperm.xlu0 %4217, %v4218_v16   ;;  %v4303_v16 = vld [vmem:[%s4513_s6 + $0x20] ss:$8 sps:$4 sm:$0xff]   ;;  %s4485_s6 = smov 5  }
  0x2d   :  { %s3268_s23 = sld [smem:[%s5531_s0 + %s4485_s6]]  }
  0x30   :  { %4235 = vperm.xlu0 %4217, %v4234_v17   ;;  %v4304_v17 = vld [vmem:[%s4590_s3 + $0x8] sm:$0xff]   ;;  %s3285_s3 = sld [smem:[%s5531_s0 + %s4495_s30]]  }
  0x7a   :  { %v339_v21 = vpop.permute.xlu0 %338 }
  0x7b   :  { %3677 = vmatmul.mubr.msk.bf16.vlgmr.msra.gmra.mrb[0].mxu1 %vm410_vm1, %v339_v21  ;;  %v343_v22 = vpop.permute.xlu1 %342 }
  0x7c   :  { %3689 = vmatpush3.bf16.msra.mxu1 %v4281_v20  ;;  %3680 = vmatprep.mubr.msk.bf16.mxu1 %vm4470_vm0, %v4469_v0 }
  0x7d   :  { %3742 = vmatprep.subr.bf16.mxu1 %v4469_v0 }
  0x7e   :  { %v341_v23 = vpop.permute.xlu0 %340 }
  0x7f   :  { %v4613_v24 = vpop.permute.xlu1 %305 }
  0x82   :  { %v4615_v25 = vpop.permute.xlu0 %307 }
  0x83   :  { %3681 = vmatmul.mubr.msk.bf16.gmra.mrb[4].mxu1 %vm410_vm1, %v341_v23  ;;  %v4620_v26 = vpop.permute.xlu1 %309  ;;  %v4302_v23 = vld [vmem:[%s4704_s21 + $0x10] sm:$0xff]  }
  0x84   :  { %3684 = vmatprep.mubr.msk.bf16.mxu1 %vm4470_vm0, %v4469_v0 }
  0x86   :  { %v333_v27 = vpop.permute.xlu0 %332 }
  0x87   :  { %3665 = vmatmul.mubr.msk.bf16.gmra.mrb[12].mxu0 %vm410_vm1, %v333_v27  ;;  %v4625_v28 = vpop.permute.xlu1 %311  ;;  %v4305_v27 = vld [vmem:[%s4704_s21 + $0x18] sm:$0xff]  }
  0x88   :  { %3668 = vmatprep.mubr.msk.bf16.mxu0 %vm4470_vm0, %v4469_v0 }
  0x8a   :  { %v335_v29 = vpop.permute.xlu0 %334 }
  0x8b   :  { %3685 = vmatmul.mubr.msk.bf16.gmra.mrb[8].mxu1 %vm410_vm1, %v343_v22  ;;  %v4630_v30 = vpop.permute.xlu1 %313 }
  0x8c   :  { %3690 = vmatprep.mubr.msk.bf16.mxu1 %vm4470_vm0, %v4469_v0 }
  0x8e   :  { %v337_v31 = vpop.permute.xlu0 %336 }
  0x8f   :  { %3669 = vmatmul.mubr.msk.bf16.gmra.mrb[16].mxu0 %vm410_vm1, %v335_v29  ;;  %v4635_v32 = vpop.permute.xlu1 %315 }
  0x90   :  { %3672 = vmatprep.mubr.msk.bf16.mxu0 %vm4470_vm0, %v4469_v0 }
  0x92   :  { %v369_v33 = vpop.permute.xlu0 %368 }
  0x93   :  { %3691 = vmatmul.mubr.msk.bf16.vlgmr.msra.gmra.mrb[12].mxu1 %vm410_vm1, %v4545_v4  ;;  %v392_v34 = vunpack.c.l.bf16 %v369_v33  ;;  %v393_v35 = vunpack.c.h.bf16 %v369_v33  ;;  %v378_v37 = vpop.permute.xlu1 %377  ;;  %v4294_v4 = vld [vmem:[%s4604_s17 + $0x28] sm:$0xff]  }
  0x94   :  { %3694 = vmatprep.mubr.msk.bf16.mxu1 %vm4470_vm0, %v4469_v0  ;;  %v398_v38 = vunpack.c.l.bf16 %v378_v37  ;;  %v399_v39 = vunpack.c.h.bf16 %v378_v37  ;;  %3743 = vmatpush3.bf16.msra.mxu1 %v4297_v9  ;;  %v4307_v33 = vld [vmem:[%s4704_s21 + $0x28] sm:$0xff]   ;;  %v4311_v37 = vld [vmem:[%s4524_s9 + $0x10] ss:$8 sps:$4 sm:$0xff]  }
  0x95   :  { %v4224_v36 = vpack.i.bf16 %v393_v35, %v392_v34  ;;  %3744 = vmatprep.subr.bf16.mxu1 %v4469_v0  ;;  %v4308_v34 = vld [vmem:[%s4704_s21 + $0x30] sm:$0xff]   ;;  %v4309_v35 = vld [vmem:[%s4704_s21 + $0x38] sm:$0xff]  }
  0x96   :  { %v371_v40 = vpop.permute.xlu0 %370  ;;  %v4229_v43 = vpack.i.bf16 %v399_v39, %v398_v38  ;;  %v4313_v38 = vld [vmem:[%s4524_s9 + $0x20] ss:$8 sps:$4 sm:$0xff]  }
  0x97   :  { %3673 = vmatmul.mubr.msk.bf16.gmra.mrb[20].mxu0 %vm410_vm1, %v337_v31  ;;  %4225 = vperm.xlu1 %4223, %v4224_v36   ;;  %v394_v41 = vunpack.c.l.bf16 %v371_v40  ;;  %v395_v42 = vunpack.c.h.bf16 %v371_v40  ;;  %v380_v44 = vpop.permute.xlu1 %379  ;;  %v4275_v36 = vld [vmem:[%s4524_s9] ss:$8 sps:$4 sm:$0xff]   ;;  %v4283_v40 = vld [vmem:[%s4585_s29 + $0x10] ss:$0 sps:$4 sm:$0x11]   ;;  %s3280_s9 = sld [smem:[%s5531_s0 + %s4492_s20]]  }
  0x98   :  { %3730 = vmatprep.mubr.msk.bf16.mxu0 %vm4470_vm0, %v4469_v0  ;;  %v400_v46 = vunpack.c.l.bf16 %v380_v44  ;;  %v401_v47 = vunpack.c.h.bf16 %v380_v44  ;;  %3745 = vmatpush3.bf16.msra.mxu1 %v4299_v10  ;;  %v4310_v39 = vld [vmem:[%s4585_s29] sm:$0xff]  }
  0x99   :  { %v4239_v49 = vpack.i.bf16 %v395_v42, %v394_v41  ;;  %3746 = vmatprep.subr.bf16.mxu1 %v4469_v0  ;;  %v4312_v41 = vld [vmem:[%s4585_s29 + $0x8] sm:$0xff]   ;;  %v1256_v42 = vand.u32 %v4283_v40, %v1254_v15  ;;  %s3281_s29 = sld [smem:[%s5531_s0 + %s4494_s26]]  }
  0x9a   :  { %v373_v48 = vpop.permute.xlu0 %372  ;;  %v4244_v54 = vpack.i.bf16 %v401_v47, %v400_v46 }
  0x9b   :  { %3695 = vmatmul.mubr.msk.bf16.gmra.mrb[16].mxu1 %vm410_vm1, %v4549_v5  ;;  %4230 = vperm.xlu1 %4223, %v4229_v43   ;;  %v396_v51 = vunpack.c.l.bf16 %v373_v48  ;;  %v397_v52 = vunpack.c.h.bf16 %v373_v48  ;;  %v382_v56 = vpop.permute.xlu1 %381  ;;  %v4295_v5 = vld [vmem:[%s4599_s13 + $0x10] sm:$0xff]  }
  0x9c   :  { %3698 = vmatprep.mubr.msk.bf16.mxu1 %vm4470_vm0, %v4469_v0  ;;  %4245 = vperm.xlu0 %4217, %v4244_v54   ;;  %v402_v59 = vunpack.c.l.bf16 %v382_v56  ;;  %v403_v60 = vunpack.c.h.bf16 %v382_v56 }
  0x9d   :  { %v4254_v57 = vpack.i.bf16 %v397_v52, %v396_v51  ;;  %3747 = vmatpush3.bf16.msra.mxu1 %v4302_v23 }
  0x9e   :  { %v4259_v62 = vpack.i.bf16 %v403_v60, %v402_v59  ;;  %3748 = vmatprep.subr.bf16.mxu1 %v4469_v0 }
  0x9f   :  { %4240 = vperm.xlu1 %4223, %v4239_v49   ;;  %3731 = vmatmul.mubr.msk.bf16.vlgmr.msra.gmra.mrb[24].mxu0 %vm917_vm2, %v4287_v53  ;;  %v772_v49 = vlaneseq }
  0xa0   :  { %3771 = vmatpush3.bf16.msra.mxu0 %v4288_v55  ;;  %3734 = vmatprep.mubr.msk.bf16.mxu0 %vm4470_vm0, %v4469_v0  ;;  %v125_v55 = vld [vmem:[%s3268_s23] sm:$0x1] }
  0xa1   :  { %3772 = vmatprep.subr.bf16.mxu0 %v4469_v0  ;;  %4255 = vperm.xlu0 %4217, %v4254_v57   ;;  %v773_v53 = vshrl.u32 %v772_v49, 7 }
  0xa2   :  { %3749 = vmatpush3.bf16.msra.mxu1 %v4305_v27 }
  0xa3   :  { %3699 = vmatmul.mubr.msk.bf16.gmra.mrb[20].mxu1 %vm410_vm1, %v4553_v7  ;;  %4250 = vperm.xlu1 %4223, %v4249_v58   ;;  %v4298_v7 = vld [vmem:[%s4604_s17 + $0x38] sm:$0xff]  }
  0xa4   :  { %3702 = vmatprep.mubr.msk.bf16.mxu1 %vm4470_vm0, %v4469_v0  ;;  %3773 = vmatpush3.bf16.msra.mxu0 %v4289_v61  ;;  %v681_v61 = vunpack.c.l.bf16 %v125_v55 }
  0xa5   :  { %3774 = vmatprep.subr.bf16.mxu0 %v4469_v0  ;;  %3750 = vmatprep.subr.bf16.mxu1 %v4469_v0 }
  0xa7   :  { %4260 = vperm.xlu1 %4223, %v4259_v62   ;;  %3735 = vmatmul.mubr.msk.bf16.gmra.mrb[28].mxu0 %vm917_vm2, %v4292_v63  ;;  %v774_v62 = vsub.s32 0, %v773_v53 }
  0xa8   :  { %3775 = vmatpush3.bf16.msra.mxu0 %v4290_v1  ;;  %3738 = vmatprep.mubr.msk.bf16.mxu0 %vm4470_vm0, %v4469_v0 }
  0xa9   :  { %3776 = vmatprep.subr.bf16.mxu0 %v4469_v0 }
  0xab   :  { %3703 = vmatmul.mubr.msk.bf16.gmra.mrb[24].mxu1 %vm410_vm1, %v4613_v24  ;;  %v4220_v1 = vpop.permute.xlu0 %4219 }
  0xac   :  { %3706 = vmatprep.mubr.msk.bf16.mxu1 %vm4470_vm0, %v4469_v0  ;;  %3777 = vmatpush3.bf16.msra.mxu0 %v4291_v2 }
  0xad   :  { %3778 = vmatprep.subr.bf16.mxu0 %v4469_v0 }
  0xaf   :  { %3739 = vmatmul.mubr.msk.bf16.gmra.mrb[32].mxu0 %vm917_vm2, %v4295_v5  ;;  %v4222_v5 = vunpack.i.h.bf16 %v4220_v1 }
  0xb0   :  { %3779 = vmatpush3.bf16.msra.mxu0 %v4293_v3  ;;  %3786 = vmatprep.mubr.msk.bf16.mxu0 %vm4470_vm0, %v4469_v0 }
  0xb1   :  { %3780 = vmatprep.subr.bf16.mxu0 %v4469_v0 }
  0xb3   :  { %3707 = vmatmul.mubr.msk.bf16.gmra.mrb[28].mxu1 %vm410_vm1, %v4615_v25 }
  0xb4   :  { %3710 = vmatprep.mubr.msk.bf16.mxu1 %vm4470_vm0, %v4469_v0  ;;  %3781 = vmatpush3.bf16.msra.mxu0 %v4294_v4  ;;  %v4793_v4 = vrot.slane %v681_v61, %v774_v62 }
  0xb5   :  { %3782 = vmatprep.subr.bf16.mxu0 %v4469_v0 }
  0xb8   :  { %3783 = vmatpush3.bf16.msra.mxu0 %v4296_v6  ;;  %v4221_v6 = vunpack.i.l.bf16 %v4220_v1 }
  0xb9   :  { %3784 = vmatprep.subr.bf16.mxu0 %v4469_v0 }
  0xba   :  { %v776_v14 = vmul.f32 %v4221_v6, %v4793_v4 }
  0xbb   :  { %3711 = vmatmul.mubr.msk.bf16.gmra.mrb[32].mxu1 %vm410_vm1, %v4620_v26 }
  0xbc   :  { %3714 = vmatprep.mubr.msk.bf16.mxu1 %vm4470_vm0, %v4469_v0  ;;  %3785 = vmatpush3.bf16.msra.mxu0 %v4298_v7 }
  0xbd   :  { %3844 = vmatprep.subr.bf16.mxu0 %v4469_v0 }
  0xbf   :  { %3787 = vmatmul.mubr.bf16.vlgmr.msra.gmra.mrb[36].mxu0 %v4266_v8 }
  0xc0   :  { %3790 = vmatprep.mubr.msk.bf16.mxu0 %vm4470_vm0, %v4469_v0  ;;  %3845 = vmatpush3.bf16.msra.mxu0 %v4301_v12  ;;  %v777_v12 = vmul.f32 %v4222_v5, %v4793_v4 }
  0xc1   :  { %3846 = vmatprep.subr.bf16.mxu0 %v4469_v0 }
  0xc3   :  { %3715 = vmatmul.mubr.msk.bf16.gmra.mrb[36].mxu1 %vm410_vm1, %v4625_v28 }
  0xc4   :  { %3718 = vmatprep.mubr.msk.bf16.mxu1 %vm4470_vm0, %v4469_v0  ;;  %3847 = vmatpush3.bf16.msra.mxu0 %v4304_v17 }
  0xc5   :  { %3848 = vmatprep.subr.bf16.mxu0 %v4469_v0 }
  0xc7   :  { %3791 = vmatmul.mubr.bf16.gmra.mrb[40].mxu0 %v4300_v11 }
  0xc8   :  { %3794 = vmatprep.mubr.msk.bf16.mxu0 %vm4470_vm0, %v4469_v0  ;;  %3849 = vmatpush3.bf16.msra.mxu0 %v1535_v19  ;;  %v4236_v19 = vpop.permute.xlu0 %4235 }
  0xc9   :  { %3924 = vmatprep.subr.bf16.mxu0 %v4469_v0 }
  0xcb   :  { %3719 = vmatmul.mubr.msk.bf16.gmra.mrb[40].mxu1 %vm410_vm1, %v4630_v30 }
  0xcc   :  { %3722 = vmatprep.mubr.msk.bf16.mxu1 %vm4470_vm0, %v4469_v0 }
  0xcf   :  { %3795 = vmatmul.mubr.bf16.gmra.mrb[44].mxu0 %v4303_v16 }
  0xd0   :  { %3850 = vmatprep.mubr.msk.bf16.mxu0 %vm4470_vm0, %v4469_v0 }
  0xd3   :  { %3723 = vmatmul.mubr.msk.bf16.gmra.mrb[44].mxu1 %vm410_vm1, %v4635_v32  ;;  %v4306_v32 = vld [vmem:[%s4704_s21 + $0x20] sm:$0xff]  }
  0xd4   :  { %3758 = vmatprep.mubr.msk.bf16.mxu1 %vm4470_vm0, %v4469_v0  ;;  %3751 = vmatpush3.bf16.msra.mxu1 %v4306_v32 }
  0xd5   :  { %3752 = vmatprep.subr.bf16.mxu1 %v4469_v0 }
  0xd8   :  { %3753 = vmatpush3.bf16.msra.mxu1 %v4307_v33 }
  0xd9   :  { %3754 = vmatprep.subr.bf16.mxu1 %v4469_v0 }
  0xdc   :  { %3755 = vmatpush3.bf16.msra.mxu1 %v4308_v34 }
  0xdd   :  { %3756 = vmatprep.subr.bf16.mxu1 %v4469_v0 }
  0xe0   :  { %3757 = vmatpush3.bf16.msra.mxu1 %v4309_v35 }
  0xe1   :  { %v4727_v18 = vpop.f32.mrb[0].mxu0  ;;  %3798 = vmatprep.subr.bf16.mxu1 %v4469_v0 }
  0xe2   :  { %v3654_v20 = vpop.f32.mrb[1].mxu0 }
  0xe3   :  { %v4731_v21 = vpop.f32.mrb[2].mxu0  ;;  %3759 = vmatmul.mubr.bf16.vlgmr.msra.gmra.mrb[48].mxu1 %v4275_v36 }
  0xe4   :  { %v3655_v22 = vpop.f32.mrb[3].mxu0  ;;  %3762 = vmatprep.mubr.msk.bf16.mxu1 %vm4470_vm0, %v4469_v0  ;;  %3799 = vmatpush3.bf16.msra.mxu1 %v4310_v39 }
  0xe5   :  { %3800 = vmatprep.subr.bf16.mxu1 %v4469_v0 }
  0xe8   :  { %3801 = vmatpush3.bf16.msra.mxu1 %v4312_v41 }
  0xe9   :  { %v4737_v13 = vpop.f32.mrb[4].mxu0  ;;  %3802 = vmatprep.subr.bf16.mxu1 %v4469_v0 }
  0xea   :  { %v3658_v24 = vpop.f32.mrb[5].mxu0 }
  0xeb   :  { %v4739_v25 = vpop.f32.mrb[6].mxu0  ;;  %3763 = vmatmul.mubr.bf16.gmra.mrb[52].mxu1 %v4311_v37 }
  0xec   :  { %v3659_v26 = vpop.f32.mrb[7].mxu0  ;;  %3766 = vmatprep.mubr.msk.bf16.mxu1 %vm4470_vm0, %v4469_v0  ;;  %3803 = vmatpush3.bf16.msra.mxu1 %v1256_v42 }
  0xed   :  { %3816 = vmatprep.subr.bf16.mxu1 %v4469_v0 }
  0xf1   :  { %v4743_v28 = vpop.f32.mrb[8].mxu0 }
  0xf2   :  { %v3662_v29 = vpop.f32.mrb[9].mxu0 }
  0xf3   :  { %v4745_v30 = vpop.f32.mrb[10].mxu0  ;;  %3767 = vmatmul.mubr.bf16.gmra.mrb[56].mxu1 %v4313_v38  ;;  %v4238_v29 = vunpack.i.h.bf16 %v4236_v19 }
  0xf4   :  { %v3663_v31 = vpop.f32.mrb[11].mxu0  ;;  %3804 = vmatprep.mubr.msk.bf16.mxu1 %vm4470_vm0, %v4469_v0 }
  0xf5   :  { %v4237_v31 = vunpack.i.l.bf16 %v4236_v19 }
  0xf7   :  { %v778_v36 = vmul.f32 %v4237_v31, %v4793_v4 }
 0x116   :  { %v4787_v59 = vpop.permute.xlu1 %4225 }
 0x11a   :  { %v4795_v8 = vpop.permute.xlu1 %4230 }
 0x11e   :  { %v4803_v23 = vpop.permute.xlu1 %4240 }
 0x122   :  { %v4251_v40 = vpop.permute.xlu1 %4250 }
 0x123   :  { %v4253_v49 = vunpack.i.h.bf16 %v4251_v40 }
 0x14e   :  { %v4770_v43 = vpop.f32.mrb[0].mxu1 }
 0x14f   :  { %v3678_v44 = vpop.f32.mrb[1].mxu1 }
 0x150   :  { %v4772_v45 = vpop.f32.mrb[2].mxu1 }
 0x151   :  { %v3679_v46 = vpop.f32.mrb[3].mxu1 }
 0x156   :  { %v4777_v47 = vpop.f32.mrb[4].mxu1 }
 0x157   :  { %v3682_v48 = vpop.f32.mrb[5].mxu1 }
 0x158   :  { %v4779_v50 = vpop.f32.mrb[6].mxu1 }
 0x159   :  { %v3683_v51 = vpop.f32.mrb[7].mxu1 }
 0x15a   :  { %v4781_v52 = vpop.f32.mrb[12].mxu0  ;;  %v4252_v51 = vunpack.i.l.bf16 %v4251_v40 }
 0x15b   :  { %v3666_v54 = vpop.f32.mrb[13].mxu0 }
 0x15c   :  { %v4783_v56 = vpop.f32.mrb[14].mxu0  ;;  %v780_v61 = vmul.f32 %v4252_v51, %v4793_v4 }
 0x15d   :  { %v3667_v57 = vpop.f32.mrb[15].mxu0 }
 0x15e   :  { %v4785_v58 = vpop.f32.mrb[8].mxu1 }
 0x15f   :  { %v3686_v60 = vpop.f32.mrb[9].mxu1 }
 0x160   :  { %v4789_v63 = vpop.f32.mrb[10].mxu1  ;;  %v781_v60 = vmul.f32 %v4253_v49, %v4793_v4 }
 0x161   :  { %v3687_v2 = vpop.f32.mrb[11].mxu1 }
 0x162   :  { %v4791_v3 = vpop.f32.mrb[16].mxu0  ;;  %v4227_v2 = vunpack.i.l.bf16 %v4787_v59 }
 0x163   :  { %v3670_v7 = vpop.f32.mrb[17].mxu0 }
 0x164   :  { %v4797_v9 = vpop.f32.mrb[18].mxu0 }
 0x165   :  { %v3671_v10 = vpop.f32.mrb[19].mxu0 }
 0x166   :  { %v610_v11 = vpop.f32.mrb[12].mxu1  ;;  %v4228_v10 = vunpack.i.h.bf16 %v4787_v59  ;;  %v4846_v59 = vpop.permute.xlu0 %4245 }
 0x167   :  { %v611_v15 = vadd.f32 %v610_v11, %v4727_v18  ;;  %v3692_v16 = vpop.f32.mrb[13].mxu1 }
 0x168   :  { %v613_v17 = vpop.f32.mrb[14].mxu1 }
 0x169   :  { %v614_v20 = vadd.f32 %v613_v17, %v4731_v21  ;;  %v3693_v22 = vpop.f32.mrb[15].mxu1  ;;  %v794_v26 = vadd.f32 %v776_v14, %v611_v15  ;;  %v779_v21 = vmul.f32 %v4238_v29, %v4793_v4  ;;  %v782_v15 = vmul.f32 %v4227_v2, %v4793_v4 }
 0x16a   :  { %v4805_v24 = vpop.f32.mrb[20].mxu0  ;;  %v4242_v29 = vunpack.i.l.bf16 %v4803_v23 }
 0x16b   :  { %v4807_v27 = vadd.f32 %v777_v12, %v614_v20  ;;  %v3674_v32 = vpop.f32.mrb[21].mxu0  ;;  %v783_v20 = vmul.f32 %v4228_v10, %v4793_v4 }
 0x16c   :  { %v4809_v33 = vpop.f32.mrb[22].mxu0 }
 0x16d   :  { %v1483_v18 = vpack.c.bf16 %v4807_v27, %v794_v26  ;;  %v3675_v34 = vpop.f32.mrb[23].mxu0 }
 0x16e   :  { %v618_v35 = vpop.f32.mrb[16].mxu1 }
 0x16f   :  { %v619_v37 = vadd.f32 %v618_v35, %v4737_v13  ;;  %v3696_v38 = vpop.f32.mrb[17].mxu1  ;;  %3851 = vmatmul.mubr.msk.bf16.vlgmr.msra.gmra.mrb[48].mxu0 %vm1242_vm4, %v1483_v18  ;;  %v812_v35 = vmul.f32 %v794_v26, %v794_v26 }
 0x170   :  { %v621_v39 = vpop.f32.mrb[18].mxu1  ;;  %3854 = vmatprep.mubr.msk.bf16.mxu0 %vm4470_vm0, %v4469_v0  ;;  %v813_v38 = vmul.f32 %v4807_v27, %v4807_v27 }
 0x171   :  { %v622_v41 = vadd.f32 %v621_v39, %v4739_v25  ;;  %v3697_v42 = vpop.f32.mrb[19].mxu1  ;;  %v796_v46 = vadd.f32 %v778_v36, %v619_v37  ;;  %v784_v37 = vmul.f32 %v4242_v29, %v4793_v4 }
 0x172   :  { %v4819_v44 = vpop.f32.mrb[24].mxu0  ;;  %v4256_v42 = vpop.permute.xlu0 %4255 }
 0x173   :  { %v4821_v48 = vadd.f32 %v779_v21, %v622_v41  ;;  %v3732_v53 = vpop.f32.mrb[25].mxu0  ;;  %v4243_v21 = vunpack.i.h.bf16 %v4803_v23 }
 0x174   :  { %v4823_v13 = vpop.f32.mrb[26].mxu0 }
 0x175   :  { %v1484_v54 = vpack.c.bf16 %v4821_v48, %v796_v46  ;;  %v3733_v55 = vpop.f32.mrb[27].mxu0  ;;  %v785_v51 = vmul.f32 %v4243_v21, %v4793_v4 }
 0x176   :  { %v626_v57 = vpop.f32.mrb[20].mxu1 }
 0x177   :  { %v627_v25 = vadd.f32 %v626_v57, %v4743_v28  ;;  %v3700_v62 = vpop.f32.mrb[21].mxu1  ;;  %3855 = vmatmul.mubr.msk.bf16.gmra.mrb[52].mxu0 %vm1242_vm4, %v1484_v54  ;;  %v4257_v54 = vunpack.i.l.bf16 %v4256_v42 }
 0x178   :  { %v629_v1 = vpop.f32.mrb[22].mxu1  ;;  %3858 = vmatprep.mubr.msk.bf16.mxu0 %vm4470_vm0, %v4469_v0  ;;  %v4258_v62 = vunpack.i.h.bf16 %v4256_v42 }
 0x179   :  { %v630_v5 = vadd.f32 %v629_v1, %v4745_v30  ;;  %v3701_v6 = vpop.f32.mrb[23].mxu1  ;;  %v798_v11 = vadd.f32 %v780_v61, %v627_v25  ;;  %v786_v1 = vmul.f32 %v4257_v54, %v4793_v4 }
 0x17a   :  { %v4834_v7 = vpop.f32.mrb[28].mxu0 }
 0x17b   :  { %v4837_v12 = vadd.f32 %v781_v60, %v630_v5  ;;  %v3736_v28 = vpop.f32.mrb[29].mxu0  ;;  %v814_v60 = vmul.f32 %v796_v46, %v796_v46 }
 0x17c   :  { %v4839_v14 = vpop.f32.mrb[30].mxu0 }
 0x17d   :  { %v1485_v16 = vpack.c.bf16 %v4837_v12, %v798_v11  ;;  %v3737_v17 = vpop.f32.mrb[31].mxu0 }
 0x17e   :  { %v634_v19 = vpop.f32.mrb[24].mxu1 }
 0x17f   :  { %v635_v30 = vadd.f32 %v634_v19, %v4781_v52  ;;  %v3704_v22 = vpop.f32.mrb[25].mxu1  ;;  %3859 = vmatmul.mubr.msk.bf16.gmra.mrb[56].mxu0 %vm1242_vm4, %v1485_v16 }
 0x180   :  { %v637_v31 = vpop.f32.mrb[26].mxu1  ;;  %3862 = vmatprep.mubr.msk.bf16.mxu0 %vm4470_vm0, %v4469_v0 }
 0x181   :  { %v800_v32 = vadd.f32 %v782_v15, %v635_v30  ;;  %v638_v18 = vadd.f32 %v637_v31, %v4783_v56  ;;  %v3705_v34 = vpop.f32.mrb[27].mxu1  ;;  %v787_v15 = vmul.f32 %v4258_v62, %v4793_v4  ;;  %v816_v30 = vmul.f32 %v798_v11, %v798_v11 }
 0x182   :  { %v4233_v31 = vunpack.i.h.bf16 %v4795_v8 }
 0x183   :  { %v818_v36 = vmul.f32 %v800_v32, %v800_v32  ;;  %v801_v52 = vadd.f32 %v783_v20, %v638_v18  ;;  %v4232_v20 = vunpack.i.l.bf16 %v4795_v8 }
 0x184   :  { %v789_v8 = vmul.f32 %v4233_v31, %v4793_v4 }
 0x185   :  { %v824_v39 = vadd.f32 %v818_v36, %v812_v35  ;;  %v819_v40 = vmul.f32 %v801_v52, %v801_v52  ;;  %v1486_v41 = vpack.c.bf16 %v801_v52, %v800_v32  ;;  %v788_v21 = vmul.f32 %v4232_v20, %v4793_v4 }
 0x186   :  { %v642_v49 = vpop.f32.mrb[28].mxu1 }
 0x187   :  { %v825_v53 = vadd.f32 %v819_v40, %v813_v38  ;;  %v643_v56 = vadd.f32 %v642_v49, %v4791_v3  ;;  %v3708_v26 = vpop.f32.mrb[29].mxu1  ;;  %3863 = vmatmul.mubr.msk.bf16.gmra.mrb[60].mxu0 %vm1242_vm4, %v1486_v41  ;;  %v815_v3 = vmul.f32 %v4821_v48, %v4821_v48  ;;  %v4247_v40 = vunpack.i.l.bf16 %v4846_v59 }
 0x188   :  { %v645_v23 = vpop.f32.mrb[30].mxu1  ;;  %3866 = vmatprep.mubr.msk.bf16.mxu0 %vm4470_vm0, %v4469_v0  ;;  %v4248_v49 = vunpack.i.h.bf16 %v4846_v59 }
 0x189   :  { %v802_v55 = vadd.f32 %v784_v37, %v643_v56  ;;  %v646_v27 = vadd.f32 %v645_v23, %v4797_v9  ;;  %v3709_v57 = vpop.f32.mrb[31].mxu1  ;;  %v790_v23 = vmul.f32 %v4247_v40, %v4793_v4 }
 0x18b   :  { %v820_v61 = vmul.f32 %v802_v55, %v802_v55  ;;  %v803_v25 = vadd.f32 %v785_v51, %v646_v27 }
 0x18d   :  { %v4865_v2 = vadd.f32 %v820_v61, %v814_v60  ;;  %v821_v5 = vmul.f32 %v803_v25, %v803_v25  ;;  %v1487_v6 = vpack.c.bf16 %v803_v25, %v802_v55  ;;  %v4261_v60 = vpop.permute.xlu1 %4260 }
 0x18e   :  { %v650_v10 = vpop.f32.mrb[32].mxu1 }
 0x18f   :  { %v4867_v28 = vadd.f32 %v821_v5, %v815_v3  ;;  %v651_v9 = vadd.f32 %v650_v10, %v4805_v24  ;;  %v3712_v46 = vpop.f32.mrb[33].mxu1  ;;  %3867 = vmatmul.mubr.msk.bf16.gmra.mrb[64].mxu0 %vm1242_vm4, %v1487_v6  ;;  %v817_v24 = vmul.f32 %v4837_v12, %v4837_v12  ;;  %v4263_v6 = vunpack.i.h.bf16 %v4261_v60 }
 0x190   :  { %v653_v16 = vpop.f32.mrb[34].mxu1  ;;  %3870 = vmatprep.mubr.msk.bf16.mxu0 %vm4470_vm0, %v4469_v0 }
 0x191   :  { %v804_v17 = vadd.f32 %v786_v1, %v651_v9  ;;  %v654_v48 = vadd.f32 %v653_v16, %v4809_v33  ;;  %v3713_v19 = vpop.f32.mrb[35].mxu1 }
 0x193   :  { %v822_v22 = vmul.f32 %v804_v17, %v804_v17  ;;  %v805_v29 = vadd.f32 %v787_v15, %v654_v48 }
 0x195   :  { %v4879_v32 = vadd.f32 %v822_v22, %v816_v30  ;;  %v823_v18 = vmul.f32 %v805_v29, %v805_v29  ;;  %v1488_v34 = vpack.c.bf16 %v805_v29, %v804_v17  ;;  %v793_v22 = vmul.f32 %v4263_v6, %v4793_v4 }
 0x196   :  { %v658_v35 = vpop.f32.mrb[36].mxu1 }
 0x197   :  { %v4882_v36 = vadd.f32 %v823_v18, %v817_v24  ;;  %v659_v33 = vadd.f32 %v658_v35, %v4770_v43  ;;  %v3716_v52 = vpop.f32.mrb[37].mxu1  ;;  %3871 = vmatmul.mubr.msk.bf16.gmra.mrb[68].mxu0 %vm1242_vm4, %v1488_v34 }
 0x198   :  { %v661_v11 = vpop.f32.mrb[38].mxu1  ;;  %3874 = vmatprep.mubr.msk.bf16.mxu0 %vm4470_vm0, %v4469_v0 }
 0x199   :  { %v806_v12 = vadd.f32 %v788_v21, %v659_v33  ;;  %v662_v37 = vadd.f32 %v661_v11, %v4772_v45  ;;  %v3717_v38 = vpop.f32.mrb[39].mxu1  ;;  %v791_v45 = vmul.f32 %v4248_v49, %v4793_v4 }
 0x19b   :  { %v830_v41 = vmul.f32 %v806_v12, %v806_v12  ;;  %v807_v42 = vadd.f32 %v789_v8, %v662_v37 }
 0x19d   :  { %v836_v43 = vadd.f32 %v830_v41, %v824_v39  ;;  %v831_v51 = vmul.f32 %v807_v42, %v807_v42  ;;  %v1489_v56 = vpack.c.bf16 %v807_v42, %v806_v12 }
 0x19e   :  { %v666_v26 = vpop.f32.mrb[40].mxu1 }
 0x19f   :  { %v4893_v54 = vmax.f32 %v836_v43, 1e-08  ;;  %v837_v55 = vadd.f32 %v831_v51, %v825_v53  ;;  %v667_v27 = vadd.f32 %v666_v26, %v4777_v47  ;;  %v3720_v57 = vpop.f32.mrb[41].mxu1  ;;  %3875 = vmatmul.mubr.msk.bf16.gmra.mrb[72].mxu0 %vm1242_vm4, %v1489_v56  ;;  %v4902_v53 = vpop.f32.mrb[32].mxu0  ;;  %v4262_v47 = vunpack.i.l.bf16 %v4261_v60 }
 0x1a0   :  { %v669_v61 = vpop.f32.mrb[42].mxu1  ;;  %3878 = vmatprep.mubr.msk.bf16.mxu0 %vm4470_vm0, %v4469_v0  ;;  %v3740_v5 = vpop.f32.mrb[33].mxu0 }
 0x1a1   :  { %4360 = vrsqrt.f32 %v4893_v54  ;;  %v843_v59 = vmax.f32 %v837_v55, 1e-08  ;;  %v808_v39 = vadd.f32 %v790_v23, %v667_v27  ;;  %v670_v25 = vadd.f32 %v669_v61, %v4779_v50  ;;  %v3721_v62 = vpop.f32.mrb[43].mxu1  ;;  %v4904_v10 = vpop.f32.mrb[34].mxu0 }
 0x1a2   :  { %v3741_v16 = vpop.f32.mrb[35].mxu0  ;;  %v792_v48 = vmul.f32 %v4262_v47, %v4793_v4  ;;  %vm850_vm5 = vcmp.eq.f32.partialorder %v4893_v54, inf  ;;  %v853_v40 = vand.u32 2147483648, %v4893_v54  ;;  %vm852_vm7 = vcmp.eq.f32.partialorder %v4893_v54, 0.0 }
 0x1a3   :  { %4362 = vrsqrt.f32 %v843_v59  ;;  %v832_v1 = vmul.f32 %v808_v39, %v808_v39  ;;  %v809_v3 = vadd.f32 %v791_v45, %v670_v25  ;;  %v4918_v34 = vpop.f32.mrb[36].mxu0  ;;  %vm857_vm6 = vcmp.eq.f32.partialorder %v843_v59, inf }
 0x1a4   :  { %v3788_v21 = vpop.f32.mrb[37].mxu0  ;;  %v860_v49 = vand.u32 2147483648, %v843_v59  ;;  %vm859_vm8 = vcmp.eq.f32.partialorder %v843_v59, 0.0 }
 0x1a5   :  { %v838_v15 = vadd.f32 %v832_v1, %v4865_v2  ;;  %v833_v9 = vmul.f32 %v809_v3, %v809_v3  ;;  %v1490_v46 = vpack.c.bf16 %v809_v3, %v808_v39  ;;  %v4921_v33 = vpop.f32.mrb[38].mxu0 }
 0x1a6   :  { %v674_v17 = vpop.f32.mrb[44].mxu1 }
 0x1a7   :  { %v4908_v50 = vmax.f32 %v838_v15, 1e-08  ;;  %v839_v19 = vadd.f32 %v833_v9, %v4867_v28  ;;  %v675_v20 = vadd.f32 %v674_v17, %v4785_v58  ;;  %v3724_v30 = vpop.f32.mrb[45].mxu1  ;;  %3879 = vmatmul.mubr.msk.bf16.gmra.mrb[76].mxu0 %vm1242_vm4, %v1490_v46 }
 0x1a8   :  { %v677_v29 = vpop.f32.mrb[46].mxu1  ;;  %3882 = vmatprep.mubr.msk.bf16.mxu0 %vm4470_vm0, %v4469_v0 }
 0x1a9   :  { %4364 = vrsqrt.f32 %v4908_v50  ;;  %v845_v2 = vmax.f32 %v839_v19, 1e-08  ;;  %v810_v31 = vadd.f32 %v792_v48, %v675_v20  ;;  %v678_v24 = vadd.f32 %v677_v29, %v4789_v63  ;;  %v3725_v18 = vpop.f32.mrb[47].mxu1  ;;  %v3789_v63 = vpop.f32.mrb[39].mxu0 }
 0x1aa   :  { %v4932_v23 = vpop.f32.mrb[40].mxu0  ;;  %vm864_vm9 = vcmp.eq.f32.partialorder %v4908_v50, inf  ;;  %vm866_vm11 = vcmp.eq.f32.partialorder %v4908_v50, 0.0  ;;  %v4316_v63 = vld [vmem:[%s4955_s27 + $0x10] sm:$0xff]  }
 0x1ab   :  { %v4361_v28 = vpop.eup %4360  ;;  %4366 = vrsqrt.f32 %v845_v2  ;;  %v834_v58 = vmul.f32 %v810_v31, %v810_v31  ;;  %v811_v35 = vadd.f32 %v793_v22, %v678_v24  ;;  %vm871_vm10 = vcmp.eq.f32.partialorder %v845_v2, inf }
 0x1ac   :  { %v849_v4 = vmul.f32 %v4361_v28, %v4893_v54  ;;  %v874_v39 = vand.u32 2147483648, %v845_v2  ;;  %vm873_vm12 = vcmp.eq.f32.partialorder %v845_v2, 0.0 }
 0x1ad   :  { %v4363_v52 = vpop.eup %4362  ;;  %v840_v11 = vadd.f32 %v834_v58, %v4879_v32  ;;  %v835_v8 = vmul.f32 %v811_v35, %v811_v35  ;;  %v1491_v12 = vpack.c.bf16 %v811_v35, %v810_v31 }
 0x1ae   :  { %v856_v37 = vmul.f32 %v4363_v52, %v843_v59  ;;  %v851_v38 = vsel %vm850_vm5, %v4893_v54, %v849_v4 }
 0x1af   :  { %v846_v41 = vmax.f32 %v840_v11, 1e-08  ;;  %v841_v42 = vadd.f32 %v835_v8, %v4882_v36  ;;  %3883 = vmatmul.mubr.msk.bf16.gmra.mrb[80].mxu0 %vm1242_vm4, %v1491_v12  ;;  %v854_v51 = vsel %vm852_vm7, %v853_v40, %v851_v38  ;;  %v3792_v36 = vpop.f32.mrb[41].mxu0  ;;  %v4315_v11 = vld [vmem:[%s4955_s27 + $0x8] sm:$0xff]   ;;  %v4317_v40 = vld [vmem:[%s4955_s27 + $0x18] sm:$0xff]  }
 0x1b0   :  { %v858_v32 = vsel %vm857_vm6, %v843_v59, %v856_v37  ;;  %3926 = vmatprep.mubr.msk.bf16.mxu0 %vm4470_vm0, %v4469_v0  ;;  %v4936_v54 = vpop.f32.mrb[42].mxu0  ;;  %v867_v59 = vand.u32 2147483648, %v4908_v50 }
 0x1b1   :  { %4368 = vrsqrt.f32 %v846_v41  ;;  %v847_v43 = vmax.f32 %v841_v42, 1e-08  ;;  %v861_v56 = vsel %vm859_vm8, %v860_v49, %v858_v32  ;;  %v3793_v45 = vpop.f32.mrb[43].mxu0  ;;  %vm878_vm13 = vcmp.eq.f32.partialorder %v846_v41, inf  ;;  %v4318_v32 = vld [vmem:[%s4955_s27 + $0x20] sm:$0xff]  }
 0x1b2   :  { %v1224_v26 = vpack.c.bf16 %v861_v56, %v854_v51  ;;  %v1211_v3 = vpop.f32.mrb[44].mxu0  ;;  %vm880_vm15 = vcmp.eq.f32.partialorder %v846_v41, 0.0  ;;  %v4320_v56 = vld [vmem:[%s4955_s27 + $0x30] sm:$0xff]  }
 0x1b3   :  { %v4365_v55 = vpop.eup %4364  ;;  %4370 = vrsqrt.f32 %v847_v43  ;;  %v3796_v6 = vpop.f32.mrb[45].mxu0  ;;  %vm885_vm14 = vcmp.eq.f32.partialorder %v847_v43, inf  ;;  %v888_v19 = vand.u32 2147483648, %v847_v43  ;;  %vm887_vm3 = vcmp.eq.f32.partialorder %v847_v43, 0.0 }
 0x1b4   :  { %3805 = vmatmul.mubr.msk.bf16.vlgmr.msra.gmra.mrb[60].mxu1 %vm1242_vm4, %v1224_v26  ;;  %v863_v27 = vmul.f32 %v4365_v55, %v4908_v50  ;;  %v1214_v9 = vpop.f32.mrb[46].mxu0 }
 0x1b5   :  { %v4367_v57 = vpop.eup %4366  ;;  %3808 = vmatprep.mubr.msk.bf16.mxu1 %vm4470_vm0, %v4469_v0  ;;  %v3797_v16 = vpop.f32.mrb[47].mxu0 }
 0x1b6   :  { %v865_v60 = vsel %vm864_vm9, %v4908_v50, %v863_v27  ;;  %v870_v61 = vmul.f32 %v4367_v57, %v845_v2  ;;  %v881_v50 = vand.u32 2147483648, %v846_v41 }
 0x1b7   :  { %v868_v62 = vsel %vm866_vm11, %v867_v59, %v865_v60 }
 0x1b8   :  { %v872_v25 = vsel %vm871_vm10, %v845_v2, %v870_v61  ;;  %v1078_v2 = vpop.f32.mrb[48].mxu1 }
 0x1b9   :  { %v875_v47 = vsel %vm873_vm12, %v874_v39, %v872_v25  ;;  %v1079_v31 = vadd.f32 %v1078_v2, %v4819_v44  ;;  %v3760_v24 = vpop.f32.mrb[49].mxu1  ;;  %v4314_v44 = vld [vmem:[%s4955_s27] sm:$0xff]  }
 0x1ba   :  { %v1225_v1 = vpack.c.bf16 %v875_v47, %v868_v62  ;;  %v1081_v18 = vpop.f32.mrb[50].mxu1  ;;  %3817 = vmatpush3.bf16.msra.mxu1 %v4314_v44 }
 0x1bb   :  { %v4369_v5 = vpop.eup %4368  ;;  %v1082_v28 = vadd.f32 %v1081_v18, %v4823_v13  ;;  %v3761_v58 = vpop.f32.mrb[51].mxu1  ;;  %v4958_v35 = vadd.f32 %v4918_v34, %v1079_v31  ;;  %3818 = vmatprep.subr.bf16.mxu1 %v4469_v0 }
 0x1bc   :  { %3809 = vmatmul.mubr.msk.bf16.gmra.mrb[64].mxu1 %vm1242_vm4, %v1225_v1  ;;  %v877_v15 = vmul.f32 %v4369_v5, %v846_v41  ;;  %v3358_v58 = vld [vmem:[%s3274_s1] ss:$0 sm:$0xff] }
 0x1bd   :  { %v4371_v46 = vpop.eup %4370  ;;  %3812 = vmatprep.mubr.msk.bf16.mxu1 %vm4470_vm0, %v4469_v0  ;;  %v4961_v21 = vadd.f32 %v4921_v33, %v1082_v28 }
 0x1be   :  { %v879_v17 = vsel %vm878_vm13, %v846_v41, %v877_v15  ;;  %v884_v48 = vmul.f32 %v4371_v46, %v847_v43  ;;  %v1086_v4 = vpop.f32.mrb[52].mxu1  ;;  %3819 = vmatpush3.bf16.msra.mxu1 %v4315_v11 }
 0x1bf   :  { %v882_v30 = vsel %vm880_vm15, %v881_v50, %v879_v17  ;;  %v1087_v13 = vadd.f32 %v1086_v4, %v4834_v7  ;;  %v3764_v52 = vpop.f32.mrb[53].mxu1  ;;  %3820 = vmatprep.subr.bf16.mxu1 %v4469_v0 }
 0x1c0   :  { %v886_v20 = vsel %vm885_vm14, %v847_v43, %v884_v48  ;;  %v1089_v8 = vpop.f32.mrb[54].mxu1 }
 0x1c1   :  { %v889_v22 = vsel %vm887_vm3, %v888_v19, %v886_v20  ;;  %v1090_v12 = vadd.f32 %v1089_v8, %v4839_v14  ;;  %v3765_v34 = vpop.f32.mrb[55].mxu1  ;;  %v4971_v33 = vadd.f32 %v4932_v23, %v1087_v13 }
 0x1c2   :  { %v1226_v29 = vpack.c.bf16 %v889_v22, %v882_v30  ;;  %3821 = vmatpush3.bf16.msra.mxu1 %v4316_v63 }
 0x1c3   :  { %v4974_v37 = vadd.f32 %v4936_v54, %v1090_v12  ;;  %3822 = vmatprep.subr.bf16.mxu1 %v4469_v0 }
 0x1c4   :  { %3813 = vmatmul.mubr.msk.bf16.gmra.mrb[68].mxu1 %vm1242_vm4, %v1226_v29 }
 0x1c5   :  { %3832 = vmatprep.mubr.msk.bf16.mxu1 %vm4470_vm0, %v4469_v0 }
 0x1c6   :  { %v1094_v7 = vpop.f32.mrb[56].mxu1  ;;  %3823 = vmatpush3.bf16.msra.mxu1 %v4317_v40 }
 0x1c7   :  { %v1095_v38 = vadd.f32 %v1094_v7, %v4902_v53  ;;  %v3768_v14 = vpop.f32.mrb[57].mxu1  ;;  %3824 = vmatprep.subr.bf16.mxu1 %v4469_v0  ;;  %v4319_v53 = vld [vmem:[%s4955_s27 + $0x28] sm:$0xff]  }
 0x1c8   :  { %v1097_v41 = vpop.f32.mrb[58].mxu1 }
 0x1c9   :  { %v1098_v42 = vadd.f32 %v1097_v41, %v4904_v10  ;;  %v3769_v49 = vpop.f32.mrb[59].mxu1  ;;  %v4982_v43 = vadd.f32 %v1211_v3, %v1095_v38  ;;  %v4321_v10 = vld [vmem:[%s4955_s27 + $0x38] sm:$0xff]  }
 0x1ca   :  { %3825 = vmatpush3.bf16.msra.mxu1 %v4318_v32 }
 0x1cb   :  { %v4984_v51 = vadd.f32 %v1214_v9, %v1098_v42  ;;  %3826 = vmatprep.subr.bf16.mxu1 %v4469_v0 }
 0x1ce   :  { %3827 = vmatpush3.bf16.msra.mxu1 %v4319_v53 }
 0x1cf   :  { %3828 = vmatprep.subr.bf16.mxu1 %v4469_v0 }
 0x1d2   :  { %3829 = vmatpush3.bf16.msra.mxu1 %v4320_v56 }
 0x1d3   :  { %3830 = vmatprep.subr.bf16.mxu1 %v4469_v0 }
 0x1d6   :  { %3831 = vmatpush3.bf16.msra.mxu1 %v4321_v10 }
 0x1d7   :  { %3886 = vmatprep.subr.bf16.mxu1 %v4469_v0 }
 0x242   :  { %v4993_v26 = vpop.f32.mrb[48].mxu0 }
 0x243   :  { %v3852_v23 = vpop.f32.mrb[49].mxu0 }
 0x244   :  { %v4995_v55 = vpop.f32.mrb[50].mxu0 }
 0x245   :  { %v3853_v36 = vpop.f32.mrb[51].mxu0 }
 0x24a   :  { %v4997_v27 = vpop.f32.mrb[52].mxu0 }
 0x24b   :  { %v3856_v54 = vpop.f32.mrb[53].mxu0 }
 0x24c   :  { %v4999_v57 = vpop.f32.mrb[54].mxu0 }
 0x24d   :  { %v3857_v45 = vpop.f32.mrb[55].mxu0 }
 0x252   :  { %v5001_v60 = vpop.f32.mrb[56].mxu0 }
 0x253   :  { %v3860_v61 = vpop.f32.mrb[57].mxu0 }
 0x254   :  { %v5003_v59 = vpop.f32.mrb[58].mxu0 }
 0x255   :  { %v3861_v39 = vpop.f32.mrb[59].mxu0 }
 0x25a   :  { %v5005_v25 = vpop.f32.mrb[60].mxu0 }
 0x25b   :  { %v3864_v62 = vpop.f32.mrb[61].mxu0 }
 0x25c   :  { %v5007_v47 = vpop.f32.mrb[62].mxu0 }
 0x25d   :  { %v3865_v1 = vpop.f32.mrb[63].mxu0 }
 0x262   :  { %v5009_v3 = vpop.f32.mrb[64].mxu0 }
 0x263   :  { %v3868_v5 = vpop.f32.mrb[65].mxu0 }
 0x264   :  { %v5011_v6 = vpop.f32.mrb[66].mxu0 }
 0x265   :  { %v3869_v15 = vpop.f32.mrb[67].mxu0 }
 0x26a   :  { %v5013_v9 = vpop.f32.mrb[68].mxu0 }
 0x26b   :  { %v3872_v46 = vpop.f32.mrb[69].mxu0 }
 0x26c   :  { %v5015_v16 = vpop.f32.mrb[70].mxu0 }
 0x26d   :  { %v3873_v17 = vpop.f32.mrb[71].mxu0 }
 0x272   :  { %v5017_v48 = vpop.f32.mrb[72].mxu0 }
 0x273   :  { %v3876_v50 = vpop.f32.mrb[73].mxu0 }
 0x274   :  { %v5019_v19 = vpop.f32.mrb[74].mxu0 }
 0x275   :  { %v3877_v20 = vpop.f32.mrb[75].mxu0 }
 0x27a   :  { %v5021_v30 = vpop.f32.mrb[76].mxu0 }
 0x27b   :  { %v3880_v22 = vpop.f32.mrb[77].mxu0 }
 0x27c   :  { %v5023_v29 = vpop.f32.mrb[78].mxu0 }
 0x27d   :  { %v3881_v2 = vpop.f32.mrb[79].mxu0 }
 0x282   :  { %v5028_v31 = vpop.f32.mrb[80].mxu0 }
 0x283   :  { %v3884_v24 = vpop.f32.mrb[81].mxu0 }
 0x284   :  { %v5030_v18 = vpop.f32.mrb[82].mxu0 }
 0x285   :  { %v3885_v28 = vpop.f32.mrb[83].mxu0 }
 0x287   :  { %v1292_v44 = vpop.f32.mrb[60].mxu1 }
 0x288   :  { %v1315_v4 = vadd.f32 %v1292_v44, %v4958_v35  ;;  %v3806_v13 = vpop.f32.mrb[61].mxu1 }
 0x289   :  { %v1295_v52 = vpop.f32.mrb[62].mxu1 }
 0x28a   :  { %v1327_v11 = vadd.f32 %v3358_v58, %v1315_v4  ;;  %v1316_v8 = vadd.f32 %v1295_v52, %v4961_v21  ;;  %v3807_v12 = vpop.f32.mrb[63].mxu1 }
 0x28c   :  { %v1328_v34 = vadd.f32 %v3358_v58, %v1316_v8  ;;  %v1660_v63 = vmax.f32 %v1327_v11, 0.0 }
 0x28e   :  { %v1333_v7 = vpack.c.bf16 %v1328_v34, %v1327_v11  ;;  %v1661_v38 = vmax.f32 %v1328_v34, 0.0 }
 0x28f   :  { %v1300_v14 = vpop.f32.mrb[64].mxu1 }
 0x290   :  { %v5034_v40 = vpack.c.bf16 %v1661_v38, %v1660_v63  ;;  %v1317_v41 = vadd.f32 %v1300_v14, %v4971_v33  ;;  %v3810_v42 = vpop.f32.mrb[65].mxu1  ;;  %3833 = vmatmul.mubr.bf16.vlgmr.msra.gmra.mrb[72].mxu1 %v1333_v7 }
 0x291   :  { %v1303_v49 = vpop.f32.mrb[66].mxu1  ;;  %3836 = vmatprep.mubr.msk.bf16.mxu1 %vm4470_vm0, %v4469_v0 }
 0x292   :  { %v1329_v35 = vadd.f32 %v3358_v58, %v1317_v41  ;;  %v1318_v32 = vadd.f32 %v1303_v49, %v4974_v37  ;;  %v3811_v21 = vpop.f32.mrb[67].mxu1 }
 0x294   :  { %v1330_v53 = vadd.f32 %v3358_v58, %v1318_v32  ;;  %v1662_v56 = vmax.f32 %v1329_v35, 0.0 }
 0x296   :  { %v1663_v10 = vmax.f32 %v1330_v53, 0.0  ;;  %v1334_v23 = vpack.c.bf16 %v1330_v53, %v1329_v35 }
 0x297   :  { %v1308_v36 = vpop.f32.mrb[68].mxu1 }
 0x298   :  { %v1319_v54 = vadd.f32 %v1308_v36, %v4982_v43  ;;  %v3814_v45 = vpop.f32.mrb[69].mxu1  ;;  %3837 = vmatmul.mubr.bf16.gmra.mrb[76].mxu1 %v1334_v23  ;;  %v5041_v33 = vpack.c.bf16 %v1663_v10, %v1662_v56  ;;  %v4322_v43 = vld [vmem:[%s3278_s5] sm:$0xff]  }
 0x299   :  { %v1311_v61 = vpop.f32.mrb[70].mxu1  ;;  %3840 = vmatprep.mubr.msk.bf16.mxu1 %vm4470_vm0, %v4469_v0  ;;  %3887 = vmatpush3.bf16.msra.mxu1 %v4322_v43 }
 0x29a   :  { %v1331_v39 = vadd.f32 %v3358_v58, %v1319_v54  ;;  %v1320_v62 = vadd.f32 %v1311_v61, %v4984_v51  ;;  %v3815_v37 = vpop.f32.mrb[71].mxu1  ;;  %3938 = vmatprep.subr.bf16.mxu1 %v4469_v0  ;;  %v3359_v51 = vld [vmem:[%s3277_s15] ss:$0 sm:$0xff]  ;;  %s4498_s15 = smov 26  }
 0x29b   :  { %s3289_s18 = sld [smem:[%s5531_s0 + %s4498_s15]]  }
 0x29c   :  { %v1332_v1 = vadd.f32 %v3358_v58, %v1320_v62  ;;  %v1664_v5 = vmax.f32 %v1331_v39, 0.0 }
 0x29e   :  { %v1665_v15 = vmax.f32 %v1332_v1, 0.0  ;;  %v1335_v46 = vpack.c.bf16 %v1332_v1, %v1331_v39 }
 0x2a0   :  { %3841 = vmatmul.mubr.bf16.gmra.mrb[80].mxu1 %v1335_v46  ;;  %v5046_v17 = vpack.c.bf16 %v1665_v15, %v1664_v5 }
 0x2a1   :  { %3888 = vmatprep.mubr.msk.bf16.mxu1 %vm4470_vm0, %v4469_v0 }
 0x363   :  { %v1424_v50 = vpop.f32.mrb[72].mxu1 }
 0x364   :  { %v1425_v20 = vadd.f32 %v3359_v51, %v1424_v50  ;;  %v3834_v22 = vpop.f32.mrb[73].mxu1  ;;  %v4323_v50 = vld [vmem:[%s5058_s11] sm:$0xff]  }
 0x365   :  { %v1427_v2 = vpop.f32.mrb[74].mxu1 }
 0x366   :  { %v3368_v24 = vmul.f32 -1.442695, %v1425_v20  ;;  %v1428_v28 = vadd.f32 %v3359_v51, %v1427_v2  ;;  %v3835_v58 = vpop.f32.mrb[75].mxu1 }
 0x368   :  { %4372 = vpow2.f32 %v3368_v24  ;;  %v3369_v44 = vmul.f32 -1.442695, %v1428_v28 }
 0x36a   :  { %4374 = vpow2.f32 %v3369_v44 }
 0x36b   :  { %v1432_v4 = vpop.f32.mrb[76].mxu1 }
 0x36c   :  { %v1433_v13 = vadd.f32 %v3359_v51, %v1432_v4  ;;  %v3838_v52 = vpop.f32.mrb[77].mxu1 }
 0x36d   :  { %v1435_v11 = vpop.f32.mrb[78].mxu1 }
 0x36e   :  { %v3370_v8 = vmul.f32 -1.442695, %v1433_v13  ;;  %v1436_v12 = vadd.f32 %v3359_v51, %v1435_v11  ;;  %v3839_v34 = vpop.f32.mrb[79].mxu1  ;;  %v4325_v13 = vld [vmem:[%s5058_s11 + $0x10] sm:$0xff]  }
 0x370   :  { %4376 = vpow2.f32 %v3370_v8  ;;  %v3371_v63 = vmul.f32 -1.442695, %v1436_v12 }
 0x372   :  { %v4373_v7 = vpop.eup %4372  ;;  %4378 = vpow2.f32 %v3371_v63 }
 0x373   :  { %v1465_v38 = vadd.f32 1.0, %v4373_v7  ;;  %v1440_v14 = vpop.f32.mrb[80].mxu1  ;;  %v4327_v7 = vld [vmem:[%s5058_s11 + $0x20] sm:$0xff]  }
 0x374   :  { %v4375_v41 = vpop.eup %4374  ;;  %v1441_v42 = vadd.f32 %v3359_v51, %v1440_v14  ;;  %v3842_v49 = vpop.f32.mrb[81].mxu1 }
 0x375   :  { %4380 = vrcp.f32 %v1465_v38  ;;  %v1466_v35 = vadd.f32 1.0, %v4375_v41  ;;  %v1443_v32 = vpop.f32.mrb[82].mxu1 }
 0x376   :  { %v3372_v21 = vmul.f32 -1.442695, %v1441_v42  ;;  %v1444_v53 = vadd.f32 %v3359_v51, %v1443_v32  ;;  %v3843_v56 = vpop.f32.mrb[83].mxu1 }
 0x377   :  { %4382 = vrcp.f32 %v1466_v35 }
 0x378   :  { %4384 = vpow2.f32 %v3372_v21  ;;  %v3373_v10 = vmul.f32 -1.442695, %v1444_v53 }
 0x37a   :  { %v4377_v23 = vpop.eup %4376  ;;  %4386 = vpow2.f32 %v3373_v10 }
 0x37b   :  { %v1467_v36 = vadd.f32 1.0, %v4377_v23 }
 0x37c   :  { %v4379_v54 = vpop.eup %4378 }
 0x37d   :  { %4388 = vrcp.f32 %v1467_v36  ;;  %v1468_v45 = vadd.f32 1.0, %v4379_v54 }
 0x37f   :  { %v4381_v61 = vpop.eup %4380  ;;  %4390 = vrcp.f32 %v1468_v45 }
 0x380   :  { %v1642_v39 = vmul.f32 %v4381_v61, %v4993_v26  ;;  %v5065_v62 = vmul.f32 %v4381_v61, %v5005_v25  ;;  %v5068_v37 = vmul.f32 %v4381_v61, %v5017_v48 }
 0x381   :  { %v4383_v1 = vpop.eup %4382 }
 0x382   :  { %v4385_v5 = vpop.eup %4384  ;;  %v1643_v15 = vmul.f32 %v4383_v1, %v4995_v55  ;;  %v1649_v46 = vmul.f32 %v4383_v1, %v5007_v47  ;;  %v5073_v43 = vmul.f32 %v4383_v1, %v5019_v19  ;;  %v4324_v47 = vld [vmem:[%s5058_s11 + $0x8] sm:$0xff]  }
 0x383   :  { %v1469_v51 = vadd.f32 1.0, %v4385_v5 }
 0x384   :  { %v4387_v20 = vpop.eup %4386  ;;  %v1666_v26 = vpack.c.bf16 %v1643_v15, %v1642_v39  ;;  %v1669_v25 = vpack.c.bf16 %v1649_v46, %v5065_v62  ;;  %v1672_v48 = vpack.c.bf16 %v5073_v43, %v5068_v37 }
 0x385   :  { %4392 = vrcp.f32 %v1469_v51  ;;  %v1470_v22 = vadd.f32 1.0, %v4387_v20 }
 0x386   :  { %3889 = vmatmul.mubr.msk.bf16.vlgmr.msra.gmra.mrb[84].mxu1 %vm410_vm1, %v1666_v26 }
 0x387   :  { %v4389_v55 = vpop.eup %4388  ;;  %4394 = vrcp.f32 %v1470_v22  ;;  %3892 = vmatprep.mubr.msk.bf16.mxu1 %vm4470_vm0, %v4469_v0  ;;  %3939 = vmatpush3.bf16.msra.mxu1 %v4323_v50 }
 0x388   :  { %v1644_v19 = vmul.f32 %v4389_v55, %v4997_v27  ;;  %v1650_v2 = vmul.f32 %v4389_v55, %v5009_v3  ;;  %3940 = vmatprep.subr.bf16.mxu1 %v4469_v0  ;;  %v1656_v24 = vmul.f32 %v4389_v55, %v5021_v30 }
 0x389   :  { %v4391_v28 = vpop.eup %4390 }
 0x38a   :  { %v1645_v58 = vmul.f32 %v4391_v28, %v4999_v57  ;;  %v1651_v44 = vmul.f32 %v4391_v28, %v5011_v6  ;;  %v1657_v4 = vmul.f32 %v4391_v28, %v5023_v29  ;;  %v4326_v57 = vld [vmem:[%s5058_s11 + $0x18] sm:$0xff]  }
 0x38b   :  { %3941 = vmatpush3.bf16.msra.mxu1 %v4324_v47 }
 0x38c   :  { %v1667_v52 = vpack.c.bf16 %v1645_v58, %v1644_v19  ;;  %v1670_v11 = vpack.c.bf16 %v1651_v44, %v1650_v2  ;;  %3942 = vmatprep.subr.bf16.mxu1 %v4469_v0  ;;  %v1673_v27 = vpack.c.bf16 %v1657_v4, %v1656_v24 }
 0x38e   :  { %3893 = vmatmul.mubr.msk.bf16.gmra.mrb[88].mxu1 %vm410_vm1, %v1667_v52 }
 0x38f   :  { %v4393_v3 = vpop.eup %4392  ;;  %3896 = vmatprep.mubr.msk.bf16.mxu1 %vm4470_vm0, %v4469_v0  ;;  %3943 = vmatpush3.bf16.msra.mxu1 %v4325_v13 }
 0x390   :  { %v1646_v6 = vmul.f32 %v4393_v3, %v5001_v60  ;;  %v1652_v30 = vmul.f32 %v4393_v3, %v5013_v9  ;;  %3944 = vmatprep.subr.bf16.mxu1 %v4469_v0  ;;  %v1658_v29 = vmul.f32 %v4393_v3, %v5028_v31  ;;  %v4328_v31 = vld [vmem:[%s5058_s11 + $0x28] sm:$0xff]  }
 0x391   :  { %v4395_v8 = vpop.eup %4394 }
 0x392   :  { %v1647_v12 = vmul.f32 %v4395_v8, %v5003_v59  ;;  %v1653_v34 = vmul.f32 %v4395_v8, %v5015_v16  ;;  %v1659_v63 = vmul.f32 %v4395_v8, %v5030_v18  ;;  %v4329_v59 = vld [vmem:[%s5058_s11 + $0x30] sm:$0xff]   ;;  %v4330_v16 = vld [vmem:[%s5058_s11 + $0x38] sm:$0xff]   ;;  %v4332_v18 = vld [vmem:[%s3282_s19] sm:$0xff]   ;;  %s4497_s11 = smov 21   ;;  %s4499_s19 = smov 24  }
 0x393   :  { %3945 = vmatpush3.bf16.msra.mxu1 %v4326_v57  ;;  %s3284_s14 = sld [smem:[%s5531_s0 + %s4497_s11]]  }
 0x394   :  { %v1668_v38 = vpack.c.bf16 %v1647_v12, %v1646_v6  ;;  %v1671_v60 = vpack.c.bf16 %v1653_v34, %v1652_v30  ;;  %3946 = vmatprep.subr.bf16.mxu1 %v4469_v0  ;;  %v1674_v9 = vpack.c.bf16 %v1659_v63, %v1658_v29  ;;  %s3287_s6 = sld [smem:[%s5531_s0 + %s4499_s19]]  }
 0x396   :  { %3897 = vmatmul.mubr.msk.bf16.gmra.mrb[92].mxu1 %vm410_vm1, %v1668_v38 }
 0x397   :  { %3900 = vmatprep.mubr.msk.bf16.mxu1 %vm4470_vm0, %v4469_v0  ;;  %3947 = vmatpush3.bf16.msra.mxu1 %v4327_v7 }
 0x398   :  { %3948 = vmatprep.subr.bf16.mxu1 %v4469_v0 }
 0x39b   :  { %3949 = vmatpush3.bf16.msra.mxu1 %v4328_v31 }
 0x39c   :  { %3950 = vmatprep.subr.bf16.mxu1 %v4469_v0 }
 0x39e   :  { %3901 = vmatmul.mubr.msk.bf16.gmra.mrb[96].mxu1 %vm410_vm1, %v1669_v25 }
 0x39f   :  { %3904 = vmatprep.mubr.msk.bf16.mxu1 %vm4470_vm0, %v4469_v0  ;;  %3951 = vmatpush3.bf16.msra.mxu1 %v4329_v59 }
 0x3a0   :  { %3952 = vmatprep.subr.bf16.mxu1 %v4469_v0 }
 0x3a3   :  { %3953 = vmatpush3.bf16.msra.mxu1 %v4330_v16 }
 0x3a4   :  { %3994 = vmatprep.subr.bf16.mxu1 %v4469_v0 }
 0x3a6   :  { %3905 = vmatmul.mubr.msk.bf16.gmra.mrb[100].mxu1 %vm410_vm1, %v1670_v11 }
 0x3a7   :  { %3908 = vmatprep.mubr.msk.bf16.mxu1 %vm4470_vm0, %v4469_v0 }
 0x3ae   :  { %3909 = vmatmul.mubr.msk.bf16.gmra.mrb[104].mxu1 %vm410_vm1, %v1671_v60 }
 0x3af   :  { %3912 = vmatprep.mubr.msk.bf16.mxu1 %vm4470_vm0, %v4469_v0 }
 0x3b6   :  { %3913 = vmatmul.mubr.msk.bf16.gmra.mrb[108].mxu1 %vm410_vm1, %v1672_v48 }
 0x3b7   :  { %3916 = vmatprep.mubr.msk.bf16.mxu1 %vm4470_vm0, %v4469_v0 }
 0x3be   :  { %3917 = vmatmul.mubr.msk.bf16.gmra.mrb[112].mxu1 %vm410_vm1, %v1673_v27 }
 0x3bf   :  { %3920 = vmatprep.mubr.msk.bf16.mxu1 %vm4470_vm0, %v4469_v0 }
 0x3c6   :  { %3921 = vmatmul.mubr.msk.bf16.gmra.mrb[116].mxu1 %vm410_vm1, %v1674_v9 }
 0x3c7   :  { %3954 = vmatprep.mubr.msk.bf16.mxu1 %vm4470_vm0, %v4469_v0 }
 0x3ce   :  { %3955 = vmatmul.mubr.bf16.vlgmr.msra.gmra.mrb[120].mxu1 %v5034_v40  ;;  %v4331_v40 = vld [vmem:[%s3280_s9] sm:$0xff]   ;;  %s4500_s9 = smov 27  }
 0x3cf   :  { %3958 = vmatprep.mubr.msk.bf16.mxu1 %vm4470_vm0, %v4469_v0  ;;  %3995 = vmatpush3.bf16.msra.mxu1 %v4332_v18  ;;  %s3290_s24 = sld [smem:[%s5531_s0 + %s4500_s9]]  }
 0x3d0   :  { %4070 = vmatprep.subr.bf16.mxu1 %v4469_v0  ;;  %3925 = vmatpush3.bf16.msra.mxu0 %v4331_v40 }
 0x3d1   :  { %3966 = vmatprep.subr.bf16.mxu0 %v4469_v0 }
 0x3d6   :  { %3959 = vmatmul.mubr.bf16.gmra.mrb[124].mxu1 %v5041_v33 }
 0x3d7   :  { %3962 = vmatprep.mubr.msk.bf16.mxu1 %vm4470_vm0, %v4469_v0 }
 0x3de   :  { %3963 = vmatmul.mubr.bf16.gmra.mrb[128].mxu1 %v5046_v17 }
 0x3df   :  { %3996 = vmatprep.mubr.msk.bf16.mxu1 %vm4470_vm0, %v4469_v0 }
 0x459   :  { %v1742_v33 = vpop.f32.mrb[84].mxu1 }
 0x45a   :  { %v3890_v14 = vpop.f32.mrb[85].mxu1  ;;  %v1813_v61 = vmul.f32 %v1742_v33, %v1742_v33 }
 0x45b   :  { %v1745_v41 = vpop.f32.mrb[86].mxu1 }
 0x45c   :  { %v2236_v42 = vpack.c.bf16 %v1745_v41, %v1742_v33  ;;  %v3891_v49 = vpop.f32.mrb[87].mxu1  ;;  %v1814_v1 = vmul.f32 %v1745_v41, %v1745_v41 }
 0x45e   :  { %3997 = vmatmul.mubr.msk.bf16.vlgmr.msra.gmra.mrb[132].mxu1 %vm410_vm1, %v2236_v42 }
 0x45f   :  { %4000 = vmatprep.mubr.msk.bf16.mxu1 %vm4470_vm0, %v4469_v0 }
 0x461   :  { %v1750_v35 = vpop.f32.mrb[88].mxu1 }
 0x462   :  { %v3894_v32 = vpop.f32.mrb[89].mxu1  ;;  %v1815_v20 = vmul.f32 %v1750_v35, %v1750_v35 }
 0x463   :  { %v1753_v17 = vpop.f32.mrb[90].mxu1 }
 0x464   :  { %v2237_v21 = vpack.c.bf16 %v1753_v17, %v1750_v35  ;;  %v3895_v53 = vpop.f32.mrb[91].mxu1  ;;  %v1816_v22 = vmul.f32 %v1753_v17, %v1753_v17 }
 0x466   :  { %4001 = vmatmul.mubr.msk.bf16.gmra.mrb[136].mxu1 %vm410_vm1, %v2237_v21 }
 0x467   :  { %4004 = vmatprep.mubr.msk.bf16.mxu1 %vm4470_vm0, %v4469_v0 }
 0x469   :  { %v1758_v56 = vpop.f32.mrb[92].mxu1 }
 0x46a   :  { %v3898_v10 = vpop.f32.mrb[93].mxu1  ;;  %v1817_v58 = vmul.f32 %v1758_v56, %v1758_v56 }
 0x46b   :  { %v1761_v23 = vpop.f32.mrb[94].mxu1 }
 0x46c   :  { %v2238_v36 = vpack.c.bf16 %v1761_v23, %v1758_v56  ;;  %v3899_v54 = vpop.f32.mrb[95].mxu1  ;;  %v1818_v52 = vmul.f32 %v1761_v23, %v1761_v23 }
 0x46e   :  { %4005 = vmatmul.mubr.msk.bf16.gmra.mrb[140].mxu1 %vm410_vm1, %v2238_v36 }
 0x46f   :  { %4008 = vmatprep.mubr.msk.bf16.mxu1 %vm4470_vm0, %v4469_v0 }
 0x471   :  { %v1766_v45 = vpop.f32.mrb[96].mxu1 }
 0x472   :  { %v1819_v39 = vmul.f32 %v1766_v45, %v1766_v45  ;;  %v3902_v62 = vpop.f32.mrb[97].mxu1 }
 0x473   :  { %v1769_v37 = vpop.f32.mrb[98].mxu1 }
 0x474   :  { %v1825_v5 = vadd.f32 %v1819_v39, %v1813_v61  ;;  %v1820_v15 = vmul.f32 %v1769_v37, %v1769_v37  ;;  %v2239_v46 = vpack.c.bf16 %v1769_v37, %v1766_v45  ;;  %v3903_v43 = vpop.f32.mrb[99].mxu1 }
 0x476   :  { %v1826_v51 = vadd.f32 %v1820_v15, %v1814_v1  ;;  %4009 = vmatmul.mubr.msk.bf16.gmra.mrb[144].mxu1 %vm410_vm1, %v2239_v46 }
 0x477   :  { %4012 = vmatprep.mubr.msk.bf16.mxu1 %vm4470_vm0, %v4469_v0 }
 0x479   :  { %v1774_v50 = vpop.f32.mrb[100].mxu1 }
 0x47a   :  { %v1821_v26 = vmul.f32 %v1774_v50, %v1774_v50  ;;  %v3906_v25 = vpop.f32.mrb[101].mxu1 }
 0x47b   :  { %v1777_v48 = vpop.f32.mrb[102].mxu1 }
 0x47c   :  { %v1827_v55 = vadd.f32 %v1821_v26, %v1815_v20  ;;  %v1822_v47 = vmul.f32 %v1777_v48, %v1777_v48  ;;  %v2240_v19 = vpack.c.bf16 %v1777_v48, %v1774_v50  ;;  %v3907_v2 = vpop.f32.mrb[103].mxu1 }
 0x47e   :  { %v1828_v24 = vadd.f32 %v1822_v47, %v1816_v22  ;;  %4013 = vmatmul.mubr.msk.bf16.gmra.mrb[148].mxu1 %vm410_vm1, %v2240_v19 }
 0x47f   :  { %4016 = vmatprep.mubr.msk.bf16.mxu1 %vm4470_vm0, %v4469_v0 }
 0x481   :  { %v1782_v28 = vpop.f32.mrb[104].mxu1 }
 0x482   :  { %v1823_v44 = vmul.f32 %v1782_v28, %v1782_v28  ;;  %v3910_v4 = vpop.f32.mrb[105].mxu1 }
 0x483   :  { %v1785_v13 = vpop.f32.mrb[106].mxu1 }
 0x484   :  { %v1829_v11 = vadd.f32 %v1823_v44, %v1817_v58  ;;  %v1824_v27 = vmul.f32 %v1785_v13, %v1785_v13  ;;  %v2241_v3 = vpack.c.bf16 %v1785_v13, %v1782_v28  ;;  %v3911_v57 = vpop.f32.mrb[107].mxu1 }
 0x486   :  { %v1830_v6 = vadd.f32 %v1824_v27, %v1818_v52  ;;  %4017 = vmatmul.mubr.msk.bf16.gmra.mrb[152].mxu1 %vm410_vm1, %v2241_v3 }
 0x487   :  { %4020 = vmatprep.mubr.msk.bf16.mxu1 %vm4470_vm0, %v4469_v0 }
 0x489   :  { %v1790_v30 = vpop.f32.mrb[108].mxu1 }
 0x48a   :  { %v1831_v29 = vmul.f32 %v1790_v30, %v1790_v30  ;;  %v3914_v8 = vpop.f32.mrb[109].mxu1 }
 0x48b   :  { %v1793_v12 = vpop.f32.mrb[110].mxu1 }
 0x48c   :  { %v1837_v34 = vadd.f32 %v1831_v29, %v1825_v5  ;;  %v1832_v63 = vmul.f32 %v1793_v12, %v1793_v12  ;;  %v2242_v7 = vpack.c.bf16 %v1793_v12, %v1790_v30  ;;  %v3915_v38 = vpop.f32.mrb[111].mxu1 }
 0x48e   :  { %v1843_v60 = vmax.f32 %v1837_v34, 1e-08  ;;  %v1838_v9 = vadd.f32 %v1832_v63, %v1826_v51  ;;  %4021 = vmatmul.mubr.msk.bf16.gmra.mrb[156].mxu1 %vm410_vm1, %v2242_v7 }
 0x48f   :  { %4024 = vmatprep.mubr.msk.bf16.mxu1 %vm4470_vm0, %v4469_v0 }
 0x490   :  { %4396 = vrsqrt.f32 %v1843_v60  ;;  %v1844_v31 = vmax.f32 %v1838_v9, 1e-08  ;;  %vm1851_vm4 = vcmp.eq.f32.partialorder %v1843_v60, inf  ;;  %v1854_v62 = vand.u32 2147483648, %v1843_v60 }
 0x491   :  { %v1798_v59 = vpop.f32.mrb[112].mxu1  ;;  %vm1853_vm6 = vcmp.eq.f32.partialorder %v1843_v60, 0.0 }
 0x492   :  { %4398 = vrsqrt.f32 %v1844_v31  ;;  %v1833_v16 = vmul.f32 %v1798_v59, %v1798_v59  ;;  %v3918_v18 = vpop.f32.mrb[113].mxu1  ;;  %vm1858_vm5 = vcmp.eq.f32.partialorder %v1844_v31, inf  ;;  %v1861_v5 = vand.u32 2147483648, %v1844_v31 }
 0x493   :  { %v1801_v40 = vpop.f32.mrb[114].mxu1  ;;  %vm1860_vm7 = vcmp.eq.f32.partialorder %v1844_v31, 0.0 }
 0x494   :  { %v1839_v33 = vadd.f32 %v1833_v16, %v1827_v55  ;;  %v1834_v14 = vmul.f32 %v1801_v40, %v1801_v40  ;;  %v2243_v41 = vpack.c.bf16 %v1801_v40, %v1798_v59  ;;  %v3919_v42 = vpop.f32.mrb[115].mxu1 }
 0x495   :  { %v4336_v42 = vld [vmem:[%s3283_s25 + $0x18] sm:$0xff]  }
 0x496   :  { %v1845_v49 = vmax.f32 %v1839_v33, 1e-08  ;;  %v1840_v35 = vadd.f32 %v1834_v14, %v1828_v24  ;;  %4025 = vmatmul.mubr.msk.bf16.gmra.mrb[160].mxu1 %vm410_vm1, %v2243_v41  ;;  %v4333_v33 = vld [vmem:[%s3283_s25] sm:$0xff]   ;;  %v4334_v14 = vld [vmem:[%s3283_s25 + $0x8] sm:$0xff]   ;;  %v4335_v41 = vld [vmem:[%s3283_s25 + $0x10] sm:$0xff]  }
 0x497   :  { %4028 = vmatprep.mubr.msk.bf16.mxu1 %vm4470_vm0, %v4469_v0 }
 0x498   :  { %4400 = vrsqrt.f32 %v1845_v49  ;;  %v1846_v32 = vmax.f32 %v1840_v35, 1e-08  ;;  %vm1865_vm8 = vcmp.eq.f32.partialorder %v1845_v49, inf  ;;  %v1868_v58 = vand.u32 2147483648, %v1845_v49  ;;  %v4338_v35 = vld [vmem:[%s3283_s25 + $0x28] sm:$0xff]  }
 0x499   :  { %v1806_v17 = vpop.f32.mrb[116].mxu1  ;;  %vm1867_vm10 = vcmp.eq.f32.partialorder %v1845_v49, 0.0 }
 0x49a   :  { %v4397_v21 = vpop.eup %4396  ;;  %4402 = vrsqrt.f32 %v1846_v32  ;;  %v1835_v53 = vmul.f32 %v1806_v17, %v1806_v17  ;;  %v3922_v56 = vpop.f32.mrb[117].mxu1  ;;  %vm1872_vm9 = vcmp.eq.f32.partialorder %v1846_v32, inf  ;;  %v1875_v44 = vand.u32 2147483648, %v1846_v32 }
 0x49b   :  { %v1850_v10 = vmul.f32 %v4397_v21, %v1843_v60  ;;  %v1809_v23 = vpop.f32.mrb[118].mxu1  ;;  %vm1874_vm11 = vcmp.eq.f32.partialorder %v1846_v32, 0.0 }
 0x49c   :  { %v4399_v36 = vpop.eup %4398  ;;  %v1841_v54 = vadd.f32 %v1835_v53, %v1829_v11  ;;  %v1836_v45 = vmul.f32 %v1809_v23, %v1809_v23  ;;  %v2244_v61 = vpack.c.bf16 %v1809_v23, %v1806_v17  ;;  %v3923_v39 = vpop.f32.mrb[119].mxu1  ;;  %v4340_v17 = vld [vmem:[%s3283_s25 + $0x38] sm:$0xff]  }
 0x49d   :  { %v1857_v37 = vmul.f32 %v4399_v36, %v1844_v31  ;;  %v1852_v1 = vsel %vm1851_vm4, %v1843_v60, %v1850_v10 }
 0x49e   :  { %v1847_v15 = vmax.f32 %v1841_v54, 1e-08  ;;  %v1842_v46 = vadd.f32 %v1836_v45, %v1830_v6  ;;  %4029 = vmatmul.mubr.msk.bf16.gmra.mrb[164].mxu1 %vm410_vm1, %v2244_v61  ;;  %v1855_v50 = vsel %vm1853_vm6, %v1854_v62, %v1852_v1 }
 0x49f   :  { %v1859_v43 = vsel %vm1858_vm5, %v1844_v31, %v1857_v37  ;;  %4072 = vmatprep.mubr.msk.bf16.mxu1 %vm4470_vm0, %v4469_v0 }
 0x4a0   :  { %4404 = vrsqrt.f32 %v1847_v15  ;;  %v1848_v51 = vmax.f32 %v1842_v46, 1e-08  ;;  %v1862_v20 = vsel %vm1860_vm7, %v1861_v5, %v1859_v43  ;;  %vm1879_vm12 = vcmp.eq.f32.partialorder %v1847_v15, inf }
 0x4a1   :  { %v5177_v26 = vpop.f32.mrb[120].mxu1  ;;  %v1894_v25 = vpack.c.bf16 %v1862_v20, %v1855_v50  ;;  %v1882_v63 = vand.u32 2147483648, %v1847_v15  ;;  %vm1881_vm14 = vcmp.eq.f32.partialorder %v1847_v15, 0.0 }
 0x4a2   :  { %v4401_v48 = vpop.eup %4400  ;;  %4406 = vrsqrt.f32 %v1848_v51  ;;  %v3956_v22 = vpop.f32.mrb[121].mxu1  ;;  %vm1886_vm13 = vcmp.eq.f32.partialorder %v1848_v51, inf  ;;  %v1889_v7 = vand.u32 2147483648, %v1848_v51  ;;  %vm1888_vm15 = vcmp.eq.f32.partialorder %v1848_v51, 0.0 }
 0x4a3   :  { %3927 = vmatmul.mubr.msk.bf16.vlgmr.msra.gmra.mrb[84].mxu0 %vm410_vm1, %v1894_v25  ;;  %v5180_v55 = vpop.f32.mrb[122].mxu1  ;;  %v1864_v47 = vmul.f32 %v4401_v48, %v1845_v49 }
 0x4a4   :  { %v4403_v19 = vpop.eup %4402  ;;  %v3957_v2 = vpop.f32.mrb[123].mxu1  ;;  %3930 = vmatprep.mubr.msk.bf16.mxu0 %vm4470_vm0, %v4469_v0  ;;  %3967 = vmatpush3.bf16.msra.mxu0 %v4333_v33 }
 0x4a5   :  { %v1866_v24 = vsel %vm1865_vm8, %v1845_v49, %v1864_v47  ;;  %v1871_v28 = vmul.f32 %v4403_v19, %v1846_v32  ;;  %3968 = vmatprep.subr.bf16.mxu0 %v4469_v0  ;;  %v4337_v49 = vld [vmem:[%s3283_s25 + $0x20] sm:$0xff]  }
 0x4a6   :  { %v1869_v13 = vsel %vm1867_vm10, %v1868_v58, %v1866_v24 }
 0x4a7   :  { %v1873_v4 = vsel %vm1872_vm9, %v1846_v32, %v1871_v28  ;;  %v4339_v32 = vld [vmem:[%s3283_s25 + $0x30] sm:$0xff]   ;;  %s4501_s25 = smov 25  }
 0x4a8   :  { %v1876_v52 = vsel %vm1874_vm11, %v1875_v44, %v1873_v4  ;;  %3969 = vmatpush3.bf16.msra.mxu0 %v4334_v14  ;;  %s3288_s28 = sld [smem:[%s5531_s0 + %s4501_s25]]  }
 0x4a9   :  { %v5184_v11 = vpop.f32.mrb[124].mxu1  ;;  %v1895_v27 = vpack.c.bf16 %v1876_v52, %v1869_v13  ;;  %3970 = vmatprep.subr.bf16.mxu0 %v4469_v0 }
 0x4aa   :  { %v4405_v3 = vpop.eup %4404  ;;  %v3960_v57 = vpop.f32.mrb[125].mxu1 }
 0x4ab   :  { %3931 = vmatmul.mubr.msk.bf16.gmra.mrb[88].mxu0 %vm410_vm1, %v1895_v27  ;;  %v5187_v6 = vpop.f32.mrb[126].mxu1  ;;  %v1878_v30 = vmul.f32 %v4405_v3, %v1847_v15 }
 0x4ac   :  { %v4407_v29 = vpop.eup %4406  ;;  %v3961_v8 = vpop.f32.mrb[127].mxu1  ;;  %3934 = vmatprep.mubr.msk.bf16.mxu0 %vm4470_vm0, %v4469_v0  ;;  %3971 = vmatpush3.bf16.msra.mxu0 %v4335_v41 }
 0x4ad   :  { %v1880_v12 = vsel %vm1879_vm12, %v1847_v15, %v1878_v30  ;;  %v1885_v34 = vmul.f32 %v4407_v29, %v1848_v51  ;;  %3972 = vmatprep.subr.bf16.mxu0 %v4469_v0  ;;  %v3408_v30 = vld [vmem:[%s3281_s29] ss:$0 sm:$0xff]  ;;  %s4502_s29 = smov 29  }
 0x4ae   :  { %v1883_v60 = vsel %vm1881_vm14, %v1882_v63, %v1880_v12  ;;  %s5462_s2 = sld [smem:[%s5531_s0 + %s4502_s29]]  }
 0x4af   :  { %v1887_v38 = vsel %vm1886_vm13, %v1848_v51, %v1885_v34 }
 0x4b0   :  { %v1890_v9 = vsel %vm1888_vm15, %v1889_v7, %v1887_v38  ;;  %3973 = vmatpush3.bf16.msra.mxu0 %v4336_v42 }
 0x4b1   :  { %v5191_v31 = vpop.f32.mrb[128].mxu1  ;;  %v1896_v59 = vpack.c.bf16 %v1890_v9, %v1883_v60  ;;  %3974 = vmatprep.subr.bf16.mxu0 %v4469_v0 }
 0x4b2   :  { %v3964_v16 = vpop.f32.mrb[129].mxu1 }
 0x4b3   :  { %3935 = vmatmul.mubr.msk.bf16.gmra.mrb[92].mxu0 %vm410_vm1, %v1896_v59  ;;  %v5194_v18 = vpop.f32.mrb[130].mxu1 }
 0x4b4   :  { %v3965_v40 = vpop.f32.mrb[131].mxu1  ;;  %3982 = vmatprep.mubr.msk.bf16.mxu0 %vm4470_vm0, %v4469_v0  ;;  %3975 = vmatpush3.bf16.msra.mxu0 %v4337_v49 }
 0x4b5   :  { %3976 = vmatprep.subr.bf16.mxu0 %v4469_v0 }
 0x4b8   :  { %3977 = vmatpush3.bf16.msra.mxu0 %v4338_v35 }
 0x4b9   :  { %3978 = vmatprep.subr.bf16.mxu0 %v4469_v0 }
 0x4bc   :  { %3979 = vmatpush3.bf16.msra.mxu0 %v4339_v32 }
 0x4bd   :  { %3980 = vmatprep.subr.bf16.mxu0 %v4469_v0 }
 0x4c0   :  { %3981 = vmatpush3.bf16.msra.mxu0 %v4340_v17 }
 0x4c1   :  { %4032 = vmatprep.subr.bf16.mxu0 %v4469_v0 }
 0x531   :  { %v5209_v21 = vpop.f32.mrb[132].mxu1 }
 0x532   :  { %v3998_v53 = vpop.f32.mrb[133].mxu1 }
 0x533   :  { %v5211_v56 = vpop.f32.mrb[134].mxu1 }
 0x534   :  { %v3999_v10 = vpop.f32.mrb[135].mxu1 }
 0x539   :  { %v5213_v23 = vpop.f32.mrb[136].mxu1 }
 0x53a   :  { %v4002_v36 = vpop.f32.mrb[137].mxu1 }
 0x53b   :  { %v5215_v54 = vpop.f32.mrb[138].mxu1 }
 0x53c   :  { %v4003_v45 = vpop.f32.mrb[139].mxu1 }
 0x541   :  { %v5217_v61 = vpop.f32.mrb[140].mxu1 }
 0x542   :  { %v4006_v39 = vpop.f32.mrb[141].mxu1 }
 0x543   :  { %v5219_v62 = vpop.f32.mrb[142].mxu1 }
 0x544   :  { %v4007_v37 = vpop.f32.mrb[143].mxu1 }
 0x549   :  { %v5221_v1 = vpop.f32.mrb[144].mxu1 }
 0x54a   :  { %v4010_v5 = vpop.f32.mrb[145].mxu1 }
 0x54b   :  { %v5223_v15 = vpop.f32.mrb[146].mxu1 }
 0x54c   :  { %v4011_v46 = vpop.f32.mrb[147].mxu1 }
 0x551   :  { %v5225_v43 = vpop.f32.mrb[148].mxu1 }
 0x552   :  { %v4014_v51 = vpop.f32.mrb[149].mxu1 }
 0x553   :  { %v5227_v50 = vpop.f32.mrb[150].mxu1 }
 0x554   :  { %v4015_v20 = vpop.f32.mrb[151].mxu1 }
 0x559   :  { %v5229_v25 = vpop.f32.mrb[152].mxu1 }
 0x55a   :  { %v4018_v48 = vpop.f32.mrb[153].mxu1 }
 0x55b   :  { %v5231_v22 = vpop.f32.mrb[154].mxu1 }
 0x55c   :  { %v4019_v47 = vpop.f32.mrb[155].mxu1 }
 0x561   :  { %v5233_v19 = vpop.f32.mrb[156].mxu1 }
 0x562   :  { %v4022_v2 = vpop.f32.mrb[157].mxu1 }
 0x563   :  { %v5235_v24 = vpop.f32.mrb[158].mxu1 }
 0x564   :  { %v4023_v28 = vpop.f32.mrb[159].mxu1 }
 0x569   :  { %v5237_v58 = vpop.f32.mrb[160].mxu1 }
 0x56a   :  { %v4026_v44 = vpop.f32.mrb[161].mxu1 }
 0x56b   :  { %v5239_v4 = vpop.f32.mrb[162].mxu1 }
 0x56c   :  { %v4027_v13 = vpop.f32.mrb[163].mxu1 }
 0x571   :  { %v5244_v52 = vpop.f32.mrb[164].mxu1 }
 0x572   :  { %v4030_v27 = vpop.f32.mrb[165].mxu1 }
 0x573   :  { %v5246_v3 = vpop.f32.mrb[166].mxu1 }
 0x574   :  { %v4031_v57 = vpop.f32.mrb[167].mxu1 }
 0x576   :  { %v1946_v29 = vpop.f32.mrb[84].mxu0 }
 0x577   :  { %v2052_v8 = vadd.f32 %v5177_v26, %v1946_v29  ;;  %v3928_v12 = vpop.f32.mrb[85].mxu0 }
 0x578   :  { %v1949_v34 = vpop.f32.mrb[86].mxu0 }
 0x579   :  { %v2080_v63 = vadd.f32 %v3408_v30, %v2052_v8  ;;  %v2055_v7 = vadd.f32 %v5180_v55, %v1949_v34  ;;  %v3929_v38 = vpop.f32.mrb[87].mxu0 }
 0x57b   :  { %v2081_v60 = vadd.f32 %v3408_v30, %v2055_v7  ;;  %v2401_v9 = vmax.f32 %v2080_v63, 0.0 }
 0x57d   :  { %v2086_v59 = vpack.c.bf16 %v2081_v60, %v2080_v63  ;;  %v2402_v16 = vmax.f32 %v2081_v60, 0.0 }
 0x57e   :  { %v1954_v40 = vpop.f32.mrb[88].mxu0 }
 0x57f   :  { %v5250_v33 = vpack.c.bf16 %v2402_v16, %v2401_v9  ;;  %v2060_v14 = vadd.f32 %v5184_v11, %v1954_v40  ;;  %v3932_v41 = vpop.f32.mrb[89].mxu0  ;;  %3983 = vmatmul.mubr.bf16.vlgmr.msra.gmra.mrb[96].mxu0 %v2086_v59 }
 0x580   :  { %v1957_v42 = vpop.f32.mrb[90].mxu0  ;;  %3986 = vmatprep.mubr.msk.bf16.mxu0 %vm4470_vm0, %v4469_v0 }
 0x581   :  { %v2082_v26 = vadd.f32 %v3408_v30, %v2060_v14  ;;  %v2063_v49 = vadd.f32 %v5187_v6, %v1957_v42  ;;  %v3933_v55 = vpop.f32.mrb[91].mxu0 }
 0x583   :  { %v2083_v35 = vadd.f32 %v3408_v30, %v2063_v49  ;;  %v2403_v32 = vmax.f32 %v2082_v26, 0.0 }
 0x585   :  { %v2404_v17 = vmax.f32 %v2083_v35, 0.0  ;;  %v2087_v53 = vpack.c.bf16 %v2083_v35, %v2082_v26 }
 0x586   :  { %v1962_v10 = vpop.f32.mrb[92].mxu0 }
 0x587   :  { %v2068_v36 = vadd.f32 %v5191_v31, %v1962_v10  ;;  %v3936_v45 = vpop.f32.mrb[93].mxu0  ;;  %3987 = vmatmul.mubr.bf16.gmra.mrb[100].mxu0 %v2087_v53  ;;  %v5257_v11 = vpack.c.bf16 %v2404_v17, %v2403_v32  ;;  %v4341_v31 = vld [vmem:[%s3285_s3] sm:$0xff]   ;;  %s4503_s3 = smov 28  }
 0x588   :  { %v1965_v39 = vpop.f32.mrb[94].mxu0  ;;  %3990 = vmatprep.mubr.msk.bf16.mxu0 %vm4470_vm0, %v4469_v0  ;;  %4033 = vmatpush3.bf16.msra.mxu0 %v4341_v31  ;;  %s3291_s8 = sld [smem:[%s5531_s0 + %s4503_s3]]   ;;  %s4504_s0 = smov 32  }
 0x589   :  { %v2084_v37 = vadd.f32 %v3408_v30, %v2068_v36  ;;  %v2071_v5 = vadd.f32 %v5194_v18, %v1965_v39  ;;  %v3937_v6 = vpop.f32.mrb[95].mxu0  ;;  %4084 = vmatprep.subr.bf16.mxu0 %v4469_v0  ;;  %v3409_v18 = vld [vmem:[%s3284_s14] ss:$0 sm:$0xff] }
 0x58b   :  { %v2085_v46 = vadd.f32 %v3408_v30, %v2071_v5  ;;  %v2405_v51 = vmax.f32 %v2084_v37, 0.0 }
 0x58d   :  { %v2406_v20 = vmax.f32 %v2085_v46, 0.0  ;;  %v2088_v48 = vpack.c.bf16 %v2085_v46, %v2084_v37 }
 0x58f   :  { %3991 = vmatmul.mubr.bf16.gmra.mrb[104].mxu0 %v2088_v48  ;;  %v5262_v47 = vpack.c.bf16 %v2406_v20, %v2405_v51 }
 0x590   :  { %4034 = vmatprep.mubr.msk.bf16.mxu0 %vm4470_vm0, %v4469_v0 }
 0x652   :  { %v2177_v2 = vpop.f32.mrb[96].mxu0 }
 0x653   :  { %v2178_v28 = vadd.f32 %v3409_v18, %v2177_v2  ;;  %v3984_v44 = vpop.f32.mrb[97].mxu0  ;;  %v4342_v2 = vld [vmem:[%s5273_s10] sm:$0xff]  }
 0x654   :  { %v2180_v13 = vpop.f32.mrb[98].mxu0 }
 0x655   :  { %v3418_v27 = vmul.f32 -1.442695, %v2178_v28  ;;  %v2181_v57 = vadd.f32 %v3409_v18, %v2180_v13  ;;  %v3985_v30 = vpop.f32.mrb[99].mxu0 }
 0x657   :  { %4408 = vpow2.f32 %v3418_v27  ;;  %v3419_v29 = vmul.f32 -1.442695, %v2181_v57 }
 0x659   :  { %4410 = vpow2.f32 %v3419_v29 }
 0x65a   :  { %v2185_v8 = vpop.f32.mrb[100].mxu0 }
 0x65b   :  { %v2186_v12 = vadd.f32 %v3409_v18, %v2185_v8  ;;  %v3988_v34 = vpop.f32.mrb[101].mxu0 }
 0x65c   :  { %v2188_v63 = vpop.f32.mrb[102].mxu0 }
 0x65d   :  { %v3420_v7 = vmul.f32 -1.442695, %v2186_v12  ;;  %v2189_v38 = vadd.f32 %v3409_v18, %v2188_v63  ;;  %v3989_v60 = vpop.f32.mrb[103].mxu0  ;;  %v4344_v12 = vld [vmem:[%s5273_s10 + $0x10] sm:$0xff]  }
 0x65f   :  { %4412 = vpow2.f32 %v3420_v7  ;;  %v3421_v9 = vmul.f32 -1.442695, %v2189_v38 }
 0x661   :  { %v4409_v59 = vpop.eup %4408  ;;  %4414 = vpow2.f32 %v3421_v9 }
 0x662   :  { %v2218_v16 = vadd.f32 1.0, %v4409_v59  ;;  %v2193_v40 = vpop.f32.mrb[104].mxu0  ;;  %v4346_v59 = vld [vmem:[%s5273_s10 + $0x20] sm:$0xff]  }
 0x663   :  { %v4411_v14 = vpop.eup %4410  ;;  %v2194_v41 = vadd.f32 %v3409_v18, %v2193_v40  ;;  %v3992_v42 = vpop.f32.mrb[105].mxu0 }
 0x664   :  { %4416 = vrcp.f32 %v2218_v16  ;;  %v2219_v26 = vadd.f32 1.0, %v4411_v14  ;;  %v2196_v49 = vpop.f32.mrb[106].mxu0 }
 0x665   :  { %v3422_v55 = vmul.f32 -1.442695, %v2194_v41  ;;  %v2197_v35 = vadd.f32 %v3409_v18, %v2196_v49  ;;  %v3993_v32 = vpop.f32.mrb[107].mxu0 }
 0x666   :  { %4418 = vrcp.f32 %v2219_v26 }
 0x667   :  { %4420 = vpow2.f32 %v3422_v55  ;;  %v3423_v17 = vmul.f32 -1.442695, %v2197_v35 }
 0x669   :  { %v4413_v53 = vpop.eup %4412  ;;  %4422 = vpow2.f32 %v3423_v17 }
 0x66a   :  { %v2220_v10 = vadd.f32 1.0, %v4413_v53 }
 0x66b   :  { %v4415_v36 = vpop.eup %4414 }
 0x66c   :  { %4424 = vrcp.f32 %v2220_v10  ;;  %v2221_v45 = vadd.f32 1.0, %v4415_v36 }
 0x66e   :  { %v4417_v39 = vpop.eup %4416  ;;  %4426 = vrcp.f32 %v2221_v45 }
 0x66f   :  { %v2383_v37 = vmul.f32 %v4417_v39, %v5209_v21  ;;  %v5280_v5 = vmul.f32 %v4417_v39, %v5221_v1  ;;  %v5283_v6 = vmul.f32 %v4417_v39, %v5233_v19 }
 0x670   :  { %v4419_v46 = vpop.eup %4418 }
 0x671   :  { %v4421_v51 = vpop.eup %4420  ;;  %v2384_v20 = vmul.f32 %v4419_v46, %v5211_v56  ;;  %v2390_v48 = vmul.f32 %v4419_v46, %v5223_v15  ;;  %v5288_v31 = vmul.f32 %v4419_v46, %v5235_v24  ;;  %v4343_v15 = vld [vmem:[%s5273_s10 + $0x8] sm:$0xff]  }
 0x672   :  { %v2222_v18 = vadd.f32 1.0, %v4421_v51 }
 0x673   :  { %v4423_v28 = vpop.eup %4422  ;;  %v2407_v21 = vpack.c.bf16 %v2384_v20, %v2383_v37  ;;  %v2410_v1 = vpack.c.bf16 %v2390_v48, %v5280_v5  ;;  %v2413_v19 = vpack.c.bf16 %v5288_v31, %v5283_v6 }
 0x674   :  { %4428 = vrcp.f32 %v2222_v18  ;;  %v2223_v44 = vadd.f32 1.0, %v4423_v28 }
 0x675   :  { %4035 = vmatmul.mubr.msk.bf16.vlgmr.msra.gmra.mrb[108].mxu0 %vm410_vm1, %v2407_v21 }
 0x676   :  { %v4425_v56 = vpop.eup %4424  ;;  %4430 = vrcp.f32 %v2223_v44  ;;  %4038 = vmatprep.mubr.msk.bf16.mxu0 %vm4470_vm0, %v4469_v0  ;;  %4085 = vmatpush3.bf16.msra.mxu0 %v4342_v2 }
 0x677   :  { %v2385_v24 = vmul.f32 %v4425_v56, %v5213_v23  ;;  %v2391_v13 = vmul.f32 %v4425_v56, %v5225_v43  ;;  %4086 = vmatprep.subr.bf16.mxu0 %v4469_v0  ;;  %v2397_v27 = vmul.f32 %v4425_v56, %v5237_v58 }
 0x678   :  { %v4427_v57 = vpop.eup %4426 }
 0x679   :  { %v2386_v30 = vmul.f32 %v4427_v57, %v5215_v54  ;;  %v2392_v29 = vmul.f32 %v4427_v57, %v5227_v50  ;;  %v2398_v8 = vmul.f32 %v4427_v57, %v5239_v4  ;;  %v4345_v54 = vld [vmem:[%s5273_s10 + $0x18] sm:$0xff]  }
 0x67a   :  { %4087 = vmatpush3.bf16.msra.mxu0 %v4343_v15 }
 0x67b   :  { %v2408_v34 = vpack.c.bf16 %v2386_v30, %v2385_v24  ;;  %v2411_v63 = vpack.c.bf16 %v2392_v29, %v2391_v13  ;;  %4088 = vmatprep.subr.bf16.mxu0 %v4469_v0  ;;  %v2414_v23 = vpack.c.bf16 %v2398_v8, %v2397_v27 }
 0x67d   :  { %4039 = vmatmul.mubr.msk.bf16.gmra.mrb[112].mxu0 %vm410_vm1, %v2408_v34 }
 0x67e   :  { %v4429_v43 = vpop.eup %4428  ;;  %4042 = vmatprep.mubr.msk.bf16.mxu0 %vm4470_vm0, %v4469_v0  ;;  %4089 = vmatpush3.bf16.msra.mxu0 %v4344_v12 }
 0x67f   :  { %v2387_v50 = vmul.f32 %v4429_v43, %v5217_v61  ;;  %v2393_v58 = vmul.f32 %v4429_v43, %v5229_v25  ;;  %4090 = vmatprep.subr.bf16.mxu0 %v4469_v0  ;;  %v2399_v4 = vmul.f32 %v4429_v43, %v5244_v52  ;;  %v4347_v52 = vld [vmem:[%s5273_s10 + $0x28] sm:$0xff]  }
 0x680   :  { %v4431_v7 = vpop.eup %4430 }
 0x681   :  { %v2388_v38 = vmul.f32 %v4431_v7, %v5219_v62  ;;  %v2394_v60 = vmul.f32 %v4431_v7, %v5231_v22  ;;  %v2400_v9 = vmul.f32 %v4431_v7, %v5246_v3  ;;  %v4348_v62 = vld [vmem:[%s5273_s10 + $0x30] sm:$0xff]   ;;  %v4349_v22 = vld [vmem:[%s5273_s10 + $0x38] sm:$0xff]   ;;  %v4351_v3 = vld [vmem:[%s3289_s18] sm:$0xff]  }
 0x682   :  { %4091 = vmatpush3.bf16.msra.mxu0 %v4345_v54 }
 0x683   :  { %v2409_v16 = vpack.c.bf16 %v2388_v38, %v2387_v50  ;;  %v2412_v61 = vpack.c.bf16 %v2394_v60, %v2393_v58  ;;  %4092 = vmatprep.subr.bf16.mxu0 %v4469_v0  ;;  %v2415_v25 = vpack.c.bf16 %v2400_v9, %v2399_v4 }
 0x685   :  { %4043 = vmatmul.mubr.msk.bf16.gmra.mrb[116].mxu0 %vm410_vm1, %v2409_v16 }
 0x686   :  { %4046 = vmatprep.mubr.msk.bf16.mxu0 %vm4470_vm0, %v4469_v0  ;;  %4093 = vmatpush3.bf16.msra.mxu0 %v4346_v59 }
 0x687   :  { %4094 = vmatprep.subr.bf16.mxu0 %v4469_v0 }
 0x68a   :  { %4095 = vmatpush3.bf16.msra.mxu0 %v4347_v52 }
 0x68b   :  { %4096 = vmatprep.subr.bf16.mxu0 %v4469_v0 }
 0x68d   :  { %4047 = vmatmul.mubr.msk.bf16.gmra.mrb[120].mxu0 %vm410_vm1, %v2410_v1 }
 0x68e   :  { %4050 = vmatprep.mubr.msk.bf16.mxu0 %vm4470_vm0, %v4469_v0  ;;  %4097 = vmatpush3.bf16.msra.mxu0 %v4348_v62 }
 0x68f   :  { %4098 = vmatprep.subr.bf16.mxu0 %v4469_v0 }
 0x692   :  { %4099 = vmatpush3.bf16.msra.mxu0 %v4349_v22 }
 0x693   :  { %4140 = vmatprep.subr.bf16.mxu0 %v4469_v0 }
 0x695   :  { %4051 = vmatmul.mubr.msk.bf16.gmra.mrb[124].mxu0 %vm410_vm1, %v2411_v63 }
 0x696   :  { %4054 = vmatprep.mubr.msk.bf16.mxu0 %vm4470_vm0, %v4469_v0 }
 0x69d   :  { %4055 = vmatmul.mubr.msk.bf16.gmra.mrb[128].mxu0 %vm410_vm1, %v2412_v61 }
 0x69e   :  { %4058 = vmatprep.mubr.msk.bf16.mxu0 %vm4470_vm0, %v4469_v0 }
 0x6a5   :  { %4059 = vmatmul.mubr.msk.bf16.gmra.mrb[132].mxu0 %vm410_vm1, %v2413_v19 }
 0x6a6   :  { %4062 = vmatprep.mubr.msk.bf16.mxu0 %vm4470_vm0, %v4469_v0 }
 0x6ad   :  { %4063 = vmatmul.mubr.msk.bf16.gmra.mrb[136].mxu0 %vm410_vm1, %v2414_v23 }
 0x6ae   :  { %4066 = vmatprep.mubr.msk.bf16.mxu0 %vm4470_vm0, %v4469_v0 }
 0x6b5   :  { %4067 = vmatmul.mubr.msk.bf16.gmra.mrb[140].mxu0 %vm410_vm1, %v2415_v25 }
 0x6b6   :  { %4100 = vmatprep.mubr.msk.bf16.mxu0 %vm4470_vm0, %v4469_v0 }
 0x6bd   :  { %4101 = vmatmul.mubr.bf16.vlgmr.msra.gmra.mrb[144].mxu0 %v5250_v33  ;;  %v4350_v33 = vld [vmem:[%s3287_s6] sm:$0xff]  }
 0x6be   :  { %4104 = vmatprep.mubr.msk.bf16.mxu0 %vm4470_vm0, %v4469_v0  ;;  %4141 = vmatpush3.bf16.msra.mxu0 %v4351_v3 }
 0x6bf   :  { %4071 = vmatpush3.bf16.msra.mxu1 %v4350_v33 }
 0x6c0   :  { %4112 = vmatprep.subr.bf16.mxu1 %v4469_v0 }
 0x6c5   :  { %4105 = vmatmul.mubr.bf16.gmra.mrb[148].mxu0 %v5257_v11 }
 0x6c6   :  { %4108 = vmatprep.mubr.msk.bf16.mxu0 %vm4470_vm0, %v4469_v0 }
 0x6cd   :  { %4109 = vmatmul.mubr.bf16.gmra.mrb[152].mxu0 %v5262_v47 }
 0x6ce   :  { %4142 = vmatprep.mubr.msk.bf16.mxu0 %vm4470_vm0, %v4469_v0 }
 0x748   :  { %v2483_v11 = vpop.f32.mrb[108].mxu0 }
 0x749   :  { %v4036_v40 = vpop.f32.mrb[109].mxu0  ;;  %v2554_v39 = vmul.f32 %v2483_v11, %v2483_v11 }
 0x74a   :  { %v2486_v14 = vpop.f32.mrb[110].mxu0 }
 0x74b   :  { %v2977_v41 = vpack.c.bf16 %v2486_v14, %v2483_v11  ;;  %v4037_v42 = vpop.f32.mrb[111].mxu0  ;;  %v2555_v46 = vmul.f32 %v2486_v14, %v2486_v14 }
 0x74d   :  { %4143 = vmatmul.mubr.msk.bf16.vlgmr.msra.gmra.mrb[156].mxu0 %vm410_vm1, %v2977_v41 }
 0x74e   :  { %4146 = vmatprep.mubr.msk.bf16.mxu0 %vm4470_vm0, %v4469_v0 }
 0x750   :  { %v2491_v26 = vpop.f32.mrb[112].mxu0 }
 0x751   :  { %v4040_v49 = vpop.f32.mrb[113].mxu0  ;;  %v2556_v28 = vmul.f32 %v2491_v26, %v2491_v26 }
 0x752   :  { %v2494_v47 = vpop.f32.mrb[114].mxu0 }
 0x753   :  { %v2978_v55 = vpack.c.bf16 %v2494_v47, %v2491_v26  ;;  %v4041_v35 = vpop.f32.mrb[115].mxu0  ;;  %v2557_v44 = vmul.f32 %v2494_v47, %v2494_v47 }
 0x755   :  { %4147 = vmatmul.mubr.msk.bf16.gmra.mrb[160].mxu0 %vm410_vm1, %v2978_v55 }
 0x756   :  { %4150 = vmatprep.mubr.msk.bf16.mxu0 %vm4470_vm0, %v4469_v0 }
 0x758   :  { %v2499_v32 = vpop.f32.mrb[116].mxu0 }
 0x759   :  { %v4044_v17 = vpop.f32.mrb[117].mxu0  ;;  %v2558_v30 = vmul.f32 %v2499_v32, %v2499_v32 }
 0x75a   :  { %v2502_v53 = vpop.f32.mrb[118].mxu0 }
 0x75b   :  { %v2979_v10 = vpack.c.bf16 %v2502_v53, %v2499_v32  ;;  %v4045_v36 = vpop.f32.mrb[119].mxu0  ;;  %v2559_v34 = vmul.f32 %v2502_v53, %v2502_v53 }
 0x75d   :  { %4151 = vmatmul.mubr.msk.bf16.gmra.mrb[164].mxu0 %vm410_vm1, %v2979_v10 }
 0x75e   :  { %4154 = vmatprep.mubr.msk.bf16.mxu0 %vm4470_vm0, %v4469_v0 }
 0x760   :  { %v2507_v45 = vpop.f32.mrb[120].mxu0 }
 0x761   :  { %v2560_v37 = vmul.f32 %v2507_v45, %v2507_v45  ;;  %v4048_v5 = vpop.f32.mrb[121].mxu0 }
 0x762   :  { %v2510_v6 = vpop.f32.mrb[122].mxu0 }
 0x763   :  { %v2566_v51 = vadd.f32 %v2560_v37, %v2554_v39  ;;  %v2561_v20 = vmul.f32 %v2510_v6, %v2510_v6  ;;  %v2980_v48 = vpack.c.bf16 %v2510_v6, %v2507_v45  ;;  %v4049_v31 = vpop.f32.mrb[123].mxu0 }
 0x765   :  { %v2567_v18 = vadd.f32 %v2561_v20, %v2555_v46  ;;  %4155 = vmatmul.mubr.msk.bf16.gmra.mrb[168].mxu0 %vm410_vm1, %v2980_v48 }
 0x766   :  { %4158 = vmatprep.mubr.msk.bf16.mxu0 %vm4470_vm0, %v4469_v0 }
 0x768   :  { %v2515_v2 = vpop.f32.mrb[124].mxu0 }
 0x769   :  { %v2562_v21 = vmul.f32 %v2515_v2, %v2515_v2  ;;  %v4052_v1 = vpop.f32.mrb[125].mxu0 }
 0x76a   :  { %v2518_v19 = vpop.f32.mrb[126].mxu0 }
 0x76b   :  { %v2568_v56 = vadd.f32 %v2562_v21, %v2556_v28  ;;  %v2563_v15 = vmul.f32 %v2518_v19, %v2518_v19  ;;  %v2981_v24 = vpack.c.bf16 %v2518_v19, %v2515_v2  ;;  %v4053_v13 = vpop.f32.mrb[127].mxu0 }
 0x76d   :  { %v2569_v27 = vadd.f32 %v2563_v15, %v2557_v44  ;;  %4159 = vmatmul.mubr.msk.bf16.gmra.mrb[172].mxu0 %vm410_vm1, %v2981_v24 }
 0x76e   :  { %4162 = vmatprep.mubr.msk.bf16.mxu0 %vm4470_vm0, %v4469_v0 }
 0x770   :  { %v2523_v57 = vpop.f32.mrb[128].mxu0 }
 0x771   :  { %v2564_v29 = vmul.f32 %v2523_v57, %v2523_v57  ;;  %v4056_v8 = vpop.f32.mrb[129].mxu0 }
 0x772   :  { %v2526_v12 = vpop.f32.mrb[130].mxu0 }
 0x773   :  { %v2570_v63 = vadd.f32 %v2564_v29, %v2558_v30  ;;  %v2565_v23 = vmul.f32 %v2526_v12, %v2526_v12  ;;  %v2982_v43 = vpack.c.bf16 %v2526_v12, %v2523_v57  ;;  %v4057_v54 = vpop.f32.mrb[131].mxu0 }
 0x775   :  { %v2571_v50 = vadd.f32 %v2565_v23, %v2559_v34  ;;  %4163 = vmatmul.mubr.msk.bf16.gmra.mrb[176].mxu0 %vm410_vm1, %v2982_v43 }
 0x776   :  { %4166 = vmatprep.mubr.msk.bf16.mxu0 %vm4470_vm0, %v4469_v0 }
 0x778   :  { %v2531_v58 = vpop.f32.mrb[132].mxu0 }
 0x779   :  { %v2572_v4 = vmul.f32 %v2531_v58, %v2531_v58  ;;  %v4060_v7 = vpop.f32.mrb[133].mxu0 }
 0x77a   :  { %v2534_v38 = vpop.f32.mrb[134].mxu0 }
 0x77b   :  { %v2578_v60 = vadd.f32 %v2572_v4, %v2566_v51  ;;  %v2573_v9 = vmul.f32 %v2534_v38, %v2534_v38  ;;  %v2983_v59 = vpack.c.bf16 %v2534_v38, %v2531_v58  ;;  %v4061_v16 = vpop.f32.mrb[135].mxu0 }
 0x77d   :  { %v2584_v61 = vmax.f32 %v2578_v60, 1e-08  ;;  %v2579_v25 = vadd.f32 %v2573_v9, %v2567_v18  ;;  %4167 = vmatmul.mubr.msk.bf16.gmra.mrb[180].mxu0 %vm410_vm1, %v2983_v59 }
 0x77e   :  { %4170 = vmatprep.mubr.msk.bf16.mxu0 %vm4470_vm0, %v4469_v0 }
 0x77f   :  { %4432 = vrsqrt.f32 %v2584_v61  ;;  %v2585_v52 = vmax.f32 %v2579_v25, 1e-08  ;;  %vm2592_vm3 = vcmp.eq.f32.partialorder %v2584_v61, inf  ;;  %v2595_v5 = vand.u32 2147483648, %v2584_v61 }
 0x780   :  { %v2539_v62 = vpop.f32.mrb[136].mxu0  ;;  %vm2594_vm5 = vcmp.eq.f32.partialorder %v2584_v61, 0.0 }
 0x781   :  { %4434 = vrsqrt.f32 %v2585_v52  ;;  %v2574_v22 = vmul.f32 %v2539_v62, %v2539_v62  ;;  %v4064_v3 = vpop.f32.mrb[137].mxu0  ;;  %vm2599_vm4 = vcmp.eq.f32.partialorder %v2585_v52, inf  ;;  %v2602_v51 = vand.u32 2147483648, %v2585_v52 }
 0x782   :  { %v2542_v33 = vpop.f32.mrb[138].mxu0  ;;  %vm2601_vm6 = vcmp.eq.f32.partialorder %v2585_v52, 0.0 }
 0x783   :  { %v2580_v11 = vadd.f32 %v2574_v22, %v2568_v56  ;;  %v2575_v40 = vmul.f32 %v2542_v33, %v2542_v33  ;;  %v2984_v14 = vpack.c.bf16 %v2542_v33, %v2539_v62  ;;  %v4065_v41 = vpop.f32.mrb[139].mxu0 }
 0x784   :  { %v4355_v41 = vld [vmem:[%s3290_s24 + $0x18] sm:$0xff]  }
 0x785   :  { %v2586_v42 = vmax.f32 %v2580_v11, 1e-08  ;;  %v2581_v26 = vadd.f32 %v2575_v40, %v2569_v27  ;;  %4171 = vmatmul.mubr.msk.bf16.gmra.mrb[184].mxu0 %vm410_vm1, %v2984_v14  ;;  %v4352_v11 = vld [vmem:[%s3290_s24] sm:$0xff]   ;;  %v4353_v40 = vld [vmem:[%s3290_s24 + $0x8] sm:$0xff]   ;;  %v4354_v14 = vld [vmem:[%s3290_s24 + $0x10] sm:$0xff]  }
 0x786   :  { %4174 = vmatprep.mubr.msk.bf16.mxu0 %vm4470_vm0, %v4469_v0 }
 0x787   :  { %4436 = vrsqrt.f32 %v2586_v42  ;;  %v2587_v49 = vmax.f32 %v2581_v26, 1e-08  ;;  %vm2606_vm7 = vcmp.eq.f32.partialorder %v2586_v42, inf  ;;  %v2609_v30 = vand.u32 2147483648, %v2586_v42  ;;  %v4357_v26 = vld [vmem:[%s3290_s24 + $0x28] sm:$0xff]  }
 0x788   :  { %v2547_v47 = vpop.f32.mrb[140].mxu0  ;;  %vm2608_vm9 = vcmp.eq.f32.partialorder %v2586_v42, 0.0 }
 0x789   :  { %v4433_v55 = vpop.eup %4432  ;;  %4438 = vrsqrt.f32 %v2587_v49  ;;  %v2576_v35 = vmul.f32 %v2547_v47, %v2547_v47  ;;  %v4068_v32 = vpop.f32.mrb[141].mxu0  ;;  %vm2613_vm8 = vcmp.eq.f32.partialorder %v2587_v49, inf  ;;  %v2616_v29 = vand.u32 2147483648, %v2587_v49 }
 0x78a   :  { %v2591_v17 = vmul.f32 %v4433_v55, %v2584_v61  ;;  %v2550_v53 = vpop.f32.mrb[142].mxu0  ;;  %vm2615_vm10 = vcmp.eq.f32.partialorder %v2587_v49, 0.0 }
 0x78b   :  { %v4435_v10 = vpop.eup %4434  ;;  %v2582_v36 = vadd.f32 %v2576_v35, %v2570_v63  ;;  %v2577_v45 = vmul.f32 %v2550_v53, %v2550_v53  ;;  %v2985_v39 = vpack.c.bf16 %v2550_v53, %v2547_v47  ;;  %v4069_v37 = vpop.f32.mrb[143].mxu0  ;;  %v4359_v47 = vld [vmem:[%s3290_s24 + $0x38] sm:$0xff]  }
 0x78c   :  { %v2598_v6 = vmul.f32 %v4435_v10, %v2585_v52  ;;  %v2593_v46 = vsel %vm2592_vm3, %v2584_v61, %v2591_v17 }
 0x78d   :  { %v2588_v20 = vmax.f32 %v2582_v36, 1e-08  ;;  %v2583_v48 = vadd.f32 %v2577_v45, %v2571_v50  ;;  %4175 = vmatmul.mubr.msk.bf16.gmra.mrb[188].mxu0 %vm410_vm1, %v2985_v39  ;;  %v2596_v2 = vsel %vm2594_vm5, %v2595_v5, %v2593_v46 }
 0x78e   :  { %v2600_v31 = vsel %vm2599_vm4, %v2585_v52, %v2598_v6 }
 0x78f   :  { %4440 = vrsqrt.f32 %v2588_v20  ;;  %v2589_v18 = vmax.f32 %v2583_v48, 1e-08  ;;  %v2603_v28 = vsel %vm2601_vm6, %v2602_v51, %v2600_v31  ;;  %vm2620_vm11 = vcmp.eq.f32.partialorder %v2588_v20, inf }
 0x790   :  { %v5389_v21 = vpop.f32.mrb[144].mxu0  ;;  %v2635_v1 = vpack.c.bf16 %v2603_v28, %v2596_v2  ;;  %v2623_v9 = vand.u32 2147483648, %v2588_v20  ;;  %vm2622_vm13 = vcmp.eq.f32.partialorder %v2588_v20, 0.0 }
 0x791   :  { %v4437_v19 = vpop.eup %4436  ;;  %4442 = vrsqrt.f32 %v2589_v18  ;;  %v4102_v44 = vpop.f32.mrb[145].mxu0  ;;  %vm2627_vm12 = vcmp.eq.f32.partialorder %v2589_v18, inf  ;;  %v2630_v59 = vand.u32 2147483648, %v2589_v18  ;;  %vm2629_vm14 = vcmp.eq.f32.partialorder %v2589_v18, 0.0 }
 0x792   :  { %4073 = vmatmul.mubr.msk.bf16.vlgmr.msra.gmra.mrb[168].mxu1 %vm410_vm1, %v2635_v1  ;;  %v5392_v56 = vpop.f32.mrb[146].mxu0  ;;  %v2605_v15 = vmul.f32 %v4437_v19, %v2586_v42 }
 0x793   :  { %v4439_v24 = vpop.eup %4438  ;;  %v4103_v13 = vpop.f32.mrb[147].mxu0  ;;  %4076 = vmatprep.mubr.msk.bf16.mxu1 %vm4470_vm0, %v4469_v0  ;;  %4113 = vmatpush3.bf16.msra.mxu1 %v4352_v11 }
 0x794   :  { %v2607_v27 = vsel %vm2606_vm7, %v2586_v42, %v2605_v15  ;;  %v2612_v57 = vmul.f32 %v4439_v24, %v2587_v49  ;;  %4114 = vmatprep.subr.bf16.mxu1 %v4469_v0  ;;  %v4356_v42 = vld [vmem:[%s3290_s24 + $0x20] sm:$0xff]  }
 0x795   :  { %v2610_v12 = vsel %vm2608_vm9, %v2609_v30, %v2607_v27 }
 0x796   :  { %v2614_v8 = vsel %vm2613_vm8, %v2587_v49, %v2612_v57  ;;  %v4358_v49 = vld [vmem:[%s3290_s24 + $0x30] sm:$0xff]  }
 0x797   :  { %v2617_v34 = vsel %vm2615_vm10, %v2616_v29, %v2614_v8  ;;  %4115 = vmatpush3.bf16.msra.mxu1 %v4353_v40 }
 0x798   :  { %v5396_v63 = vpop.f32.mrb[148].mxu0  ;;  %v2636_v23 = vpack.c.bf16 %v2617_v34, %v2610_v12  ;;  %4116 = vmatprep.subr.bf16.mxu1 %v4469_v0 }
 0x799   :  { %v4441_v43 = vpop.eup %4440  ;;  %v4106_v54 = vpop.f32.mrb[149].mxu0 }
 0x79a   :  { %4077 = vmatmul.mubr.msk.bf16.gmra.mrb[172].mxu1 %vm410_vm1, %v2636_v23  ;;  %v5399_v50 = vpop.f32.mrb[150].mxu0  ;;  %v2619_v58 = vmul.f32 %v4441_v43, %v2588_v20 }
 0x79b   :  { %v4443_v4 = vpop.eup %4442  ;;  %v4107_v7 = vpop.f32.mrb[151].mxu0  ;;  %4080 = vmatprep.mubr.msk.bf16.mxu1 %vm4470_vm0, %v4469_v0  ;;  %4117 = vmatpush3.bf16.msra.mxu1 %v4354_v14 }
 0x79c   :  { %v2621_v38 = vsel %vm2620_vm11, %v2588_v20, %v2619_v58  ;;  %v2626_v60 = vmul.f32 %v4443_v4, %v2589_v18  ;;  %4118 = vmatprep.subr.bf16.mxu1 %v4469_v0  ;;  %v3456_v58 = vld [vmem:[%s3288_s28] ss:$0 sm:$0xff] }
 0x79d   :  { %v2624_v61 = vsel %vm2622_vm13, %v2623_v9, %v2621_v38 }
 0x79e   :  { %v2628_v16 = vsel %vm2627_vm12, %v2589_v18, %v2626_v60 }
 0x79f   :  { %v2631_v25 = vsel %vm2629_vm14, %v2630_v59, %v2628_v16  ;;  %4119 = vmatpush3.bf16.msra.mxu1 %v4355_v41 }
 0x7a0   :  { %v5403_v52 = vpop.f32.mrb[152].mxu0  ;;  %v2637_v62 = vpack.c.bf16 %v2631_v25, %v2624_v61  ;;  %4120 = vmatprep.subr.bf16.mxu1 %v4469_v0 }
 0x7a1   :  { %v4110_v22 = vpop.f32.mrb[153].mxu0 }
 0x7a2   :  { %4081 = vmatmul.mubr.msk.bf16.gmra.mrb[176].mxu1 %vm410_vm1, %v2637_v62  ;;  %v5406_v3 = vpop.f32.mrb[154].mxu0 }
 0x7a3   :  { %v4111_v33 = vpop.f32.mrb[155].mxu0  ;;  %4128 = vmatprep.mubr.msk.bf16.mxu1 %vm4470_vm0, %v4469_v0  ;;  %4121 = vmatpush3.bf16.msra.mxu1 %v4356_v42 }
 0x7a4   :  { %4122 = vmatprep.subr.bf16.mxu1 %v4469_v0 }
 0x7a7   :  { %4123 = vmatpush3.bf16.msra.mxu1 %v4357_v26 }
 0x7a8   :  { %4124 = vmatprep.subr.bf16.mxu1 %v4469_v0 }
 0x7ab   :  { %4125 = vmatpush3.bf16.msra.mxu1 %v4358_v49 }
 0x7ac   :  { %4126 = vmatprep.subr.bf16.mxu1 %v4469_v0 }
 0x7af   :  { %4127 = vmatpush3.bf16.msra.mxu1 %v4359_v47 }
 0x820   :  { %v5420_v55 = vpop.f32.mrb[156].mxu0 }
 0x821   :  { %v4144_v35 = vpop.f32.mrb[157].mxu0 }
 0x822   :  { %v5422_v32 = vpop.f32.mrb[158].mxu0 }
 0x823   :  { %v4145_v17 = vpop.f32.mrb[159].mxu0 }
 0x828   :  { %v5424_v53 = vpop.f32.mrb[160].mxu0 }
 0x829   :  { %v4148_v10 = vpop.f32.mrb[161].mxu0 }
 0x82a   :  { %v5426_v36 = vpop.f32.mrb[162].mxu0 }
 0x82b   :  { %v4149_v45 = vpop.f32.mrb[163].mxu0 }
 0x830   :  { %v5428_v39 = vpop.f32.mrb[164].mxu0 }
 0x831   :  { %v4152_v37 = vpop.f32.mrb[165].mxu0 }
 0x832   :  { %v5430_v5 = vpop.f32.mrb[166].mxu0 }
 0x833   :  { %v4153_v6 = vpop.f32.mrb[167].mxu0 }
 0x838   :  { %v5432_v46 = vpop.f32.mrb[168].mxu0 }
 0x839   :  { %v4156_v51 = vpop.f32.mrb[169].mxu0 }
 0x83a   :  { %v5434_v20 = vpop.f32.mrb[170].mxu0 }
 0x83b   :  { %v4157_v48 = vpop.f32.mrb[171].mxu0 }
 0x840   :  { %v5436_v31 = vpop.f32.mrb[172].mxu0 }
 0x841   :  { %v4160_v18 = vpop.f32.mrb[173].mxu0 }
 0x842   :  { %v5438_v2 = vpop.f32.mrb[174].mxu0 }
 0x843   :  { %v4161_v28 = vpop.f32.mrb[175].mxu0 }
 0x848   :  { %v5440_v1 = vpop.f32.mrb[176].mxu0 }
 0x849   :  { %v4164_v19 = vpop.f32.mrb[177].mxu0 }
 0x84a   :  { %v5442_v44 = vpop.f32.mrb[178].mxu0 }
 0x84b   :  { %v4165_v15 = vpop.f32.mrb[179].mxu0 }
 0x850   :  { %v5444_v24 = vpop.f32.mrb[180].mxu0 }
 0x851   :  { %v4168_v13 = vpop.f32.mrb[181].mxu0 }
 0x852   :  { %v5446_v27 = vpop.f32.mrb[182].mxu0 }
 0x853   :  { %v4169_v57 = vpop.f32.mrb[183].mxu0 }
 0x858   :  { %v5448_v30 = vpop.f32.mrb[184].mxu0 }
 0x859   :  { %v4172_v29 = vpop.f32.mrb[185].mxu0 }
 0x85a   :  { %v5450_v8 = vpop.f32.mrb[186].mxu0 }
 0x85b   :  { %v4173_v12 = vpop.f32.mrb[187].mxu0 }
 0x860   :  { %v5455_v34 = vpop.f32.mrb[188].mxu0 }
 0x861   :  { %v4176_v23 = vpop.f32.mrb[189].mxu0 }
 0x862   :  { %v5457_v43 = vpop.f32.mrb[190].mxu0 }
 0x863   :  { %v4177_v54 = vpop.f32.mrb[191].mxu0 }
 0x865   :  { %v2687_v4 = vpop.f32.mrb[168].mxu1 }
 0x866   :  { %v2793_v7 = vadd.f32 %v5389_v21, %v2687_v4  ;;  %v4074_v38 = vpop.f32.mrb[169].mxu1 }
 0x867   :  { %v2690_v60 = vpop.f32.mrb[170].mxu1 }
 0x868   :  { %v2821_v9 = vadd.f32 %v3456_v58, %v2793_v7  ;;  %v2796_v59 = vadd.f32 %v5392_v56, %v2690_v60  ;;  %v4075_v16 = vpop.f32.mrb[171].mxu1 }
 0x86a   :  { %3247 = vst [vmem:[%s5462_s2] sm:$0xff] %v2821_v9  ;;  %v2822_v61 = vadd.f32 %v3456_v58, %v2796_v59 }
 0x86c   :  { %v2827_v25 = vpack.c.bf16 %v2822_v61, %v2821_v9  ;;  %3250 = vst [vmem:[%s5462_s2 + $0x10] sm:$0xff] %v2822_v61 }
 0x86d   :  { %v2695_v62 = vpop.f32.mrb[172].mxu1 }
 0x86e   :  { %v2801_v22 = vadd.f32 %v5396_v63, %v2695_v62  ;;  %v4078_v33 = vpop.f32.mrb[173].mxu1  ;;  %4129 = vmatmul.mubr.bf16.vlgmr.msra.gmra.mrb[180].mxu1 %v2827_v25 }
 0x86f   :  { %v2698_v11 = vpop.f32.mrb[174].mxu1  ;;  %4132 = vmatprep.mubr.msk.bf16.mxu1 %vm4470_vm0, %v4469_v0 }
 0x870   :  { %v2823_v21 = vadd.f32 %v3456_v58, %v2801_v22  ;;  %v2804_v40 = vadd.f32 %v5399_v50, %v2698_v11  ;;  %v4079_v56 = vpop.f32.mrb[175].mxu1 }
 0x872   :  { %3252 = vst [vmem:[%s5462_s2 + $0x20] sm:$0xff] %v2823_v21  ;;  %v2824_v14 = vadd.f32 %v3456_v58, %v2804_v40 }
 0x874   :  { %3254 = vst [vmem:[%s5462_s2 + $0x30] sm:$0xff] %v2824_v14  ;;  %v2828_v41 = vpack.c.bf16 %v2824_v14, %v2823_v21 }
 0x875   :  { %v2703_v42 = vpop.f32.mrb[176].mxu1 }
 0x876   :  { %v2809_v26 = vadd.f32 %v5403_v52, %v2703_v42  ;;  %v4082_v63 = vpop.f32.mrb[177].mxu1  ;;  %4133 = vmatmul.mubr.bf16.gmra.mrb[184].mxu1 %v2828_v41  ;;  %v3457_v52 = vld [vmem:[%s3291_s8] ss:$0 sm:$0xff] }
 0x877   :  { %v2706_v49 = vpop.f32.mrb[178].mxu1  ;;  %4136 = vmatprep.mubr.msk.bf16.mxu1 %vm4470_vm0, %v4469_v0  ;;  %vm3248_vm0 = vcmask 392192  }
 0x878   :  { %v2825_v47 = vadd.f32 %v3456_v58, %v2809_v26  ;;  %v2812_v35 = vadd.f32 %v5406_v3, %v2706_v49  ;;  %v4083_v17 = vpop.f32.mrb[179].mxu1 }
 0x87a   :  { %3256 = vst [vmem:[%s5462_s2 + $0x40] sm:$0xff] %v2825_v47  ;;  %v2826_v50 = vadd.f32 %v3456_v58, %v2812_v35 }
 0x87c   :  { %3258 = vst [vmem:[%s5462_s2 + $0x50] sm:$0xff] %v2826_v50  ;;  %v2829_v10 = vpack.c.bf16 %v2826_v50, %v2825_v47 }
 0x87e   :  { %4137 = vmatmul.mubr.bf16.gmra.mrb[188].mxu1 %v2829_v10 }
 0x941   :  { %v2918_v45 = vpop.f32.mrb[180].mxu1 }
 0x942   :  { %v2919_v37 = vadd.f32 %v3457_v52, %v2918_v45  ;;  %v4130_v6 = vpop.f32.mrb[181].mxu1 }
 0x943   :  { %v2921_v51 = vpop.f32.mrb[182].mxu1 }
 0x944   :  { %v3466_v0 = vmul.f32 -1.442695, %v2919_v37  ;;  %v2922_v48 = vadd.f32 %v3457_v52, %v2921_v51  ;;  %v4131_v18 = vpop.f32.mrb[183].mxu1 }
 0x946   :  { %4444 = vpow2.f32 %v3466_v0  ;;  %v3467_v3 = vmul.f32 -1.442695, %v2922_v48 }
 0x948   :  { %4446 = vpow2.f32 %v3467_v3 }
 0x949   :  { %v2926_v28 = vpop.f32.mrb[184].mxu1 }
 0x94a   :  { %v2927_v19 = vadd.f32 %v3457_v52, %v2926_v28  ;;  %v4134_v15 = vpop.f32.mrb[185].mxu1 }
 0x94b   :  { %v2929_v13 = vpop.f32.mrb[186].mxu1 }
 0x94c   :  { %v3468_v57 = vmul.f32 -1.442695, %v2927_v19  ;;  %v2930_v29 = vadd.f32 %v3457_v52, %v2929_v13  ;;  %v4135_v12 = vpop.f32.mrb[187].mxu1 }
 0x94e   :  { %4448 = vpow2.f32 %v3468_v57  ;;  %v3469_v23 = vmul.f32 -1.442695, %v2930_v29 }
 0x950   :  { %v4445_v54 = vpop.eup %4444  ;;  %4450 = vpow2.f32 %v3469_v23 }
 0x951   :  { %v2959_v58 = vadd.f32 1.0, %v4445_v54  ;;  %v2934_v4 = vpop.f32.mrb[188].mxu1 }
 0x952   :  { %v4447_v7 = vpop.eup %4446  ;;  %v2935_v38 = vadd.f32 %v3457_v52, %v2934_v4  ;;  %v4138_v60 = vpop.f32.mrb[189].mxu1 }
 0x953   :  { %4452 = vrcp.f32 %v2959_v58  ;;  %v2960_v9 = vadd.f32 1.0, %v4447_v7  ;;  %v2937_v59 = vpop.f32.mrb[190].mxu1 }
 0x954   :  { %v3470_v16 = vmul.f32 -1.442695, %v2935_v38  ;;  %v2938_v61 = vadd.f32 %v3457_v52, %v2937_v59  ;;  %v4139_v25 = vpop.f32.mrb[191].mxu1 }
 0x955   :  { %4454 = vrcp.f32 %v2960_v9 }
 0x956   :  { %4456 = vpow2.f32 %v3470_v16  ;;  %v3471_v62 = vmul.f32 -1.442695, %v2938_v61 }
 0x958   :  { %v4449_v22 = vpop.eup %4448  ;;  %4458 = vpow2.f32 %v3471_v62 }
 0x959   :  { %v2961_v33 = vadd.f32 1.0, %v4449_v22 }
 0x95a   :  { %v4451_v11 = vpop.eup %4450 }
 0x95b   :  { %4460 = vrcp.f32 %v2961_v33  ;;  %v2962_v21 = vadd.f32 1.0, %v4451_v11 }
 0x95d   :  { %v4453_v40 = vpop.eup %4452  ;;  %4462 = vrcp.f32 %v2962_v21 }
 0x95e   :  { %v3130_v56 = vmul.f32 %v4453_v40, %v5432_v46  ;;  %v3136_v14 = vmul.f32 %v4453_v40, %v5444_v24  ;;  %v3124_v41 = vmul.f32 %v4453_v40, %v5420_v55 }
 0x95f   :  { %v4455_v42 = vpop.eup %4454 }
 0x960   :  { %v4457_v26 = vpop.eup %4456  ;;  %3181 = vrot.lane.b32.xlu0 %v3130_v56, %s4489_s7  ;;  %v3131_v63 = vmul.f32 %v4455_v42, %v5434_v20  ;;  %v3137_v49 = vmul.f32 %v4455_v42, %v5446_v27  ;;  %v3125_v47 = vmul.f32 %v4455_v42, %v5422_v32 }
 0x961   :  { %v2963_v35 = vadd.f32 1.0, %v4457_v26 }
 0x962   :  { %v4459_v17 = vpop.eup %4458  ;;  %3183 = vrot.lane.b32.xlu1 %v3131_v63, %s4489_s7 }
 0x963   :  { %4464 = vrcp.f32 %v2963_v35  ;;  %v2964_v46 = vadd.f32 1.0, %v4459_v17 }
 0x964   :  { %3205 = vrot.lane.b32.xlu0 %v3136_v14, %s4504_s0 }
 0x965   :  { %v4461_v24 = vpop.eup %4460  ;;  %4466 = vrcp.f32 %v2964_v46 }
 0x966   :  { %3207 = vrot.lane.b32.xlu1 %v3137_v49, %s4504_s0  ;;  %v3132_v55 = vmul.f32 %v4461_v24, %v5436_v31  ;;  %v3138_v50 = vmul.f32 %v4461_v24, %v5448_v30  ;;  %v3126_v20 = vmul.f32 %v4461_v24, %v5424_v53 }
 0x967   :  { %v4463_v27 = vpop.eup %4462 }
 0x968   :  { %3185 = vrot.lane.b32.xlu0 %v3132_v55, %s4489_s7  ;;  %v3133_v32 = vmul.f32 %v4463_v27, %v5438_v2  ;;  %v3139_v10 = vmul.f32 %v4463_v27, %v5450_v8  ;;  %v3127_v52 = vmul.f32 %v4463_v27, %v5426_v36 }
 0x96a   :  { %3187 = vrot.lane.b32.xlu1 %v3133_v32, %s4489_s7 }
 0x96c   :  { %3209 = vrot.lane.b32.xlu0 %v3138_v50, %s4504_s0 }
 0x96d   :  { %v4465_v45 = vpop.eup %4464 }
 0x96e   :  { %3211 = vrot.lane.b32.xlu1 %v3139_v10, %s4504_s0  ;;  %v3134_v31 = vmul.f32 %v4465_v45, %v5440_v1  ;;  %v3140_v30 = vmul.f32 %v4465_v45, %v5455_v34  ;;  %v3128_v53 = vmul.f32 %v4465_v45, %v5428_v39 }
 0x96f   :  { %v4467_v37 = vpop.eup %4466 }
 0x970   :  { %3189 = vrot.lane.b32.xlu0 %v3134_v31, %s4489_s7  ;;  %v3135_v2 = vmul.f32 %v4467_v37, %v5442_v44  ;;  %v3141_v36 = vmul.f32 %v4467_v37, %v5457_v43  ;;  %v3129_v8 = vmul.f32 %v4467_v37, %v5430_v5 }
 0x972   :  { %3191 = vrot.lane.b32.xlu1 %v3135_v2, %s4489_s7 }
 0x974   :  { %3213 = vrot.lane.b32.xlu0 %v3140_v30, %s4504_s0 }
 0x976   :  { %3215 = vrot.lane.b32.xlu1 %v3141_v36, %s4504_s0 }
 0x9d2   :  { %v3182_v1 = vpop.permute.xlu0 %3181 }
 0x9d3   :  { %v3223_v39 = vsel %vm410_vm1, %v3124_v41, %v3182_v1 }
 0x9d4   :  { %v3184_v6 = vpop.permute.xlu1 %3183 }
 0x9d5   :  { %v3224_v44 = vsel %vm410_vm1, %v3125_v47, %v3184_v6 }
 0x9d6   :  { %v3206_v34 = vpop.permute.xlu0 %3205 }
 0x9d7   :  { %v3229_v51 = vsel %vm917_vm2, %v3223_v39, %v3206_v34 }
 0x9d8   :  { %3249 = vst.msk [vmem:[%s5462_s2 + $0x8] sm:$0xff] %vm3248_vm0, %v3229_v51  ;;  %v3208_v43 = vpop.permute.xlu1 %3207 }
 0x9d9   :  { %v3230_v5 = vsel %vm917_vm2, %v3224_v44, %v3208_v43 }
 0x9da   :  { %3251 = vst.msk [vmem:[%s5462_s2 + $0x18] sm:$0xff] %vm3248_vm0, %v3230_v5  ;;  %v3186_v0 = vpop.permute.xlu0 %3185 }
 0x9db   :  { %v3225_v18 = vsel %vm410_vm1, %v3126_v20, %v3186_v0 }
 0x9dc   :  { %v3188_v48 = vpop.permute.xlu1 %3187 }
 0x9dd   :  { %v3226_v19 = vsel %vm410_vm1, %v3127_v52, %v3188_v48 }
 0x9de   :  { %v3210_v3 = vpop.permute.xlu0 %3209 }
 0x9df   :  { %v3231_v28 = vsel %vm917_vm2, %v3225_v18, %v3210_v3 }
 0x9e0   :  { %3253 = vst.msk [vmem:[%s5462_s2 + $0x28] sm:$0xff] %vm3248_vm0, %v3231_v28  ;;  %v3212_v15 = vpop.permute.xlu1 %3211 }
 0x9e1   :  { %v3232_v13 = vsel %vm917_vm2, %v3226_v19, %v3212_v15 }
 0x9e2   :  { %3255 = vst.msk [vmem:[%s5462_s2 + $0x38] sm:$0xff] %vm3248_vm0, %v3232_v13  ;;  %v3190_v57 = vpop.permute.xlu0 %3189 }
 0x9e3   :  { %v3227_v12 = vsel %vm410_vm1, %v3128_v53, %v3190_v57 }
 0x9e4   :  { %v3192_v29 = vpop.permute.xlu1 %3191 }
 0x9e5   :  { %v3228_v58 = vsel %vm410_vm1, %v3129_v8, %v3192_v29 }
 0x9e6   :  { %v3214_v23 = vpop.permute.xlu0 %3213 }
 0x9e7   :  { %v3233_v54 = vsel %vm917_vm2, %v3227_v12, %v3214_v23 }
 0x9e8   :  { %3257 = vst.msk [vmem:[%s5462_s2 + $0x48] sm:$0xff] %vm3248_vm0, %v3233_v54  ;;  %v3216_v4 = vpop.permute.xlu1 %3215 }
 0x9e9   :  { %v3234_v7 = vsel %vm917_vm2, %v3228_v58, %v3216_v4 }
 0x9ea   :  { %3259 = vst.msk [vmem:[%s5462_s2 + $0x58] sm:$0xff] %vm3248_vm0, %v3234_v7 }

</bundles_post_ra>
